<compile_context>
chip_gen: v5e
topology: v5e:2x2
jax: 0.10.0
libtpu: 0.0.40
codegen_flags: <defaults>
</compile_context>

<pallas_src>
import functools

import jax
import jax.numpy as jnp
from jax.experimental import pallas as pl
from jax.experimental.pallas import tpu as pltpu

EPS = 1e-5


def _bn_fold(y, gamma, beta, inv_m):
    """Training-mode BatchNorm via single-pass stats folded to scale/shift."""
    s1 = jnp.sum(y, axis=0, keepdims=True)
    s2 = jnp.sum(y * y, axis=0, keepdims=True)
    mean = s1 * inv_m
    var = s2 * inv_m - mean * mean            # biased variance (BN train mode)
    scale = gamma * jax.lax.rsqrt(var + EPS)
    shift = beta - mean * scale
    return y * scale + shift


def _make_fused_kernel(N, H, W):
    M = N * H * W
    inv_m = 1.0 / M

    def kernel(x_ref, w1_ref, w2_ref, w3_ref,
               g1_ref, b1_ref, g2_ref, b2_ref, g3_ref, b3_ref,
               o_ref, xp_ref, patch_ref):
        C = w1_ref.shape[1]          # group width (conv1 out / conv2 channels)
        mm_dtype = w1_ref.dtype      # MXU operand dtype (f32 or bf16)

        x = x_ref[...]               # (M, Cin) f32; read once, reused as residual

        # -------- stage 1: 1x1 conv -> BN -> ReLU -------------------------
        y1 = jnp.dot(x.astype(mm_dtype), w1_ref[...],
                     preferred_element_type=jnp.float32)
        y1 = jnp.maximum(_bn_fold(y1, g1_ref[...], b1_ref[...], inv_m), 0.0)

        # -------- stage 2: grouped 3x3 conv (pad=1) -> BN -> ReLU ---------
        # Zero-padding fused in-kernel: zero the halo scratch, write interior.
        xp_ref[...] = jnp.zeros_like(xp_ref)
        xp_ref[:, 1:H + 1, 1:W + 1, :] = y1.reshape(N, H, W, C)
        # im2col: pack the 9 shifted taps into one (M, 9*C) slab so conv2 is a
        # single wide-K matmul instead of 9 narrow K=C matmuls + 8 adds.
        for t in range(9):           # static unroll
            ky, kx = t // 3, t % 3
            patch_ref[:, t * C:(t + 1) * C] = (
                xp_ref[:, ky:ky + H, kx:kx + W, :].reshape(M, C))
        y2 = jnp.dot(patch_ref[...].astype(mm_dtype), w2_ref[...],
                     preferred_element_type=jnp.float32)
        y2 = jnp.maximum(_bn_fold(y2, g2_ref[...], b2_ref[...], inv_m), 0.0)

        # -------- stage 3: 1x1 conv -> BN -> residual add -> ReLU ---------
        y3 = jnp.dot(y2.astype(mm_dtype), w3_ref[...],
                     preferred_element_type=jnp.float32)
        y3 = _bn_fold(y3, g3_ref[...], b3_ref[...], inv_m)
        o_ref[...] = jnp.maximum(y3 + x, 0.0)

    return kernel


def resnext_bottleneck_forward_nhwc(x_nhwc, params, *, matmul_dtype=jnp.float32):
    """Fused ResNeXt bottleneck, NHWC in / NHWC out (stride=1, no downsample)."""
    N, H, W, Cin = x_nhwc.shape
    M = N * H * W
    gw = params["w1"].shape[1]
    Cout = params["w3"].shape[1]

    x2d = x_nhwc.reshape(M, Cin)
    w1 = params["w1"].astype(matmul_dtype)
    w2 = params["w2_im2col"].astype(matmul_dtype)
    w3 = params["w3"].astype(matmul_dtype)

    vmem = pl.BlockSpec(memory_space=pltpu.MemorySpace.VMEM)
    out2d = pl.pallas_call(
        _make_fused_kernel(N, H, W),
        out_shape=jax.ShapeDtypeStruct((M, Cout), jnp.float32),
        in_specs=[vmem] * 10,
        out_specs=vmem,
        scratch_shapes=[
            pltpu.VMEM((N, H + 2, W + 2, gw), jnp.float32),   # padded out1 (halo)
            pltpu.VMEM((M, 9 * gw), jnp.float32),             # im2col patch slab
        ],
    )(x2d, w1, w2, w3,
      params["g1"], params["b1"], params["g2"], params["b2"],
      params["g3"], params["b3"])
    return out2d.reshape(N, H, W, Cout)


@functools.partial(jax.jit, static_argnames=("matmul_dtype",))
def resnext_bottleneck_forward(x_nchw, params, *, matmul_dtype=jnp.float32):
    """NCHW public wrapper matching the PyTorch module interface."""
    x_nhwc = jnp.transpose(x_nchw, (0, 2, 3, 1))              # NCHW -> NHWC (once)
    out = resnext_bottleneck_forward_nhwc(x_nhwc, params, matmul_dtype=matmul_dtype)
    return jnp.transpose(out, (0, 3, 1, 2))                   # NHWC -> NCHW


# ---------------------------------------------------------------------------
# Deterministic parameter construction (PyTorch conv-weight layouts folded to
# the matmul layouts the fused kernel expects).
# ---------------------------------------------------------------------------
def make_params(key, inplanes, cardinality, bottleneck_width, expansion=2):
    gw = cardinality * bottleneck_width
    cout = gw * expansion
    cpg = gw // cardinality  # channels per group (in == out per group here)

    ks = jax.random.split(key, 9)
    # conv1: torch (gw, inplanes, 1, 1) -> (inplanes, gw)
    w1_t = jax.random.normal(ks[0], (gw, inplanes), jnp.float32) * 0.05
    w1 = w1_t.T
    # conv2 grouped: torch (gw, cpg, 3, 3) -> stacked block-diagonal tap mats
    w2_t = jax.random.normal(ks[1], (gw, cpg, 3, 3), jnp.float32) * 0.05
    taps = []
    for t in range(9):
        ky, kx = t // 3, t % 3
        blocks = [w2_t[g * cpg:(g + 1) * cpg, :, ky, kx].T for g in range(cardinality)]
        taps.append(jax.scipy.linalg.block_diag(*blocks))
    w2_im2col = jnp.stack(taps, axis=0).reshape(9 * gw, gw)   # rows: [tap, cin]
    # conv3: torch (cout, gw, 1, 1) -> (gw, cout)
    w3_t = jax.random.normal(ks[2], (cout, gw), jnp.float32) * 0.05
    w3 = w3_t.T

    g1 = 1.0 + 0.1 * jax.random.normal(ks[3], (1, gw), jnp.float32)
    b1 = 0.1 * jax.random.normal(ks[4], (1, gw), jnp.float32)
    g2 = 1.0 + 0.1 * jax.random.normal(ks[5], (1, gw), jnp.float32)
    b2 = 0.1 * jax.random.normal(ks[6], (1, gw), jnp.float32)
    g3 = 1.0 + 0.1 * jax.random.normal(ks[7], (1, cout), jnp.float32)
    b3 = 0.1 * jax.random.normal(ks[8], (1, cout), jnp.float32)

    return dict(w1=w1, w2_im2col=w2_im2col, w2_t=w2_t, w3=w3,
                g1=g1, b1=b1, g2=g2, b2=b2, g3=g3, b3=b3)


# ---------------------------------------------------------------------------
# Pure-JAX reference (lax convs, f32) for a correctness check.
# ---------------------------------------------------------------------------
def _bn_train(x_nchw, gamma, beta):
    mean = jnp.mean(x_nchw, axis=(0, 2, 3), keepdims=True)
    var = jnp.mean((x_nchw - mean) ** 2, axis=(0, 2, 3), keepdims=True)
    g = gamma.reshape(1, -1, 1, 1)
    b = beta.reshape(1, -1, 1, 1)
    return (x_nchw - mean) * jax.lax.rsqrt(var + EPS) * g + b


def reference_forward(x_nchw, params, cardinality):
    dn = jax.lax.conv_dimension_numbers(x_nchw.shape, (1, 1, 1, 1),
                                        ("NCHW", "OIHW", "NCHW"))
    gw = params["w1"].shape[1]
    w1_oihw = params["w1"].T.reshape(gw, -1, 1, 1)
    o = jax.lax.conv_general_dilated(x_nchw, w1_oihw, (1, 1), "VALID",
                                     dimension_numbers=dn)
    o = jax.nn.relu(_bn_train(o, params["g1"], params["b1"]))
    o = jax.lax.conv_general_dilated(o, params["w2_t"], (1, 1), ((1, 1), (1, 1)),
                                     dimension_numbers=dn,
                                     feature_group_count=cardinality)
    o = jax.nn.relu(_bn_train(o, params["g2"], params["b2"]))
    cout = params["w3"].shape[1]
    w3_oihw = params["w3"].T.reshape(cout, gw, 1, 1)
    o = jax.lax.conv_general_dilated(o, w3_oihw, (1, 1), "VALID",
                                     dimension_numbers=dn)
    o = _bn_train(o, params["g3"], params["b3"])
    return jax.nn.relu(o + x_nchw)


if __name__ == "__main__":
    # Small ResNeXt config: cardinality=4, bottleneck_width=8 -> group_width=32,
    # expansion=2 -> out channels 64 == inplanes (stride=1, downsample=None).
    N, H, W = 2, 16, 16
    cardinality, bottleneck_width = 4, 8
    inplanes = cardinality * bottleneck_width * 2   # 64; matches identity residual

    key = jax.random.PRNGKey(0)
    kx, kp = jax.random.split(key)
    x = jax.random.normal(kx, (N, inplanes, H, W), jnp.float32)
    params = make_params(kp, inplanes, cardinality, bottleneck_width)

    ref = jax.block_until_ready(reference_forward(x, params, cardinality))

    # f32 MXU operands: tightly matches the PyTorch (f32) module semantics.
    out = jax.block_until_ready(resnext_bottleneck_forward(x, params))
    assert out.shape == (N, inplanes, H, W)
    assert jnp.allclose(out, ref, rtol=1e-3, atol=1e-3), (
        f"f32 path max abs err = {jnp.max(jnp.abs(out - ref))}")

    # bf16 MXU operands (bf16-native MXUs on v5e/v6e/v7x) with f32 accumulation
    # and f32 BN/elementwise math; generous tolerance vs the f32 reference.
    out_bf16 = jax.block_until_ready(
        resnext_bottleneck_forward(x, params, matmul_dtype=jnp.bfloat16))
    assert jnp.allclose(out_bf16, ref, rtol=1e-1, atol=1.5e-1), (
        f"bf16 path max abs err = {jnp.max(jnp.abs(out_bf16 - ref))}")

    print("KERNEL_OK")
</pallas_src>

<mosaic_0001>
module attributes {stable_mosaic.version = 11 : i64} {
  func.func @kernel(%arg0: memref<512x64xf32, #tpu.memory_space<vmem>>, %arg1: memref<64x32xf32, #tpu.memory_space<vmem>>, %arg2: memref<288x32xf32, #tpu.memory_space<vmem>>, %arg3: memref<32x64xf32, #tpu.memory_space<vmem>>, %arg4: memref<1x32xf32, #tpu.memory_space<vmem>>, %arg5: memref<1x32xf32, #tpu.memory_space<vmem>>, %arg6: memref<1x32xf32, #tpu.memory_space<vmem>>, %arg7: memref<1x32xf32, #tpu.memory_space<vmem>>, %arg8: memref<1x64xf32, #tpu.memory_space<vmem>>, %arg9: memref<1x64xf32, #tpu.memory_space<vmem>>, %arg10: memref<512x64xf32, #tpu.memory_space<vmem>>, %arg11: memref<2x18x18x32xf32, #tpu.memory_space<vmem>>, %arg12: memref<512x288xf32, #tpu.memory_space<vmem>>) attributes {dimension_semantics = [], scalar_prefetch = 0 : i64, scratch_operands = 2 : i64, tpu.core_type = #tpu.core_type<tc>} {
    %c0 = arith.constant 0 : index
    %c0_0 = arith.constant 0 : index
    %0 = vector.load %arg0[%c0, %c0_0] : memref<512x64xf32, #tpu.memory_space<vmem>>, vector<512x64xf32>
    %c0_1 = arith.constant 0 : index
    %c0_2 = arith.constant 0 : index
    %1 = vector.load %arg1[%c0_1, %c0_2] : memref<64x32xf32, #tpu.memory_space<vmem>>, vector<64x32xf32>
    %cst = arith.constant dense<0.000000e+00> : vector<512x32xf32>
    %2 = tpu.matmul %0, %1, %cst {dimension_numbers = #tpu.dot_dimension_numbers<[1], [0], [0], [1], [0, 0, 1, 1], [], []>} : vector<512x64xf32>, vector<64x32xf32>, vector<512x32xf32> -> vector<512x32xf32>
    %c0_3 = arith.constant 0 : index
    %c0_4 = arith.constant 0 : index
    %3 = vector.load %arg4[%c0_3, %c0_4] : memref<1x32xf32, #tpu.memory_space<vmem>>, vector<1x32xf32>
    %c0_5 = arith.constant 0 : index
    %c0_6 = arith.constant 0 : index
    %4 = vector.load %arg5[%c0_5, %c0_6] : memref<1x32xf32, #tpu.memory_space<vmem>>, vector<1x32xf32>
    %cst_7 = arith.constant dense<0.000000e+00> : vector<32xf32>
    %5 = vector.multi_reduction <add>, %2, %cst_7 [0] : vector<512x32xf32> to vector<32xf32>
    %6 = vector.shape_cast %5 : vector<32xf32> to vector<1x32xf32>
    %7 = arith.mulf %2, %2 : vector<512x32xf32>
    %cst_8 = arith.constant dense<0.000000e+00> : vector<32xf32>
    %8 = vector.multi_reduction <add>, %7, %cst_8 [0] : vector<512x32xf32> to vector<32xf32>
    %9 = vector.shape_cast %8 : vector<32xf32> to vector<1x32xf32>
    %cst_9 = arith.constant 0.001953125 : f32
    %10 = vector.broadcast %cst_9 : f32 to vector<1x32xf32>
    %11 = arith.mulf %6, %10 : vector<1x32xf32>
    %cst_10 = arith.constant 0.001953125 : f32
    %12 = vector.broadcast %cst_10 : f32 to vector<1x32xf32>
    %13 = arith.mulf %9, %12 : vector<1x32xf32>
    %14 = arith.mulf %11, %11 : vector<1x32xf32>
    %15 = arith.subf %13, %14 : vector<1x32xf32>
    %cst_11 = arith.constant 9.99999974E-6 : f32
    %16 = vector.broadcast %cst_11 : f32 to vector<1x32xf32>
    %17 = arith.addf %15, %16 : vector<1x32xf32>
    %18 = math.rsqrt %17 : vector<1x32xf32>
    %19 = arith.mulf %3, %18 : vector<1x32xf32>
    %20 = arith.mulf %11, %19 : vector<1x32xf32>
    %21 = arith.subf %4, %20 : vector<1x32xf32>
    %22 = vector.broadcast %19 : vector<1x32xf32> to vector<512x32xf32>
    %23 = arith.mulf %2, %22 : vector<512x32xf32>
    %24 = vector.broadcast %21 : vector<1x32xf32> to vector<512x32xf32>
    %25 = arith.addf %23, %24 : vector<512x32xf32>
    %cst_12 = arith.constant 0.000000e+00 : f32
    %26 = vector.broadcast %cst_12 : f32 to vector<512x32xf32>
    %27 = arith.maximumf %25, %26 : vector<512x32xf32>
    %cst_13 = arith.constant 0.000000e+00 : f32
    %28 = vector.broadcast %cst_13 : f32 to vector<2x18x18x32xf32>
    %c0_14 = arith.constant 0 : index
    %c0_15 = arith.constant 0 : index
    %c0_16 = arith.constant 0 : index
    %c0_17 = arith.constant 0 : index
    %29 = vector.load %arg11[%c0_14, %c0_15, %c0_16, %c0_17] : memref<2x18x18x32xf32, #tpu.memory_space<vmem>>, vector<2x18x18x32xf32>
    tpu.vector_store %arg11[%c0_14, %c0_15, %c0_16, %c0_17], %28 {strides = array<i32>} : memref<2x18x18x32xf32, #tpu.memory_space<vmem>>, vector<2x18x18x32xf32>,
    %30 = vector.shape_cast %27 : vector<512x32xf32> to vector<2x16x16x32xf32>
    %c0_18 = arith.constant 0 : index
    %c1 = arith.constant 1 : index
    %c1_19 = arith.constant 1 : index
    %c0_20 = arith.constant 0 : index
    %31 = vector.load %arg11[%c0_18, %c1, %c1_19, %c0_20] : memref<2x18x18x32xf32, #tpu.memory_space<vmem>>, vector<2x16x16x32xf32>
    tpu.vector_store %arg11[%c0_18, %c1, %c1_19, %c0_20], %30 {strides = array<i32>} : memref<2x18x18x32xf32, #tpu.memory_space<vmem>>, vector<2x16x16x32xf32>,
    %c0_21 = arith.constant 0 : index
    %c0_22 = arith.constant 0 : index
    %c0_23 = arith.constant 0 : index
    %c0_24 = arith.constant 0 : index
    %32 = vector.load %arg11[%c0_21, %c0_22, %c0_23, %c0_24] : memref<2x18x18x32xf32, #tpu.memory_space<vmem>>, vector<2x16x16x32xf32>
    %33 = vector.shape_cast %32 : vector<2x16x16x32xf32> to vector<512x32xf32>
    %c0_25 = arith.constant 0 : index
    %c0_26 = arith.constant 0 : index
    %34 = vector.load %arg12[%c0_25, %c0_26] : memref<512x288xf32, #tpu.memory_space<vmem>>, vector<512x32xf32>
    tpu.vector_store %arg12[%c0_25, %c0_26], %33 {strides = array<i32>} : memref<512x288xf32, #tpu.memory_space<vmem>>, vector<512x32xf32>,
    %c0_27 = arith.constant 0 : index
    %c0_28 = arith.constant 0 : index
    %c1_29 = arith.constant 1 : index
    %c0_30 = arith.constant 0 : index
    %35 = vector.load %arg11[%c0_27, %c0_28, %c1_29, %c0_30] : memref<2x18x18x32xf32, #tpu.memory_space<vmem>>, vector<2x16x16x32xf32>
    %36 = vector.shape_cast %35 : vector<2x16x16x32xf32> to vector<512x32xf32>
    %c0_31 = arith.constant 0 : index
    %c32 = arith.constant 32 : index
    %37 = vector.load %arg12[%c0_31, %c32] : memref<512x288xf32, #tpu.memory_space<vmem>>, vector<512x32xf32>
    tpu.vector_store %arg12[%c0_31, %c32], %36 {strides = array<i32>} : memref<512x288xf32, #tpu.memory_space<vmem>>, vector<512x32xf32>,
    %c0_32 = arith.constant 0 : index
    %c0_33 = arith.constant 0 : index
    %c2 = arith.constant 2 : index
    %c0_34 = arith.constant 0 : index
    %38 = vector.load %arg11[%c0_32, %c0_33, %c2, %c0_34] : memref<2x18x18x32xf32, #tpu.memory_space<vmem>>, vector<2x16x16x32xf32>
    %39 = vector.shape_cast %38 : vector<2x16x16x32xf32> to vector<512x32xf32>
    %c0_35 = arith.constant 0 : index
    %c64 = arith.constant 64 : index
    %40 = vector.load %arg12[%c0_35, %c64] : memref<512x288xf32, #tpu.memory_space<vmem>>, vector<512x32xf32>
    tpu.vector_store %arg12[%c0_35, %c64], %39 {strides = array<i32>} : memref<512x288xf32, #tpu.memory_space<vmem>>, vector<512x32xf32>,
    %c0_36 = arith.constant 0 : index
    %c1_37 = arith.constant 1 : index
    %c0_38 = arith.constant 0 : index
    %c0_39 = arith.constant 0 : index
    %41 = vector.load %arg11[%c0_36, %c1_37, %c0_38, %c0_39] : memref<2x18x18x32xf32, #tpu.memory_space<vmem>>, vector<2x16x16x32xf32>
    %42 = vector.shape_cast %41 : vector<2x16x16x32xf32> to vector<512x32xf32>
    %c0_40 = arith.constant 0 : index
    %c96 = arith.constant 96 : index
    %43 = vector.load %arg12[%c0_40, %c96] : memref<512x288xf32, #tpu.memory_space<vmem>>, vector<512x32xf32>
    tpu.vector_store %arg12[%c0_40, %c96], %42 {strides = array<i32>} : memref<512x288xf32, #tpu.memory_space<vmem>>, vector<512x32xf32>,
    %c0_41 = arith.constant 0 : index
    %c1_42 = arith.constant 1 : index
    %c1_43 = arith.constant 1 : index
    %c0_44 = arith.constant 0 : index
    %44 = vector.load %arg11[%c0_41, %c1_42, %c1_43, %c0_44] : memref<2x18x18x32xf32, #tpu.memory_space<vmem>>, vector<2x16x16x32xf32>
    %45 = vector.shape_cast %44 : vector<2x16x16x32xf32> to vector<512x32xf32>
    %c0_45 = arith.constant 0 : index
    %c128 = arith.constant 128 : index
    %46 = vector.load %arg12[%c0_45, %c128] : memref<512x288xf32, #tpu.memory_space<vmem>>, vector<512x32xf32>
    tpu.vector_store %arg12[%c0_45, %c128], %45 {strides = array<i32>} : memref<512x288xf32, #tpu.memory_space<vmem>>, vector<512x32xf32>,
    %c0_46 = arith.constant 0 : index
    %c1_47 = arith.constant 1 : index
    %c2_48 = arith.constant 2 : index
    %c0_49 = arith.constant 0 : index
    %47 = vector.load %arg11[%c0_46, %c1_47, %c2_48, %c0_49] : memref<2x18x18x32xf32, #tpu.memory_space<vmem>>, vector<2x16x16x32xf32>
    %48 = vector.shape_cast %47 : vector<2x16x16x32xf32> to vector<512x32xf32>
    %c0_50 = arith.constant 0 : index
    %c160 = arith.constant 160 : index
    %49 = vector.load %arg12[%c0_50, %c160] : memref<512x288xf32, #tpu.memory_space<vmem>>, vector<512x32xf32>
    tpu.vector_store %arg12[%c0_50, %c160], %48 {strides = array<i32>} : memref<512x288xf32, #tpu.memory_space<vmem>>, vector<512x32xf32>,
    %c0_51 = arith.constant 0 : index
    %c2_52 = arith.constant 2 : index
    %c0_53 = arith.constant 0 : index
    %c0_54 = arith.constant 0 : index
    %50 = vector.load %arg11[%c0_51, %c2_52, %c0_53, %c0_54] : memref<2x18x18x32xf32, #tpu.memory_space<vmem>>, vector<2x16x16x32xf32>
    %51 = vector.shape_cast %50 : vector<2x16x16x32xf32> to vector<512x32xf32>
    %c0_55 = arith.constant 0 : index
    %c192 = arith.constant 192 : index
    %52 = vector.load %arg12[%c0_55, %c192] : memref<512x288xf32, #tpu.memory_space<vmem>>, vector<512x32xf32>
    tpu.vector_store %arg12[%c0_55, %c192], %51 {strides = array<i32>} : memref<512x288xf32, #tpu.memory_space<vmem>>, vector<512x32xf32>,
    %c0_56 = arith.constant 0 : index
    %c2_57 = arith.constant 2 : index
    %c1_58 = arith.constant 1 : index
    %c0_59 = arith.constant 0 : index
    %53 = vector.load %arg11[%c0_56, %c2_57, %c1_58, %c0_59] : memref<2x18x18x32xf32, #tpu.memory_space<vmem>>, vector<2x16x16x32xf32>
    %54 = vector.shape_cast %53 : vector<2x16x16x32xf32> to vector<512x32xf32>
    %c0_60 = arith.constant 0 : index
    %c224 = arith.constant 224 : index
    %55 = vector.load %arg12[%c0_60, %c224] : memref<512x288xf32, #tpu.memory_space<vmem>>, vector<512x32xf32>
    tpu.vector_store %arg12[%c0_60, %c224], %54 {strides = array<i32>} : memref<512x288xf32, #tpu.memory_space<vmem>>, vector<512x32xf32>,
    %c0_61 = arith.constant 0 : index
    %c2_62 = arith.constant 2 : index
    %c2_63 = arith.constant 2 : index
    %c0_64 = arith.constant 0 : index
    %56 = vector.load %arg11[%c0_61, %c2_62, %c2_63, %c0_64] : memref<2x18x18x32xf32, #tpu.memory_space<vmem>>, vector<2x16x16x32xf32>
    %57 = vector.shape_cast %56 : vector<2x16x16x32xf32> to vector<512x32xf32>
    %c0_65 = arith.constant 0 : index
    %c256 = arith.constant 256 : index
    %58 = vector.load %arg12[%c0_65, %c256] : memref<512x288xf32, #tpu.memory_space<vmem>>, vector<512x32xf32>
    tpu.vector_store %arg12[%c0_65, %c256], %57 {strides = array<i32>} : memref<512x288xf32, #tpu.memory_space<vmem>>, vector<512x32xf32>,
    %c0_66 = arith.constant 0 : index
    %c0_67 = arith.constant 0 : index
    %59 = vector.load %arg12[%c0_66, %c0_67] : memref<512x288xf32, #tpu.memory_space<vmem>>, vector<512x288xf32>
    %c0_68 = arith.constant 0 : index
    %c0_69 = arith.constant 0 : index
    %60 = vector.load %arg2[%c0_68, %c0_69] : memref<288x32xf32, #tpu.memory_space<vmem>>, vector<288x32xf32>
    %cst_70 = arith.constant dense<0.000000e+00> : vector<512x32xf32>
    %61 = tpu.matmul %59, %60, %cst_70 {dimension_numbers = #tpu.dot_dimension_numbers<[1], [0], [0], [1], [0, 0, 1, 1], [], []>} : vector<512x288xf32>, vector<288x32xf32>, vector<512x32xf32> -> vector<512x32xf32>
    %c0_71 = arith.constant 0 : index
    %c0_72 = arith.constant 0 : index
    %62 = vector.load %arg6[%c0_71, %c0_72] : memref<1x32xf32, #tpu.memory_space<vmem>>, vector<1x32xf32>
    %c0_73 = arith.constant 0 : index
    %c0_74 = arith.constant 0 : index
    %63 = vector.load %arg7[%c0_73, %c0_74] : memref<1x32xf32, #tpu.memory_space<vmem>>, vector<1x32xf32>
    %cst_75 = arith.constant dense<0.000000e+00> : vector<32xf32>
    %64 = vector.multi_reduction <add>, %61, %cst_75 [0] : vector<512x32xf32> to vector<32xf32>
    %65 = vector.shape_cast %64 : vector<32xf32> to vector<1x32xf32>
    %66 = arith.mulf %61, %61 : vector<512x32xf32>
    %cst_76 = arith.constant dense<0.000000e+00> : vector<32xf32>
    %67 = vector.multi_reduction <add>, %66, %cst_76 [0] : vector<512x32xf32> to vector<32xf32>
    %68 = vector.shape_cast %67 : vector<32xf32> to vector<1x32xf32>
    %cst_77 = arith.constant 0.001953125 : f32
    %69 = vector.broadcast %cst_77 : f32 to vector<1x32xf32>
    %70 = arith.mulf %65, %69 : vector<1x32xf32>
    %cst_78 = arith.constant 0.001953125 : f32
    %71 = vector.broadcast %cst_78 : f32 to vector<1x32xf32>
    %72 = arith.mulf %68, %71 : vector<1x32xf32>
    %73 = arith.mulf %70, %70 : vector<1x32xf32>
    %74 = arith.subf %72, %73 : vector<1x32xf32>
    %cst_79 = arith.constant 9.99999974E-6 : f32
    %75 = vector.broadcast %cst_79 : f32 to vector<1x32xf32>
    %76 = arith.addf %74, %75 : vector<1x32xf32>
    %77 = math.rsqrt %76 : vector<1x32xf32>
    %78 = arith.mulf %62, %77 : vector<1x32xf32>
    %79 = arith.mulf %70, %78 : vector<1x32xf32>
    %80 = arith.subf %63, %79 : vector<1x32xf32>
    %81 = vector.broadcast %78 : vector<1x32xf32> to vector<512x32xf32>
    %82 = arith.mulf %61, %81 : vector<512x32xf32>
    %83 = vector.broadcast %80 : vector<1x32xf32> to vector<512x32xf32>
    %84 = arith.addf %82, %83 : vector<512x32xf32>
    %cst_80 = arith.constant 0.000000e+00 : f32
    %85 = vector.broadcast %cst_80 : f32 to vector<512x32xf32>
    %86 = arith.maximumf %84, %85 : vector<512x32xf32>
    %c0_81 = arith.constant 0 : index
    %c0_82 = arith.constant 0 : index
    %87 = vector.load %arg3[%c0_81, %c0_82] : memref<32x64xf32, #tpu.memory_space<vmem>>, vector<32x64xf32>
    %cst_83 = arith.constant dense<0.000000e+00> : vector<512x64xf32>
    %88 = tpu.matmul %86, %87, %cst_83 {dimension_numbers = #tpu.dot_dimension_numbers<[1], [0], [0], [1], [0, 0, 1, 1], [], []>} : vector<512x32xf32>, vector<32x64xf32>, vector<512x64xf32> -> vector<512x64xf32>
    %c0_84 = arith.constant 0 : index
    %c0_85 = arith.constant 0 : index
    %89 = vector.load %arg8[%c0_84, %c0_85] : memref<1x64xf32, #tpu.memory_space<vmem>>, vector<1x64xf32>
    %c0_86 = arith.constant 0 : index
    %c0_87 = arith.constant 0 : index
    %90 = vector.load %arg9[%c0_86, %c0_87] : memref<1x64xf32, #tpu.memory_space<vmem>>, vector<1x64xf32>
    %cst_88 = arith.constant dense<0.000000e+00> : vector<64xf32>
    %91 = vector.multi_reduction <add>, %88, %cst_88 [0] : vector<512x64xf32> to vector<64xf32>
    %92 = vector.shape_cast %91 : vector<64xf32> to vector<1x64xf32>
    %93 = arith.mulf %88, %88 : vector<512x64xf32>
    %cst_89 = arith.constant dense<0.000000e+00> : vector<64xf32>
    %94 = vector.multi_reduction <add>, %93, %cst_89 [0] : vector<512x64xf32> to vector<64xf32>
    %95 = vector.shape_cast %94 : vector<64xf32> to vector<1x64xf32>
    %cst_90 = arith.constant 0.001953125 : f32
    %96 = vector.broadcast %cst_90 : f32 to vector<1x64xf32>
    %97 = arith.mulf %92, %96 : vector<1x64xf32>
    %cst_91 = arith.constant 0.001953125 : f32
    %98 = vector.broadcast %cst_91 : f32 to vector<1x64xf32>
    %99 = arith.mulf %95, %98 : vector<1x64xf32>
    %100 = arith.mulf %97, %97 : vector<1x64xf32>
    %101 = arith.subf %99, %100 : vector<1x64xf32>
    %cst_92 = arith.constant 9.99999974E-6 : f32
    %102 = vector.broadcast %cst_92 : f32 to vector<1x64xf32>
    %103 = arith.addf %101, %102 : vector<1x64xf32>
    %104 = math.rsqrt %103 : vector<1x64xf32>
    %105 = arith.mulf %89, %104 : vector<1x64xf32>
    %106 = arith.mulf %97, %105 : vector<1x64xf32>
    %107 = arith.subf %90, %106 : vector<1x64xf32>
    %108 = vector.broadcast %105 : vector<1x64xf32> to vector<512x64xf32>
    %109 = arith.mulf %88, %108 : vector<512x64xf32>
    %110 = vector.broadcast %107 : vector<1x64xf32> to vector<512x64xf32>
    %111 = arith.addf %109, %110 : vector<512x64xf32>
    %112 = arith.addf %111, %0 : vector<512x64xf32>
    %cst_93 = arith.constant 0.000000e+00 : f32
    %113 = vector.broadcast %cst_93 : f32 to vector<512x64xf32>
    %114 = arith.maximumf %112, %113 : vector<512x64xf32>
    %c0_94 = arith.constant 0 : index
    %c0_95 = arith.constant 0 : index
    %115 = vector.load %arg10[%c0_94, %c0_95] : memref<512x64xf32, #tpu.memory_space<vmem>>, vector<512x64xf32>
    tpu.vector_store %arg10[%c0_94, %c0_95], %114 {strides = array<i32>} : memref<512x64xf32, #tpu.memory_space<vmem>>, vector<512x64xf32>,
    return
  }
}

</mosaic_0001>

<bundles_post_ra>
// kernel: resnext_bottleneck_forward.1
= control target key start
LH: loop header
LB: loop body
LE: loop exit
PB: predicated region body
PF: predicated region fallthrough
CT: control target
= control target key end

     0   :  { %15 = vsyncpa [#allocation5], 0  ;;  %s12234_s0 = inlined_call_operand.hbm [shape: f32[512,64], index: 0, kind: input, shape index: {}]   ;;  %s12235_s1 = inlined_call_operand.vmem [shape: f32[64,32], index: 1, kind: input, shape index: {}]   ;;  %s12236_s2 = inlined_call_operand.vmem [shape: f32[288,32], index: 2, kind: input, shape index: {}]   ;;  %s12237_s3 = inlined_call_operand.vmem [shape: f32[32,64], index: 3, kind: input, shape index: {}]   ;;  %s12238_s4 = inlined_call_operand.vmem [shape: f32[1,32], index: 4, kind: input, shape index: {}]   ;;  %s12239_s5 = inlined_call_operand.vmem [shape: f32[1,32], index: 5, kind: input, shape index: {}]   ;;  %s12240_s6 = inlined_call_operand.vmem [shape: f32[1,32], index: 6, kind: input, shape index: {}]   ;;  %s12241_s7 = inlined_call_operand.vmem [shape: f32[1,32], index: 7, kind: input, shape index: {}]   ;;  %s12242_s8 = inlined_call_operand.vmem [shape: f32[1,64], index: 8, kind: input, shape index: {}]   ;;  %s12243_s9 = inlined_call_operand.vmem [shape: f32[1,64], index: 9, kind: input, shape index: {}]   ;;  %s12244_s10 = inlined_call_operand.hbm [shape: f32[512,64], index: 10, kind: output, shape index: {}]  }
   0x1   :  { %16 = vsyncpa [#allocation6], 0  ;;  %s21_s15 = sshll.u32 %s12234_s0, 4  ;;  %s6986_s16 = smov [#allocation4]   ;;  %s22_s15 = int_to_ptr.hbm [resolvable:$true] %s21_s15 }
   0x2   :  { %s23_s17 = sshll.u32 %s6986_s16, 4  ;;  %s6987_s18 = smov 128   ;;  %s24_s17 = int_to_ptr.vmem [resolvable:$true] %s23_s17 }
   0x3   :  { %s6988_s19 = smov 8  }
   0x4   :  { %29 = dma.hbm_to_vmem [thread:$0]  %s22_s15, 8192, %s24_s17, [#allocation5], %s6987_s18, %s6987_s18, %s6988_s19  }
   0x5   :  { %6982 = dma.done.wait [#allocation5], 8192  }
   0x6   :  { %6983 = vsyncadd [#allocation5], 4294959104  ;;  %v123_v0 = vld [vmem:[%s12235_s1 + $0x38] sm:$0xff]  ;;  %v122_v1 = vld [vmem:[%s12235_s1 + $0x30] sm:$0xff]  ;;  %vm124_vm0 = vcmask 523264   ;;  %vm528_vm1 = vcmask 261120  }
   0x7   :  { %325 = vmatpush.msra.mxu0 %v123_v0  ;;  %6828 = vmatpush.msra.mxu1 %v123_v0  ;;  %v121_v2 = vld [vmem:[%s12235_s1 + $0x28] sm:$0xff]  ;;  %v120_v3 = vld [vmem:[%s12235_s1 + $0x20] sm:$0xff]  ;;  %v119_v4 = vld [vmem:[%s12235_s1 + $0x18] sm:$0xff]  ;;  %v6989_v21 = vmov 0.0   ;;  %vm1077_vm2 = vcmask 254976   ;;  %vm1697_vm6 = vcmask 523520  }
   0x8   :  { %6829 = vmatpush.msra.mxu2 %v123_v0  ;;  %v118_v5 = vld [vmem:[%s12235_s1 + $0x10] sm:$0xff]  ;;  %v117_v6 = vld [vmem:[%s12235_s1 + $0x8] sm:$0xff]  ;;  %v116_v7 = vld [vmem:[%s12235_s1] sm:$0xff]  ;;  %1079 = vst.msk [vmem:[#allocation2 + $0x18] sm:$0xff] %vm528_vm1, %v6989_v21  ;;  %s6990_s1 = smov 64   ;;  %vm2082_vm7 = vcmask 785920  }
   0x9   :  { %326 = vmatpush.msra.mxu0 %v122_v1  ;;  %6830 = vmatpush.msra.mxu1 %v122_v1  ;;  %v52_v8 = vld [vmem:[#allocation4] sm:$0xff]  ;;  %v53_v9 = vld [vmem:[#allocation4 + $0x8] sm:$0xff]  ;;  %v54_v10 = vld [vmem:[#allocation4 + $0x10] sm:$0xff]  ;;  %1080 = vst.msk [vmem:[#allocation2 + $0x20] sm:$0xff] %vm528_vm1, %v6989_v21  ;;  %vm2467_vm8 = vcmask 1048320   ;;  %s6623_s27 = sshll.u32 %s12244_s10, 4  ;;  %s6624_s27 = int_to_ptr.hbm [resolvable:$true] %s6623_s27 }
   0xa   :  { %6831 = vmatpush.msra.mxu2 %v122_v1  ;;  %v55_v11 = vld [vmem:[#allocation4 + $0x18] sm:$0xff]  ;;  %v56_v12 = vld [vmem:[#allocation4 + $0x20] sm:$0xff]  ;;  %v57_v13 = vld [vmem:[#allocation4 + $0x28] sm:$0xff]  ;;  %1075 = vst.msk [vmem:[#allocation2] sm:$0xff] %vm528_vm1, %v6989_v21 }
   0xb   :  { %327 = vmatpush.msra.mxu0 %v121_v2  ;;  %6832 = vmatpush.msra.mxu1 %v121_v2  ;;  %v58_v14 = vld [vmem:[#allocation4 + $0x30] sm:$0xff]  ;;  %v59_v15 = vld [vmem:[#allocation4 + $0x38] sm:$0xff]  ;;  %v60_v16 = vld [vmem:[#allocation4 + $0x40] sm:$0xff]  ;;  %1076 = vst.msk [vmem:[#allocation2 + $0x8] sm:$0xff] %vm528_vm1, %v6989_v21 }
   0xc   :  { %6833 = vmatpush.msra.mxu2 %v121_v2  ;;  %v61_v17 = vld [vmem:[#allocation4 + $0x48] sm:$0xff]  ;;  %v62_v18 = vld [vmem:[#allocation4 + $0x50] sm:$0xff]  ;;  %v63_v19 = vld [vmem:[#allocation4 + $0x58] sm:$0xff]  ;;  %1082 = vst.msk [vmem:[#allocation2 + $0x30] sm:$0xff] %vm528_vm1, %v6989_v21 }
   0xd   :  { %328 = vmatpush.msra.mxu0 %v120_v3  ;;  %6834 = vmatpush.msra.mxu1 %v120_v3  ;;  %v64_v20 = vld [vmem:[#allocation4 + $0x60] sm:$0xff]  ;;  %v65_v22 = vld [vmem:[#allocation4 + $0x68] sm:$0xff]  ;;  %1083 = vst.msk [vmem:[#allocation2 + $0x38] sm:$0xff] %vm528_vm1, %v6989_v21  ;;  %v66_v23 = vld [vmem:[#allocation4 + $0x70] sm:$0xff] }
   0xe   :  { %6835 = vmatpush.msra.mxu2 %v120_v3  ;;  %1085 = vst.msk [vmem:[#allocation2 + $0x48] sm:$0xff] %vm528_vm1, %v6989_v21  ;;  %v67_v24 = vld [vmem:[#allocation4 + $0x78] sm:$0xff]  ;;  %v68_v26 = vld [vmem:[#allocation4 + $0x80] sm:$0xff]  ;;  %v69_v28 = vld [vmem:[#allocation4 + $0x88] sm:$0xff] }
   0xf   :  { %329 = vmatpush.msra.mxu0 %v119_v4  ;;  %6836 = vmatpush.msra.mxu1 %v119_v4  ;;  %1086 = vst.msk [vmem:[#allocation2 + $0x50] sm:$0xff] %vm528_vm1, %v6989_v21  ;;  %v70_v30 = vld [vmem:[#allocation4 + $0x90] sm:$0xff]  ;;  %v71_v32 = vld [vmem:[#allocation4 + $0x98] sm:$0xff]  ;;  %v72_v35 = vld [vmem:[#allocation4 + $0xa0] sm:$0xff] }
  0x10   :  { %6837 = vmatpush.msra.mxu2 %v119_v4  ;;  %1088 = vst.msk [vmem:[#allocation2 + $0x60] sm:$0xff] %vm528_vm1, %v6989_v21  ;;  %v87_v33 = vld [vmem:[#allocation4 + $0x118] sm:$0xff]  ;;  %v88_v36 = vld [vmem:[#allocation4 + $0x120] sm:$0xff]  ;;  %v73_v38 = vld [vmem:[#allocation4 + $0xa8] sm:$0xff] }
  0x11   :  { %330 = vmatpush.msra.mxu0 %v118_v5  ;;  %6838 = vmatpush.msra.mxu1 %v118_v5  ;;  %1089 = vst.msk [vmem:[#allocation2 + $0x68] sm:$0xff] %vm528_vm1, %v6989_v21  ;;  %v89_v39 = vld [vmem:[#allocation4 + $0x128] sm:$0xff]  ;;  %v74_v41 = vld [vmem:[#allocation4 + $0xb0] sm:$0xff]  ;;  %v75_v44 = vld [vmem:[#allocation4 + $0xb8] sm:$0xff] }
  0x12   :  { %6839 = vmatpush.msra.mxu2 %v118_v5  ;;  %1091 = vst.msk [vmem:[#allocation2 + $0x78] sm:$0xff] %vm528_vm1, %v6989_v21  ;;  %v90_v42 = vld [vmem:[#allocation4 + $0x130] sm:$0xff]  ;;  %v91_v45 = vld [vmem:[#allocation4 + $0x138] sm:$0xff]  ;;  %v76_v47 = vld [vmem:[#allocation4 + $0xc0] sm:$0xff] }
  0x13   :  { %331 = vmatpush.msra.mxu0 %v117_v6  ;;  %6840 = vmatpush.msra.mxu1 %v117_v6  ;;  %1092 = vst.msk [vmem:[#allocation2 + $0x80] sm:$0xff] %vm528_vm1, %v6989_v21  ;;  %v92_v48 = vld [vmem:[#allocation4 + $0x140] sm:$0xff]  ;;  %v103_v49 = vld [vmem:[#allocation4 + $0x198] sm:$0xff]  ;;  %v77_v51 = vld [vmem:[#allocation4 + $0xc8] sm:$0xff] }
  0x14   :  { %6841 = vmatpush.msra.mxu2 %v117_v6  ;;  %1094 = vst.msk [vmem:[#allocation2 + $0x90] sm:$0xff] %vm528_vm1, %v6989_v21  ;;  %v93_v52 = vld [vmem:[#allocation4 + $0x148] sm:$0xff]  ;;  %v104_v53 = vld [vmem:[#allocation4 + $0x1a0] sm:$0xff]  ;;  %v78_v55 = vld [vmem:[#allocation4 + $0xd0] sm:$0xff] }
  0x15   :  { %332 = vmatpush.msra.mxu0 %v116_v7  ;;  %6842 = vmatpush.msra.mxu1 %v116_v7  ;;  %1095 = vst.msk [vmem:[#allocation2 + $0x98] sm:$0xff] %vm528_vm1, %v6989_v21  ;;  %v94_v56 = vld [vmem:[#allocation4 + $0x150] sm:$0xff]  ;;  %v105_v57 = vld [vmem:[#allocation4 + $0x1a8] sm:$0xff]  ;;  %v79_v59 = vld [vmem:[#allocation4 + $0xd8] sm:$0xff] }
  0x16   :  { %6636 = vmatmul.msk.f32.vlgmr.msra.gmra.mxu0 %vm124_vm0, %v52_v8  ;;  %6843 = vmatpush.msra.mxu2 %v116_v7  ;;  %1097 = vst.msk [vmem:[#allocation2 + $0xa8] sm:$0xff] %vm528_vm1, %v6989_v21  ;;  %v95_v60 = vld [vmem:[#allocation4 + $0x158] sm:$0xff]  ;;  %v106_v61 = vld [vmem:[#allocation4 + $0x1b0] sm:$0xff]  ;;  %v80_v63 = vld [vmem:[#allocation4 + $0xe0] sm:$0xff] }
  0x17   :  { %1098 = vst.msk [vmem:[#allocation2 + $0xb0] sm:$0xff] %vm528_vm1, %v6989_v21  ;;  %6671 = vmatmul.msk.f32.vlgmr.msra.gmra.mxu1 %vm124_vm0, %v87_v33  ;;  %6687 = vmatmul.msk.f32.vlgmr.msra.gmra.mxu2 %vm124_vm0, %v103_v49  ;;  %v96_v0 = vld [vmem:[#allocation4 + $0x160] sm:$0xff]  ;;  %v107_v1 = vld [vmem:[#allocation4 + $0x1b8] sm:$0xff]  ;;  %v81_v3 = vld [vmem:[#allocation4 + $0xe8] sm:$0xff] }
  0x18   :  { %1100 = vst.msk [vmem:[#allocation2 + $0xc0] sm:$0xff] %vm528_vm1, %v6989_v21  ;;  %v97_v4 = vld [vmem:[#allocation4 + $0x168] sm:$0xff]  ;;  %v108_v5 = vld [vmem:[#allocation4 + $0x1c0] sm:$0xff]  ;;  %v82_v7 = vld [vmem:[#allocation4 + $0xf0] sm:$0xff] }
  0x19   :  { %1101 = vst.msk [vmem:[#allocation2 + $0xc8] sm:$0xff] %vm528_vm1, %v6989_v21  ;;  %v98_v8 = vld [vmem:[#allocation4 + $0x170] sm:$0xff] }
  0x1a   :  { %1103 = vst.msk [vmem:[#allocation2 + $0xd8] sm:$0xff] %vm528_vm1, %v6989_v21 }
  0x1b   :  { %1104 = vst.msk [vmem:[#allocation2 + $0xe0] sm:$0xff] %vm528_vm1, %v6989_v21 }
  0x1c   :  { %1106 = vst.msk [vmem:[#allocation2 + $0xf0] sm:$0xff] %vm528_vm1, %v6989_v21 }
  0x1d   :  { %1107 = vst.msk [vmem:[#allocation2 + $0xf8] sm:$0xff] %vm528_vm1, %v6989_v21 }
  0x1e   :  { %6637 = vmatmul.msk.f32.gmra.mxu0 %vm124_vm0, %v53_v9  ;;  %1109 = vst.msk [vmem:[#allocation2 + $0x108] sm:$0xff] %vm528_vm1, %v6989_v21  ;;  %v109_v9 = vld [vmem:[#allocation4 + $0x1c8] sm:$0xff] }
  0x1f   :  { %1110 = vst.msk [vmem:[#allocation2 + $0x110] sm:$0xff] %vm528_vm1, %v6989_v21  ;;  %6672 = vmatmul.msk.f32.gmra.mxu1 %vm124_vm0, %v88_v36  ;;  %6688 = vmatmul.msk.f32.gmra.mxu2 %vm124_vm0, %v104_v53  ;;  %v115_v36 = vld [vmem:[#allocation4 + $0x1f8] sm:$0xff] }
  0x20   :  { %1112 = vst.msk [vmem:[#allocation2 + $0x120] sm:$0xff] %vm528_vm1, %v6989_v21 }
  0x21   :  { %1113 = vst.msk [vmem:[#allocation2 + $0x128] sm:$0xff] %vm528_vm1, %v6989_v21 }
  0x22   :  { %1115 = vst.msk [vmem:[#allocation2 + $0x138] sm:$0xff] %vm528_vm1, %v6989_v21 }
  0x23   :  { %1116 = vst.msk [vmem:[#allocation2 + $0x140] sm:$0xff] %vm528_vm1, %v6989_v21 }
  0x24   :  { %1118 = vst.msk [vmem:[#allocation2 + $0x150] sm:$0xff] %vm528_vm1, %v6989_v21 }
  0x25   :  { %1119 = vst.msk [vmem:[#allocation2 + $0x158] sm:$0xff] %vm528_vm1, %v6989_v21 }
  0x26   :  { %6638 = vmatmul.msk.f32.gmra.mxu0 %vm124_vm0, %v54_v10  ;;  %1121 = vst.msk [vmem:[#allocation2 + $0x168] sm:$0xff] %vm528_vm1, %v6989_v21 }
  0x27   :  { %1122 = vst.msk [vmem:[#allocation2 + $0x170] sm:$0xff] %vm528_vm1, %v6989_v21  ;;  %6673 = vmatmul.msk.f32.gmra.mxu1 %vm124_vm0, %v89_v39  ;;  %6689 = vmatmul.msk.f32.gmra.mxu2 %vm124_vm0, %v105_v57 }
  0x28   :  { %1124 = vst.msk [vmem:[#allocation2 + $0x180] sm:$0xff] %vm528_vm1, %v6989_v21 }
  0x29   :  { %1125 = vst.msk [vmem:[#allocation2 + $0x188] sm:$0xff] %vm528_vm1, %v6989_v21 }
  0x2a   :  { %1127 = vst.msk [vmem:[#allocation2 + $0x198] sm:$0xff] %vm528_vm1, %v6989_v21 }
  0x2b   :  { %1128 = vst.msk [vmem:[#allocation2 + $0x1a0] sm:$0xff] %vm528_vm1, %v6989_v21 }
  0x2c   :  { %1130 = vst.msk [vmem:[#allocation2 + $0x1b0] sm:$0xff] %vm528_vm1, %v6989_v21 }
  0x2d   :  { %1131 = vst.msk [vmem:[#allocation2 + $0x1b8] sm:$0xff] %vm528_vm1, %v6989_v21 }
  0x2e   :  { %6639 = vmatmul.msk.f32.gmra.mxu0 %vm124_vm0, %v55_v11  ;;  %1133 = vst.msk [vmem:[#allocation2 + $0x1c8] sm:$0xff] %vm528_vm1, %v6989_v21  ;;  %v83_v11 = vld [vmem:[#allocation4 + $0xf8] sm:$0xff] }
  0x2f   :  { %1134 = vst.msk [vmem:[#allocation2 + $0x1d0] sm:$0xff] %vm528_vm1, %v6989_v21  ;;  %6674 = vmatmul.msk.f32.gmra.mxu1 %vm124_vm0, %v90_v42  ;;  %6690 = vmatmul.msk.f32.gmra.mxu2 %vm124_vm0, %v106_v61 }
  0x30   :  { %1136 = vst.msk [vmem:[#allocation2 + $0x1e0] sm:$0xff] %vm528_vm1, %v6989_v21 }
  0x31   :  { %1137 = vst.msk [vmem:[#allocation2 + $0x1e8] sm:$0xff] %vm528_vm1, %v6989_v21 }
  0x32   :  { %1139 = vst.msk [vmem:[#allocation2 + $0x1f8] sm:$0xff] %vm528_vm1, %v6989_v21 }
  0x33   :  { %1140 = vst.msk [vmem:[#allocation2 + $0x200] sm:$0xff] %vm528_vm1, %v6989_v21 }
  0x34   :  { %1142 = vst.msk [vmem:[#allocation2 + $0x210] sm:$0xff] %vm528_vm1, %v6989_v21 }
  0x35   :  { %1143 = vst.msk [vmem:[#allocation2 + $0x218] sm:$0xff] %vm528_vm1, %v6989_v21 }
  0x36   :  { %6640 = vmatmul.msk.f32.gmra.mxu0 %vm124_vm0, %v56_v12  ;;  %1145 = vst.msk [vmem:[#allocation2 + $0x228] sm:$0xff] %vm528_vm1, %v6989_v21  ;;  %v99_v12 = vld [vmem:[#allocation4 + $0x178] sm:$0xff] }
  0x37   :  { %1146 = vst.msk [vmem:[#allocation2 + $0x230] sm:$0xff] %vm528_vm1, %v6989_v21  ;;  %6675 = vmatmul.msk.f32.gmra.mxu1 %vm124_vm0, %v91_v45  ;;  %6691 = vmatmul.msk.f32.gmra.mxu2 %vm124_vm0, %v107_v1 }
  0x38   :  { %1148 = vst.msk [vmem:[#allocation2 + $0x240] sm:$0xff] %vm528_vm1, %v6989_v21 }
  0x39   :  { %1149 = vst.msk [vmem:[#allocation2 + $0x248] sm:$0xff] %vm528_vm1, %v6989_v21 }
  0x3a   :  { %1151 = vst.msk [vmem:[#allocation2 + $0x258] sm:$0xff] %vm528_vm1, %v6989_v21 }
  0x3b   :  { %1152 = vst.msk [vmem:[#allocation2 + $0x260] sm:$0xff] %vm528_vm1, %v6989_v21 }
  0x3c   :  { %1154 = vst.msk [vmem:[#allocation2 + $0x270] sm:$0xff] %vm528_vm1, %v6989_v21 }
  0x3d   :  { %1155 = vst.msk [vmem:[#allocation2 + $0x278] sm:$0xff] %vm528_vm1, %v6989_v21 }
  0x3e   :  { %6641 = vmatmul.msk.f32.gmra.mxu0 %vm124_vm0, %v57_v13  ;;  %1157 = vst.msk [vmem:[#allocation2 + $0x288] sm:$0xff] %vm528_vm1, %v6989_v21  ;;  %v110_v13 = vld [vmem:[#allocation4 + $0x1d0] sm:$0xff] }
  0x3f   :  { %1158 = vst.msk [vmem:[#allocation2 + $0x290] sm:$0xff] %vm528_vm1, %v6989_v21  ;;  %6676 = vmatmul.msk.f32.gmra.mxu1 %vm124_vm0, %v92_v48  ;;  %6692 = vmatmul.msk.f32.gmra.mxu2 %vm124_vm0, %v108_v5 }
  0x40   :  { %1160 = vst.msk [vmem:[#allocation2 + $0x2a0] sm:$0xff] %vm528_vm1, %v6989_v21 }
  0x41   :  { %1161 = vst.msk [vmem:[#allocation2 + $0x2a8] sm:$0xff] %vm528_vm1, %v6989_v21 }
  0x42   :  { %1163 = vst.msk [vmem:[#allocation2 + $0x2b8] sm:$0xff] %vm528_vm1, %v6989_v21 }
  0x43   :  { %1164 = vst.msk [vmem:[#allocation2 + $0x2c0] sm:$0xff] %vm528_vm1, %v6989_v21 }
  0x44   :  { %1166 = vst.msk [vmem:[#allocation2 + $0x2d0] sm:$0xff] %vm528_vm1, %v6989_v21 }
  0x45   :  { %1167 = vst.msk [vmem:[#allocation2 + $0x2d8] sm:$0xff] %vm528_vm1, %v6989_v21 }
  0x46   :  { %6642 = vmatmul.msk.f32.gmra.mxu0 %vm124_vm0, %v58_v14  ;;  %1169 = vst.msk [vmem:[#allocation2 + $0x2e8] sm:$0xff] %vm528_vm1, %v6989_v21 }
  0x47   :  { %1170 = vst.msk [vmem:[#allocation2 + $0x2f0] sm:$0xff] %vm528_vm1, %v6989_v21  ;;  %6677 = vmatmul.msk.f32.gmra.mxu1 %vm124_vm0, %v93_v52  ;;  %6693 = vmatmul.msk.f32.gmra.mxu2 %vm124_vm0, %v109_v9 }
  0x48   :  { %1172 = vst.msk [vmem:[#allocation2 + $0x300] sm:$0xff] %vm528_vm1, %v6989_v21 }
  0x49   :  { %1173 = vst.msk [vmem:[#allocation2 + $0x308] sm:$0xff] %vm528_vm1, %v6989_v21 }
  0x4a   :  { %1175 = vst.msk [vmem:[#allocation2 + $0x318] sm:$0xff] %vm528_vm1, %v6989_v21 }
  0x4b   :  { %1176 = vst.msk [vmem:[#allocation2 + $0x320] sm:$0xff] %vm528_vm1, %v6989_v21 }
  0x4c   :  { %1178 = vst.msk [vmem:[#allocation2 + $0x330] sm:$0xff] %vm528_vm1, %v6989_v21 }
  0x4d   :  { %1179 = vst.msk [vmem:[#allocation2 + $0x338] sm:$0xff] %vm528_vm1, %v6989_v21 }
  0x4e   :  { %6643 = vmatmul.msk.f32.gmra.mxu0 %vm124_vm0, %v59_v15  ;;  %1181 = vst.msk [vmem:[#allocation2 + $0x348] sm:$0xff] %vm528_vm1, %v6989_v21  ;;  %v84_v15 = vld [vmem:[#allocation4 + $0x100] sm:$0xff] }
  0x4f   :  { %1182 = vst.msk [vmem:[#allocation2 + $0x350] sm:$0xff] %vm528_vm1, %v6989_v21  ;;  %6678 = vmatmul.msk.f32.gmra.mxu1 %vm124_vm0, %v94_v56  ;;  %6694 = vmatmul.msk.f32.gmra.mxu2 %vm124_vm0, %v110_v13 }
  0x50   :  { %1081 = vst.msk [vmem:[#allocation2 + $0x28] sm:$0x3] %vm1077_vm2, %v6989_v21 }
  0x51   :  { %1078 = vst.msk [vmem:[#allocation2 + $0x10] sm:$0x3] %vm1077_vm2, %v6989_v21 }
  0x52   :  { %1084 = vst.msk [vmem:[#allocation2 + $0x40] sm:$0x3] %vm1077_vm2, %v6989_v21 }
  0x53   :  { %1087 = vst.msk [vmem:[#allocation2 + $0x58] sm:$0x3] %vm1077_vm2, %v6989_v21 }
  0x54   :  { %1090 = vst.msk [vmem:[#allocation2 + $0x70] sm:$0x3] %vm1077_vm2, %v6989_v21 }
  0x55   :  { %1093 = vst.msk [vmem:[#allocation2 + $0x88] sm:$0x3] %vm1077_vm2, %v6989_v21 }
  0x56   :  { %6644 = vmatmul.msk.f32.gmra.mxu0 %vm124_vm0, %v60_v16  ;;  %1096 = vst.msk [vmem:[#allocation2 + $0xa0] sm:$0x3] %vm1077_vm2, %v6989_v21  ;;  %v100_v16 = vld [vmem:[#allocation4 + $0x180] sm:$0xff] }
  0x57   :  { %1099 = vst.msk [vmem:[#allocation2 + $0xb8] sm:$0x3] %vm1077_vm2, %v6989_v21  ;;  %6679 = vmatmul.msk.f32.gmra.mxu1 %vm124_vm0, %v95_v60 }
  0x58   :  { %1102 = vst.msk [vmem:[#allocation2 + $0xd0] sm:$0x3] %vm1077_vm2, %v6989_v21 }
  0x59   :  { %1105 = vst.msk [vmem:[#allocation2 + $0xe8] sm:$0x3] %vm1077_vm2, %v6989_v21 }
  0x5a   :  { %1108 = vst.msk [vmem:[#allocation2 + $0x100] sm:$0x3] %vm1077_vm2, %v6989_v21 }
  0x5b   :  { %1111 = vst.msk [vmem:[#allocation2 + $0x118] sm:$0x3] %vm1077_vm2, %v6989_v21 }
  0x5c   :  { %1114 = vst.msk [vmem:[#allocation2 + $0x130] sm:$0x3] %vm1077_vm2, %v6989_v21 }
  0x5d   :  { %1117 = vst.msk [vmem:[#allocation2 + $0x148] sm:$0x3] %vm1077_vm2, %v6989_v21 }
  0x5e   :  { %6645 = vmatmul.msk.f32.gmra.mxu0 %vm124_vm0, %v61_v17  ;;  %1120 = vst.msk [vmem:[#allocation2 + $0x160] sm:$0x3] %vm1077_vm2, %v6989_v21  ;;  %v111_v17 = vld [vmem:[#allocation4 + $0x1d8] sm:$0xff] }
  0x5f   :  { %1123 = vst.msk [vmem:[#allocation2 + $0x178] sm:$0x3] %vm1077_vm2, %v6989_v21  ;;  %6680 = vmatmul.msk.f32.gmra.mxu1 %vm124_vm0, %v96_v0  ;;  %6695 = vmatmul.msk.f32.gmra.mxu2 %vm124_vm0, %v111_v17 }
  0x60   :  { %1126 = vst.msk [vmem:[#allocation2 + $0x190] sm:$0x3] %vm1077_vm2, %v6989_v21 }
  0x61   :  { %1129 = vst.msk [vmem:[#allocation2 + $0x1a8] sm:$0x3] %vm1077_vm2, %v6989_v21 }
  0x62   :  { %1132 = vst.msk [vmem:[#allocation2 + $0x1c0] sm:$0x3] %vm1077_vm2, %v6989_v21 }
  0x63   :  { %1135 = vst.msk [vmem:[#allocation2 + $0x1d8] sm:$0x3] %vm1077_vm2, %v6989_v21 }
  0x64   :  { %1138 = vst.msk [vmem:[#allocation2 + $0x1f0] sm:$0x3] %vm1077_vm2, %v6989_v21 }
  0x65   :  { %1141 = vst.msk [vmem:[#allocation2 + $0x208] sm:$0x3] %vm1077_vm2, %v6989_v21 }
  0x66   :  { %6646 = vmatmul.msk.f32.gmra.mxu0 %vm124_vm0, %v62_v18  ;;  %1144 = vst.msk [vmem:[#allocation2 + $0x220] sm:$0x3] %vm1077_vm2, %v6989_v21 }
  0x67   :  { %1147 = vst.msk [vmem:[#allocation2 + $0x238] sm:$0x3] %vm1077_vm2, %v6989_v21  ;;  %6681 = vmatmul.msk.f32.gmra.mxu1 %vm124_vm0, %v97_v4 }
  0x68   :  { %1150 = vst.msk [vmem:[#allocation2 + $0x250] sm:$0x3] %vm1077_vm2, %v6989_v21 }
  0x69   :  { %1153 = vst.msk [vmem:[#allocation2 + $0x268] sm:$0x3] %vm1077_vm2, %v6989_v21 }
  0x6a   :  { %1156 = vst.msk [vmem:[#allocation2 + $0x280] sm:$0x3] %vm1077_vm2, %v6989_v21 }
  0x6b   :  { %1159 = vst.msk [vmem:[#allocation2 + $0x298] sm:$0x3] %vm1077_vm2, %v6989_v21 }
  0x6c   :  { %1162 = vst.msk [vmem:[#allocation2 + $0x2b0] sm:$0x3] %vm1077_vm2, %v6989_v21 }
  0x6d   :  { %1165 = vst.msk [vmem:[#allocation2 + $0x2c8] sm:$0x3] %vm1077_vm2, %v6989_v21 }
  0x6e   :  { %6647 = vmatmul.msk.f32.gmra.mxu0 %vm124_vm0, %v63_v19  ;;  %1168 = vst.msk [vmem:[#allocation2 + $0x2e0] sm:$0x3] %vm1077_vm2, %v6989_v21  ;;  %v85_v19 = vld [vmem:[#allocation4 + $0x108] sm:$0xff] }
  0x6f   :  { %1171 = vst.msk [vmem:[#allocation2 + $0x2f8] sm:$0x3] %vm1077_vm2, %v6989_v21  ;;  %6682 = vmatmul.msk.f32.gmra.mxu1 %vm124_vm0, %v98_v8 }
  0x70   :  { %1174 = vst.msk [vmem:[#allocation2 + $0x310] sm:$0x3] %vm1077_vm2, %v6989_v21 }
  0x71   :  { %1177 = vst.msk [vmem:[#allocation2 + $0x328] sm:$0x3] %vm1077_vm2, %v6989_v21 }
  0x72   :  { %1180 = vst.msk [vmem:[#allocation2 + $0x340] sm:$0x3] %vm1077_vm2, %v6989_v21 }
  0x73   :  { %1183 = vst.msk [vmem:[#allocation2 + $0x358] sm:$0x3] %vm1077_vm2, %v6989_v21  ;;  %v112_v21 = vld [vmem:[#allocation4 + $0x1e0] sm:$0xff] }
  0x74   :  { %6696 = vmatmul.msk.f32.gmra.mxu2 %vm124_vm0, %v112_v21 }
  0x76   :  { %6648 = vmatmul.msk.f32.gmra.mxu0 %vm124_vm0, %v64_v20  ;;  %v101_v20 = vld [vmem:[#allocation4 + $0x188] sm:$0xff] }
  0x77   :  { %6683 = vmatmul.msk.f32.gmra.mxu1 %vm124_vm0, %v99_v12 }
  0x7e   :  { %6649 = vmatmul.msk.f32.gmra.mxu0 %vm124_vm0, %v65_v22 }
  0x7f   :  { %6684 = vmatmul.msk.f32.gmra.mxu1 %vm124_vm0, %v100_v16 }
  0x86   :  { %6650 = vmatmul.msk.f32.gmra.mxu0 %vm124_vm0, %v66_v23  ;;  %v86_v23 = vld [vmem:[#allocation4 + $0x110] sm:$0xff] }
  0x87   :  { %6685 = vmatmul.msk.f32.gmra.mxu1 %vm124_vm0, %v101_v20 }
  0x8e   :  { %6651 = vmatmul.msk.f32.gmra.mxu0 %vm124_vm0, %v67_v24  ;;  %v102_v24 = vld [vmem:[#allocation4 + $0x190] sm:$0xff] }
  0x8f   :  { %6686 = vmatmul.msk.f32.gmra.mxu1 %vm124_vm0, %v102_v24 }
  0x93   :  { %v7151_v25 = vpop.f32.mrf.mxu0 }
  0x94   :  { %v662_v53 = vmul.f32 %v7151_v25, %v7151_v25  ;;  %v529_v57 = vsel %vm528_vm1, %v7151_v25, 0.0 }
  0x96   :  { %6652 = vmatmul.msk.f32.gmra.mxu0 %vm124_vm0, %v68_v26  ;;  %v113_v26 = vld [vmem:[#allocation4 + $0x1e8] sm:$0xff] }
  0x97   :  { %6697 = vmatmul.msk.f32.gmra.mxu2 %vm124_vm0, %v113_v26 }
  0x9a   :  { %v7425_v52 = vpop.f32.mrf.mxu2 }
  0x9b   :  { %v7172_v27 = vpop.f32.mrf.mxu0 }
  0x9e   :  { %6653 = vmatmul.msk.f32.gmra.mxu0 %vm124_vm0, %v69_v28 }
  0xa2   :  { %v7460_v24 = vpop.f32.mrf.mxu2 }
  0xa3   :  { %v7191_v29 = vpop.f32.mrf.mxu0 }
  0xa4   :  { %v664_v56 = vmul.f32 %v7191_v29, %v7191_v29  ;;  %v532_v60 = vsel %vm528_vm1, %v7191_v29, 0.0 }
  0xa6   :  { %6654 = vmatmul.msk.f32.gmra.mxu0 %vm124_vm0, %v70_v30  ;;  %v7397_v30 = vpop.f32.mrf.mxu1  ;;  %v729_v4 = vsel %vm528_vm1, %v664_v56, 0.0 }
  0xa7   :  { %12363 = vst [vmem:[#allocation18_spill] sm:$0xff] %v7397_v30 }
  0xab   :  { %v7210_v31 = vpop.f32.mrf.mxu0 }
  0xac   :  { %v665_v61 = vmul.f32 %v7210_v31, %v7210_v31  ;;  %v534_v5 = vsel %vm528_vm1, %v7210_v31, 0.0 }
  0xae   :  { %6655 = vmatmul.msk.f32.gmra.mxu0 %vm124_vm0, %v71_v32  ;;  %v114_v32 = vld [vmem:[#allocation4 + $0x1f0] sm:$0xff] }
  0xaf   :  { %6698 = vmatmul.msk.f32.gmra.mxu2 %vm124_vm0, %v114_v32 }
  0xb3   :  { %v7230_v34 = vpop.f32.mrf.mxu0 }
  0xb4   :  { %v536_v12 = vsel %vm528_vm1, %v7230_v34, 0.0 }
  0xb6   :  { %6656 = vmatmul.msk.f32.gmra.mxu0 %vm124_vm0, %v72_v35  ;;  %v7402_v35 = vpop.f32.mrf.mxu1 }
  0xb7   :  { %12365 = vst [vmem:[#allocation20_spill] sm:$0xff] %v7402_v35  ;;  %6699 = vmatmul.msk.f32.gmra.mxu2 %vm124_vm0, %v115_v36 }
  0xbb   :  { %v7250_v37 = vpop.f32.mrf.mxu0 }
  0xbc   :  { %v667_v13 = vmul.f32 %v7250_v37, %v7250_v37 }
  0xbe   :  { %6657 = vmatmul.msk.f32.gmra.mxu0 %vm124_vm0, %v73_v38  ;;  %v7407_v39 = vpop.f32.mrf.mxu1  ;;  %v735_v26 = vsel %vm528_vm1, %v667_v13, 0.0 }
  0xc3   :  { %v7270_v40 = vpop.f32.mrf.mxu0 }
  0xc4   :  { %v668_v20 = vmul.f32 %v7270_v40, %v7270_v40  ;;  %v540_v32 = vsel %vm528_vm1, %v7270_v40, 0.0 }
  0xc6   :  { %6658 = vmatmul.msk.f32.gmra.mxu0 %vm124_vm0, %v74_v41  ;;  %v7411_v42 = vpop.f32.mrf.mxu1  ;;  %v737_v56 = vsel %vm528_vm1, %v668_v20, 0.0 }
  0xcb   :  { %v7290_v43 = vpop.f32.mrf.mxu0 }
  0xcc   :  { %v669_v36 = vmul.f32 %v7290_v43, %v7290_v43 }
  0xce   :  { %6659 = vmatmul.msk.f32.gmra.mxu0 %vm124_vm0, %v75_v44  ;;  %v7415_v45 = vpop.f32.mrf.mxu1 }
  0xd3   :  { %v7310_v46 = vpop.f32.mrf.mxu0 }
  0xd6   :  { %6660 = vmatmul.msk.f32.gmra.mxu0 %vm124_vm0, %v76_v47  ;;  %v7419_v48 = vpop.f32.mrf.mxu1 }
  0xdb   :  { %v7331_v50 = vpop.f32.mrf.mxu0 }
  0xde   :  { %6661 = vmatmul.msk.f32.gmra.mxu0 %vm124_vm0, %v77_v51  ;;  %v663_v51 = vmul.f32 %v7172_v27, %v7172_v27  ;;  %v7442_v1 = vpop.f32.mrf.mxu1 }
  0xe3   :  { %v7350_v54 = vpop.f32.mrf.mxu0 }
  0xe6   :  { %6662 = vmatmul.msk.f32.gmra.mxu0 %vm124_vm0, %v78_v55  ;;  %v530_v55 = vsel %vm528_vm1, %v7172_v27, 0.0 }
  0xeb   :  { %v7355_v58 = vpop.f32.mrf.mxu0 }
  0xee   :  { %6663 = vmatmul.msk.f32.gmra.mxu0 %vm124_vm0, %v79_v59  ;;  %v727_v59 = vsel %vm528_vm1, %v663_v51, 0.0 }
  0xf3   :  { %v7360_v62 = vpop.f32.mrf.mxu0 }
  0xf4   :  { %12355 = vst [vmem:[#allocation10_spill] sm:$0xff] %v7360_v62 }
  0xf6   :  { %6664 = vmatmul.msk.f32.gmra.mxu0 %vm124_vm0, %v80_v63  ;;  %v531_v63 = vadd.f32 %v530_v55, %v529_v57  ;;  %v542_v57 = vsel %vm528_vm1, %v7290_v43, 0.0 }
  0xf8   :  { %v533_v9 = vadd.f32 %v532_v60, %v531_v63  ;;  %v7474_v63 = vpop.f32.mrf.mxu1 }
  0xfa   :  { %v535_v16 = vadd.f32 %v534_v5, %v533_v9  ;;  %v671_v5 = vmul.f32 %v7331_v50, %v7331_v50 }
  0xfb   :  { %v7365_v2 = vpop.f32.mrf.mxu0 }
  0xfc   :  { %12356 = vst [vmem:[#allocation11_spill] sm:$0xff] %v7365_v2 }
  0xfe   :  { %6665 = vmatmul.msk.f32.gmra.mxu0 %vm124_vm0, %v81_v3  ;;  %v726_v3 = vsel %vm528_vm1, %v662_v53, 0.0 }
  0xff   :  { %v728_v8 = vadd.f32 %v727_v59, %v726_v3  ;;  %v670_v59 = vmul.f32 %v7310_v46, %v7310_v46  ;;  %v739_v3 = vsel %vm528_vm1, %v669_v36, 0.0  ;;  %v550_v36 = vsel %vm528_vm1, %v7355_v58, 0.0 }
 0x101   :  { %v741_v9 = vsel %vm528_vm1, %v670_v59, 0.0  ;;  %v552_v59 = vsel %vm528_vm1, %v7360_v62, 0.0 }
 0x103   :  { %v7370_v6 = vpop.f32.mrf.mxu0 }
 0x104   :  { %12357 = vst [vmem:[#allocation12_spill] sm:$0xff] %v7370_v6 }
 0x106   :  { %6666 = vmatmul.msk.f32.gmra.mxu0 %vm124_vm0, %v82_v7  ;;  %v666_v7 = vmul.f32 %v7230_v34, %v7230_v34 }
 0x108   :  { %v733_v17 = vsel %vm528_vm1, %v666_v7, 0.0 }
 0x10b   :  { %v7375_v10 = vpop.f32.mrf.mxu0 }
 0x10c   :  { %12358 = vst [vmem:[#allocation13_spill] sm:$0xff] %v7375_v10 }
 0x10e   :  { %6667 = vmatmul.msk.f32.gmra.mxu0 %vm124_vm0, %v83_v11  ;;  %v731_v11 = vsel %vm528_vm1, %v665_v61, 0.0 }
 0x113   :  { %v7380_v14 = vpop.f32.mrf.mxu0 }
 0x114   :  { %12359 = vst [vmem:[#allocation14_spill] sm:$0xff] %v7380_v14 }
 0x116   :  { %6668 = vmatmul.msk.f32.gmra.mxu0 %vm124_vm0, %v84_v15  ;;  %v730_v15 = vadd.f32 %v729_v4, %v728_v8  ;;  %v544_v4 = vsel %vm528_vm1, %v7310_v46, 0.0 }
 0x118   :  { %v732_v21 = vadd.f32 %v731_v11, %v730_v15  ;;  %v546_v11 = vsel %vm528_vm1, %v7331_v50, 0.0 }
 0x11a   :  { %v734_v51 = vadd.f32 %v733_v17, %v732_v21  ;;  %v548_v17 = vsel %vm528_vm1, %v7350_v54, 0.0 }
 0x11b   :  { %v7385_v18 = vpop.f32.mrf.mxu0 }
 0x11c   :  { %12360 = vst [vmem:[#allocation15_spill] sm:$0xff] %v7385_v18  ;;  %v736_v60 = vadd.f32 %v735_v26, %v734_v51  ;;  %v7493_v26 = vpop.f32.mrf.mxu2  ;;  %v674_v51 = vmul.f32 %v7360_v62, %v7360_v62 }
 0x11e   :  { %6669 = vmatmul.msk.f32.gmra.mxu0 %vm124_vm0, %v85_v19  ;;  %v538_v19 = vsel %vm528_vm1, %v7250_v37, 0.0  ;;  %v738_v7 = vadd.f32 %v737_v56, %v736_v60  ;;  %v675_v60 = vmul.f32 %v7365_v2, %v7365_v2 }
 0x120   :  { %v740_v13 = vadd.f32 %v739_v3, %v738_v7  ;;  %v554_v7 = vsel %vm528_vm1, %v7365_v2, 0.0  ;;  %v1762_v2 = vld [vmem:[#allocation2 + $0x2] sm:$0xff] }
 0x121   :  { %1890 = vrot.lane.b32.xlu1 %v1762_v2, %s6990_s1  ;;  %v526_v2 = vld [vmem:[%s12238_s4] sm:$0x1]  ;;  %s6991_s4 = smov 96  }
 0x122   :  { %v742_v20 = vadd.f32 %v741_v9, %v740_v13  ;;  %v556_v13 = vsel %vm528_vm1, %v7370_v6, 0.0 }
 0x123   :  { %v7390_v22 = vpop.f32.mrf.mxu0 }
 0x124   :  { %12361 = vst [vmem:[#allocation16_spill] sm:$0xff] %v7390_v22 }
 0x126   :  { %6670 = vmatmul.msk.f32.gmra.mxu0 %vm124_vm0, %v86_v23  ;;  %v537_v23 = vadd.f32 %v536_v12, %v535_v16  ;;  %v672_v12 = vmul.f32 %v7350_v54, %v7350_v54  ;;  %v743_v16 = vsel %vm528_vm1, %v671_v5, 0.0  ;;  %v749_v5 = vsel %vm528_vm1, %v674_v51, 0.0 }
 0x128   :  { %v539_v53 = vadd.f32 %v538_v19, %v537_v23  ;;  %v673_v19 = vmul.f32 %v7355_v58, %v7355_v58 }
 0x12a   :  { %v541_v61 = vadd.f32 %v540_v32, %v539_v53  ;;  %v745_v32 = vsel %vm528_vm1, %v672_v12, 0.0  ;;  %v744_v53 = vadd.f32 %v743_v16, %v742_v20  ;;  %v751_v12 = vsel %vm528_vm1, %v675_v60, 0.0 }
 0x12b   :  { %v7395_v28 = vpop.f32.mrf.mxu0 }
 0x12c   :  { %12362 = vst [vmem:[#allocation17_spill] sm:$0xff] %v7395_v28  ;;  %v543_v8 = vadd.f32 %v542_v57, %v541_v61  ;;  %v747_v57 = vsel %vm528_vm1, %v673_v19, 0.0  ;;  %v746_v61 = vadd.f32 %v745_v32, %v744_v53  ;;  %v678_v32 = vmul.f32 %v7380_v14, %v7380_v14  ;;  %v7524_v53 = vpop.f32.mrf.mxu2 }
 0x12e   :  { %v545_v15 = vadd.f32 %v544_v4, %v543_v8  ;;  %v7505_v4 = vpop.f32.mrf.mxu1  ;;  %v676_v8 = vmul.f32 %v7370_v6, %v7370_v6  ;;  %v748_v9 = vadd.f32 %v747_v57, %v746_v61  ;;  %v560_v57 = vsel %vm528_vm1, %v7380_v14, 0.0 }
 0x130   :  { %v547_v21 = vadd.f32 %v546_v11, %v545_v15  ;;  %v677_v15 = vmul.f32 %v7375_v10, %v7375_v10  ;;  %v750_v16 = vadd.f32 %v749_v5, %v748_v9  ;;  %v753_v20 = vsel %vm528_vm1, %v676_v8, 0.0 }
 0x131   :  { %v562_v5 = vsel %vm528_vm1, %v7385_v18, 0.0 }
 0x132   :  { %v549_v56 = vadd.f32 %v548_v17, %v547_v21  ;;  %v558_v21 = vsel %vm528_vm1, %v7375_v10, 0.0 }
 0x133   :  { %v7400_v33 = vpop.f32.mrf.mxu0 }
 0x134   :  { %12364 = vst [vmem:[#allocation19_spill] sm:$0xff] %v7400_v33  ;;  %v551_v3 = vadd.f32 %v550_v36, %v549_v56  ;;  %v752_v36 = vadd.f32 %v751_v12, %v750_v16  ;;  %v755_v56 = vsel %vm528_vm1, %v677_v15, 0.0  ;;  %v681_v15 = vmul.f32 %v7395_v28, %v7395_v28 }
 0x136   :  { %v553_v11 = vadd.f32 %v552_v59, %v551_v3  ;;  %v679_v59 = vmul.f32 %v7385_v18, %v7385_v18  ;;  %v754_v60 = vadd.f32 %v753_v20, %v752_v36  ;;  %v757_v3 = vsel %vm528_vm1, %v678_v32, 0.0 }
 0x137   :  { %v566_v32 = vsel %vm528_vm1, %v7395_v28, 0.0  ;;  %v682_v36 = vmul.f32 %v7400_v33, %v7400_v33 }
 0x138   :  { %v555_v17 = vadd.f32 %v554_v7, %v553_v11  ;;  %v680_v7 = vmul.f32 %v7390_v22, %v7390_v22  ;;  %v756_v8 = vadd.f32 %v755_v56, %v754_v60  ;;  %v7536_v11 = vpop.f32.mrf.mxu1  ;;  %v759_v12 = vsel %vm528_vm1, %v679_v59, 0.0 }
 0x139   :  { %v568_v59 = vsel %vm528_vm1, %v7400_v33, 0.0 }
 0x13a   :  { %v557_v51 = vadd.f32 %v556_v13, %v555_v17  ;;  %v564_v13 = vsel %vm528_vm1, %v7390_v22, 0.0  ;;  %v758_v16 = vadd.f32 %v757_v3, %v756_v8 }
 0x13b   :  { %v7405_v38 = vpop.f32.mrf.mxu0 }
 0x13c   :  { %12366 = vst [vmem:[#allocation21_spill] sm:$0xff] %v7405_v38  ;;  %v559_v61 = vadd.f32 %v558_v21, %v557_v51  ;;  %v761_v21 = vsel %vm528_vm1, %v680_v7, 0.0  ;;  %v760_v51 = vadd.f32 %v759_v12, %v758_v16  ;;  %v683_v60 = vmul.f32 %v7405_v38, %v7405_v38 }
 0x13d   :  { %v765_v7 = vsel %vm528_vm1, %v682_v36, 0.0  ;;  %v570_v8 = vsel %vm528_vm1, %v7405_v38, 0.0 }
 0x13e   :  { %v561_v9 = vadd.f32 %v560_v57, %v559_v61  ;;  %v763_v57 = vsel %vm528_vm1, %v681_v15, 0.0  ;;  %v762_v61 = vadd.f32 %v761_v21, %v760_v51  ;;  %v767_v15 = vsel %vm528_vm1, %v683_v60, 0.0 }
 0x140   :  { %v563_v17 = vadd.f32 %v562_v5, %v561_v9  ;;  %v7555_v5 = vpop.f32.mrf.mxu2  ;;  %v764_v12 = vadd.f32 %v763_v57, %v762_v61  ;;  %v7569_v36 = vpop.f32.mrf.mxu1 }
 0x142   :  { %v565_v56 = vadd.f32 %v564_v13, %v563_v17  ;;  %v766_v21 = vadd.f32 %v765_v7, %v764_v12 }
 0x143   :  { %v7409_v41 = vpop.f32.mrf.mxu0 }
 0x144   :  { %12367 = vst [vmem:[#allocation22_spill] sm:$0xff] %v7409_v41  ;;  %v567_v3 = vadd.f32 %v566_v32, %v565_v56  ;;  %v684_v9 = vmul.f32 %v7409_v41, %v7409_v41  ;;  %v572_v16 = vsel %vm528_vm1, %v7409_v41, 0.0  ;;  %v768_v60 = vadd.f32 %v767_v15, %v766_v21 }
 0x146   :  { %v569_v13 = vadd.f32 %v568_v59, %v567_v3  ;;  %v769_v56 = vsel %vm528_vm1, %v684_v9, 0.0 }
 0x147   :  { %v770_v12 = vadd.f32 %v769_v56, %v768_v60 }
 0x148   :  { %v571_v32 = vadd.f32 %v570_v8, %v569_v13  ;;  %v7586_v21 = vpop.f32.mrf.mxu2 }
 0x14a   :  { %v573_v61 = vadd.f32 %v572_v16, %v571_v32 }
 0x14b   :  { %v7413_v44 = vpop.f32.mrf.mxu0 }
 0x14c   :  { %12368 = vst [vmem:[#allocation23_spill] sm:$0xff] %v7413_v44  ;;  %v685_v17 = vmul.f32 %v7413_v44, %v7413_v44  ;;  %v574_v57 = vsel %vm528_vm1, %v7413_v44, 0.0 }
 0x14d   :  { %v575_v13 = vadd.f32 %v574_v57, %v573_v61 }
 0x14e   :  { %v771_v3 = vsel %vm528_vm1, %v685_v17, 0.0 }
 0x14f   :  { %v772_v15 = vadd.f32 %v771_v3, %v770_v12 }
 0x153   :  { %v7417_v47 = vpop.f32.mrf.mxu0 }
 0x154   :  { %12369 = vst [vmem:[#allocation24_spill] sm:$0xff] %v7417_v47  ;;  %v686_v59 = vmul.f32 %v7417_v47, %v7417_v47  ;;  %v576_v7 = vsel %vm528_vm1, %v7417_v47, 0.0 }
 0x155   :  { %v577_v16 = vadd.f32 %v576_v7, %v575_v13  ;;  %v7600_v13 = vpop.f32.mrf.mxu1 }
 0x156   :  { %v773_v9 = vsel %vm528_vm1, %v686_v59, 0.0 }
 0x157   :  { %v774_v57 = vadd.f32 %v773_v9, %v772_v15 }
 0x15b   :  { %v7421_v49 = vpop.f32.mrf.mxu0 }
 0x15c   :  { %12370 = vst [vmem:[#allocation25_spill] sm:$0xff] %v7421_v49  ;;  %v687_v8 = vmul.f32 %v7421_v49, %v7421_v49  ;;  %v578_v44 = vsel %vm528_vm1, %v7421_v49, 0.0 }
 0x15d   :  { %v579_v59 = vadd.f32 %v578_v44, %v577_v16 }
 0x15e   :  { %v775_v17 = vsel %vm528_vm1, %v687_v8, 0.0 }
 0x15f   :  { %v776_v12 = vadd.f32 %v775_v17, %v774_v57 }
 0x163   :  { %v7440_v0 = vpop.f32.mrf.mxu0 }
 0x164   :  { %12371 = vst [vmem:[#allocation26_spill] sm:$0xff] %v7440_v0  ;;  %v688_v41 = vmul.f32 %v7440_v0, %v7440_v0  ;;  %v580_v32 = vsel %vm528_vm1, %v7440_v0, 0.0 }
 0x165   :  { %v581_v8 = vadd.f32 %v580_v32, %v579_v59 }
 0x166   :  { %v777_v61 = vsel %vm528_vm1, %v688_v41, 0.0 }
 0x167   :  { %v778_v15 = vadd.f32 %v777_v61, %v776_v12 }
 0x16b   :  { %v7467_v55 = vpop.f32.mrf.mxu0 }
 0x16c   :  { %12372 = vst [vmem:[#allocation27_spill] sm:$0xff] %v7467_v55  ;;  %v689_v56 = vmul.f32 %v7467_v55, %v7467_v55  ;;  %v582_v3 = vsel %vm528_vm1, %v7467_v55, 0.0 }
 0x16d   :  { %v583_v41 = vadd.f32 %v582_v3, %v581_v8 }
 0x16e   :  { %v779_v0 = vsel %vm528_vm1, %v689_v56, 0.0 }
 0x16f   :  { %v780_v32 = vadd.f32 %v779_v0, %v778_v15 }
 0x173   :  { %v7491_v23 = vpop.f32.mrf.mxu0 }
 0x174   :  { %12373 = vst [vmem:[#allocation28_spill] sm:$0xff] %v7491_v23  ;;  %v690_v7 = vmul.f32 %v7491_v23, %v7491_v23  ;;  %v584_v9 = vsel %vm528_vm1, %v7491_v23, 0.0 }
 0x175   :  { %v585_v57 = vadd.f32 %v584_v9, %v583_v41 }
 0x176   :  { %v781_v16 = vsel %vm528_vm1, %v690_v7, 0.0  ;;  %v7619_v7 = vpop.f32.mrf.mxu2 }
 0x177   :  { %v782_v61 = vadd.f32 %v781_v16, %v780_v32 }
 0x17b   :  { %v7517_v19 = vpop.f32.mrf.mxu0 }
 0x17c   :  { %12374 = vst [vmem:[#allocation29_spill] sm:$0xff] %v7517_v19  ;;  %v691_v44 = vmul.f32 %v7517_v19, %v7517_v19  ;;  %v586_v55 = vsel %vm528_vm1, %v7517_v19, 0.0 }
 0x17d   :  { %v587_v3 = vadd.f32 %v586_v55, %v585_v57 }
 0x17e   :  { %v783_v56 = vsel %vm528_vm1, %v691_v44, 0.0 }
 0x17f   :  { %v784_v44 = vadd.f32 %v783_v56, %v782_v61 }
 0x183   :  { %v7543_v20 = vpop.f32.mrf.mxu0 }
 0x184   :  { %12375 = vst [vmem:[#allocation30_spill] sm:$0xff] %v7543_v20  ;;  %v692_v17 = vmul.f32 %v7543_v20, %v7543_v20  ;;  %v588_v59 = vsel %vm528_vm1, %v7543_v20, 0.0  ;;  %v7631_v20 = vpop.f32.mrf.mxu1 }
 0x185   :  { %v589_v15 = vadd.f32 %v588_v59, %v587_v3 }
 0x186   :  { %v785_v8 = vsel %vm528_vm1, %v692_v17, 0.0 }
 0x187   :  { %v786_v32 = vadd.f32 %v785_v8, %v784_v44 }
 0x18b   :  { %v7567_v51 = vpop.f32.mrf.mxu0 }
 0x18c   :  { %12376 = vst [vmem:[#allocation31_spill] sm:$0xff] %v7567_v51  ;;  %v693_v23 = vmul.f32 %v7567_v51, %v7567_v51  ;;  %v590_v0 = vsel %vm528_vm1, %v7567_v51, 0.0 }
 0x18d   :  { %v591_v57 = vadd.f32 %v590_v0, %v589_v15  ;;  %v7645_v15 = vpop.f32.mrf.mxu2 }
 0x18e   :  { %v787_v41 = vsel %vm528_vm1, %v693_v23, 0.0 }
 0x18f   :  { %v788_v19 = vadd.f32 %v787_v41, %v786_v32  ;;  %v598_v41 = vsel %vm528_vm1, %v7397_v30, 0.0 }
 0x193   :  { %v7593_v60 = vpop.f32.mrf.mxu0 }
 0x194   :  { %12377 = vst [vmem:[#allocation32_spill] sm:$0xff] %v7593_v60  ;;  %v694_v9 = vmul.f32 %v7593_v60, %v7593_v60  ;;  %v592_v16 = vsel %vm528_vm1, %v7593_v60, 0.0  ;;  %v697_v60 = vmul.f32 %v7397_v30, %v7397_v30  ;;  %v707_v30 = vmul.f32 %v7569_v36, %v7569_v36 }
 0x195   :  { %v593_v56 = vadd.f32 %v592_v16, %v591_v57  ;;  %v600_v57 = vsel %vm528_vm1, %v7402_v35, 0.0 }
 0x196   :  { %v789_v17 = vsel %vm528_vm1, %v694_v9, 0.0  ;;  %v795_v32 = vsel %vm528_vm1, %v697_v60, 0.0 }
 0x197   :  { %v790_v23 = vadd.f32 %v789_v17, %v788_v19  ;;  %v698_v19 = vmul.f32 %v7402_v35, %v7402_v35  ;;  %v699_v17 = vmul.f32 %v7407_v39, %v7407_v39  ;;  %v612_v35 = vsel %vm528_vm1, %v7474_v63, 0.0 }
 0x19b   :  { %v7617_v12 = vpop.f32.mrf.mxu0 }
 0x19c   :  { %12378 = vst [vmem:[#allocation33_spill] sm:$0xff] %v7617_v12  ;;  %v695_v55 = vmul.f32 %v7617_v12, %v7617_v12  ;;  %v594_v51 = vsel %vm528_vm1, %v7617_v12, 0.0 }
 0x19d   :  { %v595_v61 = vadd.f32 %v594_v51, %v593_v56 }
 0x19e   :  { %v791_v59 = vsel %vm528_vm1, %v695_v55, 0.0 }
 0x19f   :  { %v792_v9 = vadd.f32 %v791_v59, %v790_v23  ;;  %v7657_v23 = vpop.f32.mrf.mxu1 }
 0x1a3   :  { %v7637_v3 = vpop.f32.mrf.mxu0 }
 0x1a4   :  { %12379 = vst [vmem:[#allocation34_spill] sm:$0xff] %v7637_v3  ;;  %v596_v8 = vsel %vm528_vm1, %v7637_v3, 0.0  ;;  %v696_v0 = vmul.f32 %v7637_v3, %v7637_v3  ;;  %v622_v3 = vsel %vm528_vm1, %v7631_v20, 0.0 }
 0x1a5   :  { %v597_v44 = vadd.f32 %v596_v8, %v595_v61  ;;  %v797_v61 = vsel %vm528_vm1, %v698_v19, 0.0  ;;  %v602_v8 = vsel %vm528_vm1, %v7407_v39, 0.0 }
 0x1a6   :  { %v793_v51 = vsel %vm528_vm1, %v696_v0, 0.0  ;;  %v700_v0 = vmul.f32 %v7411_v42, %v7411_v42 }
 0x1a7   :  { %v599_v16 = vadd.f32 %v598_v41, %v597_v44  ;;  %v794_v55 = vadd.f32 %v793_v51, %v792_v9  ;;  %v799_v44 = vsel %vm528_vm1, %v699_v17, 0.0  ;;  %v604_v41 = vsel %vm528_vm1, %v7411_v42, 0.0 }
 0x1a8   :  { %v701_v51 = vmul.f32 %v7415_v45, %v7415_v45  ;;  %v801_v19 = vsel %vm528_vm1, %v700_v0, 0.0 }
 0x1a9   :  { %v601_v56 = vadd.f32 %v600_v57, %v599_v16  ;;  %v796_v59 = vadd.f32 %v795_v32, %v794_v55  ;;  %v606_v32 = vsel %vm528_vm1, %v7415_v45, 0.0  ;;  %v702_v57 = vmul.f32 %v7419_v48, %v7419_v48 }
 0x1aa   :  { %v803_v17 = vsel %vm528_vm1, %v701_v51, 0.0 }
 0x1ab   :  { %v603_v9 = vadd.f32 %v602_v8, %v601_v56  ;;  %v798_v60 = vadd.f32 %v797_v61, %v796_v59  ;;  %v7674_v61 = vpop.f32.mrf.mxu2  ;;  %v608_v8 = vsel %vm528_vm1, %v7419_v48, 0.0 }
 0x1ad   :  { %v605_v16 = vadd.f32 %v604_v41, %v603_v9  ;;  %v800_v55 = vadd.f32 %v799_v44, %v798_v60  ;;  %v703_v9 = vmul.f32 %v7442_v1, %v7442_v1  ;;  %v805_v44 = vsel %vm528_vm1, %v702_v57, 0.0 }
 0x1ae   :  { %v610_v41 = vsel %vm528_vm1, %v7442_v1, 0.0 }
 0x1af   :  { %v607_v56 = vadd.f32 %v606_v32, %v605_v16  ;;  %v802_v59 = vadd.f32 %v801_v19, %v800_v55  ;;  %v704_v16 = vmul.f32 %v7474_v63, %v7474_v63  ;;  %v7686_v32 = vpop.f32.mrf.mxu1  ;;  %v807_v51 = vsel %vm528_vm1, %v703_v9, 0.0 }
 0x1b0   :  { %v626_v12 = vsel %vm528_vm1, %v7686_v32, 0.0 }
 0x1b1   :  { %v804_v60 = vadd.f32 %v803_v17, %v802_v59  ;;  %v609_v0 = vadd.f32 %v608_v8, %v607_v56  ;;  %v705_v56 = vmul.f32 %v7505_v4, %v7505_v4  ;;  %v809_v17 = vsel %vm528_vm1, %v704_v16, 0.0 }
 0x1b2   :  { %v614_v8 = vsel %vm528_vm1, %v7505_v4, 0.0 }
 0x1b3   :  { %v611_v55 = vadd.f32 %v610_v41, %v609_v0  ;;  %v806_v19 = vadd.f32 %v805_v44, %v804_v60  ;;  %v706_v60 = vmul.f32 %v7536_v11, %v7536_v11  ;;  %v811_v9 = vsel %vm528_vm1, %v705_v56, 0.0 }
 0x1b4   :  { %v616_v41 = vsel %vm528_vm1, %v7536_v11, 0.0 }
 0x1b5   :  { %v613_v59 = vadd.f32 %v612_v35, %v611_v55  ;;  %v808_v57 = vadd.f32 %v807_v51, %v806_v19  ;;  %v7703_v19 = vpop.f32.mrf.mxu2  ;;  %v813_v16 = vsel %vm528_vm1, %v706_v60, 0.0  ;;  %v618_v51 = vsel %vm528_vm1, %v7569_v36, 0.0 }
 0x1b7   :  { %v615_v0 = vadd.f32 %v614_v8, %v613_v59  ;;  %v810_v44 = vadd.f32 %v809_v17, %v808_v57  ;;  %v708_v59 = vmul.f32 %v7600_v13, %v7600_v13  ;;  %v815_v17 = vsel %vm528_vm1, %v707_v30, 0.0 }
 0x1b8   :  { %v620_v8 = vsel %vm528_vm1, %v7600_v13, 0.0 }
 0x1b9   :  { %v617_v35 = vadd.f32 %v616_v41, %v615_v0  ;;  %v812_v55 = vadd.f32 %v811_v9, %v810_v44  ;;  %v709_v0 = vmul.f32 %v7631_v20, %v7631_v20  ;;  %v7715_v41 = vpop.f32.mrf.mxu1  ;;  %v817_v60 = vsel %vm528_vm1, %v708_v59, 0.0 }
 0x1bb   :  { %v619_v57 = vadd.f32 %v618_v51, %v617_v35  ;;  %v814_v56 = vadd.f32 %v813_v16, %v812_v55  ;;  %v710_v35 = vmul.f32 %v7657_v23, %v7657_v23  ;;  %v819_v16 = vsel %vm528_vm1, %v709_v0, 0.0 }
 0x1bc   :  { %v624_v51 = vsel %vm528_vm1, %v7657_v23, 0.0 }
 0x1bd   :  { %v621_v44 = vadd.f32 %v620_v8, %v619_v57  ;;  %v816_v9 = vadd.f32 %v815_v17, %v814_v56  ;;  %v711_v57 = vmul.f32 %v7686_v32, %v7686_v32  ;;  %v712_v56 = vmul.f32 %v7715_v41, %v7715_v41 }
 0x1be   :  { %v821_v8 = vsel %vm528_vm1, %v710_v35, 0.0  ;;  %v630_v35 = vsel %vm528_vm1, %v7425_v52, 0.0 }
 0x1bf   :  { %v818_v55 = vadd.f32 %v817_v60, %v816_v9  ;;  %v623_v30 = vadd.f32 %v622_v3, %v621_v44  ;;  %v628_v3 = vsel %vm528_vm1, %v7715_v41, 0.0  ;;  %v7734_v9 = vpop.f32.mrf.mxu2  ;;  %v713_v60 = vmul.f32 %v7425_v52, %v7425_v52 }
 0x1c0   :  { %v823_v49 = vsel %vm528_vm1, %v711_v57, 0.0  ;;  %v715_v57 = vmul.f32 %v7493_v26, %v7493_v26 }
 0x1c1   :  { %v820_v59 = vadd.f32 %v819_v16, %v818_v55  ;;  %v625_v17 = vadd.f32 %v624_v51, %v623_v30  ;;  %v825_v55 = vsel %vm528_vm1, %v712_v56, 0.0  ;;  %v714_v51 = vmul.f32 %v7460_v24, %v7460_v24 }
 0x1c3   :  { %v822_v0 = vadd.f32 %v821_v8, %v820_v59  ;;  %v627_v44 = vadd.f32 %v626_v12, %v625_v17  ;;  %v827_v12 = vsel %vm528_vm1, %v713_v60, 0.0  ;;  %v632_v17 = vsel %vm528_vm1, %v7460_v24, 0.0 }
 0x1c4   :  { %v831_v60 = vsel %vm528_vm1, %v715_v57, 0.0 }
 0x1c5   :  { %v824_v30 = vadd.f32 %v823_v49, %v822_v0  ;;  %v629_v16 = vadd.f32 %v628_v3, %v627_v44  ;;  %v829_v49 = vsel %vm528_vm1, %v714_v51, 0.0  ;;  %v634_v3 = vsel %vm528_vm1, %v7493_v26, 0.0 }
 0x1c6   :  { %v716_v0 = vmul.f32 %v7524_v53, %v7524_v53 }
 0x1c7   :  { %v631_v47 = vadd.f32 %v630_v35, %v629_v16  ;;  %v826_v59 = vadd.f32 %v825_v55, %v824_v30  ;;  %v636_v30 = vsel %vm528_vm1, %v7524_v53, 0.0  ;;  %v717_v16 = vmul.f32 %v7555_v5, %v7555_v5 }
 0x1c8   :  { %v833_v51 = vsel %vm528_vm1, %v716_v0, 0.0 }
 0x1c9   :  { %v633_v8 = vadd.f32 %v632_v17, %v631_v47  ;;  %v828_v56 = vadd.f32 %v827_v12, %v826_v59  ;;  %v7759_v59 = vpop.f32.mrf.mxu2  ;;  %v638_v12 = vsel %vm528_vm1, %v7555_v5, 0.0  ;;  %v718_v17 = vmul.f32 %v7586_v21, %v7586_v21 }
 0x1ca   :  { %v652_v38 = vsel %vm528_vm1, %v7759_v59, 0.0 }
 0x1cb   :  { %v635_v44 = vadd.f32 %v634_v3, %v633_v8  ;;  %v830_v55 = vadd.f32 %v829_v49, %v828_v56  ;;  %v835_v56 = vsel %vm528_vm1, %v717_v16, 0.0  ;;  %v640_v49 = vsel %vm528_vm1, %v7586_v21, 0.0 }
 0x1cc   :  { %v719_v3 = vmul.f32 %v7619_v7, %v7619_v7  ;;  %v837_v0 = vsel %vm528_vm1, %v718_v17, 0.0 }
 0x1cd   :  { %v637_v47 = vadd.f32 %v636_v30, %v635_v44  ;;  %v832_v35 = vadd.f32 %v831_v60, %v830_v55  ;;  %v642_v60 = vsel %vm528_vm1, %v7619_v7, 0.0  ;;  %v720_v30 = vmul.f32 %v7645_v15, %v7645_v15 }
 0x1ce   :  { %v839_v16 = vsel %vm528_vm1, %v719_v3, 0.0 }
 0x1cf   :  { %v834_v8 = vadd.f32 %v833_v51, %v832_v35  ;;  %v639_v57 = vadd.f32 %v638_v12, %v637_v47  ;;  %v644_v51 = vsel %vm528_vm1, %v7645_v15, 0.0  ;;  %v721_v12 = vmul.f32 %v7674_v61, %v7674_v61 }
 0x1d0   :  { %v841_v17 = vsel %vm528_vm1, %v720_v30, 0.0 }
 0x1d1   :  { %v641_v44 = vadd.f32 %v640_v49, %v639_v57  ;;  %v836_v55 = vadd.f32 %v835_v56, %v834_v8  ;;  %v646_v56 = vsel %vm528_vm1, %v7674_v61, 0.0  ;;  %v722_v49 = vmul.f32 %v7703_v19, %v7703_v19 }
 0x1d2   :  { %v843_v3 = vsel %vm528_vm1, %v721_v12, 0.0 }
 0x1d3   :  { %v643_v35 = vadd.f32 %v642_v60, %v641_v44  ;;  %v838_v47 = vadd.f32 %v837_v0, %v836_v55  ;;  %v523_v0 = vpop.f32.mrf.mxu2  ;;  %v648_v60 = vsel %vm528_vm1, %v7703_v19, 0.0  ;;  %v845_v30 = vsel %vm528_vm1, %v722_v49, 0.0 }
 0x1d4   :  { %v654_v33 = vsel %vm528_vm1, %v523_v0, 0.0 }
 0x1d5   :  { %v645_v57 = vadd.f32 %v644_v51, %v643_v35  ;;  %v840_v8 = vadd.f32 %v839_v16, %v838_v47  ;;  %v723_v35 = vmul.f32 %v7734_v9, %v7734_v9  ;;  %v650_v51 = vsel %vm528_vm1, %v7734_v9, 0.0 }
 0x1d7   :  { %v647_v44 = vadd.f32 %v646_v56, %v645_v57  ;;  %v842_v55 = vadd.f32 %v841_v17, %v840_v8  ;;  %v724_v57 = vmul.f32 %v7759_v59, %v7759_v59  ;;  %v725_v8 = vmul.f32 %v523_v0, %v523_v0 }
 0x1d8   :  { %v847_v12 = vsel %vm528_vm1, %v723_v35, 0.0 }
 0x1d9   :  { %v649_v47 = vadd.f32 %v648_v60, %v647_v44  ;;  %v844_v16 = vadd.f32 %v843_v3, %v842_v55  ;;  %v849_v49 = vsel %vm528_vm1, %v724_v57, 0.0  ;;  %v851_v3 = vsel %vm528_vm1, %v725_v8, 0.0 }
 0x1db   :  { %v846_v17 = vadd.f32 %v845_v30, %v844_v16  ;;  %v651_v56 = vadd.f32 %v650_v51, %v649_v47 }
 0x1dd   :  { %v848_v44 = vadd.f32 %v847_v12, %v846_v17  ;;  %v653_v55 = vadd.f32 %v652_v38, %v651_v56 }
 0x1df   :  { %v850_v60 = vadd.f32 %v849_v49, %v848_v44  ;;  %v655_v28 = vadd.f32 %v654_v33, %v653_v55  ;;  %v527_v49 = vld [vmem:[%s12239_s5] sm:$0x1]  ;;  %s6992_s5 = smov 32  }
 0x1e1   :  { %v656_v22 = vrot.slane %v655_v28, 4  ;;  %v852_v18 = vadd.f32 %v851_v3, %v850_v60 }
 0x1e3   :  { %v657_v14 = vadd.f32 %v656_v22, %v655_v28  ;;  %v853_v16 = vrot.slane %v852_v18, 4 }
 0x1e5   :  { %v658_v47 = vrot.slane %v657_v14, 2  ;;  %v854_v30 = vadd.f32 %v853_v16, %v852_v18 }
 0x1e7   :  { %v659_v35 = vadd.f32 %v658_v47, %v657_v14  ;;  %v855_v51 = vrot.slane %v854_v30, 2  ;;  %v1763_v14 = vld [vmem:[#allocation2 + $0xa] sm:$0xff] }
 0x1e8   :  { %1892 = vrot.lane.b32.xlu1 %v1763_v14, %s6990_s1 }
 0x1e9   :  { %v660_v10 = vrot.slane %v659_v35, 1  ;;  %v856_v6 = vadd.f32 %v855_v51, %v854_v30 }
 0x1eb   :  { %v661_v62 = vadd.f32 %v660_v10, %v659_v35  ;;  %v857_v17 = vrot.slane %v856_v6, 1 }
 0x1ed   :  { %v858_v38 = vadd.f32 %v857_v17, %v856_v6  ;;  %v859_v57 = vmul.f32 0.001953125, %v661_v62  ;;  %v3459_v17 = vld [vmem:[#allocation2 + $0x199] sm:$0xff] }
 0x1ee   :  { %3617 = vrot.lane.b32.xlu2 %v3459_v17, %s6991_s4 }
 0x1ef   :  { %v860_v8 = vmul.f32 0.001953125, %v858_v38  ;;  %v861_v33 = vmul.f32 %v859_v57, %v859_v57 }
 0x1f1   :  { %v862_v56 = vsub.f32 %v860_v8, %v861_v33 }
 0x1f3   :  { %v863_v12 = vadd.f32 1e-05, %v862_v56 }
 0x1f5   :  { %6860 = vrsqrt.f32 %v863_v12  ;;  %vm870_vm4 = vweird.f32 %v863_v12 }
 0x1fb   :  { %v6861_v22 = vpop.eup %6860 }
 0x1fc   :  { %v865_v28 = vmul.f32 %v6861_v22, %v863_v12  ;;  %vm871_vm3 = vweird.f32 %v6861_v22 }
 0x1fd   :  { %vm872_vm5 = vmor %vm870_vm4, %vm871_vm3 }
 0x1fe   :  { %v866_v18 = vmul.f32 %v6861_v22, %v865_v28 }
 0x200   :  { %v867_v44 = vmul.f32 0.5, %v866_v18 }
 0x202   :  { %v868_v55 = vsub.f32 1.5, %v867_v44 }
 0x204   :  { %v869_v6 = vmul.f32 %v6861_v22, %v868_v55 }
 0x206   :  { %v873_v62 = vsel %vm872_vm5, %v6861_v22, %v869_v6 }
 0x207   :  { %v874_v10 = vmul.f32 %v873_v62, %v526_v2 }
 0x209   :  { %v875_v3 = vmul.f32 %v874_v10, %v859_v57  ;;  %v7810_v60 = vperm.slane %v874_v10, 0 }
 0x20b   :  { %v876_v16 = vsub.f32 %v527_v49, %v875_v3  ;;  %v943_v47 = vmul.f32 %v7810_v60, %v523_v0  ;;  %v880_v38 = vmul.f32 %v7810_v60, %v7151_v25  ;;  %v881_v57 = vmul.f32 %v7810_v60, %v7172_v27 }
 0x20c   :  { %v882_v0 = vmul.f32 %v7810_v60, %v7191_v29  ;;  %v883_v8 = vmul.f32 %v7810_v60, %v7210_v31  ;;  %v884_v33 = vmul.f32 %v7810_v60, %v7230_v34  ;;  %v885_v56 = vmul.f32 %v7810_v60, %v7250_v37 }
 0x20d   :  { %v7813_v30 = vperm.slane %v876_v16, 0  ;;  %v886_v12 = vmul.f32 %v7810_v60, %v7270_v40  ;;  %v7834_v25 = vmul.f32 %v7810_v60, %v7290_v43  ;;  %v7838_v27 = vmul.f32 %v7810_v60, %v7310_v46 }
 0x20e   :  { %v7842_v29 = vmul.f32 %v7810_v60, %v7331_v50  ;;  %v917_v31 = vmul.f32 %v7810_v60, %v7407_v39  ;;  %v918_v34 = vmul.f32 %v7810_v60, %v7411_v42  ;;  %v919_v37 = vmul.f32 %v7810_v60, %v7415_v45 }
 0x20f   :  { %v1010_v35 = vadd.f32 %v7813_v30, %v943_v47  ;;  %v920_v40 = vmul.f32 %v7810_v60, %v7419_v48  ;;  %v921_v43 = vmul.f32 %v7810_v60, %v7442_v1  ;;  %v922_v46 = vmul.f32 %v7810_v60, %v7474_v63 }
 0x210   :  { %v923_v50 = vmul.f32 %v7810_v60, %v7505_v4  ;;  %v924_v39 = vmul.f32 %v7810_v60, %v7536_v11  ;;  %v925_v42 = vmul.f32 %v7810_v60, %v7569_v36  ;;  %v926_v45 = vmul.f32 %v7810_v60, %v7600_v13 }
 0x211   :  { %v1074_v51 = vmax.f32 %v1010_v35, 0.0  ;;  %v927_v48 = vmul.f32 %v7810_v60, %v7631_v20  ;;  %v928_v1 = vmul.f32 %v7810_v60, %v7657_v23  ;;  %v929_v63 = vmul.f32 %v7810_v60, %v7686_v32 }
 0x212   :  { %v930_v4 = vmul.f32 %v7810_v60, %v7715_v41  ;;  %v931_v11 = vmul.f32 %v7810_v60, %v7425_v52  ;;  %v932_v36 = vmul.f32 %v7810_v60, %v7460_v24  ;;  %v933_v13 = vmul.f32 %v7810_v60, %v7493_v26 }
 0x213   :  { %1248 = vst.msk [vmem:[#allocation2 + $0x339] sm:$0xff] %vm528_vm1, %v1074_v51  ;;  %v934_v20 = vmul.f32 %v7810_v60, %v7524_v53  ;;  %v935_v23 = vmul.f32 %v7810_v60, %v7555_v5  ;;  %v936_v32 = vmul.f32 %v7810_v60, %v7586_v21  ;;  %v937_v41 = vmul.f32 %v7810_v60, %v7619_v7 }
 0x214   :  { %v938_v52 = vmul.f32 %v7810_v60, %v7645_v15  ;;  %v939_v24 = vmul.f32 %v7810_v60, %v7674_v61  ;;  %v940_v26 = vmul.f32 %v7810_v60, %v7703_v19  ;;  %v941_v53 = vmul.f32 %v7810_v60, %v7734_v9 }
 0x215   :  { %v942_v5 = vmul.f32 %v7810_v60, %v7759_v59  ;;  %v947_v21 = vadd.f32 %v7813_v30, %v880_v38  ;;  %v948_v22 = vadd.f32 %v7813_v30, %v881_v57  ;;  %v949_v7 = vadd.f32 %v7813_v30, %v882_v0 }
 0x216   :  { %v950_v15 = vadd.f32 %v7813_v30, %v883_v8  ;;  %v951_v28 = vadd.f32 %v7813_v30, %v884_v33  ;;  %v952_v61 = vadd.f32 %v7813_v30, %v885_v56  ;;  %v953_v19 = vadd.f32 %v7813_v30, %v886_v12 }
 0x217   :  { %v7904_v18 = vadd.f32 %v7813_v30, %v917_v31  ;;  %v7907_v9 = vadd.f32 %v7813_v30, %v918_v34  ;;  %v7910_v59 = vadd.f32 %v7813_v30, %v919_v37  ;;  %v7913_v14 = vadd.f32 %v7813_v30, %v920_v40 }
 0x218   :  { %v7916_v44 = vadd.f32 %v7813_v30, %v921_v43  ;;  %v7919_v55 = vadd.f32 %v7813_v30, %v922_v46  ;;  %v7922_v2 = vadd.f32 %v7813_v30, %v923_v50  ;;  %v7925_v6 = vadd.f32 %v7813_v30, %v924_v39 }
 0x219   :  { %v7928_v62 = vadd.f32 %v7813_v30, %v925_v42  ;;  %v7931_v10 = vadd.f32 %v7813_v30, %v926_v45  ;;  %v7934_v49 = vadd.f32 %v7813_v30, %v927_v48  ;;  %v7937_v3 = vadd.f32 %v7813_v30, %v928_v1 }
 0x21a   :  { %v7940_v16 = vadd.f32 %v7813_v30, %v929_v63  ;;  %v7943_v47 = vadd.f32 %v7813_v30, %v930_v4  ;;  %v7946_v35 = vadd.f32 %v7813_v30, %v931_v11  ;;  %v7949_v51 = vadd.f32 %v7813_v30, %v932_v36 }
 0x21b   :  { %v7952_v17 = vadd.f32 %v7813_v30, %v933_v13  ;;  %v7955_v38 = vadd.f32 %v7813_v30, %v934_v20  ;;  %v7958_v57 = vadd.f32 %v7813_v30, %v935_v23  ;;  %v7961_v0 = vadd.f32 %v7813_v30, %v936_v32 }
 0x21c   :  { %v7964_v8 = vadd.f32 %v7813_v30, %v937_v41  ;;  %v7967_v33 = vadd.f32 %v7813_v30, %v938_v52  ;;  %v7970_v56 = vadd.f32 %v7813_v30, %v939_v24  ;;  %v7973_v12 = vadd.f32 %v7813_v30, %v940_v26  ;;  %v12383_v41 = vld [vmem:[#allocation13_spill] sm:$0xff] }
 0x21d   :  { %v7976_v31 = vadd.f32 %v7813_v30, %v941_v53  ;;  %v7979_v34 = vadd.f32 %v7813_v30, %v942_v5  ;;  %v1011_v37 = vmax.f32 %v947_v21, 0.0  ;;  %v954_v40 = vadd.f32 %v7813_v30, %v7834_v25  ;;  %v12380_v25 = vld [vmem:[#allocation10_spill] sm:$0xff] }
 0x21e   :  { %v1012_v43 = vmax.f32 %v948_v22, 0.0  ;;  %v1013_v46 = vmax.f32 %v949_v7, 0.0  ;;  %v1014_v50 = vmax.f32 %v950_v15, 0.0  ;;  %v890_v39 = vmul.f32 %v7810_v60, %v7350_v54  ;;  %v12384_v53 = vld [vmem:[#allocation14_spill] sm:$0xff]  ;;  %v12385_v7 = vld [vmem:[#allocation15_spill] sm:$0xff] }
 0x21f   :  { %v955_v42 = vadd.f32 %v7813_v30, %v7838_v27  ;;  %v1015_v45 = vmax.f32 %v951_v28, 0.0  ;;  %1185 = vst.msk [vmem:[#allocation2 + $0x19] sm:$0xff] %vm528_vm1, %v1011_v37  ;;  %v891_v48 = vmul.f32 %v7810_v60, %v7355_v58  ;;  %v956_v1 = vadd.f32 %v7813_v30, %v7842_v29  ;;  %v12381_v27 = vld [vmem:[#allocation11_spill] sm:$0xff]  ;;  %v12382_v29 = vld [vmem:[#allocation12_spill] sm:$0xff] }
 0x220   :  { %v1016_v63 = vmax.f32 %v952_v61, 0.0  ;;  %1186 = vst.msk [vmem:[#allocation2 + $0x21] sm:$0xff] %vm528_vm1, %v1012_v43  ;;  %v892_v4 = vmul.f32 %v7810_v60, %v12380_v25  ;;  %v957_v54 = vadd.f32 %v7813_v30, %v890_v39  ;;  %v1017_v11 = vmax.f32 %v953_v19, 0.0  ;;  %v12386_v19 = vld [vmem:[#allocation16_spill] sm:$0xff]  ;;  %v12389_v25 = vld [vmem:[#allocation21_spill] sm:$0xff] }
 0x221   :  { %1187 = vst.msk [vmem:[#allocation2 + $0x31] sm:$0xff] %vm528_vm1, %v1013_v46  ;;  %v893_v36 = vmul.f32 %v7810_v60, %v12381_v27  ;;  %v958_v13 = vadd.f32 %v7813_v30, %v891_v48  ;;  %v1018_v58 = vmax.f32 %v954_v40, 0.0  ;;  %v894_v20 = vmul.f32 %v7810_v60, %v12382_v29  ;;  %v12387_v46 = vld [vmem:[#allocation17_spill] sm:$0xff]  ;;  %v12390_v27 = vld [vmem:[#allocation22_spill] sm:$0xff]  ;;  %v12391_v29 = vld [vmem:[#allocation23_spill] sm:$0xff] }
 0x222   :  { %1188 = vst.msk [vmem:[#allocation2 + $0x39] sm:$0xff] %vm528_vm1, %v1014_v50  ;;  %v959_v23 = vadd.f32 %v7813_v30, %v892_v4  ;;  %v1019_v32 = vmax.f32 %v955_v42, 0.0  ;;  %v895_v52 = vmul.f32 %v7810_v60, %v12383_v41  ;;  %v1020_v26 = vmax.f32 %v956_v1, 0.0  ;;  %v12392_v41 = vld [vmem:[#allocation24_spill] sm:$0xff] }
 0x223   :  { %1189 = vst.msk [vmem:[#allocation2 + $0x49] sm:$0xff] %vm528_vm1, %v1015_v45  ;;  %v960_v24 = vadd.f32 %v7813_v30, %v893_v36  ;;  %v896_v5 = vmul.f32 %v7810_v60, %v12384_v53  ;;  %v961_v21 = vadd.f32 %v7813_v30, %v894_v20  ;;  %v1021_v22 = vmax.f32 %v957_v54, 0.0  ;;  %v12388_v45 = vld [vmem:[#allocation19_spill] sm:$0xff]  ;;  %v12393_v53 = vld [vmem:[#allocation25_spill] sm:$0xff] }
 0x224   :  { %1190 = vst.msk [vmem:[#allocation2 + $0x51] sm:$0xff] %vm528_vm1, %v1016_v63  ;;  %v897_v15 = vmul.f32 %v7810_v60, %v12385_v7  ;;  %v962_v28 = vadd.f32 %v7813_v30, %v895_v52  ;;  %v1022_v61 = vmax.f32 %v958_v13, 0.0  ;;  %v898_v37 = vmul.f32 %v7810_v60, %v12386_v19  ;;  %v12394_v7 = vld [vmem:[#allocation26_spill] sm:$0xff]  ;;  %v12395_v19 = vld [vmem:[#allocation27_spill] sm:$0xff] }
 0x225   :  { %1191 = vst.msk [vmem:[#allocation2 + $0x61] sm:$0xff] %vm528_vm1, %v1017_v11  ;;  %v963_v40 = vadd.f32 %v7813_v30, %v896_v5  ;;  %v1023_v43 = vmax.f32 %v959_v23, 0.0  ;;  %v899_v50 = vmul.f32 %v7810_v60, %v12387_v46  ;;  %v1024_v42 = vmax.f32 %v960_v24, 0.0  ;;  %v12396_v46 = vld [vmem:[#allocation28_spill] sm:$0xff] }
 0x226   :  { %1192 = vst.msk [vmem:[#allocation2 + $0x69] sm:$0xff] %vm528_vm1, %v1018_v58  ;;  %v964_v39 = vadd.f32 %v7813_v30, %v897_v15  ;;  %v900_v48 = vmul.f32 %v7810_v60, %v12388_v45  ;;  %v965_v1 = vadd.f32 %v7813_v30, %v898_v37  ;;  %v1025_v63 = vmax.f32 %v961_v21, 0.0  ;;  %v12397_v45 = vld [vmem:[#allocation29_spill] sm:$0xff] }
 0x227   :  { %1193 = vst.msk [vmem:[#allocation2 + $0x79] sm:$0xff] %vm528_vm1, %v1019_v32  ;;  %v901_v4 = vmul.f32 %v7810_v60, %v12389_v25  ;;  %v966_v54 = vadd.f32 %v7813_v30, %v899_v50  ;;  %v1026_v11 = vmax.f32 %v962_v28, 0.0  ;;  %v902_v36 = vmul.f32 %v7810_v60, %v12390_v27  ;;  %v12398_v25 = vld [vmem:[#allocation30_spill] sm:$0xff]  ;;  %v12399_v27 = vld [vmem:[#allocation31_spill] sm:$0xff] }
 0x228   :  { %1194 = vst.msk [vmem:[#allocation2 + $0x81] sm:$0xff] %vm528_vm1, %v1020_v26  ;;  %v967_v13 = vadd.f32 %v7813_v30, %v900_v48  ;;  %v1027_v58 = vmax.f32 %v963_v40, 0.0  ;;  %v903_v20 = vmul.f32 %v7810_v60, %v12391_v29  ;;  %v1028_v32 = vmax.f32 %v964_v39, 0.0  ;;  %v3075_v29 = vld [vmem:[#allocation2 + $0x198] sm:$0xff] }
 0x229   :  { %1195 = vst.msk [vmem:[#allocation2 + $0x91] sm:$0xff] %vm528_vm1, %v1021_v22  ;;  %v968_v23 = vadd.f32 %v7813_v30, %v901_v4  ;;  %v904_v52 = vmul.f32 %v7810_v60, %v12392_v41  ;;  %v969_v24 = vadd.f32 %v7813_v30, %v902_v36  ;;  %v1029_v26 = vmax.f32 %v965_v1, 0.0  ;;  %3233 = vrot.lane.b32.xlu1 %v3075_v29, %s6990_s1 }
 0x22a   :  { %1196 = vst.msk [vmem:[#allocation2 + $0x99] sm:$0xff] %vm528_vm1, %v1022_v61  ;;  %v905_v5 = vmul.f32 %v7810_v60, %v12393_v53  ;;  %v970_v21 = vadd.f32 %v7813_v30, %v903_v20  ;;  %v1030_v22 = vmax.f32 %v966_v54, 0.0  ;;  %v906_v15 = vmul.f32 %v7810_v60, %v12394_v7  ;;  %v1377_v20 = vld [vmem:[#allocation2 + $0x1] sm:$0xff] }
 0x22b   :  { %1197 = vst.msk [vmem:[#allocation2 + $0xa9] sm:$0xff] %vm528_vm1, %v1023_v43  ;;  %v971_v28 = vadd.f32 %v7813_v30, %v904_v52  ;;  %v1031_v61 = vmax.f32 %v967_v13, 0.0  ;;  %v907_v37 = vmul.f32 %v7810_v60, %v12395_v19  ;;  %v1032_v43 = vmax.f32 %v968_v23, 0.0  ;;  %v12400_v23 = vld [vmem:[#allocation32_spill] sm:$0xff]  ;;  %1505 = vrot.lane.b32.xlu0 %v1377_v20, %s6992_s5  ;;  %v8133_v20 = vld [vmem:[#allocation2 + $0x38] sm:$0xff] }
 0x22c   :  { %1198 = vst.msk [vmem:[#allocation2 + $0xb1] sm:$0xff] %vm528_vm1, %v1024_v42  ;;  %v972_v40 = vadd.f32 %v7813_v30, %v905_v5  ;;  %v908_v50 = vmul.f32 %v7810_v60, %v12396_v46  ;;  %v973_v39 = vadd.f32 %v7813_v30, %v906_v15  ;;  %v1033_v42 = vmax.f32 %v969_v24, 0.0  ;;  %v12401_v24 = vld [vmem:[#allocation33_spill] sm:$0xff] }
 0x22d   :  { %1199 = vst.msk [vmem:[#allocation2 + $0xc1] sm:$0xff] %vm528_vm1, %v1025_v63  ;;  %v909_v48 = vmul.f32 %v7810_v60, %v12397_v45  ;;  %v974_v1 = vadd.f32 %v7813_v30, %v907_v37  ;;  %v1034_v63 = vmax.f32 %v970_v21, 0.0  ;;  %v910_v4 = vmul.f32 %v7810_v60, %v12398_v25  ;;  %v12402_v21 = vld [vmem:[#allocation34_spill] sm:$0xff]  ;;  %v1378_v25 = vld [vmem:[#allocation2 + $0x9] sm:$0xff] }
 0x22e   :  { %1200 = vst.msk [vmem:[#allocation2 + $0xc9] sm:$0xff] %vm528_vm1, %v1026_v11  ;;  %v975_v54 = vadd.f32 %v7813_v30, %v908_v50  ;;  %v1035_v11 = vmax.f32 %v971_v28, 0.0  ;;  %v911_v36 = vmul.f32 %v7810_v60, %v12399_v27  ;;  %v1037_v52 = vmax.f32 %v973_v39, 0.0  ;;  %v12403_v28 = vld [vmem:[#allocation18_spill] sm:$0xff] }
 0x22f   :  { %1201 = vst.msk [vmem:[#allocation2 + $0xd9] sm:$0xff] %vm528_vm1, %v1027_v58  ;;  %v976_v13 = vadd.f32 %v7813_v30, %v909_v48  ;;  %v1036_v58 = vmax.f32 %v972_v40, 0.0  ;;  %v977_v41 = vadd.f32 %v7813_v30, %v910_v4  ;;  %v1038_v5 = vmax.f32 %v974_v1, 0.0  ;;  %v12404_v40 = vld [vmem:[#allocation20_spill] sm:$0xff] }
 0x230   :  { %1202 = vst.msk [vmem:[#allocation2 + $0xe1] sm:$0xff] %vm528_vm1, %v1028_v32  ;;  %v912_v32 = vmul.f32 %v7810_v60, %v12400_v23  ;;  %v978_v53 = vadd.f32 %v7813_v30, %v911_v36  ;;  %v1039_v15 = vmax.f32 %v975_v54, 0.0  ;;  %v1048_v36 = vmax.f32 %v7904_v18, 0.0  ;;  %v8131_v18 = vld [vmem:[#allocation2 + $0x31] sm:$0xff] }
 0x231   :  { %1203 = vst.msk [vmem:[#allocation2 + $0xf1] sm:$0xff] %vm528_vm1, %v1029_v26  ;;  %v913_v26 = vmul.f32 %v7810_v60, %v12401_v24  ;;  %v1040_v37 = vmax.f32 %v976_v13, 0.0  ;;  %v1041_v50 = vmax.f32 %v977_v41, 0.0  ;;  %v8123_v13 = vld [vmem:[%s12236_s2 + $0x108] sm:$0xff]  ;;  %v1050_v29 = vmax.f32 %v7910_v59, 0.0 }
 0x232   :  { %1204 = vst.msk [vmem:[#allocation2 + $0xf9] sm:$0xff] %vm528_vm1, %v1030_v22  ;;  %v914_v22 = vmul.f32 %v7810_v60, %v12402_v21  ;;  %v979_v7 = vadd.f32 %v7813_v30, %v912_v32  ;;  %v1051_v23 = vmax.f32 %v7913_v14, 0.0  ;;  %v8137_v32 = vld [vmem:[#allocation2 + $0x1a] sm:$0xff]  ;;  %v1052_v59 = vmax.f32 %v7916_v44, 0.0  ;;  %v8200_v21 = vld [vmem:[#allocation2 + $0x49] sm:$0xff] }
 0x233   :  { %1205 = vst.msk [vmem:[#allocation2 + $0x109] sm:$0xff] %vm528_vm1, %v1031_v61  ;;  %v915_v61 = vmul.f32 %v7810_v60, %v12403_v28  ;;  %v980_v19 = vadd.f32 %v7813_v30, %v913_v26  ;;  %1507 = vrot.lane.b32.xlu0 %v1378_v25, %s6992_s5  ;;  %v1053_v41 = vmax.f32 %v7919_v55, 0.0  ;;  %v1054_v14 = vmax.f32 %v7922_v2, 0.0  ;;  %v8172_v26 = vld [vmem:[#allocation2 + $0x39] sm:$0xff] }
 0x234   :  { %1206 = vst.msk [vmem:[#allocation2 + $0x111] sm:$0xff] %vm528_vm1, %v1032_v43  ;;  %v916_v43 = vmul.f32 %v7810_v60, %v12404_v40  ;;  %v981_v46 = vadd.f32 %v7813_v30, %v914_v22  ;;  %v1043_v48 = vmax.f32 %v979_v7, 0.0  ;;  %v3076_v60 = vld [vmem:[#allocation2 + $0x1a0] sm:$0xff]  ;;  %v1055_v44 = vmax.f32 %v7925_v6, 0.0  ;;  %v8206_v22 = vld [vmem:[#allocation2 + $0x32] sm:$0xff] }
 0x235   :  { %1207 = vst.msk [vmem:[#allocation2 + $0x121] sm:$0xff] %vm528_vm1, %v1033_v42  ;;  %v982_v39 = vadd.f32 %v7813_v30, %v915_v61  ;;  %v1042_v42 = vmax.f32 %v978_v53, 0.0  ;;  %v1044_v1 = vmax.f32 %v980_v19, 0.0  ;;  %3235 = vrot.lane.b32.xlu1 %v3076_v60, %s6990_s1  ;;  %v1056_v55 = vmax.f32 %v7928_v62, 0.0  ;;  %v8174_v62 = vld [vmem:[#allocation2 + $0x22] sm:$0xff]  ;;  %v8225_v7 = vld [vmem:[#allocation2 + $0x51] sm:$0xff] }
 0x236   :  { %1208 = vst.msk [vmem:[#allocation2 + $0x129] sm:$0xff] %vm528_vm1, %v1034_v63  ;;  %v983_v45 = vadd.f32 %v7813_v30, %v916_v43  ;;  %v3460_v63 = vld [vmem:[#allocation2 + $0x1a1] sm:$0xff]  ;;  %v1045_v4 = vmax.f32 %v981_v46, 0.0  ;;  %v8108_v30 = vld [vmem:[%s12236_s2 + $0x118] sm:$0xff]  ;;  %v1058_v2 = vmax.f32 %v7934_v49, 0.0  ;;  %v1059_v24 = vmax.f32 %v7937_v3, 0.0 }
 0x237   :  { %1209 = vst.msk [vmem:[#allocation2 + $0x139] sm:$0xff] %vm528_vm1, %v1035_v11  ;;  %3619 = vrot.lane.b32.xlu2 %v3460_v63, %s6991_s4  ;;  %v1046_v54 = vmax.f32 %v982_v39, 0.0  ;;  %v8113_v11 = vld [vmem:[%s12236_s2 + $0x110] sm:$0xff]  ;;  %4791 = vmatpush.msrb.mxu0 %v8108_v30  ;;  %v1060_v6 = vmax.f32 %v7940_v16, 0.0  ;;  %v1062_v3 = vmax.f32 %v7946_v35, 0.0  ;;  %v1063_v16 = vmax.f32 %v7949_v51, 0.0 }
 0x238   :  { %1210 = vst.msk [vmem:[#allocation2 + $0x141] sm:$0xff] %vm528_vm1, %v1036_v58  ;;  %v1047_v27 = vmax.f32 %v983_v45, 0.0  ;;  %6845 = vmatpush.msra.mxu3 %v8108_v30  ;;  %v1049_v58 = vmax.f32 %v7907_v9, 0.0  ;;  %v8144_v9 = vld [vmem:[%s12236_s2 + $0x100] sm:$0xff]  ;;  %v8182_v49 = vld [vmem:[#allocation2 + $0x30] sm:$0xff]  ;;  %v1065_v53 = vmax.f32 %v7955_v38, 0.0 }
 0x239   :  { %1211 = vst.msk [vmem:[#allocation2 + $0x151] sm:$0xff] %vm528_vm1, %v1037_v52  ;;  %4792 = vmatpush.msrb.mxu0 %v8113_v11  ;;  %v1057_v52 = vmax.f32 %v7931_v10, 0.0  ;;  %v1061_v10 = vmax.f32 %v7943_v47, 0.0  ;;  %v1064_v47 = vmax.f32 %v7952_v17, 0.0  ;;  %v1067_v35 = vmax.f32 %v7961_v0, 0.0  ;;  %v8202_v17 = vld [vmem:[#allocation2 + $0x48] sm:$0xff] }
 0x23a   :  { %1212 = vst.msk [vmem:[#allocation2 + $0x159] sm:$0xff] %vm528_vm1, %v1038_v5  ;;  %6847 = vmatpush.msra.mxu3 %v8113_v11  ;;  %v1066_v5 = vmax.f32 %v7958_v57, 0.0  ;;  %v1068_v51 = vmax.f32 %v7964_v8, 0.0  ;;  %v1069_v38 = vmax.f32 %v7967_v33, 0.0  ;;  %v1070_v57 = vmax.f32 %v7970_v56, 0.0  ;;  %v8246_v61 = vld [vmem:[#allocation2 + $0x52] sm:$0xff] }
 0x23b   :  { %1213 = vst.msk [vmem:[#allocation2 + $0x169] sm:$0xff] %vm528_vm1, %v1039_v15  ;;  %4793 = vmatpush.msrb.mxu0 %v8123_v13  ;;  %2788 = vrot.lane.b32.xlu0 %v8137_v32, %s6992_s5  ;;  %v1071_v0 = vmax.f32 %v7973_v12, 0.0  ;;  %v1072_v8 = vmax.f32 %v7976_v31, 0.0  ;;  %v1073_v33 = vmax.f32 %v7979_v34, 0.0  ;;  %v8227_v12 = vld [vmem:[#allocation2 + $0x50] sm:$0xff]  ;;  %v8230_v31 = vld [vmem:[#allocation2 + $0x3a] sm:$0xff] }
 0x23c   :  { %1214 = vst.msk [vmem:[#allocation2 + $0x171] sm:$0xff] %vm528_vm1, %v1040_v37  ;;  %6849 = vmatpush.msra.mxu3 %v8123_v13  ;;  %v8241_v15 = vld [vmem:[#allocation2 + $0x4a] sm:$0xff]  ;;  %v8251_v37 = vld [vmem:[#allocation2 + $0x62] sm:$0xff]  ;;  %v8283_v25 = vld [vmem:[#allocation2 + $0x92] sm:$0xff] }
 0x23d   :  { %1215 = vst.msk [vmem:[#allocation2 + $0x181] sm:$0xff] %vm528_vm1, %v1041_v50  ;;  %3557 = vrot.lane.b32.xlu1 %v8131_v18, %s6991_s4  ;;  %4794 = vmatpush.msrb.mxu0 %v8144_v9  ;;  %v8255_v40 = vld [vmem:[#allocation2 + $0x61] sm:$0xff]  ;;  %v8264_v39 = vld [vmem:[#allocation2 + $0x6a] sm:$0xff] }
 0x23e   :  { %1216 = vst.msk [vmem:[#allocation2 + $0x189] sm:$0xff] %vm528_vm1, %v1042_v42  ;;  %6851 = vmatpush.msra.mxu3 %v8144_v9  ;;  %v8257_v43 = vld [vmem:[#allocation2 + $0x60] sm:$0xff] }
 0x23f   :  { %1217 = vst.msk [vmem:[#allocation2 + $0x1c9] sm:$0xff] %vm528_vm1, %v1043_v48  ;;  %3175 = vrot.lane.b32.xlu2 %v8133_v20, %s6990_s1  ;;  %v8273_v48 = vld [vmem:[#allocation2 + $0x7a] sm:$0xff]  ;;  %v8278_v63 = vld [vmem:[#allocation2 + $0x82] sm:$0xff] }
 0x240   :  { %1218 = vst.msk [vmem:[#allocation2 + $0x1d1] sm:$0xff] %vm528_vm1, %v1044_v1 }
 0x241   :  { %1219 = vst.msk [vmem:[#allocation2 + $0x1e1] sm:$0xff] %vm528_vm1, %v1045_v4  ;;  %v8285_v4 = vld [vmem:[#allocation2 + $0x69] sm:$0xff] }
 0x242   :  { %1220 = vst.msk [vmem:[#allocation2 + $0x1e9] sm:$0xff] %vm528_vm1, %v1046_v54  ;;  %v8287_v54 = vld [vmem:[#allocation2 + $0x68] sm:$0xff] }
 0x243   :  { %1221 = vst.msk [vmem:[#allocation2 + $0x1f9] sm:$0xff] %vm528_vm1, %v1047_v27  ;;  %3173 = vrot.lane.b32.xlu0 %v8182_v49, %s6990_s1 }
 0x244   :  { %1222 = vst.msk [vmem:[#allocation2 + $0x201] sm:$0xff] %vm528_vm1, %v1048_v36 }
 0x245   :  { %1223 = vst.msk [vmem:[#allocation2 + $0x211] sm:$0xff] %vm528_vm1, %v1049_v58  ;;  %2790 = vrot.lane.b32.xlu1 %v8174_v62, %s6992_s5  ;;  %v8296_v58 = vld [vmem:[#allocation2 + $0x9a] sm:$0xff] }
 0x246   :  { %1224 = vst.msk [vmem:[#allocation2 + $0x219] sm:$0xff] %vm528_vm1, %v1050_v29 }
 0x247   :  { %1225 = vst.msk [vmem:[#allocation2 + $0x229] sm:$0xff] %vm528_vm1, %v1051_v23  ;;  %3559 = vrot.lane.b32.xlu2 %v8172_v26, %s6991_s4 }
 0x248   :  { %1226 = vst.msk [vmem:[#allocation2 + $0x231] sm:$0xff] %vm528_vm1, %v1052_v59  ;;  %v8305_v59 = vld [vmem:[#allocation2 + $0xaa] sm:$0xff] }
 0x249   :  { %1227 = vst.msk [vmem:[#allocation2 + $0x241] sm:$0xff] %vm528_vm1, %v1053_v41 }
 0x24a   :  { %1228 = vst.msk [vmem:[#allocation2 + $0x249] sm:$0xff] %vm528_vm1, %v1054_v14  ;;  %v8310_v14 = vld [vmem:[#allocation2 + $0xb2] sm:$0xff] }
 0x24b   :  { %1229 = vst.msk [vmem:[#allocation2 + $0x259] sm:$0xff] %vm528_vm1, %v1055_v44  ;;  %2792 = vrot.lane.b32.xlu0 %v8206_v22, %s6992_s5 }
 0x24c   :  { %1230 = vst.msk [vmem:[#allocation2 + $0x261] sm:$0xff] %vm528_vm1, %v1056_v55  ;;  %v8315_v55 = vld [vmem:[#allocation2 + $0xc2] sm:$0xff] }
 0x24d   :  { %1231 = vst.msk [vmem:[#allocation2 + $0x271] sm:$0xff] %vm528_vm1, %v1057_v52  ;;  %3177 = vrot.lane.b32.xlu1 %v8202_v17, %s6990_s1  ;;  %v8317_v52 = vld [vmem:[#allocation2 + $0x79] sm:$0xff] }
 0x24e   :  { %1232 = vst.msk [vmem:[#allocation2 + $0x279] sm:$0xff] %vm528_vm1, %v1058_v2  ;;  %v8319_v2 = vld [vmem:[#allocation2 + $0x78] sm:$0xff] }
 0x24f   :  { %1233 = vst.msk [vmem:[#allocation2 + $0x289] sm:$0xff] %vm528_vm1, %v1059_v24  ;;  %3561 = vrot.lane.b32.xlu2 %v8200_v21, %s6991_s4 }
 0x250   :  { %1234 = vst.msk [vmem:[#allocation2 + $0x291] sm:$0xff] %vm528_vm1, %v1060_v6 }
 0x251   :  { %1235 = vst.msk [vmem:[#allocation2 + $0x2a1] sm:$0xff] %vm528_vm1, %v1061_v10  ;;  %v8328_v10 = vld [vmem:[#allocation2 + $0xca] sm:$0xff] }
 0x252   :  { %1236 = vst.msk [vmem:[#allocation2 + $0x2a9] sm:$0xff] %vm528_vm1, %v1062_v3 }
 0x253   :  { %1237 = vst.msk [vmem:[#allocation2 + $0x2b9] sm:$0xff] %vm528_vm1, %v1063_v16  ;;  %2794 = vrot.lane.b32.xlu0 %v8230_v31, %s6992_s5 }
 0x254   :  { %1238 = vst.msk [vmem:[#allocation2 + $0x2c1] sm:$0xff] %vm528_vm1, %v1064_v47  ;;  %v1379_v47 = vld [vmem:[#allocation2 + $0x19] sm:$0xff] }
 0x255   :  { %1239 = vst.msk [vmem:[#allocation2 + $0x2d1] sm:$0xff] %vm528_vm1, %v1065_v53  ;;  %3179 = vrot.lane.b32.xlu1 %v8227_v12, %s6990_s1  ;;  %v8339_v53 = vld [vmem:[#allocation2 + $0xda] sm:$0xff] }
 0x256   :  { %1240 = vst.msk [vmem:[#allocation2 + $0x2d9] sm:$0xff] %vm528_vm1, %v1066_v5  ;;  %v3874_v5 = vld [vmem:[#allocation2 + $0x33a] sm:$0xff] }
 0x257   :  { %1241 = vst.msk [vmem:[#allocation2 + $0x2e9] sm:$0xff] %vm528_vm1, %v1067_v35  ;;  %v3860_v56 = vld [vmem:[#allocation2 + $0x292] sm:$0xff]  ;;  %3563 = vrot.lane.b32.xlu2 %v8225_v7, %s6991_s4  ;;  %v8342_v35 = vld [vmem:[#allocation2 + $0x21] sm:$0xff] }
 0x258   :  { %1242 = vst.msk [vmem:[#allocation2 + $0x2f1] sm:$0xff] %vm528_vm1, %v1068_v51  ;;  %v8347_v51 = vld [vmem:[#allocation2 + $0xe2] sm:$0xff] }
 0x259   :  { %1243 = vst.msk [vmem:[#allocation2 + $0x301] sm:$0xff] %vm528_vm1, %v1069_v38  ;;  %v3861_v34 = vld [vmem:[#allocation2 + $0x2a2] sm:$0xff]  ;;  %v3862_v28 = vld [vmem:[#allocation2 + $0x2aa] sm:$0xff] }
 0x25a   :  { %1244 = vst.msk [vmem:[#allocation2 + $0x309] sm:$0xff] %vm528_vm1, %v1070_v57  ;;  %v8349_v38 = vld [vmem:[#allocation2 + $0x80] sm:$0xff]  ;;  %v2147_v57 = vld [vmem:[#allocation2 + $0x18] sm:$0xff] }
 0x25b   :  { %1245 = vst.msk [vmem:[#allocation2 + $0x319] sm:$0xff] %vm528_vm1, %v1071_v0  ;;  %v3863_v19 = vld [vmem:[#allocation2 + $0x2ba] sm:$0xff]  ;;  %v3864_v46 = vld [vmem:[#allocation2 + $0x2c2] sm:$0xff]  ;;  %2796 = vrot.lane.b32.xlu0 %v8241_v15, %s6992_s5 }
 0x25c   :  { %1246 = vst.msk [vmem:[#allocation2 + $0x321] sm:$0xff] %vm528_vm1, %v1072_v8  ;;  %v8357_v8 = vld [vmem:[#allocation2 + $0xf2] sm:$0xff] }
 0x25d   :  { %1247 = vst.msk [vmem:[#allocation2 + $0x331] sm:$0xff] %vm528_vm1, %v1073_v33  ;;  %3181 = vrot.lane.b32.xlu1 %v8257_v43, %s6990_s1  ;;  %v3865_v45 = vld [vmem:[#allocation2 + $0x2d2] sm:$0xff]  ;;  %v3866_v1 = vld [vmem:[#allocation2 + $0x2da] sm:$0xff] }
 0x25e   :  { %3877 = vst.msk [vmem:[#allocation3 + $0x10] sm:$0xff] %vm528_vm1, %v8206_v22 }
 0x25f   :  { %3924 = vst.msk [vmem:[#allocation3 + $0x478] sm:$0xff] %vm528_vm1, %v3860_v56  ;;  %3565 = vrot.lane.b32.xlu2 %v8255_v40, %s6991_s4  ;;  %v3867_v60 = vld [vmem:[#allocation2 + $0x2ea] sm:$0xff]  ;;  %v3868_v27 = vld [vmem:[#allocation2 + $0x2f2] sm:$0xff]  ;;  %v8367_v56 = vld [vmem:[#allocation2 + $0xfa] sm:$0xff] }
 0x260   :  { %3878 = vst.msk [vmem:[#allocation3 + $0x28] sm:$0xff] %vm528_vm1, %v8230_v31 }
 0x261   :  { %3925 = vst.msk [vmem:[#allocation3 + $0x490] sm:$0xff] %vm528_vm1, %v3861_v34  ;;  %v3869_v23 = vld [vmem:[#allocation2 + $0x302] sm:$0xff]  ;;  %v3870_v41 = vld [vmem:[#allocation2 + $0x30a] sm:$0xff] }
 0x262   :  { %3879 = vst.msk [vmem:[#allocation3 + $0x40] sm:$0xff] %vm528_vm1, %v8241_v15  ;;  %v8373_v34 = vld [vmem:[#allocation2 + $0x10a] sm:$0xff] }
 0x263   :  { %3926 = vst.msk [vmem:[#allocation3 + $0x4a8] sm:$0xff] %vm528_vm1, %v3862_v28  ;;  %2798 = vrot.lane.b32.xlu0 %v8246_v61, %s6992_s5  ;;  %v3871_v44 = vld [vmem:[#allocation2 + $0x31a] sm:$0xff]  ;;  %v3872_v24 = vld [vmem:[#allocation2 + $0x322] sm:$0xff]  ;;  %v8379_v28 = vld [vmem:[#allocation2 + $0x112] sm:$0xff] }
 0x264   :  { %3880 = vst.msk [vmem:[#allocation3 + $0x58] sm:$0xff] %vm528_vm1, %v8246_v61  ;;  %v3873_v16 = vld [vmem:[#allocation2 + $0x332] sm:$0xff] }
 0x265   :  { %v3943_v50 = vld [vmem:[#allocation3 + $0x10] sm:$0xff]  ;;  %3927 = vst.msk [vmem:[#allocation3 + $0x4c0] sm:$0xff] %vm528_vm1, %v3863_v19  ;;  %3183 = vrot.lane.b32.xlu1 %v8287_v54, %s6990_s1 }
 0x266   :  { %6700 = vmatmul.msk.f32.vlgmr.msrb.gmra.mxu0 %vm528_vm1, %v3943_v50  ;;  %v4084_v42 = vld [vmem:[#allocation3 + $0x478] sm:$0xff]  ;;  %3881 = vst.msk [vmem:[#allocation3 + $0x70] sm:$0xff] %vm528_vm1, %v8251_v37  ;;  %v3053_v19 = vld [vmem:[#allocation2 + $0x90] sm:$0xff] }
 0x267   :  { %6747 = vmatmul.msk.f32.vlgmr.msra.gmra.mxu3 %vm528_vm1, %v4084_v42  ;;  %3928 = vst.msk [vmem:[#allocation3 + $0x4d8] sm:$0xff] %vm528_vm1, %v3864_v46  ;;  %v3946_v36 = vld [vmem:[#allocation3 + $0x28] sm:$0xff]  ;;  %3567 = vrot.lane.b32.xlu2 %v8285_v4, %s6991_s4 }
 0x268   :  { %3882 = vst.msk [vmem:[#allocation3 + $0x88] sm:$0xff] %vm528_vm1, %v8264_v39  ;;  %v4087_v29 = vld [vmem:[#allocation3 + $0x490] sm:$0xff]  ;;  %v8381_v46 = vld [vmem:[#allocation2 + $0x81] sm:$0xff] }
 0x269   :  { %3929 = vst.msk [vmem:[#allocation3 + $0x4f0] sm:$0xff] %vm528_vm1, %v3865_v45  ;;  %v3949_v6 = vld [vmem:[#allocation3 + $0x40] sm:$0xff] }
 0x26a   :  { %3883 = vst.msk [vmem:[#allocation3 + $0xa0] sm:$0xff] %vm528_vm1, %v8273_v48  ;;  %v4090_v3 = vld [vmem:[#allocation3 + $0x4a8] sm:$0xff] }
 0x26b   :  { %3930 = vst.msk [vmem:[#allocation3 + $0x508] sm:$0xff] %vm528_vm1, %v3866_v1  ;;  %2800 = vrot.lane.b32.xlu0 %v8251_v37, %s6992_s5  ;;  %v3952_v0 = vld [vmem:[#allocation3 + $0x58] sm:$0xff]  ;;  %v8390_v42 = vld [vmem:[#allocation2 + $0x122] sm:$0xff]  ;;  %v8400_v1 = vld [vmem:[#allocation2 + $0x12a] sm:$0xff] }
 0x26c   :  { %3884 = vst.msk [vmem:[#allocation3 + $0xb8] sm:$0xff] %vm528_vm1, %v8278_v63  ;;  %v4093_v33 = vld [vmem:[#allocation3 + $0x4c0] sm:$0xff] }
 0x26d   :  { %3931 = vst.msk [vmem:[#allocation3 + $0x520] sm:$0xff] %vm528_vm1, %v3867_v60  ;;  %3185 = vrot.lane.b32.xlu1 %v8319_v2, %s6990_s1  ;;  %v3955_v50 = vld [vmem:[#allocation3 + $0x70] sm:$0xff]  ;;  %v8406_v60 = vld [vmem:[#allocation2 + $0x13a] sm:$0xff] }
 0x26e   :  { %6701 = vmatmul.msk.f32.gmra.mxu0 %vm528_vm1, %v3946_v36  ;;  %3885 = vst.msk [vmem:[#allocation3 + $0xd0] sm:$0xff] %vm528_vm1, %v8283_v25  ;;  %v4096_v45 = vld [vmem:[#allocation3 + $0x4d8] sm:$0xff]  ;;  %v2148_v36 = vld [vmem:[#allocation2 + $0x20] sm:$0xff] }
 0x26f   :  { %6748 = vmatmul.msk.f32.gmra.mxu3 %vm528_vm1, %v4087_v29  ;;  %3932 = vst.msk [vmem:[#allocation3 + $0x538] sm:$0xff] %vm528_vm1, %v3868_v27  ;;  %3569 = vrot.lane.b32.xlu2 %v8317_v52, %s6991_s4  ;;  %v8412_v27 = vld [vmem:[#allocation2 + $0x142] sm:$0xff] }
 0x270   :  { %3886 = vst.msk [vmem:[#allocation3 + $0xe8] sm:$0xff] %vm528_vm1, %v8296_v58  ;;  %v3958_v29 = vld [vmem:[#allocation3 + $0x88] sm:$0xff] }
 0x271   :  { %3933 = vst.msk [vmem:[#allocation3 + $0x550] sm:$0xff] %vm528_vm1, %v3869_v23  ;;  %v8419_v23 = vpop.permute.xlu2 %3617 }
 0x272   :  { %3887 = vst.msk [vmem:[#allocation3 + $0x100] sm:$0xff] %vm528_vm1, %v8305_v59 }
 0x273   :  { %3934 = vst.msk [vmem:[#allocation3 + $0x568] sm:$0xff] %vm528_vm1, %v3870_v41  ;;  %2802 = vrot.lane.b32.xlu0 %v8264_v39, %s6992_s5  ;;  %v8422_v41 = vld [vmem:[#allocation2 + $0x152] sm:$0xff] }
 0x274   :  { %3888 = vst.msk [vmem:[#allocation3 + $0x118] sm:$0xff] %vm528_vm1, %v8310_v14 }
 0x275   :  { %3935 = vst.msk [vmem:[#allocation3 + $0x580] sm:$0xff] %vm528_vm1, %v3871_v44  ;;  %3187 = vrot.lane.b32.xlu1 %v8349_v38, %s6990_s1  ;;  %v4099_v44 = vld [vmem:[#allocation3 + $0x4f0] sm:$0xff] }
 0x276   :  { %6702 = vmatmul.msk.f32.gmra.mxu0 %vm528_vm1, %v3949_v6  ;;  %3889 = vst.msk [vmem:[#allocation3 + $0x130] sm:$0xff] %vm528_vm1, %v8315_v55  ;;  %v8438_v6 = vld [vmem:[#allocation2 + $0x16a] sm:$0xff] }
 0x277   :  { %6749 = vmatmul.msk.f32.gmra.mxu3 %vm528_vm1, %v4090_v3  ;;  %3936 = vst.msk [vmem:[#allocation3 + $0x598] sm:$0xff] %vm528_vm1, %v3872_v24  ;;  %2275 = vrot.lane.b32.xlu2 %v2147_v57, %s6991_s4  ;;  %v8433_v24 = vld [vmem:[#allocation2 + $0x91] sm:$0xff] }
 0x278   :  { %3890 = vst.msk [vmem:[#allocation3 + $0x148] sm:$0xff] %vm528_vm1, %v8328_v10  ;;  %v1253_v3 = vld [vmem:[#allocation2 + $0x30] sm:$0xff] }
 0x279   :  { %3937 = vst.msk [vmem:[#allocation3 + $0x5b0] sm:$0xff] %vm528_vm1, %v3873_v16  ;;  %v8442_v16 = vpop.permute.xlu1 %1890 }
 0x27a   :  { %2596 = vst.msk [vmem:[#allocation3 + $0x8] sm:$0xff] %vm528_vm1, %v1379_v47 }
 0x27b   :  { %3891 = vst.msk [vmem:[#allocation3 + $0x160] sm:$0xff] %vm528_vm1, %v8339_v53  ;;  %2804 = vrot.lane.b32.xlu0 %v8273_v48, %s6992_s5 }
 0x27c   :  { %3938 = vst.msk [vmem:[#allocation3 + $0x5c8] sm:$0xff] %vm528_vm1, %v3874_v5  ;;  %v3054_v5 = vld [vmem:[#allocation2 + $0x98] sm:$0xff] }
 0x27d   :  { %2597 = vst.msk [vmem:[#allocation3 + $0x20] sm:$0xff] %vm528_vm1, %v8342_v35  ;;  %3189 = vrot.lane.b32.xlu1 %v3053_v19, %s6990_s1  ;;  %v4102_v19 = vld [vmem:[#allocation3 + $0x508] sm:$0xff] }
 0x27e   :  { %6703 = vmatmul.msk.f32.gmra.mxu0 %vm528_vm1, %v3952_v0  ;;  %3892 = vst.msk [vmem:[#allocation3 + $0x178] sm:$0xff] %vm528_vm1, %v8347_v51  ;;  %v3961_v0 = vld [vmem:[#allocation3 + $0xa0] sm:$0xff] }
 0x27f   :  { %6750 = vmatmul.msk.f32.gmra.mxu3 %vm528_vm1, %v4093_v33  ;;  %2598 = vst.msk [vmem:[#allocation3 + $0x38] sm:$0xff] %vm528_vm1, %v8131_v18  ;;  %3571 = vrot.lane.b32.xlu2 %v8381_v46, %s6991_s4  ;;  %v3841_v33 = vld [vmem:[#allocation2 + $0x182] sm:$0xff] }
 0x280   :  { %3893 = vst.msk [vmem:[#allocation3 + $0x190] sm:$0xff] %vm528_vm1, %v8357_v8 }
 0x281   :  { %2599 = vst.msk [vmem:[#allocation3 + $0x50] sm:$0xff] %vm528_vm1, %v8172_v26 }
 0x282   :  { %3894 = vst.msk [vmem:[#allocation3 + $0x1a8] sm:$0xff] %vm528_vm1, %v8367_v56 }
 0x283   :  { %2600 = vst.msk [vmem:[#allocation3 + $0x68] sm:$0xff] %vm528_vm1, %v8200_v21  ;;  %1509 = vrot.lane.b32.xlu0 %v1379_v47, %s6992_s5  ;;  %v3840_v47 = vld [vmem:[#allocation2 + $0x172] sm:$0xff] }
 0x284   :  { %3895 = vst.msk [vmem:[#allocation3 + $0x1c0] sm:$0xff] %vm528_vm1, %v8373_v34 }
 0x285   :  { %2601 = vst.msk [vmem:[#allocation3 + $0x80] sm:$0xff] %vm528_vm1, %v8225_v7  ;;  %1894 = vrot.lane.b32.xlu1 %v8137_v32, %s6990_s1  ;;  %v8431_v32 = vld [vmem:[#allocation2 + $0x15a] sm:$0xff] }
 0x286   :  { %6704 = vmatmul.msk.f32.gmra.mxu0 %vm528_vm1, %v3955_v50  ;;  %3896 = vst.msk [vmem:[#allocation3 + $0x1d8] sm:$0xff] %vm528_vm1, %v8379_v28  ;;  %v1254_v50 = vld [vmem:[#allocation2 + $0x38] sm:$0xff] }
 0x287   :  { %6751 = vmatmul.msk.f32.gmra.mxu3 %vm528_vm1, %v4096_v45  ;;  %2602 = vst.msk [vmem:[#allocation3 + $0x98] sm:$0xff] %vm528_vm1, %v8255_v40  ;;  %2277 = vrot.lane.b32.xlu2 %v2148_v36, %s6991_s4 }
 0x288   :  { %3897 = vst.msk [vmem:[#allocation3 + $0x1f0] sm:$0xff] %vm528_vm1, %v8390_v42 }
 0x289   :  { %2603 = vst.msk [vmem:[#allocation3 + $0xb0] sm:$0xff] %vm528_vm1, %v8285_v4 }
 0x28a   :  { %3898 = vst.msk [vmem:[#allocation3 + $0x208] sm:$0xff] %vm528_vm1, %v8400_v1 }
 0x28b   :  { %2604 = vst.msk [vmem:[#allocation3 + $0xc8] sm:$0xff] %vm528_vm1, %v8317_v52  ;;  %2806 = vrot.lane.b32.xlu0 %v8278_v63, %s6992_s5 }
 0x28c   :  { %12405 = vst [vmem:[#allocation10_spill] sm:$0xff] %v8412_v27 }
 0x28d   :  { %3899 = vst.msk [vmem:[#allocation3 + $0x220] sm:$0xff] %vm528_vm1, %v8406_v60  ;;  %3191 = vrot.lane.b32.xlu1 %v3054_v5, %s6990_s1  ;;  %v1256_v5 = vld [vmem:[#allocation2 + $0x50] sm:$0xff] }
 0x28e   :  { %12406 = vst [vmem:[#allocation11_spill] sm:$0xff] %v8419_v23  ;;  %6705 = vmatmul.msk.f32.gmra.mxu0 %vm528_vm1, %v3958_v29  ;;  %v8463_v29 = vld [vmem:[#allocation2 + $0xa9] sm:$0xff] }
 0x28f   :  { %1315 = vst.msk [vmem:[#allocation3 + $0x30] sm:$0xff] %vm528_vm1, %v2147_v57  ;;  %6752 = vmatmul.msk.f32.gmra.mxu3 %vm528_vm1, %v4099_v44  ;;  %v8446_v57 = vld [vmem:[#allocation2 + $0x99] sm:$0xff]  ;;  %3573 = vrot.lane.b32.xlu2 %v8433_v24, %s6991_s4  ;;  %v1255_v44 = vld [vmem:[#allocation2 + $0x48] sm:$0xff] }
 0x290   :  { %12407 = vst [vmem:[#allocation12_spill] sm:$0xff] %v8422_v41  ;;  %v3055_v23 = vld [vmem:[#allocation2 + $0xa8] sm:$0xff] }
 0x291   :  { %3900 = vst.msk [vmem:[#allocation3 + $0x238] sm:$0xff] %vm528_vm1, %v8412_v27  ;;  %v8459_v45 = vpop.permute.xlu2 %3619  ;;  %v3973_v27 = vld [vmem:[#allocation3 + $0x100] sm:$0xff] }
 0x292   :  { %2605 = vst.msk [vmem:[#allocation3 + $0xe0] sm:$0xff] %vm528_vm1, %v8381_v46 }
 0x293   :  { %12408 = vst [vmem:[#allocation13_spill] sm:$0xff] %v8431_v32  ;;  %1511 = vrot.lane.b32.xlu0 %v8342_v35, %s6992_s5  ;;  %v3847_v35 = vld [vmem:[#allocation2 + $0x1fa] sm:$0xff] }
 0x294   :  { %3901 = vst.msk [vmem:[#allocation3 + $0x250] sm:$0xff] %vm528_vm1, %v8422_v41  ;;  %v1261_v41 = vld [vmem:[#allocation2 + $0x90] sm:$0xff] }
 0x295   :  { %1316 = vst.msk [vmem:[#allocation3 + $0x48] sm:$0xff] %vm528_vm1, %v2148_v36  ;;  %v3842_v36 = vld [vmem:[#allocation2 + $0x18a] sm:$0xff]  ;;  %1896 = vrot.lane.b32.xlu1 %v8174_v62, %s6990_s1  ;;  %v1249_v62 = vld [vmem:[#allocation2] sm:$0xff] }
 0x296   :  { %12409 = vst [vmem:[#allocation14_spill] sm:$0xff] %v8438_v6  ;;  %6706 = vmatmul.msk.f32.gmra.mxu0 %vm528_vm1, %v3961_v0  ;;  %v3964_v0 = vld [vmem:[#allocation3 + $0xb8] sm:$0xff] }
 0x297   :  { %3902 = vst.msk [vmem:[#allocation3 + $0x268] sm:$0xff] %vm528_vm1, %v8431_v32  ;;  %6753 = vmatmul.msk.f32.gmra.mxu3 %vm528_vm1, %v4102_v19  ;;  %2279 = vrot.lane.b32.xlu2 %v8182_v49, %s6991_s4  ;;  %v4105_v19 = vld [vmem:[#allocation3 + $0x520] sm:$0xff]  ;;  %v3851_v32 = vld [vmem:[#allocation2 + $0x22a] sm:$0xff] }
 0x298   :  { %2606 = vst.msk [vmem:[#allocation3 + $0xf8] sm:$0xff] %vm528_vm1, %v8433_v24 }
 0x299   :  { %3903 = vst.msk [vmem:[#allocation3 + $0x280] sm:$0xff] %vm528_vm1, %v8438_v6  ;;  %v8488_v49 = vpop.permute.xlu2 %3175  ;;  %v3967_v6 = vld [vmem:[#allocation3 + $0xd0] sm:$0xff] }
 0x29a   :  { %1317 = vst.msk [vmem:[#allocation3 + $0x60] sm:$0xff] %vm528_vm1, %v1253_v3  ;;  %v8467_v3 = vld [vmem:[#allocation2 + $0xb1] sm:$0xff] }
 0x29b   :  { %3904 = vst.msk [vmem:[#allocation3 + $0x298] sm:$0xff] %vm528_vm1, %v3840_v47  ;;  %v3845_v47 = vld [vmem:[#allocation2 + $0x1e2] sm:$0xff]  ;;  %2808 = vrot.lane.b32.xlu0 %v8283_v25, %s6992_s5 }
 0x29c   :  { %12410 = vst [vmem:[#allocation15_spill] sm:$0xff] %v8459_v45  ;;  %v8501_v45 = vld [vmem:[#allocation2 + $0xc9] sm:$0xff] }
 0x29d   :  { %2607 = vst.msk [vmem:[#allocation3 + $0x110] sm:$0xff] %vm528_vm1, %v8446_v57  ;;  %3193 = vrot.lane.b32.xlu1 %v3055_v23, %s6990_s1  ;;  %v4162_v23 = vld [vmem:[%s12236_s2 + $0xe8] sm:$0xff] }
 0x29e   :  { %3905 = vst.msk [vmem:[#allocation3 + $0x2b0] sm:$0xff] %vm528_vm1, %v3841_v33  ;;  %v8477_v33 = vpop.permute.xlu1 %1892  ;;  %6707 = vmatmul.msk.f32.gmra.mxu0 %vm528_vm1, %v3964_v0  ;;  %v4163_v0 = vld [vmem:[%s12236_s2 + $0xf0] sm:$0xff] }
 0x29f   :  { %1318 = vst.msk [vmem:[#allocation3 + $0x78] sm:$0xff] %vm528_vm1, %v1254_v50  ;;  %v8484_v50 = vld [vmem:[#allocation2 + $0xc1] sm:$0xff]  ;;  %6754 = vmatmul.msk.f32.gmra.mxu3 %vm528_vm1, %v4105_v19  ;;  %3575 = vrot.lane.b32.xlu2 %v8446_v57, %s6991_s4 }
 0x2a0   :  { %3906 = vst.msk [vmem:[#allocation3 + $0x2c8] sm:$0xff] %vm528_vm1, %v3842_v36  ;;  %v3846_v36 = vld [vmem:[#allocation2 + $0x1ea] sm:$0xff]  ;;  %v3848_v19 = vld [vmem:[#allocation2 + $0x202] sm:$0xff] }
 0x2a1   :  { %2608 = vst.msk [vmem:[#allocation3 + $0x128] sm:$0xff] %vm528_vm1, %v8463_v29 }
 0x2a2   :  { %1319 = vst.msk [vmem:[#allocation3 + $0x90] sm:$0xff] %vm528_vm1, %v1255_v44  ;;  %v4164_v44 = vld [vmem:[%s12236_s2 + $0xf8] sm:$0xff] }
 0x2a3   :  { %2609 = vst.msk [vmem:[#allocation3 + $0x140] sm:$0xff] %vm528_vm1, %v8467_v3  ;;  %4570 = vmatpush.msrb.mxu2 %v4164_v44  ;;  %1513 = vrot.lane.b32.xlu0 %v8131_v18, %s6992_s5  ;;  %v4157_v18 = vld [vmem:[%s12236_s2 + $0xc0] sm:$0xff] }
 0x2a4   :  { %3909 = vst.msk [vmem:[#allocation3 + $0x310] sm:$0xff] %vm528_vm1, %v3845_v47  ;;  %v1257_v47 = vld [vmem:[#allocation2 + $0x60] sm:$0xff] }
 0x2a5   :  { %1320 = vst.msk [vmem:[#allocation3 + $0xa8] sm:$0xff] %vm528_vm1, %v1256_v5  ;;  %4571 = vmatpush.msrb.mxu2 %v4163_v0  ;;  %v3849_v5 = vld [vmem:[#allocation2 + $0x212] sm:$0xff]  ;;  %v1506_v0 = vpop.permute.xlu0 %1505  ;;  %1898 = vrot.lane.b32.xlu1 %v8206_v22, %s6990_s1  ;;  %v3853_v22 = vld [vmem:[#allocation2 + $0x242] sm:$0xff] }
 0x2a6   :  { %1313 = vst.msk [vmem:[#allocation3] sm:$0xff] %vm528_vm1, %v1249_v62  ;;  %6708 = vmatmul.msk.f32.gmra.mxu0 %vm528_vm1, %v3967_v6  ;;  %v1258_v62 = vld [vmem:[#allocation2 + $0x68] sm:$0xff]  ;;  %v8515_v44 = vpop.permute.xlu1 %3233  ;;  %v4161_v6 = vld [vmem:[%s12236_s2 + $0xe0] sm:$0xff] }
 0x2a7   :  { %3910 = vst.msk [vmem:[#allocation3 + $0x328] sm:$0xff] %vm528_vm1, %v3846_v36  ;;  %v4108_v36 = vld [vmem:[#allocation3 + $0x538] sm:$0xff]  ;;  %4572 = vmatpush.msrb.mxu2 %v4162_v23  ;;  %2281 = vrot.lane.b32.xlu2 %v8133_v20, %s6991_s4  ;;  %v4158_v20 = vld [vmem:[%s12236_s2 + $0xc8] sm:$0xff] }
 0x2a8   :  { %2610 = vst.msk [vmem:[#allocation3 + $0x158] sm:$0xff] %vm528_vm1, %v8484_v50  ;;  %6755 = vmatmul.msk.f32.gmra.mxu3 %vm528_vm1, %v4108_v36  ;;  %v4160_v36 = vld [vmem:[%s12236_s2 + $0xd8] sm:$0xff] }
 0x2a9   :  { %3911 = vst.msk [vmem:[#allocation3 + $0x340] sm:$0xff] %vm528_vm1, %v3847_v35  ;;  %v1250_v35 = vld [vmem:[#allocation2 + $0x8] sm:$0xff]  ;;  %4573 = vmatpush.msrb.mxu2 %v4161_v6  ;;  %v3852_v23 = vld [vmem:[#allocation2 + $0x232] sm:$0xff] }
 0x2aa   :  { %1321 = vst.msk [vmem:[#allocation3 + $0xc0] sm:$0xff] %vm528_vm1, %v1257_v47  ;;  %v8525_v47 = vpop.permute.xlu2 %3559  ;;  %v4111_v6 = vld [vmem:[#allocation3 + $0x550] sm:$0xff] }
 0x2ab   :  { %3912 = vst.msk [vmem:[#allocation3 + $0x358] sm:$0xff] %vm528_vm1, %v3848_v19  ;;  %v3850_v19 = vld [vmem:[#allocation2 + $0x21a] sm:$0xff]  ;;  %4574 = vmatpush.msrb.mxu2 %v4160_v36  ;;  %2810 = vrot.lane.b32.xlu0 %v8296_v58, %s6992_s5 }
 0x2ac   :  { %2611 = vst.msk [vmem:[#allocation3 + $0x170] sm:$0xff] %vm528_vm1, %v8501_v45 }
 0x2ad   :  { %12411 = vst [vmem:[#allocation16_spill] sm:$0xff] %v8515_v44  ;;  %v8531_v44 = vld [vmem:[#allocation2 + $0xd9] sm:$0xff] }
 0x2ae   :  { %3913 = vst.msk [vmem:[#allocation3 + $0x370] sm:$0xff] %vm528_vm1, %v3849_v5  ;;  %v1259_v5 = vld [vmem:[#allocation2 + $0x78] sm:$0xff] }
 0x2af   :  { %1698 = vst.msk [vmem:[#allocation3] sm:$0xff] %vm1697_vm6, %v1506_v0  ;;  %v4159_v0 = vld [vmem:[%s12236_s2 + $0xd0] sm:$0xff]  ;;  %3577 = vrot.lane.b32.xlu2 %v8463_v29, %s6991_s4 }
 0x2b0   :  { %1314 = vst.msk [vmem:[#allocation3 + $0x18] sm:$0xff] %vm528_vm1, %v1250_v35  ;;  %v3970_v35 = vld [vmem:[#allocation3 + $0xe8] sm:$0xff]  ;;  %6756 = vmatmul.msk.f32.gmra.mxu3 %vm528_vm1, %v4111_v6  ;;  %4575 = vmatpush.msrb.mxu2 %v4159_v0  ;;  %v3056_v6 = vld [vmem:[#allocation2 + $0xb0] sm:$0xff] }
 0x2b1   :  { %1322 = vst.msk [vmem:[#allocation3 + $0xd8] sm:$0xff] %vm528_vm1, %v1258_v62  ;;  %v8544_v62 = vld [vmem:[#allocation2 + $0xe1] sm:$0xff]  ;;  %6709 = vmatmul.msk.f32.gmra.mxu0 %vm528_vm1, %v3970_v35  ;;  %v3854_v0 = vld [vmem:[#allocation2 + $0x24a] sm:$0xff]  ;;  %3195 = vrot.lane.b32.xlu1 %v3056_v6, %s6990_s1  ;;  %v1262_v6 = vld [vmem:[#allocation2 + $0x98] sm:$0xff] }
 0x2b2   :  { %3914 = vst.msk [vmem:[#allocation3 + $0x388] sm:$0xff] %vm528_vm1, %v3850_v19  ;;  %v8552_v19 = vpop.permute.xlu1 %3235  ;;  %v8558_v36 = vpop.permute.xlu2 %3561  ;;  %4576 = vmatpush.msrb.mxu2 %v4158_v20  ;;  %v8566_v35 = vld [vmem:[#allocation2 + $0xf1] sm:$0xff]  ;;  %v4114_v20 = vld [vmem:[#allocation3 + $0x568] sm:$0xff] }
 0x2b3   :  { %2612 = vst.msk [vmem:[#allocation3 + $0x188] sm:$0xff] %vm528_vm1, %v8531_v44  ;;  %1515 = vrot.lane.b32.xlu0 %v8172_v26, %s6992_s5 }
 0x2b4   :  { %3915 = vst.msk [vmem:[#allocation3 + $0x3a0] sm:$0xff] %vm528_vm1, %v3851_v32  ;;  %v1508_v32 = vpop.permute.xlu0 %1507  ;;  %4577 = vmatpush.msrb.mxu2 %v4157_v18  ;;  %v4148_v18 = vld [vmem:[%s12236_s2 + $0x78] sm:$0xff] }
 0x2b5   :  { %1323 = vst.msk [vmem:[#allocation3 + $0xf0] sm:$0xff] %vm528_vm1, %v1259_v5  ;;  %v1260_v5 = vld [vmem:[#allocation2 + $0x80] sm:$0xff]  ;;  %4361 = vmatpush.msrb.mxu1 %v4148_v18  ;;  %v3976_v18 = vld [vmem:[#allocation3 + $0x118] sm:$0xff] }
 0x2b6   :  { %12412 = vst [vmem:[#allocation17_spill] sm:$0xff] %v8552_v19  ;;  %v4156_v19 = vld [vmem:[%s12236_s2 + $0xb8] sm:$0xff] }
 0x2b7   :  { %3916 = vst.msk [vmem:[#allocation3 + $0x3b8] sm:$0xff] %vm528_vm1, %v3852_v23  ;;  %v3855_v23 = vld [vmem:[#allocation2 + $0x25a] sm:$0xff]  ;;  %4578 = vmatpush.msrb.mxu2 %v4156_v19  ;;  %v4147_v19 = vld [vmem:[%s12236_s2 + $0x70] sm:$0xff]  ;;  %2283 = vrot.lane.b32.xlu2 %v8202_v17, %s6991_s4 }
 0x2b8   :  { %2613 = vst.msk [vmem:[#allocation3 + $0x1a0] sm:$0xff] %vm528_vm1, %v8544_v62  ;;  %6757 = vmatmul.msk.f32.gmra.mxu3 %vm528_vm1, %v4114_v20  ;;  %4362 = vmatpush.msrb.mxu1 %v4147_v19  ;;  %v4153_v20 = vld [vmem:[%s12236_s2 + $0xa0] sm:$0xff] }
 0x2b9   :  { %1699 = vst.msk [vmem:[#allocation3 + $0x18] sm:$0xff] %vm1697_vm6, %v1508_v32  ;;  %6710 = vmatmul.msk.f32.gmra.mxu0 %vm528_vm1, %v3973_v27  ;;  %1900 = vrot.lane.b32.xlu1 %v8230_v31, %s6990_s1  ;;  %v4144_v31 = vld [vmem:[%s12236_s2 + $0x58] sm:$0xff] }
 0x2ba   :  { %3917 = vst.msk [vmem:[#allocation3 + $0x3d0] sm:$0xff] %vm528_vm1, %v3853_v22  ;;  %v4155_v22 = vld [vmem:[%s12236_s2 + $0xb0] sm:$0xff]  ;;  %v3558_v32 = vpop.permute.xlu1 %3557  ;;  %v8591_v27 = vpop.permute.xlu2 %3563 }
 0x2bb   :  { %1324 = vst.msk [vmem:[#allocation3 + $0x108] sm:$0xff] %vm528_vm1, %v1260_v5  ;;  %v4154_v5 = vld [vmem:[%s12236_s2 + $0xa8] sm:$0xff]  ;;  %4579 = vmatpush.msrb.mxu2 %v4155_v22  ;;  %2812 = vrot.lane.b32.xlu0 %v8305_v59, %s6992_s5 }
 0x2bc   :  { %3918 = vst.msk [vmem:[#allocation3 + $0x3e8] sm:$0xff] %vm528_vm1, %v3854_v0  ;;  %v2789_v58 = vpop.permute.xlu0 %2788  ;;  %v3856_v0 = vld [vmem:[#allocation2 + $0x262] sm:$0xff] }
 0x2bd   :  { %2614 = vst.msk [vmem:[#allocation3 + $0x1b8] sm:$0xff] %vm528_vm1, %v8566_v35  ;;  %4580 = vmatpush.msrb.mxu2 %v4154_v5  ;;  %v8613_v22 = vld [vmem:[#allocation2 + $0x109] sm:$0xff]  ;;  %v4145_v5 = vld [vmem:[%s12236_s2 + $0x60] sm:$0xff] }
 0x2be   :  { %3919 = vst.msk [vmem:[#allocation3 + $0x400] sm:$0xff] %vm528_vm1, %v3855_v23  ;;  %v8605_v23 = vld [vmem:[#allocation2 + $0xf9] sm:$0xff] }
 0x2bf   :  { %1325 = vst.msk [vmem:[#allocation3 + $0x120] sm:$0xff] %vm528_vm1, %v1261_v41  ;;  %v4146_v41 = vld [vmem:[%s12236_s2 + $0x68] sm:$0xff]  ;;  %4581 = vmatpush.msrb.mxu2 %v4153_v20  ;;  %v8655_v20 = vld [vmem:[#allocation2 + $0xc0] sm:$0xff]  ;;  %3579 = vrot.lane.b32.xlu2 %v8467_v3, %s6991_s4 }
 0x2c0   :  { %2083 = vst.msk [vmem:[#allocation3] sm:$0xff] %vm2082_vm7, %v8442_v16  ;;  %v3857_v16 = vld [vmem:[#allocation2 + $0x272] sm:$0xff]  ;;  %4363 = vmatpush.msrb.mxu1 %v4146_v41  ;;  %v1263_v41 = vld [vmem:[#allocation2 + $0xa8] sm:$0xff] }
 0x2c1   :  { %2980 = vst.msk [vmem:[#allocation3 + $0x8] sm:$0xff] %vm1697_vm6, %v2789_v58  ;;  %6711 = vmatmul.msk.f32.gmra.mxu0 %vm528_vm1, %v3976_v18  ;;  %v4152_v58 = vld [vmem:[%s12236_s2 + $0x98] sm:$0xff]  ;;  %v3979_v18 = vld [vmem:[#allocation3 + $0x130] sm:$0xff]  ;;  %3197 = vrot.lane.b32.xlu1 %v8655_v20, %s6990_s1 }
 0x2c2   :  { %2084 = vst.msk [vmem:[#allocation3 + $0x18] sm:$0xff] %vm2082_vm7, %v8477_v33  ;;  %v4117_v33 = vld [vmem:[#allocation3 + $0x580] sm:$0xff]  ;;  %v2791_v17 = vpop.permute.xlu1 %2790  ;;  %v8638_v26 = vpop.permute.xlu2 %3565  ;;  %4364 = vmatpush.msrb.mxu1 %v4145_v5  ;;  %4582 = vmatpush.msrb.mxu2 %v4152_v58  ;;  %v4120_v58 = vld [vmem:[#allocation3 + $0x598] sm:$0xff] }
 0x2c3   :  { %3920 = vst.msk [vmem:[#allocation3 + $0x418] sm:$0xff] %vm528_vm1, %v3856_v0  ;;  %6758 = vmatmul.msk.f32.gmra.mxu3 %vm528_vm1, %v4117_v33  ;;  %v4151_v0 = vld [vmem:[%s12236_s2 + $0x90] sm:$0xff]  ;;  %v4142_v33 = vld [vmem:[%s12236_s2 + $0x48] sm:$0xff]  ;;  %v4149_v5 = vld [vmem:[%s12236_s2 + $0x80] sm:$0xff]  ;;  %1517 = vrot.lane.b32.xlu0 %v8200_v21, %s6992_s5 }
 0x2c4   :  { %2615 = vst.msk [vmem:[#allocation3 + $0x1d0] sm:$0xff] %vm528_vm1, %v8605_v23  ;;  %v3174_v19 = vpop.permute.xlu0 %3173  ;;  %4365 = vmatpush.msrb.mxu1 %v4144_v31  ;;  %4583 = vmatpush.msrb.mxu2 %v4151_v0  ;;  %v4141_v31 = vld [vmem:[%s12236_s2 + $0x40] sm:$0xff] }
 0x2c5   :  { %3921 = vst.msk [vmem:[#allocation3 + $0x430] sm:$0xff] %vm528_vm1, %v3857_v16  ;;  %v4143_v16 = vld [vmem:[%s12236_s2 + $0x50] sm:$0xff]  ;;  %v1265_v0 = vld [vmem:[#allocation2 + $0xc0] sm:$0xff] }
 0x2c6   :  { %1326 = vst.msk [vmem:[#allocation3 + $0x138] sm:$0xff] %vm528_vm1, %v1262_v6  ;;  %v8652_v6 = vld [vmem:[#allocation2 + $0x111] sm:$0xff]  ;;  %4366 = vmatpush.msrb.mxu1 %v4143_v16  ;;  %v8692_v16 = vld [vmem:[#allocation2 + $0x129] sm:$0xff]  ;;  %v4137_v21 = vld [vmem:[%s12236_s2 + $0x20] sm:$0xff] }
 0x2c7   :  { %2616 = vst.msk [vmem:[#allocation3 + $0x1e8] sm:$0xff] %vm528_vm1, %v8613_v22  ;;  %2285 = vrot.lane.b32.xlu2 %v8227_v12, %s6991_s4 }
 0x2c8   :  { %2981 = vst.msk [vmem:[#allocation3 + $0x20] sm:$0xff] %vm1697_vm6, %v2791_v17  ;;  %4367 = vmatpush.msrb.mxu1 %v4142_v33  ;;  %v8700_v33 = vld [vmem:[#allocation2 + $0x139] sm:$0xff] }
 0x2c9   :  { %3366 = vst.msk [vmem:[#allocation3 + $0x20] sm:$0xff] %vm2082_vm7, %v8488_v49  ;;  %v4150_v49 = vld [vmem:[%s12236_s2 + $0x88] sm:$0xff]  ;;  %6712 = vmatmul.msk.f32.gmra.mxu0 %vm528_vm1, %v3979_v18  ;;  %v4139_v18 = vld [vmem:[%s12236_s2 + $0x30] sm:$0xff]  ;;  %1902 = vrot.lane.b32.xlu1 %v8241_v15, %s6990_s1 }
 0x2ca   :  { %3750 = vst.msk [vmem:[#allocation3 + $0x20] sm:$0xff] %vm2467_vm8, %v8525_v47  ;;  %v1264_v47 = vld [vmem:[#allocation2 + $0xb0] sm:$0xff]  ;;  %4584 = vmatpush.msrb.mxu2 %v4150_v49  ;;  %v3178_v17 = vpop.permute.xlu1 %3177  ;;  %4368 = vmatpush.msrb.mxu1 %v4141_v31  ;;  %v8727_v31 = vld [vmem:[#allocation2 + $0x141] sm:$0xff] }
 0x2cb   :  { %3365 = vst.msk [vmem:[#allocation3 + $0x8] sm:$0xff] %vm2082_vm7, %v3174_v19  ;;  %6759 = vmatmul.msk.f32.gmra.mxu3 %vm528_vm1, %v4120_v58  ;;  %v8683_v19 = vpop.permute.xlu2 %3567  ;;  %v3982_v58 = vld [vmem:[#allocation3 + $0x148] sm:$0xff]  ;;  %2814 = vrot.lane.b32.xlu0 %v8310_v14, %s6992_s5  ;;  %v1270_v14 = vld [vmem:[#allocation2 + $0xf8] sm:$0xff] }
 0x2cc   :  { %3749 = vst.msk [vmem:[#allocation3 + $0x8] sm:$0xff] %vm2467_vm8, %v3558_v32  ;;  %v8667_v32 = vld [vmem:[#allocation2 + $0x121] sm:$0xff]  ;;  %v2793_v59 = vpop.permute.xlu0 %2792  ;;  %4585 = vmatpush.msrb.mxu2 %v4149_v5 }
 0x2cd   :  { %1327 = vst.msk [vmem:[#allocation3 + $0x150] sm:$0xff] %vm528_vm1, %v1263_v41  ;;  %v4140_v41 = vld [vmem:[%s12236_s2 + $0x38] sm:$0xff]  ;;  %v4138_v5 = vld [vmem:[%s12236_s2 + $0x28] sm:$0xff] }
 0x2ce   :  { %2617 = vst.msk [vmem:[#allocation3 + $0x200] sm:$0xff] %vm528_vm1, %v8652_v6  ;;  %6844 = vmatpush.msra.mxu2 %v8108_v30  ;;  %4369 = vmatpush.msrb.mxu1 %v4140_v41  ;;  %v1267_v30 = vld [vmem:[#allocation2 + $0xd8] sm:$0xff] }
 0x2cf   :  { %1328 = vst.msk [vmem:[#allocation3 + $0x168] sm:$0xff] %vm528_vm1, %v1264_v47  ;;  %v1266_v47 = vld [vmem:[#allocation2 + $0xc8] sm:$0xff]  ;;  %v8733_v41 = vld [vmem:[#allocation2 + $0x151] sm:$0xff]  ;;  %3581 = vrot.lane.b32.xlu2 %v8484_v50, %s6991_s4 }
 0x2d0   :  { %2618 = vst.msk [vmem:[#allocation3 + $0x218] sm:$0xff] %vm528_vm1, %v8667_v32  ;;  %4370 = vmatpush.msrb.mxu1 %v4139_v18  ;;  %6846 = vmatpush.msra.mxu2 %v8113_v11  ;;  %v4136_v11 = vld [vmem:[%s12236_s2 + $0x18] sm:$0xff]  ;;  %v3985_v18 = vld [vmem:[#allocation3 + $0x160] sm:$0xff] }
 0x2d1   :  { %2982 = vst.msk [vmem:[#allocation3 + $0x38] sm:$0xff] %vm1697_vm6, %v2793_v59  ;;  %6713 = vmatmul.msk.f32.gmra.mxu0 %vm528_vm1, %v3982_v58  ;;  %v1268_v59 = vld [vmem:[#allocation2 + $0xe0] sm:$0xff]  ;;  %v4135_v58 = vld [vmem:[%s12236_s2 + $0x10] sm:$0xff] }
 0x2d2   :  { %3367 = vst.msk [vmem:[#allocation3 + $0x38] sm:$0xff] %vm2082_vm7, %v3178_v17  ;;  %v3180_v12 = vpop.permute.xlu1 %3179  ;;  %4371 = vmatpush.msrb.mxu1 %v4138_v5  ;;  %6848 = vmatpush.msra.mxu2 %v8123_v13  ;;  %v8746_v13 = vld [vmem:[#allocation2 + $0x159] sm:$0xff] }
 0x2d3   :  { %3751 = vst.msk [vmem:[#allocation3 + $0x38] sm:$0xff] %vm2467_vm8, %v8558_v36  ;;  %v3942_v49 = vld [vmem:[#allocation3 + $0x8] sm:$0xff]  ;;  %v4123_v36 = vld [vmem:[#allocation3 + $0x5b0] sm:$0xff]  ;;  %v8719_v15 = vpop.permute.xlu2 %3569  ;;  %1519 = vrot.lane.b32.xlu0 %v8225_v7, %s6992_s5 }
 0x2d4   :  { %4586 = vmatmul.f32.vlgmr.msrb.gmra.mxu2 %v3942_v49  ;;  %1329 = vst.msk [vmem:[#allocation3 + $0x180] sm:$0xff] %vm528_vm1, %v1265_v0  ;;  %6760 = vmatmul.msk.f32.gmra.mxu3 %vm528_vm1, %v4123_v36  ;;  %v2795_v17 = vpop.permute.xlu0 %2794  ;;  %v3945_v0 = vld [vmem:[#allocation3 + $0x20] sm:$0xff]  ;;  %v8735_v49 = vld [vmem:[#allocation2 + $0xc8] sm:$0xff] }
 0x2d5   :  { %2619 = vst.msk [vmem:[#allocation3 + $0x230] sm:$0xff] %vm528_vm1, %v8692_v16  ;;  %4372 = vmatpush.msrb.mxu1 %v4137_v21  ;;  %3199 = vrot.lane.b32.xlu1 %v8735_v49, %s6990_s1  ;;  %v8769_v21 = vld [vmem:[#allocation2 + $0x169] sm:$0xff] }
 0x2d6   :  { %1330 = vst.msk [vmem:[#allocation3 + $0x198] sm:$0xff] %vm528_vm1, %v1266_v47  ;;  %v1269_v47 = vld [vmem:[#allocation2 + $0xf0] sm:$0xff]  ;;  %6850 = vmatpush.msra.mxu2 %v8144_v9  ;;  %v4133_v9 = vld [vmem:[%s12236_s2] sm:$0xff] }
 0x2d7   :  { %2620 = vst.msk [vmem:[#allocation3 + $0x248] sm:$0xff] %vm528_vm1, %v8700_v33  ;;  %4373 = vmatpush.msrb.mxu1 %v4136_v11  ;;  %2287 = vrot.lane.b32.xlu2 %v8257_v43, %s6991_s4 }
 0x2d8   :  { %1331 = vst.msk [vmem:[#allocation3 + $0x1b0] sm:$0xff] %vm528_vm1, %v1267_v30 }
 0x2d9   :  { %2983 = vst.msk [vmem:[#allocation3 + $0x50] sm:$0xff] %vm1697_vm6, %v2795_v17  ;;  %6714 = vmatmul.msk.f32.gmra.mxu0 %vm528_vm1, %v3985_v18  ;;  %4374 = vmatpush.msrb.mxu1 %v4135_v58  ;;  %v8792_v18 = vld [vmem:[#allocation2 + $0x181] sm:$0xff] }
 0x2da   :  { %3368 = vst.msk [vmem:[#allocation3 + $0x50] sm:$0xff] %vm2082_vm7, %v3180_v12  ;;  %v3182_v30 = vpop.permute.xlu1 %3181  ;;  %v4134_v12 = vld [vmem:[%s12236_s2 + $0x8] sm:$0xff]  ;;  %v3948_v17 = vld [vmem:[#allocation3 + $0x38] sm:$0xff]  ;;  %v1273_v58 = vld [vmem:[#allocation2 + $0x120] sm:$0xff] }
 0x2db   :  { %3752 = vst.msk [vmem:[#allocation3 + $0x50] sm:$0xff] %vm2467_vm8, %v8591_v27  ;;  %v4126_v27 = vld [vmem:[#allocation3 + $0x5c8] sm:$0xff]  ;;  %v2276_v5 = vpop.permute.xlu2 %2275  ;;  %4375 = vmatpush.msrb.mxu1 %v4134_v12  ;;  %2816 = vrot.lane.b32.xlu0 %v8315_v55, %s6992_s5 }
 0x2dc   :  { %4589 = vmatmul.f32.gmra.mxu2 %v3945_v0  ;;  %2621 = vst.msk [vmem:[#allocation3 + $0x260] sm:$0xff] %vm528_vm1, %v8727_v31  ;;  %6761 = vmatmul.msk.f32.gmra.mxu3 %vm528_vm1, %v4126_v27  ;;  %v2797_v36 = vpop.permute.xlu0 %2796  ;;  %v3988_v0 = vld [vmem:[#allocation3 + $0x178] sm:$0xff] }
 0x2dd   :  { %1332 = vst.msk [vmem:[#allocation3 + $0x1c8] sm:$0xff] %vm528_vm1, %v1268_v59  ;;  %v1271_v59 = vld [vmem:[#allocation2 + $0x108] sm:$0xff]  ;;  %1904 = vrot.lane.b32.xlu1 %v8246_v61, %s6990_s1  ;;  %4376 = vmatpush.msrb.mxu1 %v4133_v9  ;;  %v1272_v61 = vld [vmem:[#allocation2 + $0x110] sm:$0xff] }
 0x2de   :  { %2622 = vst.msk [vmem:[#allocation3 + $0x278] sm:$0xff] %vm528_vm1, %v8733_v41  ;;  %v8816_v9 = vld [vmem:[#allocation2 + $0x1c9] sm:$0xff] }
 0x2df   :  { %1333 = vst.msk [vmem:[#allocation3 + $0x1e0] sm:$0xff] %vm528_vm1, %v1269_v47  ;;  %3583 = vrot.lane.b32.xlu2 %v8501_v45, %s6991_s4 }
 0x2e0   :  { %2623 = vst.msk [vmem:[#allocation3 + $0x290] sm:$0xff] %vm528_vm1, %v8746_v13 }
 0x2e1   :  { %2984 = vst.msk [vmem:[#allocation3 + $0x68] sm:$0xff] %vm1697_vm6, %v2797_v36  ;;  %6715 = vmatmul.msk.f32.gmra.mxu0 %vm528_vm1, %v3988_v0  ;;  %v8798_v36 = vld [vmem:[#allocation2 + $0x189] sm:$0xff]  ;;  %v8821_v0 = vld [vmem:[#allocation2 + $0x1d1] sm:$0xff] }
 0x2e2   :  { %3369 = vst.msk [vmem:[#allocation3 + $0x68] sm:$0xff] %vm2082_vm7, %v3182_v30  ;;  %v3184_v11 = vpop.permute.xlu1 %3183  ;;  %v3951_v27 = vld [vmem:[#allocation3 + $0x50] sm:$0xff]  ;;  %v8796_v30 = vld [vmem:[#allocation2 + $0xd8] sm:$0xff] }
 0x2e3   :  { %3753 = vst.msk [vmem:[#allocation3 + $0x68] sm:$0xff] %vm2467_vm8, %v8638_v26  ;;  %v8779_v26 = vld [vmem:[#allocation2 + $0x171] sm:$0xff]  ;;  %v3572_v47 = vpop.permute.xlu2 %3571  ;;  %1521 = vrot.lane.b32.xlu0 %v8255_v40, %s6992_s5 }
 0x2e4   :  { %2468 = vst.msk [vmem:[#allocation3] sm:$0xff] %vm2467_vm8, %v2276_v5  ;;  %4592 = vmatmul.f32.gmra.mxu2 %v3948_v17  ;;  %v2799_v43 = vpop.permute.xlu0 %2798  ;;  %v3991_v5 = vld [vmem:[#allocation3 + $0x190] sm:$0xff] }
 0x2e5   :  { %1334 = vst.msk [vmem:[#allocation3 + $0x1f8] sm:$0xff] %vm528_vm1, %v1270_v14  ;;  %3201 = vrot.lane.b32.xlu1 %v8796_v30, %s6990_s1 }
 0x2e6   :  { %2624 = vst.msk [vmem:[#allocation3 + $0x2a8] sm:$0xff] %vm528_vm1, %v8769_v21 }
 0x2e7   :  { %1335 = vst.msk [vmem:[#allocation3 + $0x210] sm:$0xff] %vm528_vm1, %v1271_v59  ;;  %v1275_v59 = vld [vmem:[#allocation2 + $0x138] sm:$0xff]  ;;  %2289 = vrot.lane.b32.xlu2 %v8287_v54, %s6991_s4 }
 0x2e8   :  { %2625 = vst.msk [vmem:[#allocation3 + $0x2c0] sm:$0xff] %vm528_vm1, %v8779_v26 }
 0x2e9   :  { %2985 = vst.msk [vmem:[#allocation3 + $0x80] sm:$0xff] %vm1697_vm6, %v2799_v43  ;;  %6716 = vmatmul.msk.f32.gmra.mxu0 %vm528_vm1, %v3991_v5  ;;  %v1276_v43 = vld [vmem:[#allocation2 + $0x140] sm:$0xff] }
 0x2ea   :  { %3370 = vst.msk [vmem:[#allocation3 + $0x80] sm:$0xff] %vm2082_vm7, %v3184_v11  ;;  %v3186_v12 = vpop.permute.xlu1 %3185  ;;  %v3954_v55 = vld [vmem:[#allocation3 + $0x68] sm:$0xff]  ;;  %v8843_v5 = vld [vmem:[#allocation2 + $0xe0] sm:$0xff] }
 0x2eb   :  { %3754 = vst.msk [vmem:[#allocation3 + $0x80] sm:$0xff] %vm2467_vm8, %v8683_v19  ;;  %v3941_v7 = vld [vmem:[#allocation3] sm:$0xff]  ;;  %v1274_v19 = vld [vmem:[#allocation2 + $0x128] sm:$0xff]  ;;  %v2278_v17 = vpop.permute.xlu2 %2277  ;;  %2818 = vrot.lane.b32.xlu0 %v8328_v10, %s6992_s5 }
 0x2ec   :  { %4377 = vmatmul.f32.vlgmr.msrb.gmra.mxu1 %v3941_v7  ;;  %4595 = vmatmul.f32.gmra.mxu2 %v3951_v27  ;;  %1336 = vst.msk [vmem:[#allocation3 + $0x228] sm:$0xff] %vm528_vm1, %v1272_v61  ;;  %v2801_v14 = vpop.permute.xlu0 %2800  ;;  %v3994_v11 = vld [vmem:[#allocation3 + $0x1a8] sm:$0xff]  ;;  %v1277_v7 = vld [vmem:[#allocation2 + $0x150] sm:$0xff] }
 0x2ed   :  { %2626 = vst.msk [vmem:[#allocation3 + $0x2d8] sm:$0xff] %vm528_vm1, %v8792_v18  ;;  %1906 = vrot.lane.b32.xlu1 %v8251_v37, %s6990_s1  ;;  %v8837_v37 = vld [vmem:[#allocation2 + $0x1e1] sm:$0xff] }
 0x2ee   :  { %1337 = vst.msk [vmem:[#allocation3 + $0x240] sm:$0xff] %vm528_vm1, %v1273_v58  ;;  %v8841_v58 = vld [vmem:[#allocation2 + $0x1e9] sm:$0xff] }
 0x2ef   :  { %2627 = vst.msk [vmem:[#allocation3 + $0x2f0] sm:$0xff] %vm528_vm1, %v8798_v36  ;;  %3585 = vrot.lane.b32.xlu2 %v8531_v44, %s6991_s4 }
 0x2f0   :  { %1338 = vst.msk [vmem:[#allocation3 + $0x258] sm:$0xff] %vm528_vm1, %v1274_v19  ;;  %v1278_v19 = vld [vmem:[#allocation2 + $0x158] sm:$0xff] }
 0x2f1   :  { %2986 = vst.msk [vmem:[#allocation3 + $0x98] sm:$0xff] %vm1697_vm6, %v2801_v14  ;;  %6717 = vmatmul.msk.f32.gmra.mxu0 %vm528_vm1, %v3994_v11  ;;  %v8864_v11 = vld [vmem:[#allocation2 + $0x201] sm:$0xff] }
 0x2f2   :  { %3371 = vst.msk [vmem:[#allocation3 + $0x98] sm:$0xff] %vm2082_vm7, %v3186_v12  ;;  %v3957_v27 = vld [vmem:[#allocation3 + $0x80] sm:$0xff] }
 0x2f3   :  { %3755 = vst.msk [vmem:[#allocation3 + $0x98] sm:$0xff] %vm2467_vm8, %v8719_v15  ;;  %v3188_v15 = vpop.permute.xlu1 %3187  ;;  %v3574_v54 = vpop.permute.xlu2 %3573  ;;  %v3997_v12 = vld [vmem:[#allocation3 + $0x1c0] sm:$0xff]  ;;  %1523 = vrot.lane.b32.xlu0 %v8285_v4, %s6992_s5 }
 0x2f4   :  { %2469 = vst.msk [vmem:[#allocation3 + $0x18] sm:$0xff] %vm2467_vm8, %v2278_v17  ;;  %4598 = vmatmul.f32.gmra.mxu2 %v3954_v55  ;;  %v2803_v61 = vpop.permute.xlu0 %2802 }
 0x2f5   :  { %12413 = vst [vmem:[#allocation19_spill] sm:$0xff] %v8821_v0  ;;  %3203 = vrot.lane.b32.xlu1 %v8843_v5, %s6990_s1 }
 0x2f6   :  { %2628 = vst.msk [vmem:[#allocation3 + $0x308] sm:$0xff] %vm528_vm1, %v8816_v9 }
 0x2f7   :  { %1339 = vst.msk [vmem:[#allocation3 + $0x270] sm:$0xff] %vm528_vm1, %v1275_v59  ;;  %v1279_v59 = vld [vmem:[#allocation2 + $0x168] sm:$0xff]  ;;  %2291 = vrot.lane.b32.xlu2 %v8319_v2, %s6991_s4 }
 0x2f8   :  { %2629 = vst.msk [vmem:[#allocation3 + $0x320] sm:$0xff] %vm528_vm1, %v8821_v0  ;;  %v4006_v0 = vld [vmem:[#allocation3 + $0x208] sm:$0xff] }
 0x2f9   :  { %1340 = vst.msk [vmem:[#allocation3 + $0x288] sm:$0xff] %vm528_vm1, %v1276_v43  ;;  %6718 = vmatmul.msk.f32.gmra.mxu0 %vm528_vm1, %v3997_v12  ;;  %v1280_v43 = vld [vmem:[#allocation2 + $0x170] sm:$0xff] }
 0x2fa   :  { %2987 = vst.msk [vmem:[#allocation3 + $0xb0] sm:$0xff] %vm1697_vm6, %v2803_v61  ;;  %v3960_v10 = vld [vmem:[#allocation3 + $0x98] sm:$0xff]  ;;  %v8870_v61 = vpop.f32.mrf.mxu0 }
 0x2fb   :  { %3372 = vst.msk [vmem:[#allocation3 + $0xb0] sm:$0xff] %vm2082_vm7, %v3188_v15  ;;  %v3944_v40 = vld [vmem:[#allocation3 + $0x18] sm:$0xff]  ;;  %v3190_v14 = vpop.permute.xlu1 %3189  ;;  %v2280_v55 = vpop.permute.xlu2 %2279  ;;  %2820 = vrot.lane.b32.xlu0 %v8339_v53, %s6992_s5 }
 0x2fc   :  { %3756 = vst.msk [vmem:[#allocation3 + $0xb0] sm:$0xff] %vm2467_vm8, %v3572_v47  ;;  %4380 = vmatmul.f32.gmra.mxu1 %v3944_v40  ;;  %4601 = vmatmul.f32.gmra.mxu2 %v3957_v27  ;;  %v8851_v47 = vld [vmem:[#allocation2 + $0x1f9] sm:$0xff]  ;;  %v2805_v17 = vpop.permute.xlu0 %2804  ;;  %v8867_v15 = vld [vmem:[#allocation2 + $0x211] sm:$0xff] }
 0x2fd   :  { %2630 = vst.msk [vmem:[#allocation3 + $0x338] sm:$0xff] %vm528_vm1, %v8837_v37  ;;  %1908 = vrot.lane.b32.xlu1 %v8264_v39, %s6990_s1  ;;  %v8876_v40 = vld [vmem:[#allocation2 + $0x219] sm:$0xff]  ;;  %v8889_v39 = vld [vmem:[#allocation2 + $0x229] sm:$0xff]  ;;  %v8895_v12 = vld [vmem:[#allocation2 + $0x231] sm:$0xff] }
 0x2fe   :  { %1341 = vst.msk [vmem:[#allocation3 + $0x2a0] sm:$0xff] %vm528_vm1, %v1277_v7  ;;  %v4000_v7 = vld [vmem:[#allocation3 + $0x1d8] sm:$0xff] }
 0x2ff   :  { %2631 = vst.msk [vmem:[#allocation3 + $0x350] sm:$0xff] %vm528_vm1, %v8841_v58  ;;  %3587 = vrot.lane.b32.xlu2 %v8544_v62, %s6991_s4 }
 0x300   :  { %1342 = vst.msk [vmem:[#allocation3 + $0x2b8] sm:$0xff] %vm528_vm1, %v1278_v19  ;;  %v8892_v19 = vld [vmem:[#allocation2 + $0x1c8] sm:$0xff] }
 0x301   :  { %2632 = vst.msk [vmem:[#allocation3 + $0x368] sm:$0xff] %vm528_vm1, %v8851_v47  ;;  %6719 = vmatmul.msk.f32.gmra.mxu0 %vm528_vm1, %v4000_v7 }
 0x302   :  { %2988 = vst.msk [vmem:[#allocation3 + $0xc8] sm:$0xff] %vm1697_vm6, %v2805_v17  ;;  %v8899_v17 = vld [vmem:[#allocation2 + $0x1d0] sm:$0xff] }
 0x303   :  { %3373 = vst.msk [vmem:[#allocation3 + $0xc8] sm:$0xff] %vm2082_vm7, %v3190_v14  ;;  %v3576_v2 = vpop.permute.xlu2 %3575  ;;  %v3963_v4 = vld [vmem:[#allocation3 + $0xb0] sm:$0xff]  ;;  %1525 = vrot.lane.b32.xlu0 %v8317_v52, %s6992_s5  ;;  %v1288_v52 = vld [vmem:[#allocation2 + $0x200] sm:$0xff] }
 0x304   :  { %3757 = vst.msk [vmem:[#allocation3 + $0xc8] sm:$0xff] %vm2467_vm8, %v3574_v54  ;;  %4604 = vmatmul.f32.gmra.mxu2 %v3960_v10  ;;  %v1895_v54 = vpop.permute.xlu1 %1894  ;;  %v1510_v27 = vpop.permute.xlu0 %1509  ;;  %v8897_v14 = vld [vmem:[#allocation2 + $0xf0] sm:$0xff]  ;;  %v8907_v10 = vld [vmem:[#allocation2 + $0x241] sm:$0xff] }
 0x305   :  { %1343 = vst.msk [vmem:[#allocation3 + $0x2d0] sm:$0xff] %vm528_vm1, %v1279_v59  ;;  %v4003_v59 = vld [vmem:[#allocation3 + $0x1f0] sm:$0xff]  ;;  %3205 = vrot.lane.b32.xlu1 %v8897_v14, %s6990_s1 }
 0x306   :  { %12414 = vst [vmem:[#allocation21_spill] sm:$0xff] %v8870_v61  ;;  %v1286_v61 = vld [vmem:[#allocation2 + $0x1e8] sm:$0xff] }
 0x307   :  { %2633 = vst.msk [vmem:[#allocation3 + $0x380] sm:$0xff] %vm528_vm1, %v8864_v11  ;;  %2293 = vrot.lane.b32.xlu2 %v8349_v38, %s6991_s4 }
 0x308   :  { %1344 = vst.msk [vmem:[#allocation3 + $0x2e8] sm:$0xff] %vm528_vm1, %v1280_v43 }
 0x309   :  { %2634 = vst.msk [vmem:[#allocation3 + $0x398] sm:$0xff] %vm528_vm1, %v8867_v15  ;;  %6720 = vmatmul.msk.f32.gmra.mxu0 %vm528_vm1, %v4003_v59 }
 0x30a   :  { %2635 = vst.msk [vmem:[#allocation3 + $0x3b0] sm:$0xff] %vm528_vm1, %v8876_v40 }
 0x30b   :  { %1700 = vst.msk [vmem:[#allocation3 + $0x30] sm:$0xff] %vm1697_vm6, %v1510_v27  ;;  %v2282_v7 = vpop.permute.xlu2 %2281  ;;  %v1285_v27 = vld [vmem:[#allocation2 + $0x1e0] sm:$0xff]  ;;  %v3966_v59 = vld [vmem:[#allocation3 + $0xc8] sm:$0xff]  ;;  %2822 = vrot.lane.b32.xlu0 %v8347_v51, %s6992_s5 }
 0x30c   :  { %2085 = vst.msk [vmem:[#allocation3 + $0x30] sm:$0xff] %vm2082_vm7, %v1895_v54  ;;  %4607 = vmatmul.f32.gmra.mxu2 %v3963_v4  ;;  %v3192_v43 = vpop.permute.xlu1 %3191  ;;  %v2807_v54 = vpop.permute.xlu0 %2806  ;;  %v8924_v4 = vld [vmem:[#allocation2 + $0x249] sm:$0xff] }
 0x30d   :  { %2470 = vst.msk [vmem:[#allocation3 + $0x30] sm:$0xff] %vm2467_vm8, %v2280_v55  ;;  %v8916_v55 = vpop.f32.mrf.mxu0  ;;  %1910 = vrot.lane.b32.xlu1 %v8273_v48, %s6990_s1 }
 0x30e   :  { %2636 = vst.msk [vmem:[#allocation3 + $0x3c8] sm:$0xff] %vm528_vm1, %v8889_v39 }
 0x30f   :  { %1347 = vst.msk [vmem:[#allocation3 + $0x330] sm:$0xff] %vm528_vm1, %v8892_v19  ;;  %3589 = vrot.lane.b32.xlu2 %v8566_v35, %s6991_s4 }
 0x310   :  { %2637 = vst.msk [vmem:[#allocation3 + $0x3e0] sm:$0xff] %vm528_vm1, %v8895_v12 }
 0x311   :  { %12415 = vst [vmem:[#allocation22_spill] sm:$0xff] %v8916_v55  ;;  %v8927_v55 = vld [vmem:[#allocation2 + $0x259] sm:$0xff]  ;;  %6721 = vmatmul.msk.f32.gmra.mxu0 %vm528_vm1, %v4006_v0 }
 0x312   :  { %1348 = vst.msk [vmem:[#allocation3 + $0x348] sm:$0xff] %vm528_vm1, %v8899_v17 }
 0x313   :  { %2638 = vst.msk [vmem:[#allocation3 + $0x3f8] sm:$0xff] %vm528_vm1, %v8907_v10  ;;  %1527 = vrot.lane.b32.xlu0 %v8381_v46, %s6992_s5  ;;  %v8998_v46 = vld [vmem:[#allocation2 + $0x2a9] sm:$0xff] }
 0x314   :  { %2989 = vst.msk [vmem:[#allocation3 + $0xe0] sm:$0xff] %vm1697_vm6, %v2807_v54  ;;  %v3947_v53 = vld [vmem:[#allocation3 + $0x30] sm:$0xff]  ;;  %4610 = vmatmul.f32.gmra.mxu2 %v3966_v59  ;;  %v3578_v54 = vpop.permute.xlu2 %3577  ;;  %v1512_v38 = vpop.permute.xlu0 %1511 }
 0x315   :  { %3374 = vst.msk [vmem:[#allocation3 + $0xe0] sm:$0xff] %vm2082_vm7, %v3192_v43  ;;  %4383 = vmatmul.f32.gmra.mxu1 %v3947_v53  ;;  %v1287_v43 = vld [vmem:[#allocation2 + $0x1f8] sm:$0xff]  ;;  %v8943_v48 = vpop.f32.mrf.mxu0  ;;  %v1289_v59 = vld [vmem:[#allocation2 + $0x210] sm:$0xff] }
 0x316   :  { %3758 = vst.msk [vmem:[#allocation3 + $0xe0] sm:$0xff] %vm2467_vm8, %v3576_v2  ;;  %v1897_v2 = vpop.permute.xlu1 %1896  ;;  %v8952_v53 = vld [vmem:[#allocation2 + $0xf8] sm:$0xff] }
 0x317   :  { %1349 = vst.msk [vmem:[#allocation3 + $0x360] sm:$0xff] %vm528_vm1, %v1285_v27  ;;  %v8946_v27 = vld [vmem:[#allocation2 + $0x261] sm:$0xff]  ;;  %3207 = vrot.lane.b32.xlu1 %v8952_v53, %s6990_s1 }
 0x318   :  { %2639 = vst.msk [vmem:[#allocation3 + $0x410] sm:$0xff] %vm528_vm1, %v8924_v4 }
 0x319   :  { %1350 = vst.msk [vmem:[#allocation3 + $0x378] sm:$0xff] %vm528_vm1, %v1286_v61  ;;  %v8950_v61 = vld [vmem:[#allocation2 + $0x271] sm:$0xff] }
 0x31a   :  { %2640 = vst.msk [vmem:[#allocation3 + $0x428] sm:$0xff] %vm528_vm1, %v8927_v55 }
 0x31b   :  { %1351 = vst.msk [vmem:[#allocation3 + $0x390] sm:$0xff] %vm528_vm1, %v1287_v43  ;;  %v4009_v43 = vld [vmem:[#allocation3 + $0x220] sm:$0xff]  ;;  %2824 = vrot.lane.b32.xlu0 %v8357_v8, %s6992_s5 }
 0x31c   :  { %12416 = vst [vmem:[#allocation23_spill] sm:$0xff] %v8943_v48  ;;  %6722 = vmatmul.msk.f32.gmra.mxu0 %vm528_vm1, %v4009_v43  ;;  %v1290_v48 = vld [vmem:[#allocation2 + $0x218] sm:$0xff]  ;;  %v8973_v43 = vld [vmem:[#allocation2 + $0x289] sm:$0xff]  ;;  %v1296_v8 = vld [vmem:[#allocation2 + $0x260] sm:$0xff] }
 0x31d   :  { %1701 = vst.msk [vmem:[#allocation3 + $0x48] sm:$0xff] %vm1697_vm6, %v1512_v38  ;;  %v3969_v0 = vld [vmem:[#allocation3 + $0xe0] sm:$0xff]  ;;  %v2284_v38 = vpop.permute.xlu2 %2283  ;;  %v8975_v51 = vpop.f32.mrf.mxu0 }
 0x31e   :  { %12417 = vst [vmem:[#allocation24_spill] sm:$0xff] %v8946_v27  ;;  %4613 = vmatmul.f32.gmra.mxu2 %v3969_v0  ;;  %v2809_v0 = vpop.permute.xlu0 %2808 }
 0x31f   :  { %2086 = vst.msk [vmem:[#allocation3 + $0x48] sm:$0xff] %vm2082_vm7, %v1897_v2  ;;  %v8960_v2 = vld [vmem:[#allocation2 + $0x279] sm:$0xff]  ;;  %1912 = vrot.lane.b32.xlu1 %v8278_v63, %s6990_s1  ;;  %v8994_v63 = vld [vmem:[#allocation2 + $0x2a1] sm:$0xff] }
 0x320   :  { %2471 = vst.msk [vmem:[#allocation3 + $0x48] sm:$0xff] %vm2467_vm8, %v2282_v7  ;;  %v3194_v7 = vpop.permute.xlu1 %3193 }
 0x321   :  { %12418 = vst [vmem:[#allocation25_spill] sm:$0xff] %v8950_v61 }
 0x322   :  { %2641 = vst.msk [vmem:[#allocation3 + $0x440] sm:$0xff] %vm528_vm1, %v8946_v27  ;;  %v4012_v27 = vld [vmem:[#allocation3 + $0x238] sm:$0xff] }
 0x323   :  { %12419 = vst [vmem:[#allocation26_spill] sm:$0xff] %v8960_v2  ;;  %1529 = vrot.lane.b32.xlu0 %v8433_v24, %s6992_s5  ;;  %v3843_v24 = vld [vmem:[#allocation2 + $0x19a] sm:$0xff] }
 0x324   :  { %1352 = vst.msk [vmem:[#allocation3 + $0x3a8] sm:$0xff] %vm528_vm1, %v1288_v52  ;;  %6723 = vmatmul.msk.f32.gmra.mxu0 %vm528_vm1, %v4012_v27 }
 0x325   :  { %2642 = vst.msk [vmem:[#allocation3 + $0x458] sm:$0xff] %vm528_vm1, %v8950_v61  ;;  %v1291_v61 = vld [vmem:[#allocation2 + $0x228] sm:$0xff] }
 0x326   :  { %1353 = vst.msk [vmem:[#allocation3 + $0x3c0] sm:$0xff] %vm528_vm1, %v1289_v59  ;;  %v8978_v59 = vld [vmem:[#allocation2 + $0x291] sm:$0xff] }
 0x327   :  { %2643 = vst.msk [vmem:[#allocation3 + $0x470] sm:$0xff] %vm528_vm1, %v8960_v2  ;;  %v3950_v52 = vld [vmem:[#allocation3 + $0x48] sm:$0xff]  ;;  %v6866_v2 = vld [vmem:[#allocation2 + $0x90] sm:$0xff] }
 0x328   :  { %2990 = vst.msk [vmem:[#allocation3 + $0xf8] sm:$0xff] %vm1697_vm6, %v2809_v0  ;;  %4386 = vmatmul.f32.gmra.mxu1 %v3950_v52  ;;  %2295 = vrot.lane.b32.xlu2 %v6866_v2, %s6991_s4  ;;  %v1514_v2 = vpop.permute.xlu0 %1513  ;;  %v1293_v0 = vld [vmem:[#allocation2 + $0x240] sm:$0xff]  ;;  %v1294_v52 = vld [vmem:[#allocation2 + $0x248] sm:$0xff] }
 0x329   :  { %3375 = vst.msk [vmem:[#allocation3 + $0xf8] sm:$0xff] %vm2082_vm7, %v3194_v7  ;;  %v1292_v7 = vld [vmem:[#allocation2 + $0x230] sm:$0xff] }
 0x32a   :  { %12420 = vst [vmem:[#allocation27_spill] sm:$0xff] %v8975_v51  ;;  %v1295_v51 = vld [vmem:[#allocation2 + $0x258] sm:$0xff] }
 0x32b   :  { %3759 = vst.msk [vmem:[#allocation3 + $0xf8] sm:$0xff] %vm2467_vm8, %v3578_v54  ;;  %v1899_v54 = vpop.permute.xlu1 %1898  ;;  %2826 = vrot.lane.b32.xlu0 %v8367_v56, %s6992_s5  ;;  %v3844_v56 = vld [vmem:[#allocation2 + $0x1a2] sm:$0xff] }
 0x32c   :  { %1354 = vst.msk [vmem:[#allocation3 + $0x3d8] sm:$0xff] %vm528_vm1, %v1290_v48  ;;  %v3580_v48 = vpop.permute.xlu2 %3579 }
 0x32d   :  { %2644 = vst.msk [vmem:[#allocation3 + $0x488] sm:$0xff] %vm528_vm1, %v8973_v43 }
 0x32e   :  { %1355 = vst.msk [vmem:[#allocation3 + $0x3f0] sm:$0xff] %vm528_vm1, %v1291_v61  ;;  %v9000_v61 = vld [vmem:[#allocation2 + $0x108] sm:$0xff] }
 0x32f   :  { %2645 = vst.msk [vmem:[#allocation3 + $0x4a0] sm:$0xff] %vm528_vm1, %v8978_v59  ;;  %3209 = vrot.lane.b32.xlu1 %v9000_v61, %s6990_s1 }
 0x330   :  { %1356 = vst.msk [vmem:[#allocation3 + $0x408] sm:$0xff] %vm528_vm1, %v1292_v7  ;;  %v9004_v7 = vpop.f32.mrf.mxu0  ;;  %3591 = vrot.lane.b32.xlu2 %v8605_v23, %s6991_s4 }
 0x331   :  { %1702 = vst.msk [vmem:[#allocation3 + $0x60] sm:$0xff] %vm1697_vm6, %v1514_v2  ;;  %v4015_v2 = vld [vmem:[#allocation3 + $0x250] sm:$0xff] }
 0x332   :  { %12421 = vst [vmem:[#allocation28_spill] sm:$0xff] %v8994_v63  ;;  %v3972_v27 = vld [vmem:[#allocation3 + $0xf8] sm:$0xff]  ;;  %6724 = vmatmul.msk.f32.gmra.mxu0 %vm528_vm1, %v4015_v2  ;;  %v9023_v2 = vld [vmem:[#allocation2 + $0x2c1] sm:$0xff] }
 0x333   :  { %2087 = vst.msk [vmem:[#allocation3 + $0x60] sm:$0xff] %vm2082_vm7, %v1899_v54  ;;  %4616 = vmatmul.f32.gmra.mxu2 %v3972_v27  ;;  %v9010_v54 = vld [vmem:[#allocation2 + $0x2b9] sm:$0xff]  ;;  %1531 = vrot.lane.b32.xlu0 %v8446_v57, %s6992_s5 }
 0x334   :  { %2472 = vst.msk [vmem:[#allocation3 + $0x60] sm:$0xff] %vm2467_vm8, %v2284_v38  ;;  %v3196_v38 = vpop.permute.xlu1 %3195  ;;  %v2286_v27 = vpop.permute.xlu2 %2285  ;;  %v9094_v57 = vld [vmem:[#allocation2 + $0x319] sm:$0xff] }
 0x335   :  { %12422 = vst [vmem:[#allocation29_spill] sm:$0xff] %v8998_v46 }
 0x336   :  { %2646 = vst.msk [vmem:[#allocation3 + $0x4b8] sm:$0xff] %vm528_vm1, %v8994_v63  ;;  %v6867_v63 = vld [vmem:[#allocation2 + $0x98] sm:$0xff] }
 0x337   :  { %12423 = vst [vmem:[#allocation30_spill] sm:$0xff] %v9004_v7  ;;  %v2811_v7 = vpop.permute.xlu0 %2810  ;;  %1914 = vrot.lane.b32.xlu1 %v8283_v25, %s6990_s1 }
 0x338   :  { %1357 = vst.msk [vmem:[#allocation3 + $0x420] sm:$0xff] %vm528_vm1, %v1293_v0  ;;  %2297 = vrot.lane.b32.xlu2 %v6867_v63, %s6991_s4 }
 0x339   :  { %2647 = vst.msk [vmem:[#allocation3 + $0x4d0] sm:$0xff] %vm528_vm1, %v8998_v46  ;;  %v9026_v46 = vld [vmem:[#allocation2 + $0x2d1] sm:$0xff] }
 0x33a   :  { %1358 = vst.msk [vmem:[#allocation3 + $0x438] sm:$0xff] %vm528_vm1, %v1294_v52  ;;  %v4018_v52 = vld [vmem:[#allocation3 + $0x268] sm:$0xff] }
 0x33b   :  { %2648 = vst.msk [vmem:[#allocation3 + $0x4e8] sm:$0xff] %vm528_vm1, %v9010_v54  ;;  %v3953_v0 = vld [vmem:[#allocation3 + $0x60] sm:$0xff]  ;;  %6725 = vmatmul.msk.f32.gmra.mxu0 %vm528_vm1, %v4018_v52  ;;  %v9048_v52 = vld [vmem:[#allocation2 + $0x110] sm:$0xff]  ;;  %2828 = vrot.lane.b32.xlu0 %v8373_v34, %s6992_s5 }
 0x33c   :  { %2991 = vst.msk [vmem:[#allocation3 + $0x110] sm:$0xff] %vm1697_vm6, %v2811_v7  ;;  %4389 = vmatmul.f32.gmra.mxu1 %v3953_v0  ;;  %v1297_v7 = vld [vmem:[#allocation2 + $0x270] sm:$0xff]  ;;  %v3582_v63 = vpop.permute.xlu2 %3581  ;;  %v9045_v0 = vld [vmem:[#allocation2 + $0x2d9] sm:$0xff] }
 0x33d   :  { %3376 = vst.msk [vmem:[#allocation3 + $0x110] sm:$0xff] %vm2082_vm7, %v3196_v38  ;;  %v1305_v34 = vld [vmem:[#allocation2 + $0x2d0] sm:$0xff] }
 0x33e   :  { %12424 = vst [vmem:[#allocation31_spill] sm:$0xff] %v9023_v2 }
 0x33f   :  { %3760 = vst.msk [vmem:[#allocation3 + $0x110] sm:$0xff] %vm2467_vm8, %v3580_v48  ;;  %v9038_v48 = vpop.f32.mrf.mxu0  ;;  %v1516_v38 = vpop.permute.xlu0 %1515  ;;  %3211 = vrot.lane.b32.xlu1 %v9048_v52, %s6990_s1 }
 0x340   :  { %12425 = vst [vmem:[#allocation32_spill] sm:$0xff] %v9026_v46  ;;  %3593 = vrot.lane.b32.xlu2 %v8613_v22, %s6991_s4 }
 0x341   :  { %1359 = vst.msk [vmem:[#allocation3 + $0x450] sm:$0xff] %vm528_vm1, %v1295_v51  ;;  %v1901_v51 = vpop.permute.xlu1 %1900 }
 0x342   :  { %2649 = vst.msk [vmem:[#allocation3 + $0x500] sm:$0xff] %vm528_vm1, %v9023_v2  ;;  %v6868_v2 = vld [vmem:[#allocation2 + $0xa8] sm:$0xff] }
 0x343   :  { %1360 = vst.msk [vmem:[#allocation3 + $0x468] sm:$0xff] %vm528_vm1, %v1296_v8  ;;  %v1298_v8 = vld [vmem:[#allocation2 + $0x278] sm:$0xff]  ;;  %1533 = vrot.lane.b32.xlu0 %v8463_v29, %s6992_s5  ;;  %v1308_v29 = vld [vmem:[#allocation2 + $0x2f0] sm:$0xff] }
 0x344   :  { %12426 = vst [vmem:[#allocation33_spill] sm:$0xff] %v9038_v48  ;;  %v9051_v48 = vld [vmem:[#allocation2 + $0x2e9] sm:$0xff] }
 0x345   :  { %2650 = vst.msk [vmem:[#allocation3 + $0x518] sm:$0xff] %vm528_vm1, %v9026_v46  ;;  %v4021_v46 = vld [vmem:[#allocation3 + $0x280] sm:$0xff] }
 0x346   :  { %1361 = vst.msk [vmem:[#allocation3 + $0x480] sm:$0xff] %vm528_vm1, %v1297_v7  ;;  %v3975_v25 = vld [vmem:[#allocation3 + $0x110] sm:$0xff]  ;;  %6726 = vmatmul.msk.f32.gmra.mxu0 %vm528_vm1, %v4021_v46 }
 0x347   :  { %1703 = vst.msk [vmem:[#allocation3 + $0x78] sm:$0xff] %vm1697_vm6, %v1516_v38  ;;  %4619 = vmatmul.f32.gmra.mxu2 %v3975_v25  ;;  %v2813_v38 = vpop.permute.xlu0 %2812  ;;  %v9066_v25 = vpop.f32.mrf.mxu0 }
 0x348   :  { %2088 = vst.msk [vmem:[#allocation3 + $0x78] sm:$0xff] %vm2082_vm7, %v1901_v51  ;;  %v2288_v51 = vpop.permute.xlu2 %2287  ;;  %2299 = vrot.lane.b32.xlu2 %v6868_v2, %s6991_s4  ;;  %v9088_v2 = vld [vmem:[#allocation2 + $0x309] sm:$0xff] }
 0x349   :  { %12427 = vst [vmem:[#allocation34_spill] sm:$0xff] %v9045_v0  ;;  %v3198_v7 = vpop.permute.xlu1 %3197 }
 0x34a   :  { %2473 = vst.msk [vmem:[#allocation3 + $0x78] sm:$0xff] %vm2467_vm8, %v2286_v27  ;;  %v1299_v27 = vld [vmem:[#allocation2 + $0x288] sm:$0xff] }
 0x34b   :  { %3907 = vst.msk [vmem:[#allocation3 + $0x2e0] sm:$0xff] %vm528_vm1, %v3843_v24  ;;  %v9070_v24 = vld [vmem:[#allocation2 + $0x2f1] sm:$0xff]  ;;  %2830 = vrot.lane.b32.xlu0 %v8379_v28, %s6992_s5  ;;  %v1312_v28 = vld [vmem:[#allocation2 + $0x320] sm:$0xff] }
 0x34c   :  { %12428 = vst [vmem:[#allocation18_spill] sm:$0xff] %v9051_v48 }
 0x34d   :  { %2651 = vst.msk [vmem:[#allocation3 + $0x530] sm:$0xff] %vm528_vm1, %v9045_v0  ;;  %v1775_v0 = vld [vmem:[#allocation2 + $0x9a] sm:$0xff] }
 0x34e   :  { %1362 = vst.msk [vmem:[#allocation3 + $0x498] sm:$0xff] %vm528_vm1, %v1298_v8  ;;  %v1300_v8 = vld [vmem:[#allocation2 + $0x290] sm:$0xff]  ;;  %1916 = vrot.lane.b32.xlu1 %v1775_v0, %s6990_s1 }
 0x34f   :  { %2652 = vst.msk [vmem:[#allocation3 + $0x548] sm:$0xff] %vm528_vm1, %v9051_v48  ;;  %v9074_v48 = vld [vmem:[#allocation2 + $0x301] sm:$0xff] }
 0x350   :  { %1363 = vst.msk [vmem:[#allocation3 + $0x4b0] sm:$0xff] %vm528_vm1, %v1299_v27  ;;  %v4024_v27 = vld [vmem:[#allocation3 + $0x298] sm:$0xff]  ;;  %3595 = vrot.lane.b32.xlu2 %v8652_v6, %s6991_s4 }
 0x351   :  { %12429 = vst [vmem:[#allocation20_spill] sm:$0xff] %v9066_v25  ;;  %v3956_v46 = vld [vmem:[#allocation3 + $0x78] sm:$0xff]  ;;  %6727 = vmatmul.msk.f32.gmra.mxu0 %vm528_vm1, %v4024_v27  ;;  %v9091_v27 = vpop.f32.mrf.mxu0  ;;  %v1304_v25 = vld [vmem:[#allocation2 + $0x2c0] sm:$0xff] }
 0x352   :  { %2992 = vst.msk [vmem:[#allocation3 + $0x128] sm:$0xff] %vm1697_vm6, %v2813_v38  ;;  %4392 = vmatmul.f32.gmra.mxu1 %v3956_v46  ;;  %v3584_v38 = vpop.permute.xlu2 %3583  ;;  %v1518_v46 = vpop.permute.xlu0 %1517 }
 0x353   :  { %3377 = vst.msk [vmem:[#allocation3 + $0x128] sm:$0xff] %vm2082_vm7, %v3198_v7  ;;  %v1301_v7 = vld [vmem:[#allocation2 + $0x2a0] sm:$0xff]  ;;  %1535 = vrot.lane.b32.xlu0 %v8467_v3, %s6992_s5 }
 0x354   :  { %3761 = vst.msk [vmem:[#allocation3 + $0x128] sm:$0xff] %vm2467_vm8, %v3582_v63  ;;  %v1903_v63 = vpop.permute.xlu1 %1902 }
 0x355   :  { %3908 = vst.msk [vmem:[#allocation3 + $0x2f8] sm:$0xff] %vm528_vm1, %v3844_v56  ;;  %v1302_v56 = vld [vmem:[#allocation2 + $0x2a8] sm:$0xff] }
 0x356   :  { %12430 = vst [vmem:[#allocation35_spill] sm:$0xff] %v9074_v48 }
 0x357   :  { %2653 = vst.msk [vmem:[#allocation3 + $0x560] sm:$0xff] %vm528_vm1, %v9070_v24 }
 0x358   :  { %1364 = vst.msk [vmem:[#allocation3 + $0x4c8] sm:$0xff] %vm528_vm1, %v1300_v8  ;;  %v9096_v8 = vld [vmem:[#allocation2 + $0x120] sm:$0xff] }
 0x359   :  { %2654 = vst.msk [vmem:[#allocation3 + $0x578] sm:$0xff] %vm528_vm1, %v9074_v48  ;;  %3213 = vrot.lane.b32.xlu1 %v9096_v8, %s6990_s1  ;;  %v6869_v48 = vld [vmem:[#allocation2 + $0xb0] sm:$0xff] }
 0x35a   :  { %1365 = vst.msk [vmem:[#allocation3 + $0x4e0] sm:$0xff] %vm528_vm1, %v1301_v7  ;;  %v1303_v7 = vld [vmem:[#allocation2 + $0x2b8] sm:$0xff]  ;;  %2301 = vrot.lane.b32.xlu2 %v6869_v48, %s6991_s4  ;;  %v1307_v48 = vld [vmem:[#allocation2 + $0x2e8] sm:$0xff] }
 0x35b   :  { %1704 = vst.msk [vmem:[#allocation3 + $0x90] sm:$0xff] %vm1697_vm6, %v1518_v46  ;;  %v3978_v0 = vld [vmem:[#allocation3 + $0x128] sm:$0xff]  ;;  %v4027_v46 = vld [vmem:[#allocation3 + $0x2b0] sm:$0xff]  ;;  %2832 = vrot.lane.b32.xlu0 %v8390_v42, %s6992_s5 }
 0x35c   :  { %12431 = vst [vmem:[#allocation36_spill] sm:$0xff] %v9088_v2  ;;  %4622 = vmatmul.f32.gmra.mxu2 %v3978_v0  ;;  %6728 = vmatmul.msk.f32.gmra.mxu0 %vm528_vm1, %v4027_v46  ;;  %v2290_v0 = vpop.permute.xlu2 %2289  ;;  %v9117_v46 = vld [vmem:[#allocation2 + $0x331] sm:$0xff] }
 0x35d   :  { %2089 = vst.msk [vmem:[#allocation3 + $0x90] sm:$0xff] %vm2082_vm7, %v1903_v63  ;;  %v9104_v63 = vld [vmem:[#allocation2 + $0x321] sm:$0xff] }
 0x35e   :  { %12432 = vst [vmem:[#allocation37_spill] sm:$0xff] %v9091_v27  ;;  %v2815_v27 = vpop.permute.xlu0 %2814 }
 0x35f   :  { %2474 = vst.msk [vmem:[#allocation3 + $0x90] sm:$0xff] %vm2467_vm8, %v2288_v51  ;;  %v3200_v51 = vpop.permute.xlu1 %3199 }
 0x360   :  { %12433 = vst [vmem:[#allocation38_spill] sm:$0xff] %v9094_v57 }
 0x361   :  { %2655 = vst.msk [vmem:[#allocation3 + $0x590] sm:$0xff] %vm528_vm1, %v9088_v2  ;;  %v9120_v2 = vld [vmem:[#allocation2 + $0x339] sm:$0xff] }
 0x362   :  { %12434 = vst [vmem:[#allocation39_spill] sm:$0xff] %v9104_v63  ;;  %3597 = vrot.lane.b32.xlu2 %v8667_v32, %s6991_s4 }
 0x363   :  { %1366 = vst.msk [vmem:[#allocation3 + $0x4f8] sm:$0xff] %vm528_vm1, %v1302_v56  ;;  %1537 = vrot.lane.b32.xlu0 %v8484_v50, %s6992_s5 }
 0x364   :  { %2656 = vst.msk [vmem:[#allocation3 + $0x5a8] sm:$0xff] %vm528_vm1, %v9094_v57  ;;  %v1776_v57 = vld [vmem:[#allocation2 + $0xaa] sm:$0xff] }
 0x365   :  { %1367 = vst.msk [vmem:[#allocation3 + $0x510] sm:$0xff] %vm528_vm1, %v1303_v7  ;;  %v9123_v7 = vpop.f32.mrf.mxu0  ;;  %1918 = vrot.lane.b32.xlu1 %v1776_v57, %s6990_s1 }
 0x366   :  { %2657 = vst.msk [vmem:[#allocation3 + $0x5c0] sm:$0xff] %vm528_vm1, %v9104_v63  ;;  %v3959_v56 = vld [vmem:[#allocation3 + $0x90] sm:$0xff]  ;;  %v4030_v63 = vld [vmem:[#allocation3 + $0x2c8] sm:$0xff] }
 0x367   :  { %2993 = vst.msk [vmem:[#allocation3 + $0x140] sm:$0xff] %vm1697_vm6, %v2815_v27  ;;  %4395 = vmatmul.f32.gmra.mxu1 %v3959_v56  ;;  %v1306_v27 = vld [vmem:[#allocation2 + $0x2d8] sm:$0xff]  ;;  %6729 = vmatmul.msk.f32.gmra.mxu0 %vm528_vm1, %v4030_v63  ;;  %v4033_v56 = vld [vmem:[#allocation3 + $0x2e0] sm:$0xff] }
 0x368   :  { %3378 = vst.msk [vmem:[#allocation3 + $0x140] sm:$0xff] %vm2082_vm7, %v3200_v51  ;;  %v1520_v51 = vpop.permute.xlu0 %1519  ;;  %v3858_v63 = vld [vmem:[#allocation2 + $0x27a] sm:$0xff] }
 0x369   :  { %3762 = vst.msk [vmem:[#allocation3 + $0x140] sm:$0xff] %vm2467_vm8, %v3584_v38  ;;  %v3586_v38 = vpop.permute.xlu2 %3585 }
 0x36a   :  { %12435 = vst [vmem:[#allocation40_spill] sm:$0xff] %v9120_v2  ;;  %2303 = vrot.lane.b32.xlu2 %v8655_v20, %s6991_s4 }
 0x36b   :  { %1368 = vst.msk [vmem:[#allocation3 + $0x528] sm:$0xff] %vm528_vm1, %v1304_v25  ;;  %v1905_v25 = vpop.permute.xlu1 %1904  ;;  %2834 = vrot.lane.b32.xlu0 %v8400_v1, %s6992_s5 }
 0x36c   :  { %12436 = vst [vmem:[#allocation41_spill] sm:$0xff] %v9123_v7  ;;  %v3859_v7 = vld [vmem:[#allocation2 + $0x28a] sm:$0xff] }
 0x36d   :  { %2658 = vst.msk [vmem:[#allocation3 + $0x5d8] sm:$0xff] %vm528_vm1, %v9117_v46 }
 0x36e   :  { %1369 = vst.msk [vmem:[#allocation3 + $0x540] sm:$0xff] %vm528_vm1, %v1305_v34  ;;  %v9139_v34 = vld [vmem:[#allocation2 + $0x128] sm:$0xff] }
 0x36f   :  { %2659 = vst.msk [vmem:[#allocation3 + $0x5f0] sm:$0xff] %vm528_vm1, %v9120_v2  ;;  %3215 = vrot.lane.b32.xlu1 %v9139_v34, %s6990_s1  ;;  %6730 = vmatmul.msk.f32.gmra.mxu0 %vm528_vm1, %v4033_v56  ;;  %v1311_v56 = vld [vmem:[#allocation2 + $0x318] sm:$0xff] }
 0x370   :  { %1370 = vst.msk [vmem:[#allocation3 + $0x558] sm:$0xff] %vm528_vm1, %v1306_v27  ;;  %v3981_v57 = vld [vmem:[#allocation3 + $0x140] sm:$0xff]  ;;  %v4036_v2 = vld [vmem:[#allocation3 + $0x2f8] sm:$0xff] }
 0x371   :  { %1705 = vst.msk [vmem:[#allocation3 + $0xa8] sm:$0xff] %vm1697_vm6, %v1520_v51  ;;  %4625 = vmatmul.f32.gmra.mxu2 %v3981_v57  ;;  %v1309_v27 = vld [vmem:[#allocation2 + $0x300] sm:$0xff]  ;;  %v2292_v51 = vpop.permute.xlu2 %2291  ;;  %v1310_v57 = vld [vmem:[#allocation2 + $0x308] sm:$0xff] }
 0x372   :  { %2090 = vst.msk [vmem:[#allocation3 + $0xa8] sm:$0xff] %vm2082_vm7, %v1905_v25  ;;  %3599 = vrot.lane.b32.xlu2 %v8692_v16, %s6991_s4 }
 0x373   :  { %2475 = vst.msk [vmem:[#allocation3 + $0xa8] sm:$0xff] %vm2467_vm8, %v2290_v0  ;;  %v9151_v0 = vpop.f32.mrf.mxu0  ;;  %v3202_v25 = vpop.permute.xlu1 %3201  ;;  %1539 = vrot.lane.b32.xlu0 %v8501_v45, %s6992_s5 }
 0x374   :  { %1371 = vst.msk [vmem:[#allocation3 + $0x570] sm:$0xff] %vm528_vm1, %v1307_v48  ;;  %v2817_v48 = vpop.permute.xlu0 %2816 }
 0x375   :  { %3922 = vst.msk [vmem:[#allocation3 + $0x448] sm:$0xff] %vm528_vm1, %v3858_v63 }
 0x376   :  { %1372 = vst.msk [vmem:[#allocation3 + $0x588] sm:$0xff] %vm528_vm1, %v1308_v29  ;;  %v1777_v29 = vld [vmem:[#allocation2 + $0xb2] sm:$0xff] }
 0x377   :  { %12437 = vst [vmem:[#allocation42_spill] sm:$0xff] %v9151_v0  ;;  %1920 = vrot.lane.b32.xlu1 %v1777_v29, %s6990_s1  ;;  %6731 = vmatmul.msk.f32.gmra.mxu0 %vm528_vm1, %v4036_v2  ;;  %v4039_v2 = vld [vmem:[#allocation3 + $0x310] sm:$0xff]  ;;  %v4042_v29 = vld [vmem:[#allocation3 + $0x328] sm:$0xff] }
 0x378   :  { %3923 = vst.msk [vmem:[#allocation3 + $0x460] sm:$0xff] %vm528_vm1, %v3859_v7 }
 0x379   :  { %1373 = vst.msk [vmem:[#allocation3 + $0x5a0] sm:$0xff] %vm528_vm1, %v1309_v27 }
 0x37a   :  { %2994 = vst.msk [vmem:[#allocation3 + $0x158] sm:$0xff] %vm1697_vm6, %v2817_v48  ;;  %v3962_v63 = vld [vmem:[#allocation3 + $0xa8] sm:$0xff]  ;;  %v9172_v48 = vld [vmem:[#allocation2 + $0x138] sm:$0xff]  ;;  %2305 = vrot.lane.b32.xlu2 %v8735_v49, %s6991_s4 }
 0x37b   :  { %3379 = vst.msk [vmem:[#allocation3 + $0x158] sm:$0xff] %vm2082_vm7, %v3202_v25  ;;  %4398 = vmatmul.f32.gmra.mxu1 %v3962_v63  ;;  %v1907_v7 = vpop.permute.xlu1 %1906  ;;  %v9167_v25 = vpop.f32.mrf.mxu0  ;;  %2836 = vrot.lane.b32.xlu0 %v8406_v60, %s6992_s5 }
 0x37c   :  { %3763 = vst.msk [vmem:[#allocation3 + $0x158] sm:$0xff] %vm2467_vm8, %v3586_v38  ;;  %v3588_v38 = vpop.permute.xlu2 %3587  ;;  %v1522_v27 = vpop.permute.xlu0 %1521 }
 0x37d   :  { %1374 = vst.msk [vmem:[#allocation3 + $0x5b8] sm:$0xff] %vm528_vm1, %v1310_v57 }
 0x37e   :  { %1375 = vst.msk [vmem:[#allocation3 + $0x5d0] sm:$0xff] %vm528_vm1, %v1311_v56 }
 0x37f   :  { %1376 = vst.msk [vmem:[#allocation3 + $0x5e8] sm:$0xff] %vm528_vm1, %v1312_v28  ;;  %3217 = vrot.lane.b32.xlu1 %v9172_v48, %s6990_s1  ;;  %6732 = vmatmul.msk.f32.gmra.mxu0 %vm528_vm1, %v4039_v2  ;;  %v1778_v28 = vld [vmem:[#allocation2 + $0xc2] sm:$0xff] }
 0x380   :  { %12438 = vst [vmem:[#allocation43_spill] sm:$0xff] %v9167_v25  ;;  %v4045_v2 = vld [vmem:[#allocation3 + $0x340] sm:$0xff] }
 0x381   :  { %1706 = vst.msk [vmem:[#allocation3 + $0xc0] sm:$0xff] %vm1697_vm6, %v1522_v27 }
 0x382   :  { %2091 = vst.msk [vmem:[#allocation3 + $0xc0] sm:$0xff] %vm2082_vm7, %v1907_v7  ;;  %3601 = vrot.lane.b32.xlu2 %v8700_v33, %s6991_s4 }
 0x383   :  { %v3984_v20 = vld [vmem:[#allocation3 + $0x158] sm:$0xff]  ;;  %2476 = vst.msk [vmem:[#allocation3 + $0xc0] sm:$0xff] %vm2467_vm8, %v2292_v51  ;;  %v3204_v3 = vpop.permute.xlu1 %3203  ;;  %v9183_v56 = vpop.f32.mrf.mxu0  ;;  %1541 = vrot.lane.b32.xlu0 %v8531_v44, %s6992_s5  ;;  %v12444_v44 = vld [vmem:[#allocation10_spill] sm:$0xff] }
 0x384   :  { %4628 = vmatmul.f32.gmra.mxu2 %v3984_v20  ;;  %v2294_v57 = vpop.permute.xlu2 %2293  ;;  %v2819_v63 = vpop.permute.xlu0 %2818  ;;  %12439 = vst [vmem:[#allocation44_spill] sm:$0xff] %v9183_v56  ;;  %v9195_v20 = vld [vmem:[#allocation2 + $0x140] sm:$0xff] }
 0x385   :  { %2995 = vst.msk [vmem:[#allocation3 + $0x170] sm:$0xff] %vm1697_vm6, %v2819_v63 }
 0x386   :  { %3380 = vst.msk [vmem:[#allocation3 + $0x170] sm:$0xff] %vm2082_vm7, %v3204_v3 }
 0x387   :  { %3764 = vst.msk [vmem:[#allocation3 + $0x170] sm:$0xff] %vm2467_vm8, %v3588_v38  ;;  %1922 = vrot.lane.b32.xlu1 %v1778_v28, %s6990_s1  ;;  %6733 = vmatmul.msk.f32.gmra.mxu0 %vm528_vm1, %v4042_v29  ;;  %v4048_v28 = vld [vmem:[#allocation3 + $0x358] sm:$0xff] }
 0x38a   :  { %v3965_v51 = vld [vmem:[#allocation3 + $0xc0] sm:$0xff]  ;;  %2307 = vrot.lane.b32.xlu2 %v8796_v30, %s6991_s4  ;;  %v9220_v30 = vld [vmem:[#allocation2 + $0x150] sm:$0xff] }
 0x38b   :  { %4401 = vmatmul.f32.gmra.mxu1 %v3965_v51  ;;  %v1909_v42 = vpop.permute.xlu1 %1908  ;;  %v9197_v49 = vpop.f32.mrf.mxu0  ;;  %v1779_v51 = vld [vmem:[#allocation2 + $0xca] sm:$0xff]  ;;  %2838 = vrot.lane.b32.xlu0 %v12444_v44, %s6992_s5 }
 0x38c   :  { %v3590_v7 = vpop.permute.xlu2 %3589  ;;  %v1524_v27 = vpop.permute.xlu0 %1523  ;;  %12440 = vst [vmem:[#allocation45_spill] sm:$0xff] %v9197_v49 }
 0x38d   :  { %1707 = vst.msk [vmem:[#allocation3 + $0xd8] sm:$0xff] %vm1697_vm6, %v1524_v27 }
 0x38e   :  { %2092 = vst.msk [vmem:[#allocation3 + $0xd8] sm:$0xff] %vm2082_vm7, %v1909_v42  ;;  %v3987_v38 = vld [vmem:[#allocation3 + $0x170] sm:$0xff] }
 0x38f   :  { %2477 = vst.msk [vmem:[#allocation3 + $0xd8] sm:$0xff] %vm2467_vm8, %v2294_v57  ;;  %4631 = vmatmul.f32.gmra.mxu2 %v3987_v38  ;;  %3219 = vrot.lane.b32.xlu1 %v9195_v20, %s6990_s1  ;;  %v4051_v38 = vld [vmem:[#allocation3 + $0x370] sm:$0xff] }
 0x390   :  { %6734 = vmatmul.msk.f32.gmra.mxu0 %vm528_vm1, %v4045_v2 }
 0x392   :  { %3603 = vrot.lane.b32.xlu2 %v8727_v31, %s6991_s4 }
 0x393   :  { %v3206_v50 = vpop.permute.xlu1 %3205  ;;  %v9215_v1 = vpop.f32.mrf.mxu0  ;;  %1543 = vrot.lane.b32.xlu0 %v8544_v62, %s6992_s5  ;;  %v12446_v62 = vld [vmem:[#allocation12_spill] sm:$0xff] }
 0x394   :  { %v2296_v3 = vpop.permute.xlu2 %2295  ;;  %v2821_v57 = vpop.permute.xlu0 %2820  ;;  %12441 = vst [vmem:[#allocation46_spill] sm:$0xff] %v9215_v1 }
 0x395   :  { %2996 = vst.msk [vmem:[#allocation3 + $0x188] sm:$0xff] %vm1697_vm6, %v2821_v57 }
 0x396   :  { %3381 = vst.msk [vmem:[#allocation3 + $0x188] sm:$0xff] %vm2082_vm7, %v3206_v50  ;;  %v3968_v63 = vld [vmem:[#allocation3 + $0xd8] sm:$0xff] }
 0x397   :  { %3765 = vst.msk [vmem:[#allocation3 + $0x188] sm:$0xff] %vm2467_vm8, %v3590_v7  ;;  %4404 = vmatmul.f32.gmra.mxu1 %v3968_v63  ;;  %1924 = vrot.lane.b32.xlu1 %v1779_v51, %s6990_s1  ;;  %v1780_v63 = vld [vmem:[#allocation2 + $0xda] sm:$0xff]  ;;  %v4054_v51 = vld [vmem:[#allocation3 + $0x388] sm:$0xff] }
 0x398   :  { %6735 = vmatmul.msk.f32.gmra.mxu0 %vm528_vm1, %v4048_v28 }
 0x39a   :  { %2309 = vrot.lane.b32.xlu2 %v8843_v5, %s6991_s4  ;;  %v9245_v5 = vld [vmem:[#allocation2 + $0x158] sm:$0xff] }
 0x39b   :  { %v1911_v29 = vpop.permute.xlu1 %1910  ;;  %v9229_v57 = vpop.f32.mrf.mxu0  ;;  %2840 = vrot.lane.b32.xlu0 %v12446_v62, %s6992_s5  ;;  %v4069_v62 = vld [vmem:[#allocation3 + $0x400] sm:$0xff] }
 0x39c   :  { %v3592_v42 = vpop.permute.xlu2 %3591  ;;  %v1526_v27 = vpop.permute.xlu0 %1525  ;;  %12442 = vst [vmem:[#allocation47_spill] sm:$0xff] %v9229_v57 }
 0x39d   :  { %1708 = vst.msk [vmem:[#allocation3 + $0xf0] sm:$0xff] %vm1697_vm6, %v1526_v27 }
 0x39e   :  { %2093 = vst.msk [vmem:[#allocation3 + $0xf0] sm:$0xff] %vm2082_vm7, %v1911_v29  ;;  %v3990_v7 = vld [vmem:[#allocation3 + $0x188] sm:$0xff] }
 0x39f   :  { %2478 = vst.msk [vmem:[#allocation3 + $0xf0] sm:$0xff] %vm2467_vm8, %v2296_v3  ;;  %4634 = vmatmul.f32.gmra.mxu2 %v3990_v7  ;;  %3221 = vrot.lane.b32.xlu1 %v9220_v30, %s6990_s1  ;;  %v4057_v7 = vld [vmem:[#allocation3 + $0x3a0] sm:$0xff] }
 0x3a0   :  { %6736 = vmatmul.msk.f32.gmra.mxu0 %vm528_vm1, %v4051_v38 }
 0x3a2   :  { %3605 = vrot.lane.b32.xlu2 %v8733_v41, %s6991_s4 }
 0x3a3   :  { %v3208_v45 = vpop.permute.xlu1 %3207  ;;  %v9242_v27 = vpop.f32.mrf.mxu0  ;;  %1545 = vrot.lane.b32.xlu0 %v8566_v35, %s6992_s5  ;;  %v12449_v35 = vld [vmem:[#allocation13_spill] sm:$0xff] }
 0x3a4   :  { %v2298_v2 = vpop.permute.xlu2 %2297  ;;  %v2823_v50 = vpop.permute.xlu0 %2822  ;;  %12443 = vst [vmem:[#allocation48_spill] sm:$0xff] %v9242_v27 }
 0x3a5   :  { %2997 = vst.msk [vmem:[#allocation3 + $0x1a0] sm:$0xff] %vm1697_vm6, %v2823_v50 }
 0x3a6   :  { %3382 = vst.msk [vmem:[#allocation3 + $0x1a0] sm:$0xff] %vm2082_vm7, %v3208_v45  ;;  %v3971_v3 = vld [vmem:[#allocation3 + $0xf0] sm:$0xff] }
 0x3a7   :  { %3766 = vst.msk [vmem:[#allocation3 + $0x1a0] sm:$0xff] %vm2467_vm8, %v3592_v42  ;;  %4407 = vmatmul.f32.gmra.mxu1 %v3971_v3  ;;  %1926 = vrot.lane.b32.xlu1 %v1780_v63, %s6990_s1  ;;  %v1781_v3 = vld [vmem:[#allocation2 + $0xe2] sm:$0xff] }
 0x3a8   :  { %6737 = vmatmul.msk.f32.gmra.mxu0 %vm528_vm1, %v4054_v51  ;;  %v4060_v51 = vld [vmem:[#allocation3 + $0x3b8] sm:$0xff] }
 0x3aa   :  { %2311 = vrot.lane.b32.xlu2 %v8897_v14, %s6991_s4  ;;  %v4063_v14 = vld [vmem:[#allocation3 + $0x3d0] sm:$0xff] }
 0x3ab   :  { %v1913_v60 = vpop.permute.xlu1 %1912  ;;  %v9257_v63 = vpop.f32.mrf.mxu0  ;;  %2842 = vrot.lane.b32.xlu0 %v12449_v35, %s6992_s5  ;;  %v9316_v35 = vld [vmem:[#allocation2 + $0x180] sm:$0xff] }
 0x3ac   :  { %v3594_v28 = vpop.permute.xlu2 %3593  ;;  %v1528_v29 = vpop.permute.xlu0 %1527  ;;  %12445 = vst [vmem:[#allocation10_spill] sm:$0xff] %v9257_v63 }
 0x3ad   :  { %1709 = vst.msk [vmem:[#allocation3 + $0x108] sm:$0xff] %vm1697_vm6, %v1528_v29 }
 0x3ae   :  { %2094 = vst.msk [vmem:[#allocation3 + $0x108] sm:$0xff] %vm2082_vm7, %v1913_v60  ;;  %v3993_v42 = vld [vmem:[#allocation3 + $0x1a0] sm:$0xff] }
 0x3af   :  { %2479 = vst.msk [vmem:[#allocation3 + $0x108] sm:$0xff] %vm2467_vm8, %v2298_v2  ;;  %4637 = vmatmul.f32.gmra.mxu2 %v3993_v42  ;;  %3223 = vrot.lane.b32.xlu1 %v9245_v5, %s6990_s1 }
 0x3b0   :  { %6738 = vmatmul.msk.f32.gmra.mxu0 %vm528_vm1, %v4057_v7  ;;  %v9268_v7 = vld [vmem:[#allocation2 + $0x168] sm:$0xff] }
 0x3b2   :  { %3607 = vrot.lane.b32.xlu2 %v8746_v13, %s6991_s4 }
 0x3b3   :  { %v3210_v38 = vpop.permute.xlu1 %3209  ;;  %v9277_v44 = vpop.f32.mrf.mxu0  ;;  %1547 = vrot.lane.b32.xlu0 %v8605_v23, %s6992_s5 }
 0x3b4   :  { %v2300_v45 = vpop.permute.xlu2 %2299  ;;  %v2825_v50 = vpop.permute.xlu0 %2824  ;;  %12447 = vst [vmem:[#allocation12_spill] sm:$0xff] %v9277_v44 }
 0x3b5   :  { %2998 = vst.msk [vmem:[#allocation3 + $0x1b8] sm:$0xff] %vm1697_vm6, %v2825_v50 }
 0x3b6   :  { %3383 = vst.msk [vmem:[#allocation3 + $0x1b8] sm:$0xff] %vm2082_vm7, %v3210_v38  ;;  %v3974_v2 = vld [vmem:[#allocation3 + $0x108] sm:$0xff] }
 0x3b7   :  { %3767 = vst.msk [vmem:[#allocation3 + $0x1b8] sm:$0xff] %vm2467_vm8, %v3594_v28  ;;  %4410 = vmatmul.f32.gmra.mxu1 %v3974_v2  ;;  %1928 = vrot.lane.b32.xlu1 %v1781_v3, %s6990_s1  ;;  %v1782_v3 = vld [vmem:[#allocation2 + $0xf2] sm:$0xff] }
 0x3b8   :  { %6739 = vmatmul.msk.f32.gmra.mxu0 %vm528_vm1, %v4060_v51  ;;  %v4066_v51 = vld [vmem:[#allocation3 + $0x3e8] sm:$0xff] }
 0x3ba   :  { %2313 = vrot.lane.b32.xlu2 %v8952_v53, %s6991_s4  ;;  %v9293_v53 = vld [vmem:[#allocation2 + $0x170] sm:$0xff] }
 0x3bb   :  { %v1915_v60 = vpop.permute.xlu1 %1914 }
 0x3bc   :  { %v3596_v29 = vpop.permute.xlu2 %3595  ;;  %v1530_v42 = vpop.permute.xlu0 %1529 }
 0x3bd   :  { %1710 = vst.msk [vmem:[#allocation3 + $0x120] sm:$0xff] %vm1697_vm6, %v1530_v42 }
 0x3be   :  { %2095 = vst.msk [vmem:[#allocation3 + $0x120] sm:$0xff] %vm2082_vm7, %v1915_v60  ;;  %v3996_v28 = vld [vmem:[#allocation3 + $0x1b8] sm:$0xff] }
 0x3bf   :  { %2480 = vst.msk [vmem:[#allocation3 + $0x120] sm:$0xff] %vm2467_vm8, %v2300_v45  ;;  %4640 = vmatmul.f32.gmra.mxu2 %v3996_v28  ;;  %3225 = vrot.lane.b32.xlu1 %v9268_v7, %s6990_s1 }
 0x3c0   :  { %6740 = vmatmul.msk.f32.gmra.mxu0 %vm528_vm1, %v4063_v14  ;;  %v9289_v14 = vpop.f32.mrf.mxu0 }
 0x3c1   :  { %12448 = vst [vmem:[#allocation49_spill] sm:$0xff] %v9289_v14 }
 0x3c2   :  { %3609 = vrot.lane.b32.xlu2 %v8769_v21, %s6991_s4 }
 0x3c3   :  { %v3212_v38 = vpop.permute.xlu1 %3211 }
 0x3c4   :  { %v2302_v50 = vpop.permute.xlu2 %2301  ;;  %v2827_v45 = vpop.permute.xlu0 %2826 }
 0x3c5   :  { %2999 = vst.msk [vmem:[#allocation3 + $0x1d0] sm:$0xff] %vm1697_vm6, %v2827_v45 }
 0x3c6   :  { %3384 = vst.msk [vmem:[#allocation3 + $0x1d0] sm:$0xff] %vm2082_vm7, %v3212_v38  ;;  %v3977_v2 = vld [vmem:[#allocation3 + $0x120] sm:$0xff] }
 0x3c7   :  { %3768 = vst.msk [vmem:[#allocation3 + $0x1d0] sm:$0xff] %vm2467_vm8, %v3596_v29  ;;  %4413 = vmatmul.f32.gmra.mxu1 %v3977_v2  ;;  %1930 = vrot.lane.b32.xlu1 %v1782_v3, %s6990_s1 }
 0x3c8   :  { %6741 = vmatmul.msk.f32.gmra.mxu0 %vm528_vm1, %v4066_v51  ;;  %v9305_v3 = vpop.f32.mrf.mxu0  ;;  %v1783_v51 = vld [vmem:[#allocation2 + $0xfa] sm:$0xff] }
 0x3c9   :  { %12450 = vst [vmem:[#allocation13_spill] sm:$0xff] %v9305_v3 }
 0x3ca   :  { %2315 = vrot.lane.b32.xlu2 %v9000_v61, %s6991_s4  ;;  %v4075_v61 = vld [vmem:[#allocation3 + $0x430] sm:$0xff] }
 0x3cb   :  { %v1917_v60 = vpop.permute.xlu1 %1916 }
 0x3cc   :  { %v3598_v42 = vpop.permute.xlu2 %3597  ;;  %v1532_v28 = vpop.permute.xlu0 %1531 }
 0x3cd   :  { %1711 = vst.msk [vmem:[#allocation3 + $0x138] sm:$0xff] %vm1697_vm6, %v1532_v28 }
 0x3ce   :  { %2096 = vst.msk [vmem:[#allocation3 + $0x138] sm:$0xff] %vm2082_vm7, %v1917_v60  ;;  %v3999_v29 = vld [vmem:[#allocation3 + $0x1d0] sm:$0xff]  ;;  %v4072_v60 = vld [vmem:[#allocation3 + $0x418] sm:$0xff] }
 0x3cf   :  { %2481 = vst.msk [vmem:[#allocation3 + $0x138] sm:$0xff] %vm2467_vm8, %v2302_v50  ;;  %4643 = vmatmul.f32.gmra.mxu2 %v3999_v29  ;;  %3227 = vrot.lane.b32.xlu1 %v9293_v53, %s6990_s1 }
 0x3d0   :  { %6742 = vmatmul.msk.f32.gmra.mxu0 %vm528_vm1, %v4069_v62  ;;  %v9322_v23 = vpop.f32.mrf.mxu0 }
 0x3d1   :  { %12451 = vst [vmem:[#allocation50_spill] sm:$0xff] %v9322_v23  ;;  %v1409_v23 = vld [vmem:[#allocation2 + $0x1b1] sm:$0xff] }
 0x3d2   :  { %3611 = vrot.lane.b32.xlu2 %v8779_v26, %s6991_s4 }
 0x3d3   :  { %v3214_v38 = vpop.permute.xlu1 %3213 }
 0x3d4   :  { %v2304_v45 = vpop.permute.xlu2 %2303  ;;  %v2829_v2 = vpop.permute.xlu0 %2828 }
 0x3d5   :  { %3000 = vst.msk [vmem:[#allocation3 + $0x1e8] sm:$0xff] %vm1697_vm6, %v2829_v2 }
 0x3d6   :  { %3385 = vst.msk [vmem:[#allocation3 + $0x1e8] sm:$0xff] %vm2082_vm7, %v3214_v38  ;;  %v3980_v50 = vld [vmem:[#allocation3 + $0x138] sm:$0xff]  ;;  %v12452_v38 = vld [vmem:[#allocation14_spill] sm:$0xff] }
 0x3d7   :  { %3769 = vst.msk [vmem:[#allocation3 + $0x1e8] sm:$0xff] %vm2467_vm8, %v3598_v42  ;;  %4416 = vmatmul.f32.gmra.mxu1 %v3980_v50  ;;  %1932 = vrot.lane.b32.xlu1 %v1783_v51, %s6990_s1 }
 0x3d8   :  { %6743 = vmatmul.msk.f32.gmra.mxu0 %vm528_vm1, %v4072_v60  ;;  %2844 = vrot.lane.b32.xlu0 %v12452_v38, %s6992_s5  ;;  %v1784_v60 = vld [vmem:[#allocation2 + $0x10a] sm:$0xff] }
 0x3da   :  { %2317 = vrot.lane.b32.xlu2 %v9048_v52, %s6991_s4 }
 0x3db   :  { %v1919_v28 = vpop.permute.xlu1 %1918 }
 0x3dc   :  { %v3600_v29 = vpop.permute.xlu2 %3599  ;;  %v1534_v62 = vpop.permute.xlu0 %1533 }
 0x3dd   :  { %1712 = vst.msk [vmem:[#allocation3 + $0x150] sm:$0xff] %vm1697_vm6, %v1534_v62 }
 0x3de   :  { %2097 = vst.msk [vmem:[#allocation3 + $0x150] sm:$0xff] %vm2082_vm7, %v1919_v28  ;;  %v4002_v42 = vld [vmem:[#allocation3 + $0x1e8] sm:$0xff] }
 0x3df   :  { %2482 = vst.msk [vmem:[#allocation3 + $0x150] sm:$0xff] %vm2467_vm8, %v2304_v45  ;;  %4646 = vmatmul.f32.gmra.mxu2 %v4002_v42  ;;  %3229 = vrot.lane.b32.xlu1 %v9316_v35, %s6990_s1 }
 0x3e0   :  { %6744 = vmatmul.msk.f32.gmra.mxu0 %vm528_vm1, %v4075_v61  ;;  %1549 = vrot.lane.b32.xlu0 %v8613_v22, %s6992_s5  ;;  %v9344_v22 = vld [vmem:[#allocation2 + $0x172] sm:$0xff] }
 0x3e2   :  { %3613 = vrot.lane.b32.xlu2 %v8792_v18, %s6991_s4  ;;  %v1785_v18 = vld [vmem:[#allocation2 + $0x112] sm:$0xff] }
 0x3e3   :  { %v3216_v2 = vpop.permute.xlu1 %3215 }
 0x3e4   :  { %v2306_v50 = vpop.permute.xlu2 %2305  ;;  %v2831_v45 = vpop.permute.xlu0 %2830 }
 0x3e5   :  { %3001 = vst.msk [vmem:[#allocation3 + $0x200] sm:$0xff] %vm1697_vm6, %v2831_v45 }
 0x3e6   :  { %3386 = vst.msk [vmem:[#allocation3 + $0x200] sm:$0xff] %vm2082_vm7, %v3216_v2  ;;  %v3983_v51 = vld [vmem:[#allocation3 + $0x150] sm:$0xff] }
 0x3e7   :  { %3770 = vst.msk [vmem:[#allocation3 + $0x200] sm:$0xff] %vm2467_vm8, %v3600_v29  ;;  %4419 = vmatmul.f32.gmra.mxu1 %v3983_v51  ;;  %1934 = vrot.lane.b32.xlu1 %v1784_v60, %s6990_s1  ;;  %v9338_v29 = vld [vmem:[#allocation2 + $0x188] sm:$0xff] }
 0x3e8   :  { %2846 = vrot.lane.b32.xlu0 %v9344_v22, %s6992_s5 }
 0x3ea   :  { %2319 = vrot.lane.b32.xlu2 %v9096_v8, %s6991_s4  ;;  %v2690_v8 = vld [vmem:[#allocation2 + $0x182] sm:$0xff] }
 0x3eb   :  { %v1921_v28 = vpop.permute.xlu1 %1920 }
 0x3ec   :  { %v3602_v62 = vpop.permute.xlu2 %3601  ;;  %v1536_v42 = vpop.permute.xlu0 %1535 }
 0x3ed   :  { %1713 = vst.msk [vmem:[#allocation3 + $0x168] sm:$0xff] %vm1697_vm6, %v1536_v42 }
 0x3ee   :  { %2098 = vst.msk [vmem:[#allocation3 + $0x168] sm:$0xff] %vm2082_vm7, %v1921_v28  ;;  %v4005_v61 = vld [vmem:[#allocation3 + $0x200] sm:$0xff] }
 0x3ef   :  { %2483 = vst.msk [vmem:[#allocation3 + $0x168] sm:$0xff] %vm2467_vm8, %v2306_v50  ;;  %4649 = vmatmul.f32.gmra.mxu2 %v4005_v61  ;;  %3231 = vrot.lane.b32.xlu1 %v9338_v29, %s6990_s1 }
 0x3f0   :  { %1551 = vrot.lane.b32.xlu0 %v8652_v6, %s6992_s5 }
 0x3f2   :  { %3615 = vrot.lane.b32.xlu2 %v8798_v36, %s6991_s4 }
 0x3f3   :  { %v3218_v52 = vpop.permute.xlu1 %3217 }
 0x3f4   :  { %v2308_v38 = vpop.permute.xlu2 %2307  ;;  %v2833_v2 = vpop.permute.xlu0 %2832 }
 0x3f5   :  { %3002 = vst.msk [vmem:[#allocation3 + $0x218] sm:$0xff] %vm1697_vm6, %v2833_v2 }
 0x3f6   :  { %3387 = vst.msk [vmem:[#allocation3 + $0x218] sm:$0xff] %vm2082_vm7, %v3218_v52  ;;  %v3986_v50 = vld [vmem:[#allocation3 + $0x168] sm:$0xff] }
 0x3f7   :  { %3771 = vst.msk [vmem:[#allocation3 + $0x218] sm:$0xff] %vm2467_vm8, %v3602_v62  ;;  %4422 = vmatmul.f32.gmra.mxu1 %v3986_v50  ;;  %1936 = vrot.lane.b32.xlu1 %v1785_v18, %s6990_s1  ;;  %v1786_v62 = vld [vmem:[#allocation2 + $0x122] sm:$0xff] }
 0x3f8   :  { %2848 = vrot.lane.b32.xlu0 %v2690_v8, %s6992_s5 }
 0x3fa   :  { %2321 = vrot.lane.b32.xlu2 %v9139_v34, %s6991_s4 }
 0x3fb   :  { %v1923_v45 = vpop.permute.xlu1 %1922 }
 0x3fc   :  { %v3604_v51 = vpop.permute.xlu2 %3603  ;;  %v1538_v60 = vpop.permute.xlu0 %1537 }
 0x3fd   :  { %1714 = vst.msk [vmem:[#allocation3 + $0x180] sm:$0xff] %vm1697_vm6, %v1538_v60 }
 0x3fe   :  { %2099 = vst.msk [vmem:[#allocation3 + $0x180] sm:$0xff] %vm2082_vm7, %v1923_v45  ;;  %v4008_v28 = vld [vmem:[#allocation3 + $0x218] sm:$0xff]  ;;  %v9374_v45 = vld [vmem:[#allocation2 + $0x1e0] sm:$0xff] }
 0x3ff   :  { %2484 = vst.msk [vmem:[#allocation3 + $0x180] sm:$0xff] %vm2467_vm8, %v2308_v38  ;;  %4652 = vmatmul.f32.gmra.mxu2 %v4008_v28  ;;  %1938 = vrot.lane.b32.xlu1 %v1786_v62, %s6990_s1  ;;  %v1787_v38 = vld [vmem:[#allocation2 + $0x12a] sm:$0xff]  ;;  %v1788_v62 = vld [vmem:[#allocation2 + $0x13a] sm:$0xff] }
 0x400   :  { %1553 = vrot.lane.b32.xlu0 %v8667_v32, %s6992_s5  ;;  %v2691_v32 = vld [vmem:[#allocation2 + $0x18a] sm:$0xff] }
 0x402   :  { %2323 = vrot.lane.b32.xlu2 %v9172_v48, %s6991_s4 }
 0x403   :  { %v3220_v6 = vpop.permute.xlu1 %3219 }
 0x404   :  { %v2310_v42 = vpop.permute.xlu2 %2309  ;;  %v2835_v61 = vpop.permute.xlu0 %2834 }
 0x405   :  { %3003 = vst.msk [vmem:[#allocation3 + $0x230] sm:$0xff] %vm1697_vm6, %v2835_v61  ;;  %v9391_v61 = vpop.f32.mrf.mxu2 }
 0x406   :  { %3388 = vst.msk [vmem:[#allocation3 + $0x230] sm:$0xff] %vm2082_vm7, %v3220_v6  ;;  %v3989_v52 = vld [vmem:[#allocation3 + $0x180] sm:$0xff] }
 0x407   :  { %3772 = vst.msk [vmem:[#allocation3 + $0x230] sm:$0xff] %vm2467_vm8, %v3604_v51  ;;  %4425 = vmatmul.f32.gmra.mxu1 %v3989_v52  ;;  %1940 = vrot.lane.b32.xlu1 %v1787_v38, %s6990_s1  ;;  %v9394_v52 = vld [vmem:[#allocation2 + $0x1e8] sm:$0xff] }
 0x408   :  { %2850 = vrot.lane.b32.xlu0 %v2691_v32, %s6992_s5 }
 0x40a   :  { %2325 = vrot.lane.b32.xlu2 %v9195_v20, %s6991_s4 }
 0x40b   :  { %v1925_v36 = vpop.permute.xlu1 %1924 }
 0x40c   :  { %v3606_v2 = vpop.permute.xlu2 %3605  ;;  %v1540_v50 = vpop.permute.xlu0 %1539 }
 0x40d   :  { %1715 = vst.msk [vmem:[#allocation3 + $0x198] sm:$0xff] %vm1697_vm6, %v1540_v50  ;;  %v1789_v50 = vld [vmem:[#allocation2 + $0x142] sm:$0xff] }
 0x40e   :  { %2100 = vst.msk [vmem:[#allocation3 + $0x198] sm:$0xff] %vm2082_vm7, %v1925_v36  ;;  %v4011_v18 = vld [vmem:[#allocation3 + $0x230] sm:$0xff] }
 0x40f   :  { %2485 = vst.msk [vmem:[#allocation3 + $0x198] sm:$0xff] %vm2467_vm8, %v2310_v42  ;;  %4655 = vmatmul.f32.gmra.mxu2 %v4011_v18  ;;  %3237 = vrot.lane.b32.xlu1 %v9374_v45, %s6990_s1 }
 0x410   :  { %1555 = vrot.lane.b32.xlu0 %v8692_v16, %s6992_s5  ;;  %v9400_v16 = vld [vmem:[#allocation2 + $0x1ca] sm:$0xff] }
 0x412   :  { %3621 = vrot.lane.b32.xlu2 %v8837_v37, %s6991_s4 }
 0x413   :  { %v3222_v34 = vpop.permute.xlu1 %3221 }
 0x414   :  { %v2312_v51 = vpop.permute.xlu2 %2311  ;;  %v2837_v60 = vpop.permute.xlu0 %2836 }
 0x415   :  { %3004 = vst.msk [vmem:[#allocation3 + $0x248] sm:$0xff] %vm1697_vm6, %v2837_v60  ;;  %v9414_v60 = vpop.f32.mrf.mxu2 }
 0x416   :  { %3389 = vst.msk [vmem:[#allocation3 + $0x248] sm:$0xff] %vm2082_vm7, %v3222_v34  ;;  %v3992_v28 = vld [vmem:[#allocation3 + $0x198] sm:$0xff] }
 0x417   :  { %3773 = vst.msk [vmem:[#allocation3 + $0x248] sm:$0xff] %vm2467_vm8, %v3606_v2  ;;  %4428 = vmatmul.f32.gmra.mxu1 %v3992_v28  ;;  %1942 = vrot.lane.b32.xlu1 %v1788_v62, %s6990_s1  ;;  %v9417_v28 = vld [vmem:[#allocation2 + $0x1f8] sm:$0xff] }
 0x418   :  { %2852 = vrot.lane.b32.xlu0 %v9400_v16, %s6992_s5 }
 0x41a   :  { %2327 = vrot.lane.b32.xlu2 %v9220_v30, %s6991_s4 }
 0x41b   :  { %v1927_v48 = vpop.permute.xlu1 %1926 }
 0x41c   :  { %v3608_v8 = vpop.permute.xlu2 %3607  ;;  %v1542_v6 = vpop.permute.xlu0 %1541 }
 0x41d   :  { %1716 = vst.msk [vmem:[#allocation3 + $0x1b0] sm:$0xff] %vm1697_vm6, %v1542_v6  ;;  %v1790_v6 = vld [vmem:[#allocation2 + $0x152] sm:$0xff] }
 0x41e   :  { %2101 = vst.msk [vmem:[#allocation3 + $0x1b0] sm:$0xff] %vm2082_vm7, %v1927_v48  ;;  %v4014_v42 = vld [vmem:[#allocation3 + $0x248] sm:$0xff] }
 0x41f   :  { %2486 = vst.msk [vmem:[#allocation3 + $0x1b0] sm:$0xff] %vm2467_vm8, %v2312_v51  ;;  %4658 = vmatmul.f32.gmra.mxu2 %v4014_v42  ;;  %3239 = vrot.lane.b32.xlu1 %v9394_v52, %s6990_s1 }
 0x420   :  { %1557 = vrot.lane.b32.xlu0 %v8700_v33, %s6992_s5  ;;  %v9423_v33 = vld [vmem:[#allocation2 + $0x1d2] sm:$0xff] }
 0x422   :  { %3623 = vrot.lane.b32.xlu2 %v8841_v58, %s6991_s4 }
 0x423   :  { %v3224_v20 = vpop.permute.xlu1 %3223 }
 0x424   :  { %v2314_v38 = vpop.permute.xlu2 %2313  ;;  %v2839_v36 = vpop.permute.xlu0 %2838 }
 0x425   :  { %3005 = vst.msk [vmem:[#allocation3 + $0x260] sm:$0xff] %vm1697_vm6, %v2839_v36 }
 0x426   :  { %3390 = vst.msk [vmem:[#allocation3 + $0x260] sm:$0xff] %vm2082_vm7, %v3224_v20  ;;  %v3995_v2 = vld [vmem:[#allocation3 + $0x1b0] sm:$0xff] }
 0x427   :  { %3774 = vst.msk [vmem:[#allocation3 + $0x260] sm:$0xff] %vm2467_vm8, %v3608_v8  ;;  %4431 = vmatmul.f32.gmra.mxu1 %v3995_v2  ;;  %1944 = vrot.lane.b32.xlu1 %v1789_v50, %s6990_s1  ;;  %v9437_v2 = vpop.f32.mrf.mxu2  ;;  %v9440_v50 = vld [vmem:[#allocation2 + $0x200] sm:$0xff] }
 0x428   :  { %2854 = vrot.lane.b32.xlu0 %v9423_v33, %s6992_s5 }
 0x42a   :  { %2329 = vrot.lane.b32.xlu2 %v9245_v5, %s6991_s4 }
 0x42b   :  { %v1929_v18 = vpop.permute.xlu1 %1928 }
 0x42c   :  { %v3610_v32 = vpop.permute.xlu2 %3609  ;;  %v1544_v34 = vpop.permute.xlu0 %1543 }
 0x42d   :  { %1717 = vst.msk [vmem:[#allocation3 + $0x1c8] sm:$0xff] %vm1697_vm6, %v1544_v34 }
 0x42e   :  { %2102 = vst.msk [vmem:[#allocation3 + $0x1c8] sm:$0xff] %vm2082_vm7, %v1929_v18  ;;  %v4017_v51 = vld [vmem:[#allocation3 + $0x260] sm:$0xff] }
 0x42f   :  { %2487 = vst.msk [vmem:[#allocation3 + $0x1c8] sm:$0xff] %vm2467_vm8, %v2314_v38  ;;  %4661 = vmatmul.f32.gmra.mxu2 %v4017_v51  ;;  %3241 = vrot.lane.b32.xlu1 %v9417_v28, %s6990_s1  ;;  %v1791_v51 = vld [vmem:[#allocation2 + $0x15a] sm:$0xff] }
 0x430   :  { %1559 = vrot.lane.b32.xlu0 %v8727_v31, %s6992_s5  ;;  %v9446_v31 = vld [vmem:[#allocation2 + $0x1e2] sm:$0xff] }
 0x432   :  { %3625 = vrot.lane.b32.xlu2 %v8851_v47, %s6991_s4 }
 0x433   :  { %v3226_v30 = vpop.permute.xlu1 %3225 }
 0x434   :  { %v2316_v62 = vpop.permute.xlu2 %2315  ;;  %v2841_v48 = vpop.permute.xlu0 %2840 }
 0x435   :  { %3006 = vst.msk [vmem:[#allocation3 + $0x278] sm:$0xff] %vm1697_vm6, %v2841_v48 }
 0x436   :  { %3391 = vst.msk [vmem:[#allocation3 + $0x278] sm:$0xff] %vm2082_vm7, %v3226_v30  ;;  %v3998_v8 = vld [vmem:[#allocation3 + $0x1c8] sm:$0xff] }
 0x437   :  { %3775 = vst.msk [vmem:[#allocation3 + $0x278] sm:$0xff] %vm2467_vm8, %v3610_v32  ;;  %4434 = vmatmul.f32.gmra.mxu1 %v3998_v8  ;;  %1946 = vrot.lane.b32.xlu1 %v1790_v6, %s6990_s1  ;;  %v9460_v6 = vpop.f32.mrf.mxu2 }
 0x438   :  { %2856 = vrot.lane.b32.xlu0 %v9446_v31, %s6992_s5 }
 0x43a   :  { %2331 = vrot.lane.b32.xlu2 %v9268_v7, %s6991_s4 }
 0x43b   :  { %v1931_v42 = vpop.permute.xlu1 %1930 }
 0x43c   :  { %v3612_v20 = vpop.permute.xlu2 %3611  ;;  %v1546_v38 = vpop.permute.xlu0 %1545 }
 0x43d   :  { %1718 = vst.msk [vmem:[#allocation3 + $0x1e0] sm:$0xff] %vm1697_vm6, %v1546_v38 }
 0x43e   :  { %2103 = vst.msk [vmem:[#allocation3 + $0x1e0] sm:$0xff] %vm2082_vm7, %v1931_v42  ;;  %v4020_v36 = vld [vmem:[#allocation3 + $0x278] sm:$0xff]  ;;  %v9463_v42 = vld [vmem:[#allocation2 + $0x210] sm:$0xff] }
 0x43f   :  { %2488 = vst.msk [vmem:[#allocation3 + $0x1e0] sm:$0xff] %vm2467_vm8, %v2316_v62  ;;  %4664 = vmatmul.f32.gmra.mxu2 %v4020_v36  ;;  %3243 = vrot.lane.b32.xlu1 %v9440_v50, %s6990_s1 }
 0x440   :  { %1561 = vrot.lane.b32.xlu0 %v8733_v41, %s6992_s5  ;;  %v9469_v41 = vld [vmem:[#allocation2 + $0x1ea] sm:$0xff] }
 0x442   :  { %3627 = vrot.lane.b32.xlu2 %v8864_v11, %s6991_s4 }
 0x443   :  { %v3228_v5 = vpop.permute.xlu1 %3227 }
 0x444   :  { %v2318_v18 = vpop.permute.xlu2 %2317  ;;  %v2843_v32 = vpop.permute.xlu0 %2842 }
 0x445   :  { %3007 = vst.msk [vmem:[#allocation3 + $0x290] sm:$0xff] %vm1697_vm6, %v2843_v32 }
 0x446   :  { %3392 = vst.msk [vmem:[#allocation3 + $0x290] sm:$0xff] %vm2082_vm7, %v3228_v5  ;;  %v4001_v34 = vld [vmem:[#allocation3 + $0x1e0] sm:$0xff]  ;;  %v1792_v5 = vld [vmem:[#allocation2 + $0x16a] sm:$0xff] }
 0x447   :  { %3776 = vst.msk [vmem:[#allocation3 + $0x290] sm:$0xff] %vm2467_vm8, %v3612_v20  ;;  %4437 = vmatmul.f32.gmra.mxu1 %v4001_v34  ;;  %1948 = vrot.lane.b32.xlu1 %v1791_v51, %s6990_s1 }
 0x448   :  { %2858 = vrot.lane.b32.xlu0 %v9469_v41, %s6992_s5 }
 0x44a   :  { %2333 = vrot.lane.b32.xlu2 %v9293_v53, %s6991_s4 }
 0x44b   :  { %v1933_v30 = vpop.permute.xlu1 %1932 }
 0x44c   :  { %v3614_v62 = vpop.permute.xlu2 %3613  ;;  %v1548_v48 = vpop.permute.xlu0 %1547 }
 0x44d   :  { %1719 = vst.msk [vmem:[#allocation3 + $0x1f8] sm:$0xff] %vm1697_vm6, %v1548_v48 }
 0x44e   :  { %2104 = vst.msk [vmem:[#allocation3 + $0x1f8] sm:$0xff] %vm2082_vm7, %v1933_v30  ;;  %v4023_v8 = vld [vmem:[#allocation3 + $0x290] sm:$0xff]  ;;  %v9483_v30 = vpop.f32.mrf.mxu2 }
 0x44f   :  { %2489 = vst.msk [vmem:[#allocation3 + $0x1f8] sm:$0xff] %vm2467_vm8, %v2318_v18  ;;  %4667 = vmatmul.f32.gmra.mxu2 %v4023_v8  ;;  %3245 = vrot.lane.b32.xlu1 %v9463_v42, %s6990_s1 }
 0x450   :  { %1563 = vrot.lane.b32.xlu0 %v8746_v13, %s6992_s5  ;;  %v9492_v13 = vld [vmem:[#allocation2 + $0x1fa] sm:$0xff] }
 0x452   :  { %3629 = vrot.lane.b32.xlu2 %v8867_v15, %s6991_s4 }
 0x453   :  { %v3230_v7 = vpop.permute.xlu1 %3229 }
 0x454   :  { %v2320_v20 = vpop.permute.xlu2 %2319  ;;  %v2845_v38 = vpop.permute.xlu0 %2844 }
 0x455   :  { %3008 = vst.msk [vmem:[#allocation3 + $0x2a8] sm:$0xff] %vm1697_vm6, %v2845_v38 }
 0x456   :  { %3393 = vst.msk [vmem:[#allocation3 + $0x2a8] sm:$0xff] %vm2082_vm7, %v3230_v7  ;;  %v4004_v36 = vld [vmem:[#allocation3 + $0x1f8] sm:$0xff] }
 0x457   :  { %3777 = vst.msk [vmem:[#allocation3 + $0x2a8] sm:$0xff] %vm2467_vm8, %v3614_v62  ;;  %4440 = vmatmul.f32.gmra.mxu1 %v4004_v36  ;;  %1950 = vrot.lane.b32.xlu1 %v1792_v5, %s6990_s1  ;;  %v9486_v62 = vld [vmem:[#allocation2 + $0x218] sm:$0xff] }
 0x458   :  { %2860 = vrot.lane.b32.xlu0 %v9492_v13, %s6992_s5 }
 0x45a   :  { %2335 = vrot.lane.b32.xlu2 %v9316_v35, %s6991_s4  ;;  %v9510_v35 = vld [vmem:[#allocation2 + $0x228] sm:$0xff] }
 0x45b   :  { %v1935_v18 = vpop.permute.xlu1 %1934 }
 0x45c   :  { %v3616_v32 = vpop.permute.xlu2 %3615  ;;  %v1550_v34 = vpop.permute.xlu0 %1549 }
 0x45d   :  { %1720 = vst.msk [vmem:[#allocation3 + $0x210] sm:$0xff] %vm1697_vm6, %v1550_v34 }
 0x45e   :  { %2105 = vst.msk [vmem:[#allocation3 + $0x210] sm:$0xff] %vm2082_vm7, %v1935_v18  ;;  %v4026_v51 = vld [vmem:[#allocation3 + $0x2a8] sm:$0xff]  ;;  %v9507_v18 = vpop.f32.mrf.mxu2 }
 0x45f   :  { %2490 = vst.msk [vmem:[#allocation3 + $0x210] sm:$0xff] %vm2467_vm8, %v2320_v20  ;;  %4670 = vmatmul.f32.gmra.mxu2 %v4026_v51  ;;  %3247 = vrot.lane.b32.xlu1 %v9486_v62, %s6990_s1  ;;  %v12453_v51 = vld [vmem:[#allocation16_spill] sm:$0xff] }
 0x460   :  { %1565 = vrot.lane.b32.xlu0 %v8769_v21, %s6992_s5  ;;  %v9516_v21 = vld [vmem:[#allocation2 + $0x202] sm:$0xff] }
 0x462   :  { %3631 = vrot.lane.b32.xlu2 %v8876_v40, %s6991_s4 }
 0x463   :  { %v3232_v53 = vpop.permute.xlu1 %3231 }
 0x464   :  { %v2322_v48 = vpop.permute.xlu2 %2321  ;;  %v2847_v8 = vpop.permute.xlu0 %2846 }
 0x465   :  { %3009 = vst.msk [vmem:[#allocation3 + $0x2c0] sm:$0xff] %vm1697_vm6, %v2847_v8  ;;  %v12454_v8 = vld [vmem:[#allocation11_spill] sm:$0xff] }
 0x466   :  { %3394 = vst.msk [vmem:[#allocation3 + $0x2c0] sm:$0xff] %vm2082_vm7, %v3232_v53  ;;  %v4007_v7 = vld [vmem:[#allocation3 + $0x210] sm:$0xff] }
 0x467   :  { %3778 = vst.msk [vmem:[#allocation3 + $0x2c0] sm:$0xff] %vm2467_vm8, %v3616_v32  ;;  %4443 = vmatmul.f32.gmra.mxu1 %v4007_v7  ;;  %1952 = vrot.lane.b32.xlu1 %v9344_v22, %s6990_s1 }
 0x468   :  { %2862 = vrot.lane.b32.xlu0 %v9516_v21, %s6992_s5 }
 0x46a   :  { %2337 = vrot.lane.b32.xlu2 %v9338_v29, %s6991_s4 }
 0x46b   :  { %v1937_v20 = vpop.permute.xlu1 %1936 }
 0x46c   :  { %v2324_v38 = vpop.permute.xlu2 %2323  ;;  %v1552_v36 = vpop.permute.xlu0 %1551 }
 0x46d   :  { %1721 = vst.msk [vmem:[#allocation3 + $0x228] sm:$0xff] %vm1697_vm6, %v1552_v36 }
 0x46e   :  { %2106 = vst.msk [vmem:[#allocation3 + $0x228] sm:$0xff] %vm2082_vm7, %v1937_v20  ;;  %v4029_v5 = vld [vmem:[#allocation3 + $0x2c0] sm:$0xff] }
 0x46f   :  { %2491 = vst.msk [vmem:[#allocation3 + $0x228] sm:$0xff] %vm2467_vm8, %v2322_v48  ;;  %4673 = vmatmul.f32.gmra.mxu2 %v4029_v5  ;;  %3249 = vrot.lane.b32.xlu1 %v9510_v35, %s6990_s1  ;;  %v1794_v48 = vld [vmem:[#allocation2 + $0x1b2] sm:$0xff] }
 0x470   :  { %1567 = vrot.lane.b32.xlu0 %v8779_v26, %s6992_s5  ;;  %v9541_v26 = vld [vmem:[#allocation2 + $0x212] sm:$0xff] }
 0x472   :  { %3633 = vrot.lane.b32.xlu2 %v8889_v39, %s6991_s4 }
 0x473   :  { %v1939_v22 = vpop.permute.xlu1 %1938 }
 0x474   :  { %v2326_v32 = vpop.permute.xlu2 %2325  ;;  %v2849_v34 = vpop.permute.xlu0 %2848 }
 0x475   :  { %3010 = vst.msk [vmem:[#allocation3 + $0x2d8] sm:$0xff] %vm1697_vm6, %v2849_v34  ;;  %v9532_v34 = vpop.f32.mrf.mxu2 }
 0x476   :  { %3395 = vst.msk [vmem:[#allocation3 + $0x2d8] sm:$0xff] %vm2082_vm7, %v12453_v51  ;;  %v4010_v53 = vld [vmem:[#allocation3 + $0x228] sm:$0xff]  ;;  %v9535_v51 = vld [vmem:[#allocation2 + $0x230] sm:$0xff] }
 0x477   :  { %3779 = vst.msk [vmem:[#allocation3 + $0x2d8] sm:$0xff] %vm2467_vm8, %v12454_v8  ;;  %4446 = vmatmul.f32.gmra.mxu1 %v4010_v53  ;;  %1954 = vrot.lane.b32.xlu1 %v1794_v48, %s6990_s1  ;;  %v1795_v8 = vld [vmem:[#allocation2 + $0x1ba] sm:$0xff] }
 0x478   :  { %2864 = vrot.lane.b32.xlu0 %v9541_v26, %s6992_s5 }
 0x47a   :  { %2339 = vrot.lane.b32.xlu2 %v8892_v19, %s6991_s4  ;;  %v9567_v19 = vld [vmem:[#allocation2 + $0x21a] sm:$0xff] }
 0x47b   :  { %v1941_v7 = vpop.permute.xlu1 %1940 }
 0x47c   :  { %v3622_v20 = vpop.permute.xlu2 %3621  ;;  %v1554_v36 = vpop.permute.xlu0 %1553 }
 0x47d   :  { %1722 = vst.msk [vmem:[#allocation3 + $0x240] sm:$0xff] %vm1697_vm6, %v1554_v36  ;;  %v9548_v36 = vpop.f32.mrf.mxu1  ;;  %v9558_v44 = vpop.f32.mrf.mxu2 }
 0x47e   :  { %2107 = vst.msk [vmem:[#allocation3 + $0x240] sm:$0xff] %vm2082_vm7, %v1939_v22  ;;  %v4032_v5 = vld [vmem:[#allocation3 + $0x2d8] sm:$0xff] }
 0x47f   :  { %2492 = vst.msk [vmem:[#allocation3 + $0x240] sm:$0xff] %vm2467_vm8, %v2324_v38  ;;  %4676 = vmatmul.f32.gmra.mxu2 %v4032_v5  ;;  %3251 = vrot.lane.b32.xlu1 %v9535_v51, %s6990_s1  ;;  %v12455_v38 = vld [vmem:[#allocation17_spill] sm:$0xff]  ;;  %v12456_v5 = vld [vmem:[#allocation15_spill] sm:$0xff] }
 0x480   :  { %1569 = vrot.lane.b32.xlu0 %v1409_v23, %s6992_s5 }
 0x482   :  { %3635 = vrot.lane.b32.xlu2 %v8895_v12, %s6991_s4 }
 0x483   :  { %v3238_v29 = vpop.permute.xlu1 %3237 }
 0x484   :  { %v2328_v22 = vpop.permute.xlu2 %2327  ;;  %v2851_v53 = vpop.permute.xlu0 %2850 }
 0x485   :  { %3011 = vst.msk [vmem:[#allocation3 + $0x2f0] sm:$0xff] %vm1697_vm6, %v2851_v53  ;;  %v9583_v27 = vpop.f32.mrf.mxu2 }
 0x486   :  { %3396 = vst.msk [vmem:[#allocation3 + $0x2f0] sm:$0xff] %vm2082_vm7, %v12455_v38  ;;  %v4013_v48 = vld [vmem:[#allocation3 + $0x240] sm:$0xff] }
 0x487   :  { %3780 = vst.msk [vmem:[#allocation3 + $0x2f0] sm:$0xff] %vm2467_vm8, %v12456_v5  ;;  %4449 = vmatmul.f32.gmra.mxu1 %v4013_v48  ;;  %1956 = vrot.lane.b32.xlu1 %v1795_v8, %s6990_s1  ;;  %v9561_v48 = vld [vmem:[#allocation2 + $0x240] sm:$0xff]  ;;  %v9573_v8 = vpop.f32.mrf.mxu1 }
 0x488   :  { %2866 = vrot.lane.b32.xlu0 %v9567_v19, %s6992_s5  ;;  %v1410_v5 = vld [vmem:[#allocation2 + $0x1b9] sm:$0xff] }
 0x48a   :  { %2341 = vrot.lane.b32.xlu2 %v8899_v17, %s6991_s4  ;;  %v9592_v17 = vld [vmem:[#allocation2 + $0x22a] sm:$0xff] }
 0x48b   :  { %v1943_v53 = vpop.permute.xlu1 %1942 }
 0x48c   :  { %v3624_v3 = vpop.permute.xlu2 %3623  ;;  %v1556_v14 = vpop.permute.xlu0 %1555 }
 0x48d   :  { %1723 = vst.msk [vmem:[#allocation3 + $0x258] sm:$0xff] %vm1697_vm6, %v1556_v14  ;;  %v9609_v57 = vpop.f32.mrf.mxu2 }
 0x48e   :  { %2108 = vst.msk [vmem:[#allocation3 + $0x258] sm:$0xff] %vm2082_vm7, %v1941_v7  ;;  %v4035_v38 = vld [vmem:[#allocation3 + $0x2f0] sm:$0xff] }
 0x48f   :  { %2493 = vst.msk [vmem:[#allocation3 + $0x258] sm:$0xff] %vm2467_vm8, %v2326_v32  ;;  %4679 = vmatmul.f32.gmra.mxu2 %v4035_v38  ;;  %3253 = vrot.lane.b32.xlu1 %v9561_v48, %s6990_s1 }
 0x490   :  { %1571 = vrot.lane.b32.xlu0 %v1410_v5, %s6992_s5  ;;  %v9598_v5 = vpop.f32.mrf.mxu1 }
 0x492   :  { %3637 = vrot.lane.b32.xlu2 %v8907_v10, %s6991_s4 }
 0x493   :  { %v3240_v14 = vpop.permute.xlu1 %3239 }
 0x494   :  { %v2330_v23 = vpop.permute.xlu2 %2329  ;;  %v2853_v7 = vpop.permute.xlu0 %2852 }
 0x495   :  { %3012 = vst.msk [vmem:[#allocation3 + $0x308] sm:$0xff] %vm1697_vm6, %v2853_v7  ;;  %v9635_v49 = vpop.f32.mrf.mxu2 }
 0x496   :  { %3397 = vst.msk [vmem:[#allocation3 + $0x308] sm:$0xff] %vm2082_vm7, %v3238_v29  ;;  %v4016_v32 = vld [vmem:[#allocation3 + $0x258] sm:$0xff] }
 0x497   :  { %3781 = vst.msk [vmem:[#allocation3 + $0x308] sm:$0xff] %vm2467_vm8, %v3622_v20  ;;  %4452 = vmatmul.f32.gmra.mxu1 %v4016_v32  ;;  %1958 = vrot.lane.b32.xlu1 %v9400_v16, %s6990_s1  ;;  %v9586_v20 = vld [vmem:[#allocation2 + $0x248] sm:$0xff] }
 0x498   :  { %2868 = vrot.lane.b32.xlu0 %v9592_v17, %s6992_s5  ;;  %12458 = vst [vmem:[#allocation14_spill] sm:$0xff] %v9635_v49 }
 0x49a   :  { %2343 = vrot.lane.b32.xlu2 %v9374_v45, %s6991_s4 }
 0x49b   :  { %v1945_v38 = vpop.permute.xlu1 %1944 }
 0x49c   :  { %v3626_v63 = vpop.permute.xlu2 %3625  ;;  %v1558_v7 = vpop.permute.xlu0 %1557 }
 0x49d   :  { %1724 = vst.msk [vmem:[#allocation3 + $0x270] sm:$0xff] %vm1697_vm6, %v1558_v7  ;;  %v9661_v56 = vpop.f32.mrf.mxu2 }
 0x49e   :  { %2109 = vst.msk [vmem:[#allocation3 + $0x270] sm:$0xff] %vm2082_vm7, %v1943_v53  ;;  %v4038_v29 = vld [vmem:[#allocation3 + $0x308] sm:$0xff] }
 0x49f   :  { %2494 = vst.msk [vmem:[#allocation3 + $0x270] sm:$0xff] %vm2467_vm8, %v2328_v22  ;;  %4682 = vmatmul.f32.gmra.mxu2 %v4038_v29  ;;  %3255 = vrot.lane.b32.xlu1 %v9586_v20, %s6990_s1 }
 0x4a0   :  { %1573 = vrot.lane.b32.xlu0 %v8816_v9, %s6992_s5  ;;  %v9618_v9 = vld [vmem:[#allocation2 + $0x232] sm:$0xff]  ;;  %12459 = vst [vmem:[#allocation16_spill] sm:$0xff] %v9661_v56 }
 0x4a2   :  { %3639 = vrot.lane.b32.xlu2 %v8924_v4, %s6991_s4 }
 0x4a3   :  { %v3242_v16 = vpop.permute.xlu1 %3241 }
 0x4a4   :  { %v2332_v53 = vpop.permute.xlu2 %2331  ;;  %v2855_v32 = vpop.permute.xlu0 %2854 }
 0x4a5   :  { %3013 = vst.msk [vmem:[#allocation3 + $0x320] sm:$0xff] %vm1697_vm6, %v2855_v32 }
 0x4a6   :  { %3398 = vst.msk [vmem:[#allocation3 + $0x320] sm:$0xff] %vm2082_vm7, %v3240_v14  ;;  %v4019_v22 = vld [vmem:[#allocation3 + $0x270] sm:$0xff] }
 0x4a7   :  { %3782 = vst.msk [vmem:[#allocation3 + $0x320] sm:$0xff] %vm2467_vm8, %v3624_v3  ;;  %4455 = vmatmul.f32.gmra.mxu1 %v4019_v22  ;;  %1960 = vrot.lane.b32.xlu1 %v9423_v33, %s6990_s1  ;;  %v9612_v3 = vld [vmem:[#allocation2 + $0x258] sm:$0xff]  ;;  %v9624_v22 = vpop.f32.mrf.mxu1 }
 0x4a8   :  { %2870 = vrot.lane.b32.xlu0 %v9618_v9, %s6992_s5 }
 0x4aa   :  { %2345 = vrot.lane.b32.xlu2 %v9394_v52, %s6991_s4  ;;  %v9644_v52 = vld [vmem:[#allocation2 + $0x242] sm:$0xff] }
 0x4ab   :  { %v1947_v7 = vpop.permute.xlu1 %1946 }
 0x4ac   :  { %v3628_v29 = vpop.permute.xlu2 %3627  ;;  %v1560_v32 = vpop.permute.xlu0 %1559 }
 0x4ad   :  { %1725 = vst.msk [vmem:[#allocation3 + $0x288] sm:$0xff] %vm1697_vm6, %v1560_v32  ;;  %v12457_v32 = vld [vmem:[#allocation19_spill] sm:$0xff] }
 0x4ae   :  { %2110 = vst.msk [vmem:[#allocation3 + $0x288] sm:$0xff] %vm2082_vm7, %v1945_v38  ;;  %v4041_v14 = vld [vmem:[#allocation3 + $0x320] sm:$0xff] }
 0x4af   :  { %2495 = vst.msk [vmem:[#allocation3 + $0x288] sm:$0xff] %vm2467_vm8, %v2330_v23  ;;  %4685 = vmatmul.f32.gmra.mxu2 %v4041_v14  ;;  %3257 = vrot.lane.b32.xlu1 %v9612_v3, %s6990_s1 }
 0x4b0   :  { %1575 = vrot.lane.b32.xlu0 %v12457_v32, %s6992_s5  ;;  %v9650_v32 = vpop.f32.mrf.mxu1 }
 0x4b2   :  { %3641 = vrot.lane.b32.xlu2 %v8927_v55, %s6991_s4 }
 0x4b3   :  { %v3244_v45 = vpop.permute.xlu1 %3243 }
 0x4b4   :  { %v2334_v33 = vpop.permute.xlu2 %2333  ;;  %v2857_v38 = vpop.permute.xlu0 %2856 }
 0x4b5   :  { %3014 = vst.msk [vmem:[#allocation3 + $0x338] sm:$0xff] %vm1697_vm6, %v2857_v38 }
 0x4b6   :  { %3399 = vst.msk [vmem:[#allocation3 + $0x338] sm:$0xff] %vm2082_vm7, %v3242_v16  ;;  %v4022_v23 = vld [vmem:[#allocation3 + $0x288] sm:$0xff] }
 0x4b7   :  { %3783 = vst.msk [vmem:[#allocation3 + $0x338] sm:$0xff] %vm2467_vm8, %v3626_v63  ;;  %4458 = vmatmul.f32.gmra.mxu1 %v4022_v23  ;;  %1962 = vrot.lane.b32.xlu1 %v9446_v31, %s6990_s1  ;;  %v9638_v63 = vld [vmem:[#allocation2 + $0x260] sm:$0xff] }
 0x4b8   :  { %2872 = vrot.lane.b32.xlu0 %v9644_v52, %s6992_s5 }
 0x4ba   :  { %2347 = vrot.lane.b32.xlu2 %v9417_v28, %s6991_s4  ;;  %v9664_v28 = vld [vmem:[#allocation2 + $0x270] sm:$0xff] }
 0x4bb   :  { %v1949_v14 = vpop.permute.xlu1 %1948 }
 0x4bc   :  { %v3630_v1 = vpop.permute.xlu2 %3629  ;;  %v1562_v38 = vpop.permute.xlu0 %1561 }
 0x4bd   :  { %1726 = vst.msk [vmem:[#allocation3 + $0x2a0] sm:$0xff] %vm1697_vm6, %v1562_v38 }
 0x4be   :  { %2111 = vst.msk [vmem:[#allocation3 + $0x2a0] sm:$0xff] %vm2082_vm7, %v1947_v7  ;;  %v4044_v16 = vld [vmem:[#allocation3 + $0x338] sm:$0xff] }
 0x4bf   :  { %2496 = vst.msk [vmem:[#allocation3 + $0x2a0] sm:$0xff] %vm2467_vm8, %v2332_v53  ;;  %4688 = vmatmul.f32.gmra.mxu2 %v4044_v16  ;;  %3259 = vrot.lane.b32.xlu1 %v9638_v63, %s6990_s1 }
 0x4c0   :  { %1577 = vrot.lane.b32.xlu0 %v8837_v37, %s6992_s5  ;;  %v9670_v37 = vld [vmem:[#allocation2 + $0x24a] sm:$0xff] }
 0x4c3   :  { %v3246_v31 = vpop.permute.xlu1 %3245 }
 0x4c4   :  { %v2336_v7 = vpop.permute.xlu2 %2335  ;;  %v2859_v23 = vpop.permute.xlu0 %2858 }
 0x4c5   :  { %3015 = vst.msk [vmem:[#allocation3 + $0x350] sm:$0xff] %vm1697_vm6, %v2859_v23 }
 0x4c6   :  { %3400 = vst.msk [vmem:[#allocation3 + $0x350] sm:$0xff] %vm2082_vm7, %v3244_v45  ;;  %v4025_v53 = vld [vmem:[#allocation3 + $0x2a0] sm:$0xff] }
 0x4c7   :  { %3784 = vst.msk [vmem:[#allocation3 + $0x350] sm:$0xff] %vm2467_vm8, %v3628_v29  ;;  %4461 = vmatmul.f32.gmra.mxu1 %v4025_v53  ;;  %1964 = vrot.lane.b32.xlu1 %v9469_v41, %s6990_s1  ;;  %v12460_v41 = vld [vmem:[#allocation24_spill] sm:$0xff] }
 0x4c8   :  { %3643 = vrot.lane.b32.xlu2 %v12460_v41, %s6991_s4  ;;  %2874 = vrot.lane.b32.xlu0 %v9670_v37, %s6992_s5 }
 0x4cb   :  { %v1951_v38 = vpop.permute.xlu1 %1950 }
 0x4cc   :  { %v3632_v16 = vpop.permute.xlu2 %3631  ;;  %v1564_v23 = vpop.permute.xlu0 %1563 }
 0x4cd   :  { %1727 = vst.msk [vmem:[#allocation3 + $0x2b8] sm:$0xff] %vm1697_vm6, %v1564_v23  ;;  %v9676_v23 = vpop.f32.mrf.mxu1 }
 0x4ce   :  { %2112 = vst.msk [vmem:[#allocation3 + $0x2b8] sm:$0xff] %vm2082_vm7, %v1949_v14  ;;  %v4047_v45 = vld [vmem:[#allocation3 + $0x350] sm:$0xff] }
 0x4cf   :  { %2497 = vst.msk [vmem:[#allocation3 + $0x2b8] sm:$0xff] %vm2467_vm8, %v2334_v33  ;;  %4691 = vmatmul.f32.gmra.mxu2 %v4047_v45  ;;  %3261 = vrot.lane.b32.xlu1 %v9664_v28, %s6990_s1 }
 0x4d0   :  { %2349 = vrot.lane.b32.xlu2 %v9440_v50, %s6991_s4  ;;  %1579 = vrot.lane.b32.xlu0 %v8841_v58, %s6992_s5  ;;  %v9690_v50 = vld [vmem:[#allocation2 + $0x278] sm:$0xff] }
 0x4d1   :  { %v12462_v58 = vld [vmem:[#allocation25_spill] sm:$0xff] }
 0x4d3   :  { %v3248_v29 = vpop.permute.xlu1 %3247 }
 0x4d4   :  { %v2338_v14 = vpop.permute.xlu2 %2337  ;;  %v2861_v53 = vpop.permute.xlu0 %2860 }
 0x4d5   :  { %3016 = vst.msk [vmem:[#allocation3 + $0x368] sm:$0xff] %vm1697_vm6, %v2861_v53 }
 0x4d6   :  { %3401 = vst.msk [vmem:[#allocation3 + $0x368] sm:$0xff] %vm2082_vm7, %v3246_v31  ;;  %v4028_v33 = vld [vmem:[#allocation3 + $0x2b8] sm:$0xff]  ;;  %v1281_v31 = vld [vmem:[#allocation2 + $0x1b0] sm:$0xff] }
 0x4d7   :  { %3785 = vst.msk [vmem:[#allocation3 + $0x368] sm:$0xff] %vm2467_vm8, %v3630_v1  ;;  %4464 = vmatmul.f32.gmra.mxu1 %v4028_v33  ;;  %1966 = vrot.lane.b32.xlu1 %v9492_v13, %s6990_s1  ;;  %v9687_v1 = vpop.f32.mrf.mxu2  ;;  %v9697_v13 = vld [vmem:[#allocation2 + $0x25a] sm:$0xff] }
 0x4d8   :  { %12461 = vst [vmem:[#allocation11_spill] sm:$0xff] %v9687_v1  ;;  %3645 = vrot.lane.b32.xlu2 %v12462_v58, %s6991_s4  ;;  %2876 = vrot.lane.b32.xlu0 %v9697_v13, %s6992_s5 }
 0x4d9   :  { %1345 = vst.msk [vmem:[#allocation3 + $0x300] sm:$0xff] %vm528_vm1, %v1281_v31 }
 0x4db   :  { %v1953_v45 = vpop.permute.xlu1 %1952 }
 0x4dc   :  { %v3634_v25 = vpop.permute.xlu2 %3633  ;;  %v1566_v53 = vpop.permute.xlu0 %1565 }
 0x4dd   :  { %1728 = vst.msk [vmem:[#allocation3 + $0x2d0] sm:$0xff] %vm1697_vm6, %v1566_v53 }
 0x4de   :  { %2113 = vst.msk [vmem:[#allocation3 + $0x2d0] sm:$0xff] %vm2082_vm7, %v1951_v38  ;;  %v4050_v56 = vld [vmem:[#allocation3 + $0x368] sm:$0xff] }
 0x4df   :  { %2498 = vst.msk [vmem:[#allocation3 + $0x2d0] sm:$0xff] %vm2467_vm8, %v2336_v7  ;;  %4694 = vmatmul.f32.gmra.mxu2 %v4050_v56  ;;  %3263 = vrot.lane.b32.xlu1 %v9690_v50, %s6990_s1  ;;  %v9703_v7 = vpop.f32.mrf.mxu1 }
 0x4e0   :  { %2351 = vrot.lane.b32.xlu2 %v9463_v42, %s6991_s4  ;;  %1581 = vrot.lane.b32.xlu0 %v8851_v47, %s6992_s5  ;;  %v9717_v42 = vld [vmem:[#allocation2 + $0x288] sm:$0xff]  ;;  %v12464_v47 = vld [vmem:[#allocation26_spill] sm:$0xff] }
 0x4e3   :  { %v3250_v38 = vpop.permute.xlu1 %3249 }
 0x4e4   :  { %v2340_v33 = vpop.permute.xlu2 %2339  ;;  %v2863_v53 = vpop.permute.xlu0 %2862 }
 0x4e5   :  { %3017 = vst.msk [vmem:[#allocation3 + $0x380] sm:$0xff] %vm1697_vm6, %v2863_v53 }
 0x4e6   :  { %3402 = vst.msk [vmem:[#allocation3 + $0x380] sm:$0xff] %vm2082_vm7, %v3248_v29  ;;  %v4031_v56 = vld [vmem:[#allocation3 + $0x2d0] sm:$0xff]  ;;  %v1282_v29 = vld [vmem:[#allocation2 + $0x1b8] sm:$0xff] }
 0x4e7   :  { %3786 = vst.msk [vmem:[#allocation3 + $0x380] sm:$0xff] %vm2467_vm8, %v3632_v16  ;;  %4467 = vmatmul.f32.gmra.mxu1 %v4031_v56  ;;  %1968 = vrot.lane.b32.xlu1 %v9516_v21, %s6990_s1  ;;  %v9714_v16 = vpop.f32.mrf.mxu2  ;;  %v9724_v21 = vld [vmem:[#allocation2 + $0x262] sm:$0xff] }
 0x4e8   :  { %12463 = vst [vmem:[#allocation17_spill] sm:$0xff] %v9714_v16  ;;  %3647 = vrot.lane.b32.xlu2 %v12464_v47, %s6991_s4  ;;  %2878 = vrot.lane.b32.xlu0 %v9724_v21, %s6992_s5 }
 0x4e9   :  { %1346 = vst.msk [vmem:[#allocation3 + $0x318] sm:$0xff] %vm528_vm1, %v1282_v29 }
 0x4eb   :  { %v1955_v31 = vpop.permute.xlu1 %1954 }
 0x4ec   :  { %v3636_v1 = vpop.permute.xlu2 %3635  ;;  %v1568_v53 = vpop.permute.xlu0 %1567 }
 0x4ed   :  { %1729 = vst.msk [vmem:[#allocation3 + $0x2e8] sm:$0xff] %vm1697_vm6, %v1568_v53 }
 0x4ee   :  { %2114 = vst.msk [vmem:[#allocation3 + $0x2e8] sm:$0xff] %vm2082_vm7, %v1953_v45  ;;  %v4053_v0 = vld [vmem:[#allocation3 + $0x380] sm:$0xff] }
 0x4ef   :  { %2499 = vst.msk [vmem:[#allocation3 + $0x2e8] sm:$0xff] %vm2467_vm8, %v2338_v14  ;;  %4697 = vmatmul.f32.gmra.mxu2 %v4053_v0  ;;  %3265 = vrot.lane.b32.xlu1 %v9717_v42, %s6990_s1  ;;  %v9730_v14 = vpop.f32.mrf.mxu1  ;;  %v9741_v49 = vpop.f32.mrf.mxu2 }
 0x4f0   :  { %2353 = vrot.lane.b32.xlu2 %v9486_v62, %s6991_s4  ;;  %1583 = vrot.lane.b32.xlu0 %v8864_v11, %s6992_s5  ;;  %12465 = vst [vmem:[#allocation15_spill] sm:$0xff] %v9741_v49  ;;  %v9750_v11 = vld [vmem:[#allocation2 + $0x272] sm:$0xff] }
 0x4f3   :  { %v3252_v45 = vpop.permute.xlu1 %3251 }
 0x4f4   :  { %v2342_v56 = vpop.permute.xlu2 %2341  ;;  %v2865_v53 = vpop.permute.xlu0 %2864 }
 0x4f5   :  { %3018 = vst.msk [vmem:[#allocation3 + $0x398] sm:$0xff] %vm1697_vm6, %v2865_v53 }
 0x4f6   :  { %3403 = vst.msk [vmem:[#allocation3 + $0x398] sm:$0xff] %vm2082_vm7, %v3250_v38  ;;  %v4034_v0 = vld [vmem:[#allocation3 + $0x2e8] sm:$0xff] }
 0x4f7   :  { %3787 = vst.msk [vmem:[#allocation3 + $0x398] sm:$0xff] %vm2467_vm8, %v3634_v25  ;;  %4470 = vmatmul.f32.gmra.mxu1 %v4034_v0  ;;  %1970 = vrot.lane.b32.xlu1 %v9541_v26, %s6990_s1  ;;  %v9744_v25 = vld [vmem:[#allocation2 + $0x290] sm:$0xff]  ;;  %v9756_v0 = vpop.f32.mrf.mxu1  ;;  %v9767_v49 = vpop.f32.mrf.mxu2 }
 0x4f8   :  { %3649 = vrot.lane.b32.xlu2 %v8973_v43, %s6991_s4  ;;  %2880 = vrot.lane.b32.xlu0 %v9750_v11, %s6992_s5  ;;  %12466 = vst [vmem:[#allocation19_spill] sm:$0xff] %v9767_v49 }
 0x4fb   :  { %v1957_v29 = vpop.permute.xlu1 %1956 }
 0x4fc   :  { %v3638_v16 = vpop.permute.xlu2 %3637  ;;  %v1570_v53 = vpop.permute.xlu0 %1569 }
 0x4fd   :  { %1730 = vst.msk [vmem:[#allocation3 + $0x300] sm:$0xff] %vm1697_vm6, %v1570_v53 }
 0x4fe   :  { %2115 = vst.msk [vmem:[#allocation3 + $0x300] sm:$0xff] %vm2082_vm7, %v1955_v31  ;;  %v4056_v38 = vld [vmem:[#allocation3 + $0x398] sm:$0xff] }
 0x4ff   :  { %2500 = vst.msk [vmem:[#allocation3 + $0x300] sm:$0xff] %vm2467_vm8, %v2340_v33  ;;  %4700 = vmatmul.f32.gmra.mxu2 %v4056_v38  ;;  %3267 = vrot.lane.b32.xlu1 %v9744_v25, %s6990_s1  ;;  %v9793_v49 = vpop.f32.mrf.mxu2 }
 0x500   :  { %2355 = vrot.lane.b32.xlu2 %v9510_v35, %s6991_s4  ;;  %1585 = vrot.lane.b32.xlu0 %v8867_v15, %s6992_s5  ;;  %v9770_v35 = vld [vmem:[#allocation2 + $0x2a0] sm:$0xff]  ;;  %12467 = vst [vmem:[#allocation24_spill] sm:$0xff] %v9793_v49 }
 0x501   :  { %v9776_v15 = vld [vmem:[#allocation2 + $0x27a] sm:$0xff] }
 0x503   :  { %v3254_v62 = vpop.permute.xlu1 %3253 }
 0x504   :  { %v2344_v26 = vpop.permute.xlu2 %2343  ;;  %v2867_v31 = vpop.permute.xlu0 %2866 }
 0x505   :  { %3019 = vst.msk [vmem:[#allocation3 + $0x3b0] sm:$0xff] %vm1697_vm6, %v2867_v31 }
 0x506   :  { %3404 = vst.msk [vmem:[#allocation3 + $0x3b0] sm:$0xff] %vm2082_vm7, %v3252_v45  ;;  %v4037_v33 = vld [vmem:[#allocation3 + $0x300] sm:$0xff] }
 0x507   :  { %3788 = vst.msk [vmem:[#allocation3 + $0x3b0] sm:$0xff] %vm2467_vm8, %v3636_v1  ;;  %4473 = vmatmul.f32.gmra.mxu1 %v4037_v33  ;;  %1972 = vrot.lane.b32.xlu1 %v9567_v19, %s6990_s1  ;;  %v9782_v33 = vpop.f32.mrf.mxu1 }
 0x508   :  { %3651 = vrot.lane.b32.xlu2 %v8978_v59, %s6991_s4  ;;  %2882 = vrot.lane.b32.xlu0 %v9776_v15, %s6992_s5 }
 0x50b   :  { %v1959_v53 = vpop.permute.xlu1 %1958 }
 0x50c   :  { %v3640_v38 = vpop.permute.xlu2 %3639  ;;  %v1572_v31 = vpop.permute.xlu0 %1571 }
 0x50d   :  { %1731 = vst.msk [vmem:[#allocation3 + $0x318] sm:$0xff] %vm1697_vm6, %v1572_v31 }
 0x50e   :  { %2116 = vst.msk [vmem:[#allocation3 + $0x318] sm:$0xff] %vm2082_vm7, %v1957_v29  ;;  %v4059_v45 = vld [vmem:[#allocation3 + $0x3b0] sm:$0xff] }
 0x50f   :  { %2501 = vst.msk [vmem:[#allocation3 + $0x318] sm:$0xff] %vm2467_vm8, %v2342_v56  ;;  %4703 = vmatmul.f32.gmra.mxu2 %v4059_v45  ;;  %3269 = vrot.lane.b32.xlu1 %v9770_v35, %s6990_s1 }
 0x510   :  { %2357 = vrot.lane.b32.xlu2 %v9535_v51, %s6991_s4  ;;  %1587 = vrot.lane.b32.xlu0 %v8876_v40, %s6992_s5  ;;  %v9796_v51 = vld [vmem:[#allocation2 + $0x2a8] sm:$0xff] }
 0x511   :  { %v9802_v40 = vld [vmem:[#allocation2 + $0x28a] sm:$0xff] }
 0x513   :  { %v3256_v19 = vpop.permute.xlu1 %3255 }
 0x514   :  { %v2346_v1 = vpop.permute.xlu2 %2345  ;;  %v2869_v29 = vpop.permute.xlu0 %2868 }
 0x515   :  { %3020 = vst.msk [vmem:[#allocation3 + $0x3c8] sm:$0xff] %vm1697_vm6, %v2869_v29 }
 0x516   :  { %3405 = vst.msk [vmem:[#allocation3 + $0x3c8] sm:$0xff] %vm2082_vm7, %v3254_v62  ;;  %v4040_v56 = vld [vmem:[#allocation3 + $0x318] sm:$0xff] }
 0x517   :  { %3789 = vst.msk [vmem:[#allocation3 + $0x3c8] sm:$0xff] %vm2467_vm8, %v3638_v16  ;;  %4476 = vmatmul.f32.gmra.mxu1 %v4040_v56  ;;  %1974 = vrot.lane.b32.xlu1 %v9592_v17, %s6990_s1  ;;  %v12468_v17 = vld [vmem:[#allocation28_spill] sm:$0xff] }
 0x518   :  { %3653 = vrot.lane.b32.xlu2 %v12468_v17, %s6991_s4  ;;  %2884 = vrot.lane.b32.xlu0 %v9802_v40, %s6992_s5 }
 0x51b   :  { %v1961_v31 = vpop.permute.xlu1 %1960 }
 0x51c   :  { %v3642_v45 = vpop.permute.xlu2 %3641  ;;  %v1574_v29 = vpop.permute.xlu0 %1573 }
 0x51d   :  { %1732 = vst.msk [vmem:[#allocation3 + $0x330] sm:$0xff] %vm1697_vm6, %v1574_v29  ;;  %v9808_v29 = vpop.f32.mrf.mxu1 }
 0x51e   :  { %2117 = vst.msk [vmem:[#allocation3 + $0x330] sm:$0xff] %vm2082_vm7, %v1959_v53  ;;  %v4062_v62 = vld [vmem:[#allocation3 + $0x3c8] sm:$0xff] }
 0x51f   :  { %2502 = vst.msk [vmem:[#allocation3 + $0x330] sm:$0xff] %vm2467_vm8, %v2344_v26  ;;  %4706 = vmatmul.f32.gmra.mxu2 %v4062_v62  ;;  %3271 = vrot.lane.b32.xlu1 %v9796_v51, %s6990_s1 }
 0x520   :  { %12469 = vst [vmem:[#allocation25_spill] sm:$0xff] %v9808_v29  ;;  %2359 = vrot.lane.b32.xlu2 %v9561_v48, %s6991_s4  ;;  %1589 = vrot.lane.b32.xlu0 %v8889_v39, %s6992_s5  ;;  %v9819_v29 = vpop.f32.mrf.mxu2  ;;  %v9822_v48 = vld [vmem:[#allocation2 + $0x2b8] sm:$0xff] }
 0x521   :  { %12470 = vst [vmem:[#allocation26_spill] sm:$0xff] %v9819_v29  ;;  %v9828_v39 = vld [vmem:[#allocation2 + $0x292] sm:$0xff] }
 0x523   :  { %v3258_v16 = vpop.permute.xlu1 %3257 }
 0x524   :  { %v2348_v53 = vpop.permute.xlu2 %2347  ;;  %v2871_v56 = vpop.permute.xlu0 %2870 }
 0x525   :  { %3021 = vst.msk [vmem:[#allocation3 + $0x3e0] sm:$0xff] %vm1697_vm6, %v2871_v56 }
 0x526   :  { %3406 = vst.msk [vmem:[#allocation3 + $0x3e0] sm:$0xff] %vm2082_vm7, %v3256_v19  ;;  %v4043_v26 = vld [vmem:[#allocation3 + $0x330] sm:$0xff] }
 0x527   :  { %3790 = vst.msk [vmem:[#allocation3 + $0x3e0] sm:$0xff] %vm2467_vm8, %v3640_v38  ;;  %4479 = vmatmul.f32.gmra.mxu1 %v4043_v26  ;;  %1976 = vrot.lane.b32.xlu1 %v9618_v9, %s6990_s1  ;;  %v12471_v9 = vld [vmem:[#allocation29_spill] sm:$0xff] }
 0x528   :  { %3655 = vrot.lane.b32.xlu2 %v12471_v9, %s6991_s4  ;;  %2886 = vrot.lane.b32.xlu0 %v9828_v39, %s6992_s5 }
 0x52b   :  { %v1963_v62 = vpop.permute.xlu1 %1962 }
 0x52c   :  { %v3644_v49 = vpop.permute.xlu2 %3643  ;;  %v1576_v56 = vpop.permute.xlu0 %1575 }
 0x52d   :  { %1733 = vst.msk [vmem:[#allocation3 + $0x348] sm:$0xff] %vm1697_vm6, %v1576_v56  ;;  %v9834_v56 = vpop.f32.mrf.mxu1 }
 0x52e   :  { %2118 = vst.msk [vmem:[#allocation3 + $0x348] sm:$0xff] %vm2082_vm7, %v1961_v31  ;;  %v4065_v19 = vld [vmem:[#allocation3 + $0x3e0] sm:$0xff] }
 0x52f   :  { %2503 = vst.msk [vmem:[#allocation3 + $0x348] sm:$0xff] %vm2467_vm8, %v2346_v1  ;;  %4709 = vmatmul.f32.gmra.mxu2 %v4065_v19  ;;  %3273 = vrot.lane.b32.xlu1 %v9822_v48, %s6990_s1 }
 0x530   :  { %12472 = vst [vmem:[#allocation28_spill] sm:$0xff] %v9834_v56  ;;  %2361 = vrot.lane.b32.xlu2 %v9586_v20, %s6991_s4  ;;  %1591 = vrot.lane.b32.xlu0 %v8895_v12, %s6992_s5  ;;  %v9845_v56 = vpop.f32.mrf.mxu2  ;;  %v9848_v20 = vld [vmem:[#allocation2 + $0x2c0] sm:$0xff] }
 0x531   :  { %12473 = vst [vmem:[#allocation29_spill] sm:$0xff] %v9845_v56  ;;  %v9854_v12 = vld [vmem:[#allocation2 + $0x2a2] sm:$0xff] }
 0x533   :  { %v3260_v38 = vpop.permute.xlu1 %3259 }
 0x534   :  { %v2350_v31 = vpop.permute.xlu2 %2349  ;;  %v2873_v26 = vpop.permute.xlu0 %2872 }
 0x535   :  { %3022 = vst.msk [vmem:[#allocation3 + $0x3f8] sm:$0xff] %vm1697_vm6, %v2873_v26 }
 0x536   :  { %3407 = vst.msk [vmem:[#allocation3 + $0x3f8] sm:$0xff] %vm2082_vm7, %v3258_v16  ;;  %v4046_v1 = vld [vmem:[#allocation3 + $0x348] sm:$0xff] }
 0x537   :  { %3791 = vst.msk [vmem:[#allocation3 + $0x3f8] sm:$0xff] %vm2467_vm8, %v3642_v45  ;;  %4482 = vmatmul.f32.gmra.mxu1 %v4046_v1  ;;  %1978 = vrot.lane.b32.xlu1 %v9644_v52, %s6990_s1  ;;  %v9860_v1 = vpop.f32.mrf.mxu1 }
 0x538   :  { %3657 = vrot.lane.b32.xlu2 %v9010_v54, %s6991_s4  ;;  %2888 = vrot.lane.b32.xlu0 %v9854_v12, %s6992_s5  ;;  %v9871_v56 = vpop.f32.mrf.mxu2 }
 0x539   :  { %12474 = vst [vmem:[#allocation51_spill] sm:$0xff] %v9871_v56 }
 0x53b   :  { %v1965_v19 = vpop.permute.xlu1 %1964 }
 0x53c   :  { %v3646_v29 = vpop.permute.xlu2 %3645  ;;  %v1578_v26 = vpop.permute.xlu0 %1577 }
 0x53d   :  { %1734 = vst.msk [vmem:[#allocation3 + $0x360] sm:$0xff] %vm1697_vm6, %v1578_v26 }
 0x53e   :  { %2119 = vst.msk [vmem:[#allocation3 + $0x360] sm:$0xff] %vm2082_vm7, %v1963_v62  ;;  %v4068_v16 = vld [vmem:[#allocation3 + $0x3f8] sm:$0xff] }
 0x53f   :  { %2504 = vst.msk [vmem:[#allocation3 + $0x360] sm:$0xff] %vm2467_vm8, %v2348_v53  ;;  %4712 = vmatmul.f32.gmra.mxu2 %v4068_v16  ;;  %3275 = vrot.lane.b32.xlu1 %v9848_v20, %s6990_s1 }
 0x540   :  { %2363 = vrot.lane.b32.xlu2 %v9612_v3, %s6991_s4  ;;  %1593 = vrot.lane.b32.xlu0 %v8907_v10, %s6992_s5  ;;  %v12475_v3 = vld [vmem:[#allocation31_spill] sm:$0xff] }
 0x541   :  { %v9880_v10 = vld [vmem:[#allocation2 + $0x2aa] sm:$0xff] }
 0x543   :  { %v3262_v52 = vpop.permute.xlu1 %3261 }
 0x544   :  { %v2352_v45 = vpop.permute.xlu2 %2351  ;;  %v2875_v62 = vpop.permute.xlu0 %2874 }
 0x545   :  { %3023 = vst.msk [vmem:[#allocation3 + $0x410] sm:$0xff] %vm1697_vm6, %v2875_v62 }
 0x546   :  { %3408 = vst.msk [vmem:[#allocation3 + $0x410] sm:$0xff] %vm2082_vm7, %v3260_v38  ;;  %v4049_v53 = vld [vmem:[#allocation3 + $0x360] sm:$0xff] }
 0x547   :  { %3792 = vst.msk [vmem:[#allocation3 + $0x410] sm:$0xff] %vm2467_vm8, %v3644_v49  ;;  %4485 = vmatmul.f32.gmra.mxu1 %v4049_v53  ;;  %1980 = vrot.lane.b32.xlu1 %v9670_v37, %s6990_s1  ;;  %v9874_v49 = vld [vmem:[#allocation2 + $0x2d0] sm:$0xff] }
 0x548   :  { %3659 = vrot.lane.b32.xlu2 %v12475_v3, %s6991_s4  ;;  %2890 = vrot.lane.b32.xlu0 %v9880_v10, %s6992_s5 }
 0x54b   :  { %v1967_v26 = vpop.permute.xlu1 %1966 }
 0x54c   :  { %v3648_v16 = vpop.permute.xlu2 %3647  ;;  %v1580_v62 = vpop.permute.xlu0 %1579 }
 0x54d   :  { %1735 = vst.msk [vmem:[#allocation3 + $0x378] sm:$0xff] %vm1697_vm6, %v1580_v62  ;;  %v9886_v62 = vpop.f32.mrf.mxu1 }
 0x54e   :  { %2120 = vst.msk [vmem:[#allocation3 + $0x378] sm:$0xff] %vm2082_vm7, %v1965_v19  ;;  %v4071_v38 = vld [vmem:[#allocation3 + $0x410] sm:$0xff] }
 0x54f   :  { %2505 = vst.msk [vmem:[#allocation3 + $0x378] sm:$0xff] %vm2467_vm8, %v2350_v31  ;;  %4715 = vmatmul.f32.gmra.mxu2 %v4071_v38  ;;  %3277 = vrot.lane.b32.xlu1 %v9874_v49, %s6990_s1 }
 0x550   :  { %12476 = vst [vmem:[#allocation31_spill] sm:$0xff] %v9886_v62  ;;  %2365 = vrot.lane.b32.xlu2 %v9638_v63, %s6991_s4  ;;  %1595 = vrot.lane.b32.xlu0 %v8924_v4, %s6992_s5  ;;  %v9897_v62 = vpop.f32.mrf.mxu2  ;;  %v9900_v63 = vld [vmem:[#allocation2 + $0x2d8] sm:$0xff] }
 0x551   :  { %12477 = vst [vmem:[#allocation52_spill] sm:$0xff] %v9897_v62  ;;  %v9906_v4 = vld [vmem:[#allocation2 + $0x2ba] sm:$0xff] }
 0x553   :  { %v3264_v37 = vpop.permute.xlu1 %3263 }
 0x554   :  { %v2354_v19 = vpop.permute.xlu2 %2353  ;;  %v2877_v53 = vpop.permute.xlu0 %2876 }
 0x555   :  { %3024 = vst.msk [vmem:[#allocation3 + $0x428] sm:$0xff] %vm1697_vm6, %v2877_v53 }
 0x556   :  { %3409 = vst.msk [vmem:[#allocation3 + $0x428] sm:$0xff] %vm2082_vm7, %v3262_v52  ;;  %v4052_v31 = vld [vmem:[#allocation3 + $0x378] sm:$0xff] }
 0x557   :  { %3793 = vst.msk [vmem:[#allocation3 + $0x428] sm:$0xff] %vm2467_vm8, %v3646_v29  ;;  %4488 = vmatmul.f32.gmra.mxu1 %v4052_v31  ;;  %1982 = vrot.lane.b32.xlu1 %v9697_v13, %s6990_s1  ;;  %v12478_v13 = vld [vmem:[#allocation32_spill] sm:$0xff] }
 0x558   :  { %3661 = vrot.lane.b32.xlu2 %v12478_v13, %s6991_s4  ;;  %2892 = vrot.lane.b32.xlu0 %v9906_v4, %s6992_s5 }
 0x55b   :  { %v1969_v38 = vpop.permute.xlu1 %1968 }
 0x55c   :  { %v3650_v56 = vpop.permute.xlu2 %3649  ;;  %v1582_v53 = vpop.permute.xlu0 %1581 }
 0x55d   :  { %1736 = vst.msk [vmem:[#allocation3 + $0x390] sm:$0xff] %vm1697_vm6, %v1582_v53  ;;  %v9912_v53 = vpop.f32.mrf.mxu1 }
 0x55e   :  { %2121 = vst.msk [vmem:[#allocation3 + $0x390] sm:$0xff] %vm2082_vm7, %v1967_v26  ;;  %v4074_v52 = vld [vmem:[#allocation3 + $0x428] sm:$0xff] }
 0x55f   :  { %2506 = vst.msk [vmem:[#allocation3 + $0x390] sm:$0xff] %vm2467_vm8, %v2352_v45  ;;  %4718 = vmatmul.f32.gmra.mxu2 %v4074_v52  ;;  %3279 = vrot.lane.b32.xlu1 %v9900_v63, %s6990_s1 }
 0x560   :  { %12479 = vst [vmem:[#allocation32_spill] sm:$0xff] %v9912_v53  ;;  %2367 = vrot.lane.b32.xlu2 %v9664_v28, %s6991_s4  ;;  %1597 = vrot.lane.b32.xlu0 %v8927_v55, %s6992_s5  ;;  %v9923_v53 = vpop.f32.mrf.mxu2  ;;  %v9926_v28 = vld [vmem:[#allocation2 + $0x2e8] sm:$0xff] }
 0x561   :  { %12480 = vst [vmem:[#allocation53_spill] sm:$0xff] %v9923_v53  ;;  %v9932_v55 = vld [vmem:[#allocation2 + $0x2c2] sm:$0xff] }
 0x563   :  { %v3266_v29 = vpop.permute.xlu1 %3265 }
 0x564   :  { %v2356_v26 = vpop.permute.xlu2 %2355  ;;  %v2879_v31 = vpop.permute.xlu0 %2878 }
 0x565   :  { %3025 = vst.msk [vmem:[#allocation3 + $0x440] sm:$0xff] %vm1697_vm6, %v2879_v31 }
 0x566   :  { %3410 = vst.msk [vmem:[#allocation3 + $0x440] sm:$0xff] %vm2082_vm7, %v3264_v37  ;;  %v4055_v45 = vld [vmem:[#allocation3 + $0x390] sm:$0xff] }
 0x567   :  { %3794 = vst.msk [vmem:[#allocation3 + $0x440] sm:$0xff] %vm2467_vm8, %v3648_v16  ;;  %4491 = vmatmul.f32.gmra.mxu1 %v4055_v45  ;;  %1984 = vrot.lane.b32.xlu1 %v9724_v21, %s6990_s1  ;;  %v12481_v21 = vld [vmem:[#allocation34_spill] sm:$0xff] }
 0x568   :  { %3663 = vrot.lane.b32.xlu2 %v12481_v21, %s6991_s4  ;;  %2894 = vrot.lane.b32.xlu0 %v9932_v55, %s6992_s5 }
 0x56b   :  { %v1971_v52 = vpop.permute.xlu1 %1970 }
 0x56c   :  { %v3652_v62 = vpop.permute.xlu2 %3651  ;;  %v1584_v31 = vpop.permute.xlu0 %1583 }
 0x56d   :  { %1737 = vst.msk [vmem:[#allocation3 + $0x3a8] sm:$0xff] %vm1697_vm6, %v1584_v31  ;;  %v9938_v31 = vpop.f32.mrf.mxu1 }
 0x56e   :  { %2122 = vst.msk [vmem:[#allocation3 + $0x3a8] sm:$0xff] %vm2082_vm7, %v1969_v38  ;;  %v4077_v37 = vld [vmem:[#allocation3 + $0x440] sm:$0xff] }
 0x56f   :  { %2507 = vst.msk [vmem:[#allocation3 + $0x3a8] sm:$0xff] %vm2467_vm8, %v2354_v19  ;;  %4721 = vmatmul.f32.gmra.mxu2 %v4077_v37  ;;  %3281 = vrot.lane.b32.xlu1 %v9926_v28, %s6990_s1 }
 0x570   :  { %12482 = vst [vmem:[#allocation34_spill] sm:$0xff] %v9938_v31  ;;  %2369 = vrot.lane.b32.xlu2 %v9690_v50, %s6991_s4  ;;  %1599 = vrot.lane.b32.xlu0 %v12460_v41, %s6992_s5  ;;  %v9949_v31 = vpop.f32.mrf.mxu2  ;;  %v9952_v50 = vld [vmem:[#allocation2 + $0x2f0] sm:$0xff] }
 0x571   :  { %12483 = vst [vmem:[#allocation54_spill] sm:$0xff] %v9949_v31  ;;  %v9958_v41 = vld [vmem:[#allocation2 + $0x2d2] sm:$0xff] }
 0x573   :  { %v3268_v16 = vpop.permute.xlu1 %3267 }
 0x574   :  { %v2358_v38 = vpop.permute.xlu2 %2357  ;;  %v2881_v45 = vpop.permute.xlu0 %2880 }
 0x575   :  { %3026 = vst.msk [vmem:[#allocation3 + $0x458] sm:$0xff] %vm1697_vm6, %v2881_v45 }
 0x576   :  { %3411 = vst.msk [vmem:[#allocation3 + $0x458] sm:$0xff] %vm2082_vm7, %v3266_v29  ;;  %v4058_v19 = vld [vmem:[#allocation3 + $0x3a8] sm:$0xff] }
 0x577   :  { %3795 = vst.msk [vmem:[#allocation3 + $0x458] sm:$0xff] %vm2467_vm8, %v3650_v56  ;;  %4494 = vmatmul.f32.gmra.mxu1 %v4058_v19  ;;  %1986 = vrot.lane.b32.xlu1 %v9750_v11, %s6990_s1  ;;  %v12484_v11 = vld [vmem:[#allocation18_spill] sm:$0xff] }
 0x578   :  { %3665 = vrot.lane.b32.xlu2 %v12484_v11, %s6991_s4  ;;  %2896 = vrot.lane.b32.xlu0 %v9958_v41, %s6992_s5 }
 0x57b   :  { %v1973_v37 = vpop.permute.xlu1 %1972 }
 0x57c   :  { %v3654_v53 = vpop.permute.xlu2 %3653  ;;  %v1586_v45 = vpop.permute.xlu0 %1585 }
 0x57d   :  { %1738 = vst.msk [vmem:[#allocation3 + $0x3c0] sm:$0xff] %vm1697_vm6, %v1586_v45  ;;  %v9964_v45 = vpop.f32.mrf.mxu1 }
 0x57e   :  { %2123 = vst.msk [vmem:[#allocation3 + $0x3c0] sm:$0xff] %vm2082_vm7, %v1971_v52  ;;  %v4080_v29 = vld [vmem:[#allocation3 + $0x458] sm:$0xff] }
 0x57f   :  { %2508 = vst.msk [vmem:[#allocation3 + $0x3c0] sm:$0xff] %vm2467_vm8, %v2356_v26  ;;  %4724 = vmatmul.f32.gmra.mxu2 %v4080_v29  ;;  %3283 = vrot.lane.b32.xlu1 %v9952_v50, %s6990_s1 }
 0x580   :  { %12485 = vst [vmem:[#allocation18_spill] sm:$0xff] %v9964_v45  ;;  %2371 = vrot.lane.b32.xlu2 %v9717_v42, %s6991_s4  ;;  %1601 = vrot.lane.b32.xlu0 %v12462_v58, %s6992_s5  ;;  %v9975_v45 = vpop.f32.mrf.mxu2  ;;  %v9978_v42 = vld [vmem:[#allocation2 + $0x300] sm:$0xff] }
 0x581   :  { %12486 = vst [vmem:[#allocation55_spill] sm:$0xff] %v9975_v45  ;;  %v9984_v58 = vld [vmem:[#allocation2 + $0x2da] sm:$0xff] }
 0x583   :  { %v3270_v56 = vpop.permute.xlu1 %3269 }
 0x584   :  { %v2360_v52 = vpop.permute.xlu2 %2359  ;;  %v2883_v19 = vpop.permute.xlu0 %2882 }
 0x585   :  { %3027 = vst.msk [vmem:[#allocation3 + $0x470] sm:$0xff] %vm1697_vm6, %v2883_v19 }
 0x586   :  { %3412 = vst.msk [vmem:[#allocation3 + $0x470] sm:$0xff] %vm2082_vm7, %v3268_v16  ;;  %v4061_v26 = vld [vmem:[#allocation3 + $0x3c0] sm:$0xff] }
 0x587   :  { %3796 = vst.msk [vmem:[#allocation3 + $0x470] sm:$0xff] %vm2467_vm8, %v3652_v62  ;;  %4497 = vmatmul.f32.gmra.mxu1 %v4061_v26  ;;  %1988 = vrot.lane.b32.xlu1 %v9776_v15, %s6990_s1  ;;  %v9990_v26 = vpop.f32.mrf.mxu1 }
 0x588   :  { %3667 = vrot.lane.b32.xlu2 %v9070_v24, %s6991_s4  ;;  %2898 = vrot.lane.b32.xlu0 %v9984_v58, %s6992_s5  ;;  %v10001_v45 = vpop.f32.mrf.mxu2 }
 0x589   :  { %12487 = vst [vmem:[#allocation56_spill] sm:$0xff] %v10001_v45 }
 0x58b   :  { %v1975_v29 = vpop.permute.xlu1 %1974 }
 0x58c   :  { %v3656_v31 = vpop.permute.xlu2 %3655  ;;  %v1588_v19 = vpop.permute.xlu0 %1587 }
 0x58d   :  { %1739 = vst.msk [vmem:[#allocation3 + $0x3d8] sm:$0xff] %vm1697_vm6, %v1588_v19 }
 0x58e   :  { %2124 = vst.msk [vmem:[#allocation3 + $0x3d8] sm:$0xff] %vm2082_vm7, %v1973_v37  ;;  %v4083_v16 = vld [vmem:[#allocation3 + $0x470] sm:$0xff] }
 0x58f   :  { %2509 = vst.msk [vmem:[#allocation3 + $0x3d8] sm:$0xff] %vm2467_vm8, %v2358_v38  ;;  %4727 = vmatmul.f32.gmra.mxu2 %v4083_v16  ;;  %3285 = vrot.lane.b32.xlu1 %v9978_v42, %s6990_s1 }
 0x590   :  { %2373 = vrot.lane.b32.xlu2 %v9744_v25, %s6991_s4  ;;  %1603 = vrot.lane.b32.xlu0 %v12464_v47, %s6992_s5  ;;  %v10004_v25 = vld [vmem:[#allocation2 + $0x308] sm:$0xff] }
 0x591   :  { %v10010_v47 = vld [vmem:[#allocation2 + $0x2ea] sm:$0xff] }
 0x593   :  { %v3272_v15 = vpop.permute.xlu1 %3271 }
 0x594   :  { %v2362_v62 = vpop.permute.xlu2 %2361  ;;  %v2885_v37 = vpop.permute.xlu0 %2884 }
 0x595   :  { %3028 = vst.msk [vmem:[#allocation3 + $0x488] sm:$0xff] %vm1697_vm6, %v2885_v37 }
 0x596   :  { %3413 = vst.msk [vmem:[#allocation3 + $0x488] sm:$0xff] %vm2082_vm7, %v3270_v56  ;;  %v4064_v38 = vld [vmem:[#allocation3 + $0x3d8] sm:$0xff] }
 0x597   :  { %3797 = vst.msk [vmem:[#allocation3 + $0x488] sm:$0xff] %vm2467_vm8, %v3654_v53  ;;  %4500 = vmatmul.f32.gmra.mxu1 %v4064_v38  ;;  %1990 = vrot.lane.b32.xlu1 %v9802_v40, %s6990_s1  ;;  %v12488_v40 = vld [vmem:[#allocation35_spill] sm:$0xff] }
 0x598   :  { %3669 = vrot.lane.b32.xlu2 %v12488_v40, %s6991_s4  ;;  %2900 = vrot.lane.b32.xlu0 %v10010_v47, %s6992_s5 }
 0x59b   :  { %v1977_v19 = vpop.permute.xlu1 %1976 }
 0x59c   :  { %v3658_v16 = vpop.permute.xlu2 %3657  ;;  %v1590_v37 = vpop.permute.xlu0 %1589 }
 0x59d   :  { %1740 = vst.msk [vmem:[#allocation3 + $0x3f0] sm:$0xff] %vm1697_vm6, %v1590_v37  ;;  %v10016_v37 = vpop.f32.mrf.mxu1 }
 0x59e   :  { %2125 = vst.msk [vmem:[#allocation3 + $0x3f0] sm:$0xff] %vm2082_vm7, %v1975_v29  ;;  %v4086_v56 = vld [vmem:[#allocation3 + $0x488] sm:$0xff] }
 0x59f   :  { %2510 = vst.msk [vmem:[#allocation3 + $0x3f0] sm:$0xff] %vm2467_vm8, %v2360_v52  ;;  %4730 = vmatmul.f32.gmra.mxu2 %v4086_v56  ;;  %3287 = vrot.lane.b32.xlu1 %v10004_v25, %s6990_s1 }
 0x5a0   :  { %12489 = vst [vmem:[#allocation35_spill] sm:$0xff] %v10016_v37  ;;  %2375 = vrot.lane.b32.xlu2 %v9770_v35, %s6991_s4  ;;  %1605 = vrot.lane.b32.xlu0 %v8973_v43, %s6992_s5  ;;  %v10027_v37 = vpop.f32.mrf.mxu2  ;;  %v10030_v35 = vld [vmem:[#allocation2 + $0x318] sm:$0xff] }
 0x5a1   :  { %12490 = vst [vmem:[#allocation57_spill] sm:$0xff] %v10027_v37  ;;  %v10036_v43 = vld [vmem:[#allocation2 + $0x2f2] sm:$0xff] }
 0x5a3   :  { %v3274_v53 = vpop.permute.xlu1 %3273 }
 0x5a4   :  { %v2364_v29 = vpop.permute.xlu2 %2363  ;;  %v2887_v38 = vpop.permute.xlu0 %2886 }
 0x5a5   :  { %3029 = vst.msk [vmem:[#allocation3 + $0x4a0] sm:$0xff] %vm1697_vm6, %v2887_v38 }
 0x5a6   :  { %3414 = vst.msk [vmem:[#allocation3 + $0x4a0] sm:$0xff] %vm2082_vm7, %v3272_v15  ;;  %v4067_v52 = vld [vmem:[#allocation3 + $0x3f0] sm:$0xff] }
 0x5a7   :  { %3798 = vst.msk [vmem:[#allocation3 + $0x4a0] sm:$0xff] %vm2467_vm8, %v3656_v31  ;;  %4503 = vmatmul.f32.gmra.mxu1 %v4067_v52  ;;  %1992 = vrot.lane.b32.xlu1 %v9828_v39, %s6990_s1  ;;  %v12491_v39 = vld [vmem:[#allocation36_spill] sm:$0xff] }
 0x5a8   :  { %3671 = vrot.lane.b32.xlu2 %v12491_v39, %s6991_s4  ;;  %2902 = vrot.lane.b32.xlu0 %v10036_v43, %s6992_s5 }
 0x5ab   :  { %v1979_v56 = vpop.permute.xlu1 %1978 }
 0x5ac   :  { %v3660_v45 = vpop.permute.xlu2 %3659  ;;  %v1592_v38 = vpop.permute.xlu0 %1591 }
 0x5ad   :  { %1741 = vst.msk [vmem:[#allocation3 + $0x408] sm:$0xff] %vm1697_vm6, %v1592_v38  ;;  %v10042_v38 = vpop.f32.mrf.mxu1 }
 0x5ae   :  { %2126 = vst.msk [vmem:[#allocation3 + $0x408] sm:$0xff] %vm2082_vm7, %v1977_v19  ;;  %v4089_v15 = vld [vmem:[#allocation3 + $0x4a0] sm:$0xff] }
 0x5af   :  { %2511 = vst.msk [vmem:[#allocation3 + $0x408] sm:$0xff] %vm2467_vm8, %v2362_v62  ;;  %4733 = vmatmul.f32.gmra.mxu2 %v4089_v15  ;;  %3289 = vrot.lane.b32.xlu1 %v10030_v35, %s6990_s1 }
 0x5b0   :  { %12492 = vst [vmem:[#allocation36_spill] sm:$0xff] %v10042_v38  ;;  %2377 = vrot.lane.b32.xlu2 %v9796_v51, %s6991_s4  ;;  %1607 = vrot.lane.b32.xlu0 %v8978_v59, %s6992_s5  ;;  %v10053_v38 = vpop.f32.mrf.mxu2  ;;  %v10056_v51 = vld [vmem:[#allocation2 + $0x320] sm:$0xff] }
 0x5b1   :  { %12493 = vst [vmem:[#allocation58_spill] sm:$0xff] %v10053_v38  ;;  %v10062_v59 = vld [vmem:[#allocation2 + $0x302] sm:$0xff] }
 0x5b3   :  { %v3276_v31 = vpop.permute.xlu1 %3275 }
 0x5b4   :  { %v2366_v19 = vpop.permute.xlu2 %2365  ;;  %v2889_v52 = vpop.permute.xlu0 %2888 }
 0x5b5   :  { %3030 = vst.msk [vmem:[#allocation3 + $0x4b8] sm:$0xff] %vm1697_vm6, %v2889_v52 }
 0x5b6   :  { %3415 = vst.msk [vmem:[#allocation3 + $0x4b8] sm:$0xff] %vm2082_vm7, %v3274_v53  ;;  %v4070_v62 = vld [vmem:[#allocation3 + $0x408] sm:$0xff] }
 0x5b7   :  { %3799 = vst.msk [vmem:[#allocation3 + $0x4b8] sm:$0xff] %vm2467_vm8, %v3658_v16  ;;  %4506 = vmatmul.f32.gmra.mxu1 %v4070_v62  ;;  %1994 = vrot.lane.b32.xlu1 %v9854_v12, %s6990_s1  ;;  %v12494_v12 = vld [vmem:[#allocation38_spill] sm:$0xff] }
 0x5b8   :  { %3673 = vrot.lane.b32.xlu2 %v12494_v12, %s6991_s4  ;;  %2904 = vrot.lane.b32.xlu0 %v10062_v59, %s6992_s5 }
 0x5bb   :  { %v1981_v15 = vpop.permute.xlu1 %1980 }
 0x5bc   :  { %v3662_v37 = vpop.permute.xlu2 %3661  ;;  %v1594_v52 = vpop.permute.xlu0 %1593 }
 0x5bd   :  { %1742 = vst.msk [vmem:[#allocation3 + $0x420] sm:$0xff] %vm1697_vm6, %v1594_v52  ;;  %v10068_v52 = vpop.f32.mrf.mxu1 }
 0x5be   :  { %2127 = vst.msk [vmem:[#allocation3 + $0x420] sm:$0xff] %vm2082_vm7, %v1979_v56  ;;  %v4092_v53 = vld [vmem:[#allocation3 + $0x4b8] sm:$0xff] }
 0x5bf   :  { %2512 = vst.msk [vmem:[#allocation3 + $0x420] sm:$0xff] %vm2467_vm8, %v2364_v29  ;;  %4736 = vmatmul.f32.gmra.mxu2 %v4092_v53  ;;  %3291 = vrot.lane.b32.xlu1 %v10056_v51, %s6990_s1 }
 0x5c0   :  { %12495 = vst [vmem:[#allocation38_spill] sm:$0xff] %v10068_v52  ;;  %2379 = vrot.lane.b32.xlu2 %v9822_v48, %s6991_s4  ;;  %1609 = vrot.lane.b32.xlu0 %v12468_v17, %s6992_s5  ;;  %v10079_v52 = vpop.f32.mrf.mxu2  ;;  %v10082_v48 = vld [vmem:[#allocation2 + $0x330] sm:$0xff] }
 0x5c1   :  { %12496 = vst [vmem:[#allocation59_spill] sm:$0xff] %v10079_v52  ;;  %v10088_v17 = vld [vmem:[#allocation2 + $0x30a] sm:$0xff] }
 0x5c3   :  { %v3278_v16 = vpop.permute.xlu1 %3277 }
 0x5c4   :  { %v2368_v56 = vpop.permute.xlu2 %2367  ;;  %v2891_v62 = vpop.permute.xlu0 %2890 }
 0x5c5   :  { %3031 = vst.msk [vmem:[#allocation3 + $0x4d0] sm:$0xff] %vm1697_vm6, %v2891_v62 }
 0x5c6   :  { %3416 = vst.msk [vmem:[#allocation3 + $0x4d0] sm:$0xff] %vm2082_vm7, %v3276_v31  ;;  %v4073_v29 = vld [vmem:[#allocation3 + $0x420] sm:$0xff] }
 0x5c7   :  { %3800 = vst.msk [vmem:[#allocation3 + $0x4d0] sm:$0xff] %vm2467_vm8, %v3660_v45  ;;  %4509 = vmatmul.f32.gmra.mxu1 %v4073_v29  ;;  %1996 = vrot.lane.b32.xlu1 %v9880_v10, %s6990_s1  ;;  %v12497_v10 = vld [vmem:[#allocation39_spill] sm:$0xff] }
 0x5c8   :  { %3675 = vrot.lane.b32.xlu2 %v12497_v10, %s6991_s4  ;;  %2906 = vrot.lane.b32.xlu0 %v10088_v17, %s6992_s5 }
 0x5cb   :  { %v1983_v53 = vpop.permute.xlu1 %1982 }
 0x5cc   :  { %v3664_v38 = vpop.permute.xlu2 %3663  ;;  %v1596_v62 = vpop.permute.xlu0 %1595 }
 0x5cd   :  { %1743 = vst.msk [vmem:[#allocation3 + $0x438] sm:$0xff] %vm1697_vm6, %v1596_v62  ;;  %v10094_v62 = vpop.f32.mrf.mxu1 }
 0x5ce   :  { %2128 = vst.msk [vmem:[#allocation3 + $0x438] sm:$0xff] %vm2082_vm7, %v1981_v15  ;;  %v4095_v31 = vld [vmem:[#allocation3 + $0x4d0] sm:$0xff] }
 0x5cf   :  { %2513 = vst.msk [vmem:[#allocation3 + $0x438] sm:$0xff] %vm2467_vm8, %v2366_v19  ;;  %4739 = vmatmul.f32.gmra.mxu2 %v4095_v31  ;;  %3293 = vrot.lane.b32.xlu1 %v10082_v48, %s6990_s1 }
 0x5d0   :  { %12498 = vst [vmem:[#allocation39_spill] sm:$0xff] %v10094_v62  ;;  %2381 = vrot.lane.b32.xlu2 %v9848_v20, %s6991_s4  ;;  %1611 = vrot.lane.b32.xlu0 %v12471_v9, %s6992_s5  ;;  %v10105_v62 = vpop.f32.mrf.mxu2  ;;  %v10108_v20 = vld [vmem:[#allocation2 + $0x338] sm:$0xff] }
 0x5d1   :  { %v10114_v9 = vld [vmem:[#allocation2 + $0x31a] sm:$0xff] }
 0x5d3   :  { %v3280_v45 = vpop.permute.xlu1 %3279 }
 0x5d4   :  { %v2370_v15 = vpop.permute.xlu2 %2369  ;;  %v2893_v29 = vpop.permute.xlu0 %2892 }
 0x5d5   :  { %3032 = vst.msk [vmem:[#allocation3 + $0x4e8] sm:$0xff] %vm1697_vm6, %v2893_v29 }
 0x5d6   :  { %3417 = vst.msk [vmem:[#allocation3 + $0x4e8] sm:$0xff] %vm2082_vm7, %v3278_v16  ;;  %v4076_v19 = vld [vmem:[#allocation3 + $0x438] sm:$0xff] }
 0x5d7   :  { %3801 = vst.msk [vmem:[#allocation3 + $0x4e8] sm:$0xff] %vm2467_vm8, %v3662_v37  ;;  %4512 = vmatmul.f32.gmra.mxu1 %v4076_v19  ;;  %1998 = vrot.lane.b32.xlu1 %v9906_v4, %s6990_s1  ;;  %v10120_v19 = vpop.f32.mrf.mxu1 }
 0x5d8   :  { %3677 = vrot.lane.b32.xlu2 %v9117_v46, %s6991_s4  ;;  %2908 = vrot.lane.b32.xlu0 %v10114_v9, %s6992_s5 }
 0x5db   :  { %v1985_v31 = vpop.permute.xlu1 %1984 }
 0x5dc   :  { %v3666_v52 = vpop.permute.xlu2 %3665  ;;  %v1598_v29 = vpop.permute.xlu0 %1597 }
 0x5dd   :  { %1744 = vst.msk [vmem:[#allocation3 + $0x450] sm:$0xff] %vm1697_vm6, %v1598_v29 }
 0x5de   :  { %2129 = vst.msk [vmem:[#allocation3 + $0x450] sm:$0xff] %vm2082_vm7, %v1983_v53  ;;  %v4098_v16 = vld [vmem:[#allocation3 + $0x4e8] sm:$0xff] }
 0x5df   :  { %2514 = vst.msk [vmem:[#allocation3 + $0x450] sm:$0xff] %vm2467_vm8, %v2368_v56  ;;  %4742 = vmatmul.f32.gmra.mxu2 %v4098_v16  ;;  %3295 = vrot.lane.b32.xlu1 %v10108_v20, %s6990_s1 }
 0x5e0   :  { %2383 = vrot.lane.b32.xlu2 %v9874_v49, %s6991_s4  ;;  %1613 = vrot.lane.b32.xlu0 %v9010_v54, %s6992_s5  ;;  %v12500_v49 = vld [vmem:[#allocation40_spill] sm:$0xff]  ;;  %v10137_v54 = vld [vmem:[#allocation2 + $0x322] sm:$0xff] }
 0x5e3   :  { %v3282_v4 = vpop.permute.xlu1 %3281 }
 0x5e4   :  { %v2372_v37 = vpop.permute.xlu2 %2371  ;;  %v2895_v53 = vpop.permute.xlu0 %2894 }
 0x5e5   :  { %3033 = vst.msk [vmem:[#allocation3 + $0x500] sm:$0xff] %vm1697_vm6, %v2895_v53  ;;  %v3107_v53 = vld [vmem:[#allocation2 + $0x348] sm:$0xff] }
 0x5e6   :  { %3418 = vst.msk [vmem:[#allocation3 + $0x500] sm:$0xff] %vm2082_vm7, %v3280_v45  ;;  %v4079_v56 = vld [vmem:[#allocation3 + $0x450] sm:$0xff] }
 0x5e7   :  { %3802 = vst.msk [vmem:[#allocation3 + $0x500] sm:$0xff] %vm2467_vm8, %v3664_v38  ;;  %4515 = vmatmul.f32.gmra.mxu1 %v4079_v56  ;;  %2000 = vrot.lane.b32.xlu1 %v9932_v55, %s6990_s1  ;;  %v10131_v38 = vpop.f32.mrf.mxu2 }
 0x5e8   :  { %12499 = vst [vmem:[#allocation60_spill] sm:$0xff] %v10131_v38  ;;  %3679 = vrot.lane.b32.xlu2 %v12500_v49, %s6991_s4  ;;  %2910 = vrot.lane.b32.xlu0 %v10137_v54, %s6992_s5 }
 0x5eb   :  { %v1987_v46 = vpop.permute.xlu1 %1986 }
 0x5ec   :  { %v3668_v29 = vpop.permute.xlu2 %3667  ;;  %v1600_v16 = vpop.permute.xlu0 %1599 }
 0x5ed   :  { %1745 = vst.msk [vmem:[#allocation3 + $0x468] sm:$0xff] %vm1697_vm6, %v1600_v16 }
 0x5ee   :  { %2130 = vst.msk [vmem:[#allocation3 + $0x468] sm:$0xff] %vm2082_vm7, %v1985_v31  ;;  %v4101_v45 = vld [vmem:[#allocation3 + $0x500] sm:$0xff] }
 0x5ef   :  { %2515 = vst.msk [vmem:[#allocation3 + $0x468] sm:$0xff] %vm2467_vm8, %v2370_v15  ;;  %4745 = vmatmul.f32.gmra.mxu2 %v4101_v45  ;;  %3297 = vrot.lane.b32.xlu1 %v3107_v53, %s6990_s1  ;;  %v10143_v15 = vpop.f32.mrf.mxu1 }
 0x5f0   :  { %2385 = vrot.lane.b32.xlu2 %v9900_v63, %s6991_s4  ;;  %1615 = vrot.lane.b32.xlu0 %v12475_v3, %s6992_s5  ;;  %v2722_v3 = vld [vmem:[#allocation2 + $0x332] sm:$0xff] }
 0x5f3   :  { %v3284_v55 = vpop.permute.xlu1 %3283 }
 0x5f4   :  { %v2374_v56 = vpop.permute.xlu2 %2373  ;;  %v2897_v31 = vpop.permute.xlu0 %2896 }
 0x5f5   :  { %3034 = vst.msk [vmem:[#allocation3 + $0x518] sm:$0xff] %vm1697_vm6, %v2897_v31  ;;  %v3491_v31 = vld [vmem:[#allocation2 + $0x349] sm:$0xff] }
 0x5f6   :  { %3419 = vst.msk [vmem:[#allocation3 + $0x518] sm:$0xff] %vm2082_vm7, %v3282_v4  ;;  %v4082_v16 = vld [vmem:[#allocation3 + $0x468] sm:$0xff] }
 0x5f7   :  { %3803 = vst.msk [vmem:[#allocation3 + $0x518] sm:$0xff] %vm2467_vm8, %v3666_v52  ;;  %4518 = vmatmul.f32.gmra.mxu1 %v4082_v16  ;;  %2002 = vrot.lane.b32.xlu1 %v9958_v41, %s6990_s1  ;;  %v3108_v52 = vld [vmem:[#allocation2 + $0x350] sm:$0xff]  ;;  %v10154_v16 = vpop.f32.mrf.mxu2  ;;  %v10162_v38 = vpop.f32.mrf.mxu1 }
 0x5f8   :  { %3681 = vrot.lane.b32.xlu2 %v3491_v31, %s6991_s4  ;;  %2912 = vrot.lane.b32.xlu0 %v2722_v3, %s6992_s5 }
 0x5fb   :  { %v1989_v45 = vpop.permute.xlu1 %1988 }
 0x5fc   :  { %v3670_v53 = vpop.permute.xlu2 %3669  ;;  %v1602_v49 = vpop.permute.xlu0 %1601 }
 0x5fd   :  { %1746 = vst.msk [vmem:[#allocation3 + $0x480] sm:$0xff] %vm1697_vm6, %v1602_v49 }
 0x5fe   :  { %2131 = vst.msk [vmem:[#allocation3 + $0x480] sm:$0xff] %vm2082_vm7, %v1987_v46  ;;  %v4104_v4 = vld [vmem:[#allocation3 + $0x518] sm:$0xff] }
 0x5ff   :  { %2516 = vst.msk [vmem:[#allocation3 + $0x480] sm:$0xff] %vm2467_vm8, %v2372_v37  ;;  %4748 = vmatmul.f32.gmra.mxu2 %v4104_v4  ;;  %3299 = vrot.lane.b32.xlu1 %v3108_v52, %s6990_s1  ;;  %v3492_v52 = vld [vmem:[#allocation2 + $0x351] sm:$0xff] }
 0x600   :  { %2387 = vrot.lane.b32.xlu2 %v9926_v28, %s6991_s4  ;;  %1617 = vrot.lane.b32.xlu0 %v12478_v13, %s6992_s5  ;;  %v2723_v13 = vld [vmem:[#allocation2 + $0x33a] sm:$0xff]  ;;  %v10180_v28 = vpop.f32.mrf.mxu1 }
 0x603   :  { %v3286_v63 = vpop.permute.xlu1 %3285 }
 0x604   :  { %v2376_v41 = vpop.permute.xlu2 %2375  ;;  %v2899_v49 = vpop.permute.xlu0 %2898 }
 0x605   :  { %3035 = vst.msk [vmem:[#allocation3 + $0x530] sm:$0xff] %vm1697_vm6, %v2899_v49 }
 0x606   :  { %3420 = vst.msk [vmem:[#allocation3 + $0x530] sm:$0xff] %vm2082_vm7, %v3284_v55  ;;  %v4085_v46 = vld [vmem:[#allocation3 + $0x480] sm:$0xff] }
 0x607   :  { %3804 = vst.msk [vmem:[#allocation3 + $0x530] sm:$0xff] %vm2467_vm8, %v3668_v29  ;;  %4521 = vmatmul.f32.gmra.mxu1 %v4085_v46  ;;  %2004 = vrot.lane.b32.xlu1 %v9984_v58, %s6990_s1  ;;  %v10173_v29 = vpop.f32.mrf.mxu2 }
 0x608   :  { %3683 = vrot.lane.b32.xlu2 %v3492_v52, %s6991_s4  ;;  %2914 = vrot.lane.b32.xlu0 %v2723_v13, %s6992_s5 }
 0x60b   :  { %v1991_v37 = vpop.permute.xlu1 %1990 }
 0x60c   :  { %v3672_v4 = vpop.permute.xlu2 %3671  ;;  %v1604_v31 = vpop.permute.xlu0 %1603 }
 0x60d   :  { %1747 = vst.msk [vmem:[#allocation3 + $0x498] sm:$0xff] %vm1697_vm6, %v1604_v31 }
 0x60e   :  { %2132 = vst.msk [vmem:[#allocation3 + $0x498] sm:$0xff] %vm2082_vm7, %v1989_v45  ;;  %v4107_v55 = vld [vmem:[#allocation3 + $0x530] sm:$0xff] }
 0x60f   :  { %2517 = vst.msk [vmem:[#allocation3 + $0x498] sm:$0xff] %vm2467_vm8, %v2374_v56  ;;  %4751 = vmatmul.f32.gmra.mxu2 %v4107_v55  ;;  %2006 = vrot.lane.b32.xlu1 %v10010_v47, %s6990_s1  ;;  %v10189_v47 = vpop.f32.mrf.mxu2  ;;  %v10193_v56 = vpop.f32.mrf.mxu1 }
 0x610   :  { %2389 = vrot.lane.b32.xlu2 %v9952_v50, %s6991_s4  ;;  %1619 = vrot.lane.b32.xlu0 %v12481_v21, %s6992_s5 }
 0x613   :  { %v3288_v58 = vpop.permute.xlu1 %3287 }
 0x614   :  { %v2378_v3 = vpop.permute.xlu2 %2377  ;;  %v2901_v45 = vpop.permute.xlu0 %2900 }
 0x615   :  { %3036 = vst.msk [vmem:[#allocation3 + $0x548] sm:$0xff] %vm1697_vm6, %v2901_v45 }
 0x616   :  { %3421 = vst.msk [vmem:[#allocation3 + $0x548] sm:$0xff] %vm2082_vm7, %v3286_v63  ;;  %v4088_v49 = vld [vmem:[#allocation3 + $0x498] sm:$0xff] }
 0x617   :  { %3805 = vst.msk [vmem:[#allocation3 + $0x548] sm:$0xff] %vm2467_vm8, %v3670_v53  ;;  %4524 = vmatmul.f32.gmra.mxu1 %v4088_v49  ;;  %2008 = vrot.lane.b32.xlu1 %v10036_v43, %s6990_s1  ;;  %v10202_v21 = vpop.f32.mrf.mxu2  ;;  %v10206_v50 = vpop.f32.mrf.mxu1 }
 0x618   :  { %2391 = vrot.lane.b32.xlu2 %v9978_v42, %s6991_s4  ;;  %1621 = vrot.lane.b32.xlu0 %v12484_v11, %s6992_s5 }
 0x61b   :  { %v1993_v46 = vpop.permute.xlu1 %1992 }
 0x61c   :  { %v3674_v31 = vpop.permute.xlu2 %3673  ;;  %v1606_v63 = vpop.permute.xlu0 %1605 }
 0x61d   :  { %1748 = vst.msk [vmem:[#allocation3 + $0x4b0] sm:$0xff] %vm1697_vm6, %v1606_v63 }
 0x61e   :  { %2133 = vst.msk [vmem:[#allocation3 + $0x4b0] sm:$0xff] %vm2082_vm7, %v1991_v37  ;;  %v4110_v53 = vld [vmem:[#allocation3 + $0x548] sm:$0xff] }
 0x61f   :  { %2518 = vst.msk [vmem:[#allocation3 + $0x4b0] sm:$0xff] %vm2467_vm8, %v2376_v41  ;;  %4754 = vmatmul.f32.gmra.mxu2 %v4110_v53  ;;  %2010 = vrot.lane.b32.xlu1 %v10062_v59, %s6990_s1  ;;  %v10215_v11 = vpop.f32.mrf.mxu2  ;;  %v10219_v42 = vpop.f32.mrf.mxu1 }
 0x620   :  { %2393 = vrot.lane.b32.xlu2 %v10004_v25, %s6991_s4  ;;  %12501 = vst [vmem:[#allocation40_spill] sm:$0xff] %v10215_v11  ;;  %1623 = vrot.lane.b32.xlu0 %v9070_v24, %s6992_s5  ;;  %v10224_v25 = vpop.f32.mrf.mxu0 }
 0x623   :  { %v3290_v43 = vpop.permute.xlu1 %3289 }
 0x624   :  { %v2380_v55 = vpop.permute.xlu2 %2379  ;;  %v2903_v37 = vpop.permute.xlu0 %2902 }
 0x625   :  { %3037 = vst.msk [vmem:[#allocation3 + $0x560] sm:$0xff] %vm1697_vm6, %v2903_v37 }
 0x626   :  { %3422 = vst.msk [vmem:[#allocation3 + $0x560] sm:$0xff] %vm2082_vm7, %v3288_v58  ;;  %v4091_v41 = vld [vmem:[#allocation3 + $0x4b0] sm:$0xff] }
 0x627   :  { %3806 = vst.msk [vmem:[#allocation3 + $0x560] sm:$0xff] %vm2467_vm8, %v3672_v4  ;;  %4527 = vmatmul.f32.gmra.mxu1 %v4091_v41  ;;  %2012 = vrot.lane.b32.xlu1 %v10088_v17, %s6990_s1  ;;  %v10230_v24 = vpop.f32.mrf.mxu2  ;;  %v10234_v17 = vpop.f32.mrf.mxu1 }
 0x628   :  { %2395 = vrot.lane.b32.xlu2 %v10030_v35, %s6991_s4  ;;  %12502 = vst [vmem:[#allocation61_spill] sm:$0xff] %v10230_v24  ;;  %1625 = vrot.lane.b32.xlu0 %v12488_v40, %s6992_s5  ;;  %v10243_v40 = vpop.f32.mrf.mxu0 }
 0x62b   :  { %v1995_v59 = vpop.permute.xlu1 %1994 }
 0x62c   :  { %v3676_v52 = vpop.permute.xlu2 %3675  ;;  %v1608_v13 = vpop.permute.xlu0 %1607 }
 0x62d   :  { %1749 = vst.msk [vmem:[#allocation3 + $0x4c8] sm:$0xff] %vm1697_vm6, %v1608_v13 }
 0x62e   :  { %2134 = vst.msk [vmem:[#allocation3 + $0x4c8] sm:$0xff] %vm2082_vm7, %v1993_v46  ;;  %v4113_v4 = vld [vmem:[#allocation3 + $0x560] sm:$0xff] }
 0x62f   :  { %2519 = vst.msk [vmem:[#allocation3 + $0x4c8] sm:$0xff] %vm2467_vm8, %v2378_v3  ;;  %4757 = vmatmul.f32.gmra.mxu2 %v4113_v4  ;;  %2014 = vrot.lane.b32.xlu1 %v10114_v9, %s6990_s1  ;;  %v10245_v35 = vpop.f32.mrf.mxu2  ;;  %v10249_v9 = vpop.f32.mrf.mxu1 }
 0x630   :  { %2397 = vrot.lane.b32.xlu2 %v10056_v51, %s6991_s4  ;;  %12503 = vst [vmem:[#allocation62_spill] sm:$0xff] %v10245_v35  ;;  %1627 = vrot.lane.b32.xlu0 %v12491_v39, %s6992_s5 }
 0x633   :  { %v3292_v58 = vpop.permute.xlu1 %3291 }
 0x634   :  { %v2382_v45 = vpop.permute.xlu2 %2381  ;;  %v2905_v49 = vpop.permute.xlu0 %2904 }
 0x635   :  { %3038 = vst.msk [vmem:[#allocation3 + $0x578] sm:$0xff] %vm1697_vm6, %v2905_v49 }
 0x636   :  { %3423 = vst.msk [vmem:[#allocation3 + $0x578] sm:$0xff] %vm2082_vm7, %v3290_v43  ;;  %v4094_v3 = vld [vmem:[#allocation3 + $0x4c8] sm:$0xff]  ;;  %v10262_v43 = vpop.f32.mrf.mxu0 }
 0x637   :  { %3807 = vst.msk [vmem:[#allocation3 + $0x578] sm:$0xff] %vm2467_vm8, %v3674_v31  ;;  %4530 = vmatmul.f32.gmra.mxu1 %v4094_v3  ;;  %2016 = vrot.lane.b32.xlu1 %v10137_v54, %s6990_s1  ;;  %v10256_v54 = vpop.f32.mrf.mxu2  ;;  %v10260_v39 = vpop.f32.mrf.mxu1 }
 0x638   :  { %2399 = vrot.lane.b32.xlu2 %v10082_v48, %s6991_s4  ;;  %12504 = vst [vmem:[#allocation63_spill] sm:$0xff] %v10256_v54  ;;  %1629 = vrot.lane.b32.xlu0 %v12494_v12, %s6992_s5 }
 0x63b   :  { %v1997_v46 = vpop.permute.xlu1 %1996 }
 0x63c   :  { %v3678_v63 = vpop.permute.xlu2 %3677  ;;  %v1610_v53 = vpop.permute.xlu0 %1609 }
 0x63d   :  { %1750 = vst.msk [vmem:[#allocation3 + $0x4e0] sm:$0xff] %vm1697_vm6, %v1610_v53 }
 0x63e   :  { %2135 = vst.msk [vmem:[#allocation3 + $0x4e0] sm:$0xff] %vm2082_vm7, %v1995_v59  ;;  %v4116_v51 = vld [vmem:[#allocation3 + $0x578] sm:$0xff]  ;;  %v10276_v4 = vpop.f32.mrf.mxu0 }
 0x63f   :  { %2520 = vst.msk [vmem:[#allocation3 + $0x4e0] sm:$0xff] %vm2467_vm8, %v2380_v55  ;;  %4760 = vmatmul.f32.gmra.mxu2 %v4116_v51  ;;  %v10269_v48 = vpop.f32.mrf.mxu2  ;;  %v10273_v12 = vpop.f32.mrf.mxu1 }
 0x640   :  { %2401 = vrot.lane.b32.xlu2 %v10108_v20, %s6991_s4  ;;  %12505 = vst [vmem:[#allocation64_spill] sm:$0xff] %v10269_v48  ;;  %1631 = vrot.lane.b32.xlu0 %v12497_v10, %s6992_s5 }
 0x643   :  { %v3294_v31 = vpop.permute.xlu1 %3293 }
 0x644   :  { %v2907_v37 = vpop.permute.xlu0 %2906  ;;  %v2384_v41 = vpop.permute.xlu2 %2383 }
 0x645   :  { %3039 = vst.msk [vmem:[#allocation3 + $0x590] sm:$0xff] %vm1697_vm6, %v2907_v37 }
 0x646   :  { %3424 = vst.msk [vmem:[#allocation3 + $0x590] sm:$0xff] %vm2082_vm7, %v3292_v58  ;;  %v4097_v55 = vld [vmem:[#allocation3 + $0x4e0] sm:$0xff] }
 0x647   :  { %3808 = vst.msk [vmem:[#allocation3 + $0x590] sm:$0xff] %vm2467_vm8, %v3676_v52  ;;  %4533 = vmatmul.f32.gmra.mxu1 %v4097_v55  ;;  %v10280_v58 = vpop.f32.mrf.mxu2  ;;  %v10282_v49 = vpop.f32.mrf.mxu1 }
 0x648   :  { %12506 = vst [vmem:[#allocation65_spill] sm:$0xff] %v10280_v58 }
 0x64b   :  { %v1999_v59 = vpop.permute.xlu1 %1998 }
 0x64c   :  { %v1612_v13 = vpop.permute.xlu0 %1611  ;;  %v3680_v20 = vpop.permute.xlu2 %3679 }
 0x64d   :  { %1751 = vst.msk [vmem:[#allocation3 + $0x4f8] sm:$0xff] %vm1697_vm6, %v1612_v13 }
 0x64e   :  { %2136 = vst.msk [vmem:[#allocation3 + $0x4f8] sm:$0xff] %vm2082_vm7, %v1997_v46  ;;  %v4119_v52 = vld [vmem:[#allocation3 + $0x590] sm:$0xff]  ;;  %v10287_v46 = vpop.f32.mrf.mxu0 }
 0x64f   :  { %2521 = vst.msk [vmem:[#allocation3 + $0x4f8] sm:$0xff] %vm2467_vm8, %v2382_v45  ;;  %4763 = vmatmul.f32.gmra.mxu2 %v4119_v52  ;;  %v10289_v51 = vpop.f32.mrf.mxu2  ;;  %v10291_v37 = vpop.f32.mrf.mxu1 }
 0x650   :  { %12507 = vst [vmem:[#allocation66_spill] sm:$0xff] %v10289_v51 }
 0x653   :  { %v3296_v10 = vpop.permute.xlu1 %3295 }
 0x654   :  { %v2909_v3 = vpop.permute.xlu0 %2908  ;;  %v2386_v45 = vpop.permute.xlu2 %2385 }
 0x655   :  { %3040 = vst.msk [vmem:[#allocation3 + $0x5a8] sm:$0xff] %vm1697_vm6, %v2909_v3 }
 0x656   :  { %3425 = vst.msk [vmem:[#allocation3 + $0x5a8] sm:$0xff] %vm2082_vm7, %v3294_v31  ;;  %v4100_v53 = vld [vmem:[#allocation3 + $0x4f8] sm:$0xff]  ;;  %v10296_v31 = vpop.f32.mrf.mxu0 }
 0x657   :  { %3809 = vst.msk [vmem:[#allocation3 + $0x5a8] sm:$0xff] %vm2467_vm8, %v3678_v63  ;;  %4536 = vmatmul.f32.gmra.mxu1 %v4100_v53  ;;  %v10298_v63 = vpop.f32.mrf.mxu2  ;;  %v10300_v3 = vpop.f32.mrf.mxu1 }
 0x658   :  { %12508 = vst [vmem:[#allocation67_spill] sm:$0xff] %v10298_v63 }
 0x659   :  { %12509 = vst [vmem:[#allocation68_spill] sm:$0xff] %v10300_v3  ;;  %v4078_v3 = vld [vmem:[#allocation3 + $0x448] sm:$0xff] }
 0x65b   :  { %v2001_v55 = vpop.permute.xlu1 %2000 }
 0x65c   :  { %v1614_v13 = vpop.permute.xlu0 %1613  ;;  %v3682_v51 = vpop.permute.xlu2 %3681 }
 0x65d   :  { %1752 = vst.msk [vmem:[#allocation3 + $0x510] sm:$0xff] %vm1697_vm6, %v1614_v13 }
 0x65e   :  { %2137 = vst.msk [vmem:[#allocation3 + $0x510] sm:$0xff] %vm2082_vm7, %v1999_v59  ;;  %v4122_v52 = vld [vmem:[#allocation3 + $0x5a8] sm:$0xff] }
 0x65f   :  { %2522 = vst.msk [vmem:[#allocation3 + $0x510] sm:$0xff] %vm2467_vm8, %v2384_v41  ;;  %4766 = vmatmul.f32.gmra.mxu2 %v4122_v52  ;;  %v10305_v59 = vpop.f32.mrf.mxu2  ;;  %v10307_v41 = vpop.f32.mrf.mxu1 }
 0x660   :  { %12510 = vst [vmem:[#allocation69_spill] sm:$0xff] %v10305_v59  ;;  %v10309_v52 = vpop.f32.mrf.mxu0 }
 0x661   :  { %12511 = vst [vmem:[#allocation70_spill] sm:$0xff] %v10307_v41 }
 0x663   :  { %v3298_v53 = vpop.permute.xlu1 %3297 }
 0x664   :  { %v2911_v58 = vpop.permute.xlu0 %2910  ;;  %v2388_v54 = vpop.permute.xlu2 %2387 }
 0x665   :  { %3041 = vst.msk [vmem:[#allocation3 + $0x5c0] sm:$0xff] %vm1697_vm6, %v2911_v58 }
 0x666   :  { %3426 = vst.msk [vmem:[#allocation3 + $0x5c0] sm:$0xff] %vm2082_vm7, %v3296_v10  ;;  %v4103_v13 = vld [vmem:[#allocation3 + $0x510] sm:$0xff] }
 0x667   :  { %3810 = vst.msk [vmem:[#allocation3 + $0x5c0] sm:$0xff] %vm2467_vm8, %v3680_v20  ;;  %4539 = vmatmul.f32.gmra.mxu1 %v4103_v13  ;;  %v10314_v10 = vpop.f32.mrf.mxu2  ;;  %v10316_v20 = vpop.f32.mrf.mxu1 }
 0x668   :  { %12512 = vst [vmem:[#allocation71_spill] sm:$0xff] %v10314_v10  ;;  %v10319_v59 = vpop.f32.mrf.mxu0 }
 0x669   :  { %12513 = vst [vmem:[#allocation72_spill] sm:$0xff] %v10316_v20 }
 0x66b   :  { %v2003_v48 = vpop.permute.xlu1 %2002 }
 0x66c   :  { %v1616_v63 = vpop.permute.xlu0 %1615 }
 0x66d   :  { %1753 = vst.msk [vmem:[#allocation3 + $0x528] sm:$0xff] %vm1697_vm6, %v1616_v63 }
 0x66e   :  { %2138 = vst.msk [vmem:[#allocation3 + $0x528] sm:$0xff] %vm2082_vm7, %v2001_v55  ;;  %v4125_v58 = vld [vmem:[#allocation3 + $0x5c0] sm:$0xff]  ;;  %v3684_v55 = vpop.permute.xlu2 %3683 }
 0x66f   :  { %2523 = vst.msk [vmem:[#allocation3 + $0x528] sm:$0xff] %vm2467_vm8, %v2386_v45  ;;  %4769 = vmatmul.f32.gmra.mxu2 %v4125_v58  ;;  %v10323_v41 = vpop.f32.mrf.mxu2  ;;  %v10325_v45 = vpop.f32.mrf.mxu1 }
 0x670   :  { %12514 = vst [vmem:[#allocation73_spill] sm:$0xff] %v10323_v41 }
 0x671   :  { %12515 = vst [vmem:[#allocation74_spill] sm:$0xff] %v10325_v45 }
 0x673   :  { %v3300_v63 = vpop.permute.xlu1 %3299 }
 0x674   :  { %v2913_v13 = vpop.permute.xlu0 %2912 }
 0x675   :  { %3042 = vst.msk [vmem:[#allocation3 + $0x5d8] sm:$0xff] %vm1697_vm6, %v2913_v13 }
 0x676   :  { %3427 = vst.msk [vmem:[#allocation3 + $0x5d8] sm:$0xff] %vm2082_vm7, %v3298_v53  ;;  %v4106_v35 = vld [vmem:[#allocation3 + $0x528] sm:$0xff]  ;;  %v10330_v53 = vpop.f32.mrf.mxu0 }
 0x677   :  { %3811 = vst.msk [vmem:[#allocation3 + $0x5d8] sm:$0xff] %vm2467_vm8, %v3682_v51  ;;  %4542 = vmatmul.f32.gmra.mxu1 %v4106_v35  ;;  %v10332_v20 = vpop.f32.mrf.mxu2  ;;  %v2390_v35 = vpop.permute.xlu2 %2389 }
 0x678   :  { %12516 = vst [vmem:[#allocation75_spill] sm:$0xff] %v10332_v20  ;;  %v10334_v51 = vpop.f32.mrf.mxu1 }
 0x679   :  { %12517 = vst [vmem:[#allocation76_spill] sm:$0xff] %v10334_v51 }
 0x67b   :  { %v2005_v10 = vpop.permute.xlu1 %2004 }
 0x67c   :  { %v1618_v58 = vpop.permute.xlu0 %1617 }
 0x67d   :  { %1754 = vst.msk [vmem:[#allocation3 + $0x540] sm:$0xff] %vm1697_vm6, %v1618_v58 }
 0x67e   :  { %2139 = vst.msk [vmem:[#allocation3 + $0x540] sm:$0xff] %vm2082_vm7, %v2003_v48  ;;  %v4128_v13 = vld [vmem:[#allocation3 + $0x5d8] sm:$0xff]  ;;  %v10339_v48 = vpop.f32.mrf.mxu0 }
 0x67f   :  { %2524 = vst.msk [vmem:[#allocation3 + $0x540] sm:$0xff] %vm2467_vm8, %v2388_v54  ;;  %4772 = vmatmul.f32.gmra.mxu2 %v4128_v13  ;;  %v10341_v54 = vpop.f32.mrf.mxu2  ;;  %v2392_v20 = vpop.permute.xlu2 %2391 }
 0x680   :  { %12518 = vst [vmem:[#allocation77_spill] sm:$0xff] %v10341_v54  ;;  %v10343_v13 = vpop.f32.mrf.mxu1 }
 0x681   :  { %12519 = vst [vmem:[#allocation78_spill] sm:$0xff] %v10343_v13 }
 0x683   :  { %v2007_v45 = vpop.permute.xlu1 %2006 }
 0x684   :  { %v2915_v41 = vpop.permute.xlu0 %2914 }
 0x685   :  { %3043 = vst.msk [vmem:[#allocation3 + $0x5f0] sm:$0xff] %vm1697_vm6, %v2915_v41 }
 0x686   :  { %3428 = vst.msk [vmem:[#allocation3 + $0x5f0] sm:$0xff] %vm2082_vm7, %v3300_v63  ;;  %v4109_v58 = vld [vmem:[#allocation3 + $0x540] sm:$0xff] }
 0x687   :  { %3812 = vst.msk [vmem:[#allocation3 + $0x5f0] sm:$0xff] %vm2467_vm8, %v3684_v55  ;;  %4545 = vmatmul.f32.gmra.mxu1 %v4109_v58  ;;  %v10348_v63 = vpop.f32.mrf.mxu2  ;;  %v10352_v58 = vpop.f32.mrf.mxu0 }
 0x688   :  { %12520 = vst [vmem:[#allocation79_spill] sm:$0xff] %v10348_v63  ;;  %v10350_v55 = vpop.f32.mrf.mxu1  ;;  %v2394_v13 = vpop.permute.xlu2 %2393 }
 0x689   :  { %12521 = vst [vmem:[#allocation80_spill] sm:$0xff] %v10350_v55  ;;  %v4081_v55 = vld [vmem:[#allocation3 + $0x460] sm:$0xff] }
 0x68b   :  { %v2009_v51 = vpop.permute.xlu1 %2008 }
 0x68c   :  { %v1620_v24 = vpop.permute.xlu0 %1619 }
 0x68d   :  { %1755 = vst.msk [vmem:[#allocation3 + $0x558] sm:$0xff] %vm1697_vm6, %v1620_v24 }
 0x68e   :  { %2140 = vst.msk [vmem:[#allocation3 + $0x558] sm:$0xff] %vm2082_vm7, %v2005_v10  ;;  %v4131_v41 = vld [vmem:[#allocation3 + $0x5f0] sm:$0xff] }
 0x68f   :  { %2525 = vst.msk [vmem:[#allocation3 + $0x558] sm:$0xff] %vm2467_vm8, %v2390_v35  ;;  %4775 = vmatmul.f32.gmra.mxu2 %v4131_v41  ;;  %v10358_v10 = vpop.f32.mrf.mxu2  ;;  %v3875_v41 = vld [vmem:[#allocation2 + $0x34a] sm:$0xff] }
 0x690   :  { %12522 = vst [vmem:[#allocation81_spill] sm:$0xff] %v10358_v10  ;;  %v10360_v35 = vpop.f32.mrf.mxu1  ;;  %v3876_v10 = vld [vmem:[#allocation2 + $0x352] sm:$0xff] }
 0x691   :  { %12523 = vst [vmem:[#allocation82_spill] sm:$0xff] %v10360_v35 }
 0x692   :  { %3939 = vst.msk [vmem:[#allocation3 + $0x5e0] sm:$0xff] %vm528_vm1, %v3875_v41 }
 0x693   :  { %3940 = vst.msk [vmem:[#allocation3 + $0x5f8] sm:$0xff] %vm528_vm1, %v3876_v10 }
 0x694   :  { %v1622_v54 = vpop.permute.xlu0 %1621 }
 0x695   :  { %1756 = vst.msk [vmem:[#allocation3 + $0x570] sm:$0xff] %vm1697_vm6, %v1622_v54  ;;  %v10364_v54 = vpop.f32.mrf.mxu0 }
 0x696   :  { %2141 = vst.msk [vmem:[#allocation3 + $0x570] sm:$0xff] %vm2082_vm7, %v2007_v45  ;;  %v4112_v24 = vld [vmem:[#allocation3 + $0x558] sm:$0xff] }
 0x697   :  { %2526 = vst.msk [vmem:[#allocation3 + $0x570] sm:$0xff] %vm2467_vm8, %v2392_v20  ;;  %4548 = vmatmul.f32.gmra.mxu1 %v4112_v24  ;;  %6745 = vmatmul.msk.f32.vlgmr.msra.gmra.mxu2 %vm528_vm1, %v4078_v3  ;;  %v2011_v20 = vpop.permute.xlu1 %2010  ;;  %v2396_v3 = vpop.permute.xlu2 %2395 }
 0x698   :  { %v10369_v24 = vpop.f32.mrf.mxu2  ;;  %v10371_v35 = vpop.f32.mrf.mxu1 }
 0x699   :  { %12524 = vst [vmem:[#allocation83_spill] sm:$0xff] %v10369_v24  ;;  %v4129_v41 = vld [vmem:[#allocation3 + $0x5e0] sm:$0xff] }
 0x69a   :  { %12525 = vst [vmem:[#allocation84_spill] sm:$0xff] %v10371_v35  ;;  %6762 = vmatmul.msk.f32.gmra.mxu3 %vm528_vm1, %v4129_v41  ;;  %v4132_v10 = vld [vmem:[#allocation3 + $0x5f8] sm:$0xff] }
 0x69c   :  { %v1624_v63 = vpop.permute.xlu0 %1623 }
 0x69d   :  { %1757 = vst.msk [vmem:[#allocation3 + $0x588] sm:$0xff] %vm1697_vm6, %v1624_v63 }
 0x69e   :  { %2142 = vst.msk [vmem:[#allocation3 + $0x588] sm:$0xff] %vm2082_vm7, %v2009_v51  ;;  %v4115_v45 = vld [vmem:[#allocation3 + $0x570] sm:$0xff]  ;;  %v10376_v51 = vpop.f32.mrf.mxu3 }
 0x69f   :  { %2527 = vst.msk [vmem:[#allocation3 + $0x588] sm:$0xff] %vm2467_vm8, %v2394_v13  ;;  %4551 = vmatmul.f32.gmra.mxu1 %v4115_v45  ;;  %6746 = vmatmul.msk.f32.gmra.mxu2 %vm528_vm1, %v4081_v55  ;;  %v10380_v55 = vpop.f32.mrf.mxu0  ;;  %v2013_v45 = vpop.permute.xlu1 %2012 }
 0x6a0   :  { %12526 = vst [vmem:[#allocation85_spill] sm:$0xff] %v10376_v51  ;;  %v10382_v24 = vpop.f32.mrf.mxu2  ;;  %v2398_v35 = vpop.permute.xlu2 %2397 }
 0x6a1   :  { %12527 = vst [vmem:[#allocation86_spill] sm:$0xff] %v10380_v55  ;;  %v10384_v11 = vpop.f32.mrf.mxu1 }
 0x6a2   :  { %12528 = vst [vmem:[#allocation87_spill] sm:$0xff] %v10382_v24  ;;  %6763 = vmatmul.msk.f32.gmra.mxu3 %vm528_vm1, %v4132_v10 }
 0x6a3   :  { %12529 = vst [vmem:[#allocation88_spill] sm:$0xff] %v10384_v11 }
 0x6a4   :  { %v1626_v63 = vpop.permute.xlu0 %1625 }
 0x6a5   :  { %1758 = vst.msk [vmem:[#allocation3 + $0x5a0] sm:$0xff] %vm1697_vm6, %v1626_v63 }
 0x6a6   :  { %2143 = vst.msk [vmem:[#allocation3 + $0x5a0] sm:$0xff] %vm2082_vm7, %v2011_v20  ;;  %v4118_v13 = vld [vmem:[#allocation3 + $0x588] sm:$0xff] }
 0x6a7   :  { %2528 = vst.msk [vmem:[#allocation3 + $0x5a0] sm:$0xff] %vm2467_vm8, %v2396_v3  ;;  %4554 = vmatmul.f32.gmra.mxu1 %v4118_v13  ;;  %v10390_v3 = vpop.f32.mrf.mxu3  ;;  %v10392_v63 = vpop.f32.mrf.mxu0 }
 0x6a8   :  { %12530 = vst [vmem:[#allocation89_spill] sm:$0xff] %v10390_v3  ;;  %v10394_v13 = vpop.f32.mrf.mxu2  ;;  %v2015_v51 = vpop.permute.xlu1 %2014 }
 0x6a9   :  { %12531 = vst [vmem:[#allocation90_spill] sm:$0xff] %v10394_v13  ;;  %v10396_v24 = vpop.f32.mrf.mxu1  ;;  %v2400_v11 = vpop.permute.xlu2 %2399 }
 0x6aa   :  { %12532 = vst [vmem:[#allocation91_spill] sm:$0xff] %v10396_v24 }
 0x6ac   :  { %v1628_v41 = vpop.permute.xlu0 %1627 }
 0x6ad   :  { %1759 = vst.msk [vmem:[#allocation3 + $0x5b8] sm:$0xff] %vm1697_vm6, %v1628_v41 }
 0x6ae   :  { %2144 = vst.msk [vmem:[#allocation3 + $0x5b8] sm:$0xff] %vm2082_vm7, %v2013_v45  ;;  %v4121_v20 = vld [vmem:[#allocation3 + $0x5a0] sm:$0xff] }
 0x6af   :  { %2529 = vst.msk [vmem:[#allocation3 + $0x5b8] sm:$0xff] %vm2467_vm8, %v2398_v35  ;;  %4557 = vmatmul.f32.gmra.mxu1 %v4121_v20  ;;  %v10401_v35 = vpop.f32.mrf.mxu3  ;;  %v10408_v3 = vpop.f32.mrf.mxu0 }
 0x6b0   :  { %12533 = vst [vmem:[#allocation92_spill] sm:$0xff] %v10401_v35  ;;  %v10403_v10 = vpop.f32.mrf.mxu2  ;;  %v2017_v13 = vpop.permute.xlu1 %2016 }
 0x6b1   :  { %12534 = vst [vmem:[#allocation93_spill] sm:$0xff] %v10403_v10  ;;  %v10405_v41 = vpop.f32.mrf.mxu1  ;;  %v2402_v24 = vpop.permute.xlu2 %2401 }
 0x6b2   :  { %12535 = vst [vmem:[#allocation94_spill] sm:$0xff] %v10405_v41 }
 0x6b4   :  { %v1630_v55 = vpop.permute.xlu0 %1629 }
 0x6b5   :  { %1760 = vst.msk [vmem:[#allocation3 + $0x5d0] sm:$0xff] %vm1697_vm6, %v1630_v55  ;;  %v4588_v55 = vadd.f32 %v9391_v61, %v9548_v36  ;;  %v4603_v36 = vadd.f32 %v9507_v18, %v9676_v23  ;;  %v12546_v18 = vld [vmem:[#allocation30_spill] sm:$0xff]  ;;  %v4606_v23 = vadd.f32 %v9532_v34, %v9703_v7 }
 0x6b6   :  { %2145 = vst.msk [vmem:[#allocation3 + $0x5d0] sm:$0xff] %vm2082_vm7, %v2015_v51  ;;  %v4124_v45 = vld [vmem:[#allocation3 + $0x5b8] sm:$0xff] }
 0x6b7   :  { %2530 = vst.msk [vmem:[#allocation3 + $0x5d0] sm:$0xff] %vm2467_vm8, %v2400_v11  ;;  %4560 = vmatmul.f32.gmra.mxu1 %v4124_v45  ;;  %v4591_v11 = vadd.f32 %v9414_v60, %v9573_v8  ;;  %v4594_v45 = vadd.f32 %v9437_v2, %v9598_v5  ;;  %v10425_v41 = vpop.f32.mrf.mxu3  ;;  %v12540_v60 = vld [vmem:[#allocation21_spill] sm:$0xff]  ;;  %v4600_v2 = vadd.f32 %v9483_v30, %v9650_v32 }
 0x6b8   :  { %v10418_v10 = vpop.f32.mrf.mxu2  ;;  %12539 = vst [vmem:[#allocation96_spill] sm:$0xff] %v10425_v41  ;;  %v10428_v8 = vadd.f32 %v12540_v60, %v4588_v55  ;;  %v12548_v60 = vld [vmem:[#allocation33_spill] sm:$0xff] }
 0x6b9   :  { %12536 = vst [vmem:[#allocation95_spill] sm:$0xff] %v10418_v10  ;;  %v10453_v32 = vadd.f32 %v12546_v18, %v4600_v2  ;;  %v4609_v18 = vadd.f32 %v9558_v44, %v9730_v14  ;;  %v12556_v41 = vld [vmem:[#allocation41_spill] sm:$0xff] }
 0x6ba   :  { %12541 = vst [vmem:[#allocation21_spill] sm:$0xff] %v10428_v8  ;;  %v5123_v55 = vmul.f32 %v10428_v8, %v10428_v8 }
 0x6bb   :  { %12547 = vst [vmem:[#allocation30_spill] sm:$0xff] %v10453_v32 }
 0x6bc   :  { %v1632_v20 = vpop.permute.xlu0 %1631  ;;  %v5187_v34 = vsel %vm528_vm1, %v5123_v55, 0.0 }
 0x6bd   :  { %1761 = vst.msk [vmem:[#allocation3 + $0x5e8] sm:$0xff] %vm1697_vm6, %v1632_v20  ;;  %v12537_v20 = vld [vmem:[#allocation22_spill] sm:$0xff] }
 0x6be   :  { %2146 = vst.msk [vmem:[#allocation3 + $0x5e8] sm:$0xff] %vm2082_vm7, %v2017_v13  ;;  %v4127_v51 = vld [vmem:[#allocation3 + $0x5d0] sm:$0xff]  ;;  %v10421_v35 = vadd.f32 %v12537_v20, %v4591_v11  ;;  %v4597_v13 = vadd.f32 %v9460_v6, %v9624_v22  ;;  %v12544_v22 = vld [vmem:[#allocation27_spill] sm:$0xff]  ;;  %v10446_v20 = vpop.f32.mrf.mxu0 }
 0x6bf   :  { %2531 = vst.msk [vmem:[#allocation3 + $0x5e8] sm:$0xff] %vm2467_vm8, %v2402_v24  ;;  %4563 = vmatmul.f32.gmra.mxu1 %v4127_v51  ;;  %v10430_v24 = vpop.f32.mrf.mxu1  ;;  %v12542_v51 = vld [vmem:[#allocation23_spill] sm:$0xff]  ;;  %v10484_v44 = vpop.f32.mrf.mxu3 }
 0x6c0   :  { %12538 = vst [vmem:[#allocation22_spill] sm:$0xff] %v10421_v35  ;;  %v10433_v61 = vadd.f32 %v12542_v51, %v4594_v45  ;;  %v5124_v6 = vmul.f32 %v10421_v35, %v10421_v35  ;;  %v10442_v11 = vadd.f32 %v12544_v22, %v4597_v13  ;;  %v4991_v45 = vsel %vm528_vm1, %v10421_v35, 0.0 }
 0x6c1   :  { %v4990_v13 = vsel %vm528_vm1, %v10428_v8, 0.0  ;;  %v10460_v51 = vadd.f32 %v12548_v60, %v4603_v36  ;;  %v4612_v36 = vadd.f32 %v9583_v27, %v9756_v0  ;;  %12553 = vst [vmem:[#allocation98_spill] sm:$0xff] %v10484_v44 }
 0x6c2   :  { %12543 = vst [vmem:[#allocation23_spill] sm:$0xff] %v10433_v61  ;;  %v5125_v30 = vmul.f32 %v10433_v61, %v10433_v61  ;;  %v5188_v22 = vsel %vm528_vm1, %v5124_v6, 0.0  ;;  %v4993_v35 = vsel %vm528_vm1, %v10433_v61, 0.0  ;;  %v5126_v2 = vmul.f32 %v10442_v11, %v10442_v11 }
 0x6c3   :  { %12545 = vst [vmem:[#allocation27_spill] sm:$0xff] %v10442_v11  ;;  %v4992_v7 = vadd.f32 %v4991_v45, %v4990_v13  ;;  %v4995_v6 = vsel %vm528_vm1, %v10442_v11, 0.0  ;;  %v5127_v61 = vmul.f32 %v10453_v32, %v10453_v32  ;;  %v5189_v14 = vadd.f32 %v5188_v22, %v5187_v34  ;;  %v12558_v34 = vld [vmem:[#allocation25_spill] sm:$0xff] }
 0x6c4   :  { %12549 = vst [vmem:[#allocation33_spill] sm:$0xff] %v10460_v51  ;;  %v5190_v8 = vsel %vm528_vm1, %v5125_v30, 0.0  ;;  %v5128_v27 = vmul.f32 %v10460_v51, %v10460_v51  ;;  %v5192_v0 = vsel %vm528_vm1, %v5126_v2, 0.0  ;;  %v4997_v45 = vsel %vm528_vm1, %v10453_v32, 0.0  ;;  %v12554_v30 = vld [vmem:[#allocation37_spill] sm:$0xff] }
 0x6c5   :  { %v4994_v55 = vadd.f32 %v4993_v35, %v4992_v7  ;;  %v10492_v13 = vadd.f32 %v12554_v30, %v4609_v18  ;;  %v4615_v11 = vadd.f32 %v9609_v57, %v9782_v33  ;;  %v10497_v44 = vadd.f32 %v12556_v41, %v4612_v36  ;;  %v12559_v7 = vld [vmem:[#allocation14_spill] sm:$0xff] }
 0x6c6   :  { %v4130_v5 = vld [vmem:[#allocation3 + $0x5e8] sm:$0xff]  ;;  %v5194_v35 = vsel %vm528_vm1, %v5127_v61, 0.0  ;;  %v4999_v22 = vsel %vm528_vm1, %v10460_v51, 0.0  ;;  %v4618_v18 = vadd.f32 %v12559_v7, %v12558_v34  ;;  %v5196_v57 = vsel %vm528_vm1, %v5128_v27, 0.0  ;;  %v10507_v33 = vpop.f32.mrf.mxu0  ;;  %v12561_v36 = vld [vmem:[#allocation42_spill] sm:$0xff] }
 0x6c7   :  { %4566 = vmatmul.f32.gmra.mxu1 %v4130_v5  ;;  %v10462_v5 = vpop.f32.mrf.mxu2  ;;  %v10474_v60 = vpop.f32.mrf.mxu1  ;;  %12555 = vst [vmem:[#allocation37_spill] sm:$0xff] %v10492_v13  ;;  %v5130_v61 = vmul.f32 %v10492_v13, %v10492_v13  ;;  %v5131_v27 = vmul.f32 %v10497_v44, %v10497_v44  ;;  %v5003_v7 = vsel %vm528_vm1, %v10492_v13, 0.0  ;;  %v12571_v13 = vld [vmem:[#allocation44_spill] sm:$0xff] }
 0x6c8   :  { %12550 = vst [vmem:[#allocation97_spill] sm:$0xff] %v10462_v5  ;;  %v12551_v5 = vld [vmem:[#allocation20_spill] sm:$0xff] }
 0x6c9   :  { %v10482_v10 = vadd.f32 %v12551_v5, %v4606_v23  ;;  %v5191_v23 = vadd.f32 %v5190_v8, %v5189_v14  ;;  %v4996_v5 = vadd.f32 %v4995_v6, %v4994_v55  ;;  %12557 = vst [vmem:[#allocation41_spill] sm:$0xff] %v10497_v44  ;;  %v10516_v6 = vadd.f32 %v12561_v36, %v4615_v11  ;;  %v12563_v14 = vld [vmem:[#allocation28_spill] sm:$0xff]  ;;  %v12568_v11 = vld [vmem:[#allocation11_spill] sm:$0xff] }
 0x6ca   :  { %v12564_v55 = vld [vmem:[#allocation16_spill] sm:$0xff]  ;;  %v4624_v36 = vadd.f32 %v12568_v11, %v9860_v1 }
 0x6cb   :  { %12552 = vst [vmem:[#allocation20_spill] sm:$0xff] %v10482_v10  ;;  %v5129_v2 = vmul.f32 %v10482_v10, %v10482_v10  ;;  %v5193_v30 = vadd.f32 %v5192_v0, %v5191_v23  ;;  %v4998_v32 = vadd.f32 %v4997_v45, %v4996_v5  ;;  %v5001_v41 = vsel %vm528_vm1, %v10482_v10, 0.0  ;;  %v12566_v10 = vld [vmem:[#allocation43_spill] sm:$0xff]  ;;  %v12576_v11 = vld [vmem:[#allocation32_spill] sm:$0xff] }
 0x6cc   :  { %12562 = vst [vmem:[#allocation14_spill] sm:$0xff] %v10516_v6  ;;  %v4621_v34 = vadd.f32 %v12564_v55, %v12563_v14  ;;  %v10528_v51 = vadd.f32 %v12566_v10, %v4618_v18  ;;  %v5005_v55 = vsel %vm528_vm1, %v10497_v44, 0.0  ;;  %v10542_v10 = vpop.f32.mrf.mxu3  ;;  %v12578_v44 = vld [vmem:[#allocation46_spill] sm:$0xff] }
 0x6cd   :  { %v5195_v0 = vadd.f32 %v5194_v35, %v5193_v30  ;;  %v5000_v45 = vadd.f32 %v4999_v22, %v4998_v32  ;;  %v5198_v5 = vsel %vm528_vm1, %v5129_v2, 0.0  ;;  %v12569_v35 = vld [vmem:[#allocation31_spill] sm:$0xff]  ;;  %v12570_v32 = vld [vmem:[#allocation17_spill] sm:$0xff]  ;;  %v5200_v30 = vsel %vm528_vm1, %v5130_v61, 0.0  ;;  %12573 = vst [vmem:[#allocation43_spill] sm:$0xff] %v10542_v10 }
 0x6ce   :  { %12567 = vst [vmem:[#allocation28_spill] sm:$0xff] %v10528_v51  ;;  %v4627_v22 = vadd.f32 %v12570_v32, %v12569_v35  ;;  %v5132_v2 = vmul.f32 %v10516_v6, %v10516_v6  ;;  %v5133_v61 = vmul.f32 %v10528_v51, %v10528_v51  ;;  %v12577_v35 = vld [vmem:[#allocation15_spill] sm:$0xff] }
 0x6cf   :  { %v10509_v8 = vpop.f32.mrf.mxu2  ;;  %v10522_v23 = vpop.f32.mrf.mxu1  ;;  %v5002_v14 = vadd.f32 %v5001_v41, %v5000_v45  ;;  %v5007_v41 = vsel %vm528_vm1, %v10516_v6, 0.0  ;;  %v4630_v32 = vadd.f32 %v12577_v35, %v12576_v11 }
 0x6d0   :  { %12560 = vst [vmem:[#allocation25_spill] sm:$0xff] %v10509_v8  ;;  %v5197_v8 = vadd.f32 %v5196_v57, %v5195_v0  ;;  %v5202_v57 = vsel %vm528_vm1, %v5131_v27, 0.0  ;;  %v12574_v0 = vld [vmem:[#allocation45_spill] sm:$0xff]  ;;  %v10555_v10 = vadd.f32 %v12578_v44, %v4627_v22  ;;  %v5204_v27 = vsel %vm528_vm1, %v5132_v2, 0.0  ;;  %v10569_v22 = vpop.f32.mrf.mxu0 }
 0x6d1   :  { %12565 = vst [vmem:[#allocation42_spill] sm:$0xff] %v10522_v23  ;;  %v10540_v23 = vadd.f32 %v12571_v13, %v4621_v34  ;;  %v5004_v1 = vadd.f32 %v5003_v7, %v5002_v14  ;;  %v10550_v45 = vadd.f32 %v12574_v0, %v4624_v36  ;;  %v12581_v36 = vld [vmem:[#allocation34_spill] sm:$0xff]  ;;  %v12582_v14 = vld [vmem:[#allocation19_spill] sm:$0xff]  ;;  %v5206_v35 = vsel %vm528_vm1, %v5133_v61, 0.0  ;;  %v12588_v61 = vld [vmem:[#allocation48_spill] sm:$0xff] }
 0x6d2   :  { %v5199_v18 = vadd.f32 %v5198_v5, %v5197_v8  ;;  %12579 = vst [vmem:[#allocation31_spill] sm:$0xff] %v10555_v10  ;;  %v5009_v5 = vsel %vm528_vm1, %v10528_v51, 0.0  ;;  %v4633_v0 = vadd.f32 %v12582_v14, %v12581_v36  ;;  %v12586_v14 = vld [vmem:[#allocation47_spill] sm:$0xff] }
 0x6d3   :  { %12572 = vst [vmem:[#allocation16_spill] sm:$0xff] %v10540_v23  ;;  %v5006_v34 = vadd.f32 %v5005_v55, %v5004_v1  ;;  %v5134_v7 = vmul.f32 %v10540_v23, %v10540_v23  ;;  %v12584_v1 = vld [vmem:[#allocation24_spill] sm:$0xff]  ;;  %v5011_v51 = vsel %vm528_vm1, %v10540_v23, 0.0  ;;  %v5135_v36 = vmul.f32 %v10550_v45, %v10550_v45 }
 0x6d4   :  { %12575 = vst [vmem:[#allocation11_spill] sm:$0xff] %v10550_v45  ;;  %v5201_v13 = vadd.f32 %v5200_v30, %v5199_v18  ;;  %v5539_v30 = vld [vmem:[%s12237_s3 + $0x18] sm:$0xff]  ;;  %v12583_v18 = vld [vmem:[#allocation18_spill] sm:$0xff]  ;;  %v10581_v6 = vadd.f32 %v12586_v14, %v4630_v32 }
 0x6d5   :  { %v5008_v44 = vadd.f32 %v5007_v41, %v5006_v34  ;;  %v4636_v2 = vadd.f32 %v12584_v1, %v12583_v18  ;;  %5744 = vmatpush.msrb.mxu3 %v5539_v30  ;;  %v5208_v34 = vsel %vm528_vm1, %v5134_v7, 0.0  ;;  %v5013_v30 = vsel %vm528_vm1, %v10550_v45, 0.0  ;;  %v12590_v1 = vld [vmem:[#allocation26_spill] sm:$0xff] }
 0x6d6   :  { %v5203_v55 = vadd.f32 %v5202_v57, %v5201_v13  ;;  %12587 = vst [vmem:[#allocation45_spill] sm:$0xff] %v10581_v6  ;;  %v5136_v13 = vmul.f32 %v10555_v10, %v10555_v10  ;;  %v10589_v18 = vadd.f32 %v12588_v61, %v4633_v0  ;;  %v4639_v23 = vadd.f32 %v12590_v1, %v9990_v26  ;;  %v12591_v32 = vld [vmem:[#allocation10_spill] sm:$0xff]  ;;  %v10603_v61 = vpop.f32.mrf.mxu3  ;;  %v12598_v1 = vld [vmem:[#allocation36_spill] sm:$0xff] }
 0x6d7   :  { %v10557_v8 = vpop.f32.mrf.mxu2  ;;  %v10573_v11 = vpop.f32.mrf.mxu1  ;;  %v5010_v41 = vadd.f32 %v5009_v5, %v5008_v44  ;;  %v10594_v14 = vadd.f32 %v12591_v32, %v4636_v2  ;;  %v5015_v5 = vsel %vm528_vm1, %v10555_v10, 0.0  ;;  %v5137_v7 = vmul.f32 %v10581_v6, %v10581_v6  ;;  %v12594_v44 = vld [vmem:[#allocation29_spill] sm:$0xff]  ;;  %12595 = vst [vmem:[#allocation46_spill] sm:$0xff] %v10603_v61  ;;  %v12599_v32 = vld [vmem:[#allocation51_spill] sm:$0xff] }
 0x6d8   :  { %12580 = vst [vmem:[#allocation17_spill] sm:$0xff] %v10557_v8  ;;  %v5205_v57 = vadd.f32 %v5204_v27, %v5203_v55  ;;  %v5210_v27 = vsel %vm528_vm1, %v5135_v36, 0.0  ;;  %v12593_v55 = vld [vmem:[#allocation35_spill] sm:$0xff]  ;;  %v5017_v2 = vsel %vm528_vm1, %v10581_v6, 0.0  ;;  %v5138_v36 = vmul.f32 %v10589_v18, %v10589_v18  ;;  %v10629_v61 = vpop.f32.mrf.mxu0 }
 0x6d9   :  { %12585 = vst [vmem:[#allocation44_spill] sm:$0xff] %v10573_v11  ;;  %v5012_v11 = vadd.f32 %v5011_v51, %v5010_v41  ;;  %v4642_v0 = vadd.f32 %v12594_v44, %v12593_v55  ;;  %v5212_v51 = vsel %vm528_vm1, %v5136_v13, 0.0  ;;  %v4645_v55 = vadd.f32 %v12599_v32, %v12598_v1 }
 0x6da   :  { %12589 = vst [vmem:[#allocation32_spill] sm:$0xff] %v10589_v18  ;;  %v5207_v8 = vadd.f32 %v5206_v35, %v5205_v57  ;;  %v12597_v57 = vld [vmem:[#allocation12_spill] sm:$0xff]  ;;  %v5214_v13 = vsel %vm528_vm1, %v5137_v7, 0.0  ;;  %v5216_v32 = vsel %vm528_vm1, %v5138_v36, 0.0  ;;  %v5021_v7 = vsel %vm528_vm1, %v10594_v14, 0.0 }
 0x6db   :  { %12592 = vst [vmem:[#allocation15_spill] sm:$0xff] %v10594_v14  ;;  %v5014_v26 = vadd.f32 %v5013_v30, %v5012_v11  ;;  %v10613_v41 = vadd.f32 %v12597_v57, %v4639_v23  ;;  %v12601_v30 = vld [vmem:[#allocation49_spill] sm:$0xff]  ;;  %v12602_v23 = vld [vmem:[#allocation38_spill] sm:$0xff]  ;;  %v12603_v57 = vld [vmem:[#allocation52_spill] sm:$0xff] }
 0x6dc   :  { %v5209_v45 = vadd.f32 %v5208_v34, %v5207_v8  ;;  %v5139_v8 = vmul.f32 %v10594_v14, %v10594_v14  ;;  %v5019_v34 = vsel %vm528_vm1, %v10589_v18, 0.0  ;;  %v10625_v6 = vadd.f32 %v12601_v30, %v4642_v0  ;;  %v12606_v0 = vld [vmem:[#allocation13_spill] sm:$0xff] }
 0x6dd   :  { %v5016_v10 = vadd.f32 %v5015_v5, %v5014_v26  ;;  %v12604_v5 = vld [vmem:[#allocation39_spill] sm:$0xff]  ;;  %v12605_v26 = vld [vmem:[#allocation53_spill] sm:$0xff]  ;;  %v5140_v18 = vmul.f32 %v10613_v41, %v10613_v41  ;;  %v10639_v30 = vadd.f32 %v12606_v0, %v4645_v55 }
 0x6de   :  { %v5211_v44 = vadd.f32 %v5210_v27, %v5209_v45  ;;  %v4651_v1 = vadd.f32 %v12605_v26, %v12604_v5  ;;  %v10663_v0 = vpop.f32.mrf.mxu3 }
 0x6df   :  { %v10606_v35 = vpop.f32.mrf.mxu2  ;;  %v10619_v11 = vpop.f32.mrf.mxu1  ;;  %v5018_v27 = vadd.f32 %v5017_v2, %v5016_v10  ;;  %v5023_v10 = vsel %vm528_vm1, %v10613_v41, 0.0  ;;  %v12607_v2 = vld [vmem:[#allocation50_spill] sm:$0xff] }
 0x6e0   :  { %12596 = vst [vmem:[#allocation34_spill] sm:$0xff] %v10606_v35  ;;  %v4648_v35 = vadd.f32 %v12603_v57, %v12602_v23  ;;  %v5213_v45 = vadd.f32 %v5212_v51, %v5211_v44  ;;  %v5218_v57 = vsel %vm528_vm1, %v5139_v8, 0.0  ;;  %v5141_v51 = vmul.f32 %v10625_v6, %v10625_v6  ;;  %v12608_v44 = vld [vmem:[#allocation54_spill] sm:$0xff] }
 0x6e1   :  { %12600 = vst [vmem:[#allocation19_spill] sm:$0xff] %v10619_v11  ;;  %v5020_v23 = vadd.f32 %v5019_v34, %v5018_v27  ;;  %v4654_v5 = vadd.f32 %v12608_v44, %v10120_v19  ;;  %v10652_v55 = vadd.f32 %v10224_v25, %v4651_v1  ;;  %v5220_v8 = vsel %vm528_vm1, %v5140_v18, 0.0  ;;  %v12610_v25 = vld [vmem:[#allocation56_spill] sm:$0xff] }
 0x6e2   :  { %v5215_v11 = vadd.f32 %v5214_v13, %v5213_v45  ;;  %v10647_v36 = vadd.f32 %v12607_v2, %v4648_v35  ;;  %v5025_v34 = vsel %vm528_vm1, %v10625_v6, 0.0  ;;  %v5142_v45 = vmul.f32 %v10639_v30, %v10639_v30  ;;  %v12609_v35 = vld [vmem:[#allocation55_spill] sm:$0xff] }
 0x6e3   :  { %v5022_v14 = vadd.f32 %v5021_v7, %v5020_v23  ;;  %v4657_v27 = vadd.f32 %v12609_v35, %v10143_v15  ;;  %v4660_v1 = vadd.f32 %v12610_v25, %v10162_v38  ;;  %v5222_v18 = vsel %vm528_vm1, %v5141_v51, 0.0  ;;  %v12611_v51 = vld [vmem:[#allocation57_spill] sm:$0xff]  ;;  %v10687_v35 = vpop.f32.mrf.mxu0 }
 0x6e4   :  { %v5217_v26 = vadd.f32 %v5216_v32, %v5215_v11  ;;  %v5027_v7 = vsel %vm528_vm1, %v10639_v30, 0.0  ;;  %v5143_v23 = vmul.f32 %v10647_v36, %v10647_v36  ;;  %v10675_v2 = vadd.f32 %v10243_v40, %v4654_v5 }
 0x6e5   :  { %v5024_v11 = vadd.f32 %v5023_v10, %v5022_v14  ;;  %v5144_v14 = vmul.f32 %v10652_v55, %v10652_v55  ;;  %v5224_v38 = vsel %vm528_vm1, %v5142_v45, 0.0  ;;  %v10683_v10 = vadd.f32 %v10262_v43, %v4657_v27  ;;  %v12612_v43 = vld [vmem:[#allocation58_spill] sm:$0xff] }
 0x6e6   :  { %v5219_v19 = vadd.f32 %v5218_v57, %v5217_v26  ;;  %v5029_v57 = vsel %vm528_vm1, %v10647_v36, 0.0  ;;  %v4663_v26 = vadd.f32 %v12611_v51, %v10180_v28  ;;  %v5031_v45 = vsel %vm528_vm1, %v10652_v55, 0.0 }
 0x6e7   :  { %v10654_v13 = vpop.f32.mrf.mxu2  ;;  %v10667_v32 = vpop.f32.mrf.mxu1  ;;  %v5026_v44 = vadd.f32 %v5025_v34, %v5024_v11  ;;  %v5226_v34 = vsel %vm528_vm1, %v5143_v23, 0.0  ;;  %v4666_v27 = vadd.f32 %v12612_v43, %v10193_v56  ;;  %v5228_v25 = vsel %vm528_vm1, %v5144_v14, 0.0  ;;  %v12613_v23 = vld [vmem:[#allocation59_spill] sm:$0xff] }
 0x6e8   :  { %v5221_v15 = vadd.f32 %v5220_v8, %v5219_v19  ;;  %v10690_v8 = vadd.f32 %v10276_v4, %v4660_v1  ;;  %v5145_v19 = vmul.f32 %v10675_v2, %v10675_v2  ;;  %v5033_v4 = vsel %vm528_vm1, %v10675_v2, 0.0 }
 0x6e9   :  { %v5028_v5 = vadd.f32 %v5027_v7, %v5026_v44  ;;  %v5146_v1 = vmul.f32 %v10683_v10, %v10683_v10  ;;  %v10707_v7 = vadd.f32 %v10287_v46, %v4663_v26  ;;  %v5035_v51 = vsel %vm528_vm1, %v10683_v10, 0.0  ;;  %v10723_v26 = vpop.f32.mrf.mxu3 }
 0x6ea   :  { %v5223_v40 = vadd.f32 %v5222_v18, %v5221_v15  ;;  %v4669_v15 = vadd.f32 %v12613_v23, %v10206_v50  ;;  %v4672_v46 = vadd.f32 %v10105_v62, %v10219_v42 }
 0x6eb   :  { %v5030_v28 = vadd.f32 %v5029_v57, %v5028_v5  ;;  %v5230_v57 = vsel %vm528_vm1, %v5145_v19, 0.0  ;;  %v5232_v43 = vsel %vm528_vm1, %v5146_v1, 0.0  ;;  %v5037_v19 = vsel %vm528_vm1, %v10690_v8, 0.0  ;;  %v10745_v1 = vpop.f32.mrf.mxu0 }
 0x6ec   :  { %v5225_v11 = vadd.f32 %v5224_v38, %v5223_v40  ;;  %v5147_v38 = vmul.f32 %v10690_v8, %v10690_v8  ;;  %v10719_v40 = vadd.f32 %v10296_v31, %v4666_v27  ;;  %v10733_v31 = vadd.f32 %v10309_v52, %v4669_v15 }
 0x6ed   :  { %v5032_v56 = vadd.f32 %v5031_v45, %v5030_v28  ;;  %v5039_v28 = vsel %vm528_vm1, %v10707_v7, 0.0 }
 0x6ee   :  { %v5227_v44 = vadd.f32 %v5226_v34, %v5225_v11  ;;  %v12614_v34 = vld [vmem:[#allocation60_spill] sm:$0xff]  ;;  %v5148_v11 = vmul.f32 %v10707_v7, %v10707_v7  ;;  %v5234_v42 = vsel %vm528_vm1, %v5147_v38, 0.0  ;;  %v5041_v38 = vsel %vm528_vm1, %v10719_v40, 0.0 }
 0x6ef   :  { %v10700_v18 = vpop.f32.mrf.mxu2  ;;  %v10713_v14 = vpop.f32.mrf.mxu1  ;;  %v5034_v5 = vadd.f32 %v5033_v4, %v5032_v56  ;;  %v4675_v45 = vadd.f32 %v12614_v34, %v10234_v17  ;;  %v5149_v17 = vmul.f32 %v10719_v40, %v10719_v40  ;;  %v4678_v4 = vadd.f32 %v10154_v16, %v10249_v9  ;;  %v5538_v9 = vld [vmem:[%s12237_s3 + $0x10] sm:$0xff] }
 0x6f0   :  { %v5229_v50 = vadd.f32 %v5228_v25, %v5227_v44  ;;  %v10741_v25 = vadd.f32 %v10319_v59, %v4672_v46  ;;  %v5236_v56 = vsel %vm528_vm1, %v5148_v11, 0.0  ;;  %v5150_v59 = vmul.f32 %v10733_v31, %v10733_v31  ;;  %5745 = vmatpush.msrb.mxu3 %v5538_v9  ;;  %v12617_v9 = vld [vmem:[#allocation68_spill] sm:$0xff] }
 0x6f1   :  { %v5036_v62 = vadd.f32 %v5035_v51, %v5034_v5  ;;  %v10748_v15 = vadd.f32 %v10330_v53, %v4675_v45  ;;  %v4681_v16 = vadd.f32 %v10173_v29, %v10260_v39  ;;  %v4684_v51 = vadd.f32 %v10189_v47, %v10273_v12 }
 0x6f2   :  { %v5231_v27 = vadd.f32 %v5230_v57, %v5229_v50  ;;  %v5238_v50 = vsel %vm528_vm1, %v5149_v17, 0.0  ;;  %v5043_v5 = vsel %vm528_vm1, %v10733_v31, 0.0  ;;  %v5151_v29 = vmul.f32 %v10741_v25, %v10741_v25 }
 0x6f3   :  { %v5038_v23 = vadd.f32 %v5037_v19, %v5036_v62  ;;  %v10772_v39 = vadd.f32 %v10339_v48, %v4678_v4  ;;  %v5240_v47 = vsel %vm528_vm1, %v5150_v59, 0.0  ;;  %v5045_v12 = vsel %vm528_vm1, %v10741_v25, 0.0  ;;  %v12616_v59 = vld [vmem:[#allocation86_spill] sm:$0xff] }
 0x6f4   :  { %v5233_v52 = vadd.f32 %v5232_v43, %v5231_v27  ;;  %v5152_v43 = vmul.f32 %v10748_v15, %v10748_v15  ;;  %v10780_v19 = vadd.f32 %v10352_v58, %v4681_v16  ;;  %v4687_v11 = vadd.f32 %v10202_v21, %v10282_v49  ;;  %v10784_v27 = vpop.f32.mrf.mxu3  ;;  %v12615_v58 = vld [vmem:[#allocation40_spill] sm:$0xff] }
 0x6f5   :  { %v5040_v53 = vadd.f32 %v5039_v28, %v5038_v23  ;;  %v5242_v28 = vsel %vm528_vm1, %v5151_v29, 0.0  ;;  %v5047_v17 = vsel %vm528_vm1, %v10748_v15, 0.0  ;;  %v5153_v4 = vmul.f32 %v10772_v39, %v10772_v39 }
 0x6f6   :  { %v5235_v57 = vadd.f32 %v5234_v42, %v5233_v52  ;;  %v10787_v42 = vadd.f32 %v10364_v54, %v4684_v51  ;;  %v4690_v52 = vadd.f32 %v12615_v58, %v10291_v37  ;;  %v5244_v49 = vsel %vm528_vm1, %v5152_v43, 0.0  ;;  %v10808_v51 = vpop.f32.mrf.mxu0 }
 0x6f7   :  { %v10750_v44 = vpop.f32.mrf.mxu2  ;;  %v10764_v46 = vpop.f32.mrf.mxu1  ;;  %v5042_v45 = vadd.f32 %v5041_v38, %v5040_v53  ;;  %v5049_v54 = vsel %vm528_vm1, %v10772_v39, 0.0  ;;  %v5154_v38 = vmul.f32 %v10780_v19, %v10780_v19  ;;  %v10804_v16 = vadd.f32 %v12616_v59, %v4687_v11 }
 0x6f8   :  { %v5237_v34 = vadd.f32 %v5236_v56, %v5235_v57  ;;  %v12618_v57 = vld [vmem:[#allocation61_spill] sm:$0xff]  ;;  %v10818_v43 = vadd.f32 %v10392_v63, %v4690_v52 }
 0x6f9   :  { %v5044_v62 = vadd.f32 %v5043_v5, %v5042_v45  ;;  %v4693_v53 = vadd.f32 %v12618_v57, %v12617_v9  ;;  %v5155_v5 = vmul.f32 %v10787_v42, %v10787_v42  ;;  %v5051_v45 = vsel %vm528_vm1, %v10780_v19, 0.0  ;;  %v12625_v57 = vld [vmem:[#allocation74_spill] sm:$0xff] }
 0x6fa   :  { %v5239_v48 = vadd.f32 %v5238_v50, %v5237_v34  ;;  %v5246_v34 = vsel %vm528_vm1, %v5153_v4, 0.0  ;;  %v5156_v4 = vmul.f32 %v10804_v16, %v10804_v16 }
 0x6fb   :  { %v5046_v21 = vadd.f32 %v5045_v12, %v5044_v62  ;;  %v12620_v12 = vld [vmem:[#allocation62_spill] sm:$0xff]  ;;  %v10830_v59 = vadd.f32 %v10408_v3, %v4693_v53  ;;  %v5250_v9 = vsel %vm528_vm1, %v5155_v5, 0.0 }
 0x6fc   :  { %v5241_v23 = vadd.f32 %v5240_v47, %v5239_v48  ;;  %v12619_v47 = vld [vmem:[#allocation70_spill] sm:$0xff] }
 0x6fd   :  { %v5048_v50 = vadd.f32 %v5047_v17, %v5046_v21  ;;  %v4696_v11 = vadd.f32 %v12620_v12, %v12619_v47  ;;  %v12622_v17 = vld [vmem:[#allocation63_spill] sm:$0xff]  ;;  %v5053_v21 = vsel %vm528_vm1, %v10787_v42, 0.0  ;;  %12623 = vst [vmem:[#allocation18_spill] sm:$0xff] %v10830_v59  ;;  %v10842_v47 = vpop.f32.mrf.mxu3  ;;  %v5057_v12 = vsel %vm528_vm1, %v10818_v43, 0.0 }
 0x6fe   :  { %v5243_v37 = vadd.f32 %v5242_v28, %v5241_v23  ;;  %v12621_v28 = vld [vmem:[#allocation72_spill] sm:$0xff]  ;;  %v5248_v23 = vsel %vm528_vm1, %v5154_v38, 0.0 }
 0x6ff   :  { %v10797_v56 = vpop.f32.mrf.mxu2  ;;  %v10812_v29 = vpop.f32.mrf.mxu1  ;;  %v5050_v62 = vadd.f32 %v5049_v54, %v5048_v50  ;;  %v4699_v58 = vadd.f32 %v12622_v17, %v12621_v28  ;;  %v5157_v54 = vmul.f32 %v10818_v43, %v10818_v43  ;;  %v10838_v38 = vadd.f32 %v10446_v20, %v4696_v11  ;;  %v12628_v11 = vld [vmem:[#allocation76_spill] sm:$0xff] }
 0x700   :  { %v5245_v48 = vadd.f32 %v5244_v49, %v5243_v37  ;;  %v5055_v49 = vsel %vm528_vm1, %v10804_v16, 0.0  ;;  %v12626_v37 = vld [vmem:[#allocation64_spill] sm:$0xff]  ;;  %v5158_v20 = vmul.f32 %v10830_v59, %v10830_v59 }
 0x701   :  { %v5052_v52 = vadd.f32 %v5051_v45, %v5050_v62  ;;  %12624 = vst [vmem:[#allocation24_spill] sm:$0xff] %v10838_v38  ;;  %v4702_v50 = vadd.f32 %v12626_v37, %v12625_v57  ;;  %v5252_v45 = vsel %vm528_vm1, %v5156_v4, 0.0  ;;  %v5059_v4 = vsel %vm528_vm1, %v10830_v59, 0.0  ;;  %v4925_v37 = vpop.f32.mrf.mxu0 }
 0x702   :  { %v5247_v63 = vadd.f32 %v5246_v34, %v5245_v48  ;;  %v10845_v34 = vadd.f32 %v10507_v33, %v4699_v58  ;;  %v12629_v48 = vld [vmem:[#allocation65_spill] sm:$0xff]  ;;  %v5254_v58 = vsel %vm528_vm1, %v5157_v54, 0.0  ;;  %v5061_v54 = vsel %vm528_vm1, %v10838_v38, 0.0 }
 0x703   :  { %v5054_v53 = vadd.f32 %v5053_v21, %v5052_v52  ;;  %v4705_v62 = vadd.f32 %v12629_v48, %v12628_v11  ;;  %v12631_v21 = vld [vmem:[#allocation66_spill] sm:$0xff]  ;;  %v5159_v52 = vmul.f32 %v10838_v38, %v10838_v38  ;;  %v10866_v57 = vadd.f32 %v10569_v22, %v4702_v50  ;;  %v12634_v48 = vld [vmem:[#allocation80_spill] sm:$0xff] }
 0x704   :  { %v5249_v3 = vadd.f32 %v5248_v23, %v5247_v63  ;;  %12627 = vst [vmem:[#allocation47_spill] sm:$0xff] %v10845_v34  ;;  %v12630_v23 = vld [vmem:[#allocation78_spill] sm:$0xff] }
 0x705   :  { %v5056_v17 = vadd.f32 %v5055_v49, %v5054_v53  ;;  %v4708_v63 = vadd.f32 %v12631_v21, %v12630_v23  ;;  %12632 = vst [vmem:[#allocation48_spill] sm:$0xff] %v10866_v57  ;;  %v5160_v49 = vmul.f32 %v10845_v34, %v10845_v34  ;;  %v10874_v53 = vadd.f32 %v10629_v61, %v4705_v62  ;;  %v12635_v23 = vld [vmem:[#allocation67_spill] sm:$0xff] }
 0x706   :  { %v5251_v28 = vadd.f32 %v5250_v9, %v5249_v3  ;;  %v5256_v3 = vsel %vm528_vm1, %v5158_v20, 0.0  ;;  %v4711_v21 = vadd.f32 %v12635_v23, %v12634_v48  ;;  %v5161_v20 = vmul.f32 %v10866_v57, %v10866_v57  ;;  %v10900_v23 = vpop.f32.mrf.mxu3 }
 0x707   :  { %v10847_v5 = vpop.f32.mrf.mxu2  ;;  %v10858_v33 = vpop.f32.mrf.mxu1  ;;  %v5058_v9 = vadd.f32 %v5057_v12, %v5056_v17  ;;  %12633 = vst [vmem:[#allocation26_spill] sm:$0xff] %v10874_v53  ;;  %v10879_v50 = vadd.f32 %v10687_v35, %v4708_v63  ;;  %v5063_v12 = vsel %vm528_vm1, %v10845_v34, 0.0  ;;  %v12638_v17 = vld [vmem:[#allocation69_spill] sm:$0xff]  ;;  %v5260_v48 = vsel %vm528_vm1, %v5160_v49, 0.0 }
 0x708   :  { %v5253_v11 = vadd.f32 %v5252_v45, %v5251_v28  ;;  %v5258_v45 = vsel %vm528_vm1, %v5159_v52, 0.0  ;;  %v12637_v28 = vld [vmem:[#allocation82_spill] sm:$0xff]  ;;  %v5065_v35 = vsel %vm528_vm1, %v10866_v57, 0.0  ;;  %v5162_v63 = vmul.f32 %v10874_v53, %v10874_v53  ;;  %v12640_v52 = vld [vmem:[#allocation84_spill] sm:$0xff] }
 0x709   :  { %v5060_v22 = vadd.f32 %v5059_v4, %v5058_v9  ;;  %12636 = vst [vmem:[#allocation10_spill] sm:$0xff] %v10879_v50  ;;  %v4714_v61 = vadd.f32 %v12638_v17, %v12637_v28  ;;  %v10896_v4 = vadd.f32 %v10745_v1, %v4711_v21  ;;  %v5163_v49 = vmul.f32 %v10879_v50, %v10879_v50  ;;  %v12643_v21 = vld [vmem:[#allocation88_spill] sm:$0xff]  ;;  %v12644_v17 = vld [vmem:[#allocation73_spill] sm:$0xff] }
 0x70a   :  { %v5255_v59 = vadd.f32 %v5254_v58, %v5253_v11  ;;  %v12641_v11 = vld [vmem:[#allocation71_spill] sm:$0xff]  ;;  %v5067_v28 = vsel %vm528_vm1, %v10874_v53, 0.0 }
 0x70b   :  { %v5062_v38 = vadd.f32 %v5061_v54, %v5060_v22  ;;  %12639 = vst [vmem:[#allocation35_spill] sm:$0xff] %v10896_v4  ;;  %v4717_v9 = vadd.f32 %v12641_v11, %v12640_v52  ;;  %v5262_v22 = vsel %vm528_vm1, %v5161_v20, 0.0  ;;  %v10910_v1 = vadd.f32 %v10808_v51, %v4714_v61 }
 0x70c   :  { %v5257_v62 = vadd.f32 %v5256_v3, %v5255_v59  ;;  %v4720_v52 = vadd.f32 %v12644_v17, %v12643_v21  ;;  %v5266_v51 = vsel %vm528_vm1, %v5163_v49, 0.0  ;;  %v5071_v61 = vsel %vm528_vm1, %v10896_v4, 0.0 }
 0x70d   :  { %v5064_v3 = vadd.f32 %v5063_v12, %v5062_v38  ;;  %12642 = vst [vmem:[#allocation29_spill] sm:$0xff] %v10910_v1  ;;  %v5264_v38 = vsel %vm528_vm1, %v5162_v63, 0.0  ;;  %v5164_v12 = vmul.f32 %v10896_v4, %v10896_v4  ;;  %v10919_v20 = vadd.f32 %v4925_v37, %v4717_v9  ;;  %v12647_v63 = vld [vmem:[#allocation91_spill] sm:$0xff] }
 0x70e   :  { %v5259_v59 = vadd.f32 %v5258_v45, %v5257_v62  ;;  %v5069_v45 = vsel %vm528_vm1, %v10879_v50, 0.0  ;;  %v4928_v62 = vpop.f32.mrf.mxu0  ;;  %v12657_v50 = vld [vmem:[#allocation89_spill] sm:$0xff] }
 0x70f   :  { %v5066_v57 = vadd.f32 %v5065_v35, %v5064_v3  ;;  %12645 = vst [vmem:[#allocation12_spill] sm:$0xff] %v10919_v20  ;;  %v10926_v35 = vadd.f32 %v4928_v62, %v4720_v52  ;;  %v5268_v9 = vsel %vm528_vm1, %v5164_v12, 0.0  ;;  %v5166_v49 = vmul.f32 %v10919_v20, %v10919_v20  ;;  %v10946_v12 = vpop.f32.mrf.mxu3 }
 0x710   :  { %v5261_v11 = vadd.f32 %v5260_v48, %v5259_v59  ;;  %v5165_v48 = vmul.f32 %v10910_v1, %v10910_v1  ;;  %v12648_v59 = vld [vmem:[#allocation75_spill] sm:$0xff] }
 0x711   :  { %v5068_v34 = vadd.f32 %v5067_v28, %v5066_v57  ;;  %12646 = vst [vmem:[#allocation36_spill] sm:$0xff] %v10926_v35  ;;  %v4723_v3 = vadd.f32 %v12648_v59, %v12647_v63  ;;  %v5073_v57 = vsel %vm528_vm1, %v10910_v1, 0.0  ;;  %v12652_v1 = vld [vmem:[#allocation83_spill] sm:$0xff] }
 0x712   :  { %v10889_v58 = vpop.f32.mrf.mxu2  ;;  %v5263_v53 = vadd.f32 %v5262_v22, %v5261_v11  ;;  %v5270_v62 = vsel %vm528_vm1, %v5165_v48, 0.0  ;;  %v12650_v48 = vld [vmem:[#allocation81_spill] sm:$0xff] }
 0x713   :  { %v5070_v17 = vadd.f32 %v5069_v45, %v5068_v34  ;;  %v5075_v34 = vsel %vm528_vm1, %v10919_v20, 0.0  ;;  %v12651_v20 = vld [vmem:[#allocation42_spill] sm:$0xff] }
 0x714   :  { %v10904_v54 = vpop.f32.mrf.mxu1  ;;  %v5265_v21 = vadd.f32 %v5264_v38, %v5263_v53  ;;  %v5167_v53 = vmul.f32 %v10926_v35, %v10926_v35  ;;  %v12649_v38 = vld [vmem:[#allocation79_spill] sm:$0xff] }
 0x715   :  { %v5072_v11 = vadd.f32 %v5071_v61, %v5070_v17  ;;  %v4729_v45 = vadd.f32 %v12649_v38, %v10430_v24  ;;  %v5077_v61 = vsel %vm528_vm1, %v10926_v35, 0.0  ;;  %v4735_v24 = vadd.f32 %v12652_v1, %v12651_v20 }
 0x716   :  { %v5267_v28 = vadd.f32 %v5266_v51, %v5265_v21  ;;  %v5272_v51 = vsel %vm528_vm1, %v5166_v49, 0.0  ;;  %v5274_v38 = vsel %vm528_vm1, %v5167_v53, 0.0  ;;  %v12655_v49 = vld [vmem:[#allocation85_spill] sm:$0xff] }
 0x717   :  { %v5074_v59 = vadd.f32 %v5073_v57, %v5072_v11  ;;  %v12654_v57 = vld [vmem:[#allocation77_spill] sm:$0xff]  ;;  %v10961_v11 = vadd.f32 %v12655_v49, %v4729_v45 }
 0x718   :  { %v5269_v63 = vadd.f32 %v5268_v9, %v5267_v28  ;;  %v12653_v9 = vld [vmem:[#allocation94_spill] sm:$0xff] }
 0x719   :  { %v4726_v28 = vadd.f32 %v12654_v57, %v12653_v9  ;;  %12656 = vst [vmem:[#allocation51_spill] sm:$0xff] %v10961_v11 }
 0x71a   :  { %v4931_v37 = vpop.f32.mrf.mxu2  ;;  %v5271_v17 = vadd.f32 %v5270_v62, %v5269_v63  ;;  %v12659_v63 = vld [vmem:[#allocation87_spill] sm:$0xff] }
 0x71b   :  { %v10935_v22 = vadd.f32 %v4931_v37, %v4723_v3  ;;  %v4732_v3 = vadd.f32 %v12650_v48, %v10474_v60  ;;  %v5076_v37 = vadd.f32 %v5075_v34, %v5074_v59  ;;  %v12658_v34 = vld [vmem:[#allocation44_spill] sm:$0xff] }
 0x71c   :  { %v10937_v52 = vpop.f32.mrf.mxu1  ;;  %v5273_v60 = vadd.f32 %v5272_v51, %v5271_v17  ;;  %v4738_v1 = vadd.f32 %v12659_v63, %v12658_v34  ;;  %v12661_v59 = vld [vmem:[#allocation92_spill] sm:$0xff]  ;;  %v5170_v51 = vmul.f32 %v10961_v11, %v10961_v11 }
 0x71d   :  { %v5168_v21 = vmul.f32 %v10935_v22, %v10935_v22  ;;  %v5079_v35 = vsel %vm528_vm1, %v10935_v22, 0.0  ;;  %v5078_v48 = vadd.f32 %v5077_v61, %v5076_v37  ;;  %v10966_v62 = vadd.f32 %v12657_v50, %v4732_v3  ;;  %v12662_v61 = vld [vmem:[#allocation19_spill] sm:$0xff]  ;;  %v12663_v50 = vld [vmem:[#allocation90_spill] sm:$0xff] }
 0x71e   :  { %v10974_v9 = vadd.f32 %v12661_v59, %v4735_v24  ;;  %v5275_v57 = vadd.f32 %v5274_v38, %v5273_v60  ;;  %v4741_v3 = vadd.f32 %v12663_v50, %v12662_v61  ;;  %v5537_v24 = vld [vmem:[%s12237_s3 + $0x8] sm:$0xff]  ;;  %v10999_v59 = vpop.f32.mrf.mxu3  ;;  %v5280_v61 = vsel %vm528_vm1, %v5170_v51, 0.0 }
 0x71f   :  { %v5276_v20 = vsel %vm528_vm1, %v5168_v21, 0.0  ;;  %v5080_v45 = vadd.f32 %v5079_v35, %v5078_v48  ;;  %v5083_v21 = vsel %vm528_vm1, %v10961_v11, 0.0  ;;  %v5171_v38 = vmul.f32 %v10966_v62, %v10966_v62  ;;  %v12665_v48 = vld [vmem:[#allocation93_spill] sm:$0xff]  ;;  %5746 = vmatpush.msrb.mxu3 %v5537_v24 }
 0x720   :  { %v5277_v37 = vadd.f32 %v5276_v20, %v5275_v57  ;;  %v4744_v34 = vadd.f32 %v12665_v48, %v10667_v32  ;;  %v5172_v20 = vmul.f32 %v10974_v9, %v10974_v9  ;;  %v5085_v50 = vsel %vm528_vm1, %v10966_v62, 0.0  ;;  %v12667_v32 = vld [vmem:[#allocation95_spill] sm:$0xff] }
 0x722   :  { %v4934_v4 = vpop.f32.mrf.mxu2 }
 0x723   :  { %v10971_v53 = vadd.f32 %v4934_v4, %v4726_v28  ;;  %v12664_v28 = vld [vmem:[#allocation96_spill] sm:$0xff] }
 0x724   :  { %v10976_v49 = vpop.f32.mrf.mxu1  ;;  %v10994_v60 = vadd.f32 %v12664_v28, %v4738_v1  ;;  %v12666_v1 = vld [vmem:[#allocation98_spill] sm:$0xff]  ;;  %v4747_v28 = vadd.f32 %v12667_v32, %v10713_v14 }
 0x725   :  { %12660 = vst [vmem:[#allocation49_spill] sm:$0xff] %v10971_v53  ;;  %v5081_v17 = vsel %vm528_vm1, %v10971_v53, 0.0  ;;  %v5169_v4 = vmul.f32 %v10971_v53, %v10971_v53  ;;  %v5282_v53 = vsel %vm528_vm1, %v5171_v38, 0.0 }
 0x726   :  { %v5082_v35 = vadd.f32 %v5081_v17, %v5080_v45  ;;  %v11007_v17 = vadd.f32 %v12666_v1, %v4741_v3  ;;  %v5173_v51 = vmul.f32 %v10994_v60, %v10994_v60  ;;  %v5284_v3 = vsel %vm528_vm1, %v5172_v20, 0.0 }
 0x727   :  { %v5278_v63 = vsel %vm528_vm1, %v5169_v4, 0.0  ;;  %v12668_v4 = vld [vmem:[#allocation97_spill] sm:$0xff] }
 0x728   :  { %v5084_v45 = vadd.f32 %v5083_v21, %v5082_v35  ;;  %v5279_v57 = vadd.f32 %v5278_v63, %v5277_v37  ;;  %v4750_v24 = vadd.f32 %v12668_v4, %v10764_v46  ;;  %v5087_v21 = vsel %vm528_vm1, %v10974_v9, 0.0  ;;  %v12669_v37 = vld [vmem:[#allocation43_spill] sm:$0xff] }
 0x729   :  { %v11019_v35 = vadd.f32 %v12669_v37, %v4744_v34  ;;  %v5089_v46 = vsel %vm528_vm1, %v10994_v60, 0.0  ;;  %v5174_v38 = vmul.f32 %v11007_v17, %v11007_v17 }
 0x72a   :  { %v5086_v48 = vadd.f32 %v5085_v50, %v5084_v45  ;;  %v5281_v11 = vadd.f32 %v5280_v61, %v5279_v57  ;;  %v12670_v45 = vld [vmem:[#allocation46_spill] sm:$0xff]  ;;  %v12671_v61 = vld [vmem:[#allocation25_spill] sm:$0xff]  ;;  %v11032_v34 = vadd.f32 %v10663_v0, %v4750_v24 }
 0x72b   :  { %v11027_v57 = vadd.f32 %v12670_v45, %v4747_v28  ;;  %v4753_v50 = vadd.f32 %v12671_v61, %v10812_v29  ;;  %v5175_v4 = vmul.f32 %v11019_v35, %v11019_v35  ;;  %v5288_v0 = vsel %vm528_vm1, %v5174_v38, 0.0 }
 0x72c   :  { %v5088_v63 = vadd.f32 %v5087_v21, %v5086_v48  ;;  %v5283_v14 = vadd.f32 %v5282_v53, %v5281_v11  ;;  %v4558_v1 = vpop.f32.mrf.mxu1  ;;  %v5286_v11 = vsel %vm528_vm1, %v5173_v51, 0.0  ;;  %v5091_v53 = vsel %vm528_vm1, %v11007_v17, 0.0  ;;  %v12672_v48 = vld [vmem:[#allocation17_spill] sm:$0xff]  ;;  %v12673_v21 = vld [vmem:[#allocation34_spill] sm:$0xff] }
 0x72d   :  { %v4756_v28 = vadd.f32 %v12672_v48, %v10858_v33  ;;  %v4759_v37 = vadd.f32 %v12673_v21, %v10904_v54  ;;  %v5093_v24 = vsel %vm528_vm1, %v11019_v35, 0.0  ;;  %v5176_v51 = vmul.f32 %v11027_v57, %v11027_v57 }
 0x72e   :  { %v5090_v32 = vadd.f32 %v5089_v46, %v5088_v63  ;;  %v5285_v20 = vadd.f32 %v5284_v3, %v5283_v14  ;;  %v11049_v3 = vadd.f32 %v10723_v26, %v4753_v50  ;;  %v4979_v63 = vpop.f32.mrf.mxu3  ;;  %v5177_v33 = vmul.f32 %v11032_v34, %v11032_v34 }
 0x72f   :  { %v5290_v54 = vsel %vm528_vm1, %v5175_v4, 0.0  ;;  %v5095_v38 = vsel %vm528_vm1, %v11027_v57, 0.0  ;;  %v11057_v61 = vadd.f32 %v10784_v27, %v4756_v28  ;;  %v11062_v26 = vadd.f32 %v10842_v47, %v4759_v37 }
 0x730   :  { %v5092_v29 = vadd.f32 %v5091_v53, %v5090_v32  ;;  %v5287_v45 = vadd.f32 %v5286_v11, %v5285_v20  ;;  %v4762_v32 = vadd.f32 %v10654_v13, %v10937_v52  ;;  %v5292_v53 = vsel %vm528_vm1, %v5176_v51, 0.0 }
 0x731   :  { %v5097_v4 = vsel %vm528_vm1, %v11032_v34, 0.0  ;;  %v5178_v48 = vmul.f32 %v11049_v3, %v11049_v3  ;;  %v4765_v27 = vadd.f32 %v10700_v18, %v10976_v49  ;;  %v5294_v28 = vsel %vm528_vm1, %v5177_v33, 0.0 }
 0x732   :  { %v5094_v14 = vadd.f32 %v5093_v24, %v5092_v29  ;;  %v5289_v46 = vadd.f32 %v5288_v0, %v5287_v45  ;;  %v5099_v47 = vsel %vm528_vm1, %v11049_v3, 0.0  ;;  %v5179_v21 = vmul.f32 %v11057_v61, %v11057_v61 }
 0x733   :  { %v11077_v37 = vadd.f32 %v10900_v23, %v4762_v32  ;;  %v4768_v29 = vadd.f32 %v10750_v44, %v4558_v1  ;;  %v5180_v45 = vmul.f32 %v11062_v26, %v11062_v26  ;;  %v5296_v49 = vsel %vm528_vm1, %v5178_v48, 0.0 }
 0x734   :  { %v5291_v50 = vadd.f32 %v5290_v54, %v5289_v46  ;;  %v5096_v20 = vadd.f32 %v5095_v38, %v5094_v14  ;;  %v4561_v11 = vpop.f32.mrf.mxu1  ;;  %v5101_v24 = vsel %vm528_vm1, %v11057_v61, 0.0  ;;  %v11086_v51 = vadd.f32 %v10946_v12, %v4765_v27 }
 0x735   :  { %v4771_v33 = vadd.f32 %v10797_v56, %v4561_v11  ;;  %v5298_v44 = vsel %vm528_vm1, %v5179_v21, 0.0  ;;  %v5103_v1 = vsel %vm528_vm1, %v11062_v26, 0.0  ;;  %v5181_v54 = vmul.f32 %v11077_v37, %v11077_v37 }
 0x736   :  { %v5098_v13 = vadd.f32 %v5097_v4, %v5096_v20  ;;  %v5293_v52 = vadd.f32 %v5292_v53, %v5291_v50  ;;  %v4982_v46 = vpop.f32.mrf.mxu3  ;;  %v11095_v38 = vadd.f32 %v10999_v59, %v4768_v29  ;;  %v5300_v32 = vsel %vm528_vm1, %v5180_v45, 0.0 }
 0x737   :  { %v5105_v56 = vsel %vm528_vm1, %v11077_v37, 0.0  ;;  %v5182_v11 = vmul.f32 %v11086_v51, %v11086_v51  ;;  %v11102_v53 = vadd.f32 %v4979_v63, %v4771_v33  ;;  %v5302_v59 = vsel %vm528_vm1, %v5181_v54, 0.0 }
 0x738   :  { %v5100_v0 = vadd.f32 %v5099_v47, %v5098_v13  ;;  %v5295_v18 = vadd.f32 %v5294_v28, %v5293_v52  ;;  %v5107_v28 = vsel %vm528_vm1, %v11086_v51, 0.0  ;;  %v5183_v13 = vmul.f32 %v11095_v38, %v11095_v38 }
 0x739   :  { %v5304_v21 = vsel %vm528_vm1, %v5182_v11, 0.0  ;;  %v5109_v63 = vsel %vm528_vm1, %v11095_v38, 0.0 }
 0x73a   :  { %v5102_v14 = vadd.f32 %v5101_v24, %v5100_v0  ;;  %v5297_v23 = vadd.f32 %v5296_v49, %v5295_v18  ;;  %v5306_v18 = vsel %vm528_vm1, %v5183_v13, 0.0  ;;  %v5111_v49 = vsel %vm528_vm1, %v11102_v53, 0.0 }
 0x73c   :  { %v5104_v12 = vadd.f32 %v5103_v1, %v5102_v14  ;;  %v5299_v50 = vadd.f32 %v5298_v44, %v5297_v23  ;;  %v4564_v20 = vpop.f32.mrf.mxu1 }
 0x73d   :  { %v4774_v4 = vadd.f32 %v10847_v5, %v4564_v20  ;;  %v5184_v5 = vmul.f32 %v11102_v53, %v11102_v53 }
 0x73e   :  { %v5106_v48 = vadd.f32 %v5105_v56, %v5104_v12  ;;  %v5301_v27 = vadd.f32 %v5300_v32, %v5299_v50  ;;  %v4985_v23 = vpop.f32.mrf.mxu3 }
 0x73f   :  { %v11115_v29 = vadd.f32 %v4982_v46, %v4774_v4  ;;  %v5308_v44 = vsel %vm528_vm1, %v5184_v5, 0.0 }
 0x740   :  { %v5108_v52 = vadd.f32 %v5107_v28, %v5106_v48  ;;  %v5303_v47 = vadd.f32 %v5302_v59, %v5301_v27 }
 0x741   :  { %v5185_v1 = vmul.f32 %v11115_v29, %v11115_v29  ;;  %v5113_v32 = vsel %vm528_vm1, %v11115_v29, 0.0 }
 0x742   :  { %v5305_v45 = vadd.f32 %v5304_v21, %v5303_v47  ;;  %v5110_v0 = vadd.f32 %v5109_v63, %v5108_v52 }
 0x743   :  { %v5310_v20 = vsel %vm528_vm1, %v5185_v1, 0.0  ;;  %v5536_v1 = vld [vmem:[%s12237_s3] sm:$0xff] }
 0x744   :  { %v5307_v24 = vadd.f32 %v5306_v18, %v5305_v45  ;;  %v5112_v33 = vadd.f32 %v5111_v49, %v5110_v0  ;;  %v4567_v14 = vpop.f32.mrf.mxu1  ;;  %5747 = vmatpush.msrb.mxu3 %v5536_v1 }
 0x745   :  { %v4777_v54 = vadd.f32 %v10889_v58, %v4567_v14 }
 0x746   :  { %v5309_v46 = vadd.f32 %v5308_v44, %v5307_v24  ;;  %v5114_v50 = vadd.f32 %v5113_v32, %v5112_v33 }
 0x747   :  { %v4986_v12 = vadd.f32 %v4985_v23, %v4777_v54 }
 0x748   :  { %v5311_v4 = vadd.f32 %v5310_v20, %v5309_v46 }
 0x749   :  { %v5115_v56 = vsel %vm528_vm1, %v4986_v12, 0.0  ;;  %v5186_v11 = vmul.f32 %v4986_v12, %v4986_v12 }
 0x74a   :  { %v5116_v48 = vadd.f32 %v5115_v56, %v5114_v50  ;;  %v4988_v56 = vld [vmem:[%s12240_s6] sm:$0x1] }
 0x74b   :  { %v5312_v27 = vsel %vm528_vm1, %v5186_v11, 0.0 }
 0x74c   :  { %v5117_v59 = vrot.slane %v5116_v48, 4  ;;  %v5313_v28 = vadd.f32 %v5312_v27, %v5311_v4 }
 0x74e   :  { %v5118_v13 = vadd.f32 %v5117_v59, %v5116_v48  ;;  %v5314_v52 = vrot.slane %v5313_v28, 4 }
 0x750   :  { %v5119_v58 = vrot.slane %v5118_v13, 2  ;;  %v5315_v47 = vadd.f32 %v5314_v52, %v5313_v28 }
 0x752   :  { %v5120_v21 = vadd.f32 %v5119_v58, %v5118_v13  ;;  %v5316_v63 = vrot.slane %v5315_v47, 2  ;;  %v4989_v13 = vld [vmem:[%s12241_s7] sm:$0x1] }
 0x754   :  { %v5121_v5 = vrot.slane %v5120_v21, 1  ;;  %v5317_v45 = vadd.f32 %v5316_v63, %v5315_v47  ;;  %v12674_v47 = vld [vmem:[#allocation21_spill] sm:$0xff] }
 0x756   :  { %v5122_v0 = vadd.f32 %v5121_v5, %v5120_v21  ;;  %v5318_v18 = vrot.slane %v5317_v45, 1 }
 0x758   :  { %v5319_v49 = vadd.f32 %v5318_v18, %v5317_v45  ;;  %v5320_v24 = vmul.f32 0.001953125, %v5122_v0  ;;  %v12675_v45 = vld [vmem:[#allocation22_spill] sm:$0xff] }
 0x75a   :  { %v5321_v33 = vmul.f32 0.001953125, %v5319_v49  ;;  %v5322_v14 = vmul.f32 %v5320_v24, %v5320_v24  ;;  %v12676_v49 = vld [vmem:[#allocation23_spill] sm:$0xff] }
 0x75c   :  { %v5323_v23 = vsub.f32 %v5321_v33, %v5322_v14 }
 0x75e   :  { %v5324_v44 = vadd.f32 1e-05, %v5323_v23  ;;  %v12677_v23 = vld [vmem:[#allocation27_spill] sm:$0xff] }
 0x760   :  { %6862 = vrsqrt.f32 %v5324_v44  ;;  %vm5331_vm10 = vweird.f32 %v5324_v44 }
 0x766   :  { %v6863_v54 = vpop.eup %6862 }
 0x767   :  { %v5326_v46 = vmul.f32 %v6863_v54, %v5324_v44  ;;  %vm5332_vm9 = vweird.f32 %v6863_v54 }
 0x768   :  { %vm5333_vm11 = vmor %vm5331_vm10, %vm5332_vm9 }
 0x769   :  { %v5327_v32 = vmul.f32 %v6863_v54, %v5326_v46  ;;  %v12678_v46 = vld [vmem:[#allocation30_spill] sm:$0xff] }
 0x76b   :  { %v5328_v50 = vmul.f32 0.5, %v5327_v32 }
 0x76d   :  { %v5329_v20 = vsub.f32 1.5, %v5328_v50 }
 0x76f   :  { %v5330_v11 = vmul.f32 %v6863_v54, %v5329_v20 }
 0x771   :  { %v5334_v4 = vsel %vm5333_vm11, %v6863_v54, %v5330_v11 }
 0x772   :  { %v5335_v48 = vmul.f32 %v5334_v4, %v4988_v56  ;;  %v12679_v56 = vld [vmem:[#allocation33_spill] sm:$0xff] }
 0x774   :  { %v11135_v27 = vperm.slane %v5335_v48, 0  ;;  %v5336_v28 = vmul.f32 %v5335_v48, %v5320_v24 }
 0x776   :  { %v11138_v59 = vmul.f32 %v11135_v27, %v4986_v12  ;;  %v5337_v52 = vsub.f32 %v4989_v13, %v5336_v28  ;;  %v5341_v21 = vmul.f32 %v11135_v27, %v12674_v47  ;;  %v5342_v12 = vmul.f32 %v11135_v27, %v12675_v45  ;;  %v12680_v28 = vld [vmem:[#allocation20_spill] sm:$0xff] }
 0x777   :  { %v5343_v24 = vmul.f32 %v11135_v27, %v12676_v49  ;;  %v5344_v44 = vmul.f32 %v11135_v27, %v12677_v23  ;;  %v5345_v32 = vmul.f32 %v11135_v27, %v12678_v46  ;;  %v5346_v11 = vmul.f32 %v11135_v27, %v12679_v56 }
 0x778   :  { %v11143_v58 = vperm.slane %v5337_v52, 0  ;;  %v5347_v13 = vmul.f32 %v11135_v27, %v12680_v28 }
 0x77a   :  { %v5408_v63 = vadd.f32 %v11143_v58, %v5341_v21  ;;  %v5409_v0 = vadd.f32 %v11143_v58, %v5342_v12  ;;  %v5410_v33 = vadd.f32 %v11143_v58, %v5343_v24  ;;  %v5411_v1 = vadd.f32 %v11143_v58, %v5344_v44  ;;  %v12681_v21 = vld [vmem:[#allocation37_spill] sm:$0xff]  ;;  %v12683_v24 = vld [vmem:[#allocation14_spill] sm:$0xff]  ;;  %v12684_v44 = vld [vmem:[#allocation28_spill] sm:$0xff] }
 0x77b   :  { %v5412_v50 = vadd.f32 %v11143_v58, %v5345_v32  ;;  %v5413_v4 = vadd.f32 %v11143_v58, %v5346_v11  ;;  %v5414_v52 = vadd.f32 %v11143_v58, %v5347_v13  ;;  %v12682_v12 = vld [vmem:[#allocation41_spill] sm:$0xff]  ;;  %v12685_v32 = vld [vmem:[#allocation16_spill] sm:$0xff]  ;;  %v12686_v11 = vld [vmem:[#allocation11_spill] sm:$0xff] }
 0x77c   :  { %v5472_v5 = vmax.f32 %v5408_v63, 0.0  ;;  %v5473_v18 = vmax.f32 %v5409_v0, 0.0  ;;  %v5474_v14 = vmax.f32 %v5410_v33, 0.0  ;;  %v5475_v54 = vmax.f32 %v5411_v1, 0.0  ;;  %v12687_v13 = vld [vmem:[#allocation31_spill] sm:$0xff] }
 0x77d   :  { %v5476_v20 = vmax.f32 %v5412_v50, 0.0  ;;  %v5477_v48 = vmax.f32 %v5413_v4, 0.0  ;;  %v5478_v47 = vmax.f32 %v5414_v52, 0.0  ;;  %v5348_v63 = vmul.f32 %v11135_v27, %v12681_v21 }
 0x77e   :  { %6764 = vmatmul.msk.f32.vlgmr.msrb.gmra.mxu3 %vm528_vm1, %v5472_v5  ;;  %v5349_v0 = vmul.f32 %v11135_v27, %v12682_v12  ;;  %v5350_v33 = vmul.f32 %v11135_v27, %v12683_v24  ;;  %v5351_v1 = vmul.f32 %v11135_v27, %v12684_v44  ;;  %v5352_v50 = vmul.f32 %v11135_v27, %v12685_v32 }
 0x77f   :  { %v5415_v5 = vadd.f32 %v11143_v58, %v5348_v63  ;;  %v5353_v4 = vmul.f32 %v11135_v27, %v12686_v11  ;;  %v5354_v52 = vmul.f32 %v11135_v27, %v12687_v13  ;;  %v12688_v63 = vld [vmem:[#allocation45_spill] sm:$0xff] }
 0x781   :  { %v5479_v45 = vmax.f32 %v5415_v5, 0.0  ;;  %v5355_v5 = vmul.f32 %v11135_v27, %v12688_v63 }
 0x786   :  { %6765 = vmatmul.msk.f32.gmra.mxu3 %vm528_vm1, %v5473_v18  ;;  %v5416_v18 = vadd.f32 %v11143_v58, %v5349_v0  ;;  %v12689_v0 = vld [vmem:[#allocation32_spill] sm:$0xff] }
 0x788   :  { %v5480_v49 = vmax.f32 %v5416_v18, 0.0  ;;  %v5356_v18 = vmul.f32 %v11135_v27, %v12689_v0 }
 0x78e   :  { %6766 = vmatmul.msk.f32.gmra.mxu3 %vm528_vm1, %v5474_v14  ;;  %v5417_v14 = vadd.f32 %v11143_v58, %v5350_v33  ;;  %v12690_v33 = vld [vmem:[#allocation15_spill] sm:$0xff] }
 0x790   :  { %v5481_v23 = vmax.f32 %v5417_v14, 0.0  ;;  %v5357_v14 = vmul.f32 %v11135_v27, %v12690_v33 }
 0x796   :  { %6767 = vmatmul.msk.f32.gmra.mxu3 %vm528_vm1, %v5475_v54  ;;  %v5418_v54 = vadd.f32 %v11143_v58, %v5351_v1  ;;  %v5358_v1 = vmul.f32 %v11135_v27, %v10613_v41  ;;  %v5360_v41 = vmul.f32 %v11135_v27, %v10639_v30  ;;  %v5362_v30 = vmul.f32 %v11135_v27, %v10652_v55 }
 0x797   :  { %v5364_v55 = vmul.f32 %v11135_v27, %v10683_v10  ;;  %v5366_v10 = vmul.f32 %v11135_v27, %v10707_v7  ;;  %v5368_v7 = vmul.f32 %v11135_v27, %v10733_v31  ;;  %v5370_v31 = vmul.f32 %v11135_v27, %v10748_v15 }
 0x798   :  { %v5482_v46 = vmax.f32 %v5418_v54, 0.0  ;;  %v5425_v54 = vadd.f32 %v11143_v58, %v5358_v1  ;;  %v5372_v15 = vmul.f32 %v11135_v27, %v10780_v19  ;;  %v5374_v19 = vmul.f32 %v11135_v27, %v10804_v16 }
 0x79a   :  { %v5489_v32 = vmax.f32 %v5425_v54, 0.0 }
 0x79e   :  { %6768 = vmatmul.msk.f32.gmra.mxu3 %vm528_vm1, %v5476_v20  ;;  %v5419_v20 = vadd.f32 %v11143_v58, %v5352_v50  ;;  %v5359_v50 = vmul.f32 %v11135_v27, %v10625_v6  ;;  %v5361_v6 = vmul.f32 %v11135_v27, %v10647_v36  ;;  %v5363_v36 = vmul.f32 %v11135_v27, %v10675_v2 }
 0x79f   :  { %v5365_v2 = vmul.f32 %v11135_v27, %v10690_v8  ;;  %v5367_v8 = vmul.f32 %v11135_v27, %v10719_v40  ;;  %v5369_v40 = vmul.f32 %v11135_v27, %v10741_v25  ;;  %v5371_v25 = vmul.f32 %v11135_v27, %v10772_v39 }
 0x7a0   :  { %v5483_v56 = vmax.f32 %v5419_v20, 0.0  ;;  %v5426_v20 = vadd.f32 %v11143_v58, %v5359_v50  ;;  %v5428_v13 = vadd.f32 %v11143_v58, %v5361_v6  ;;  %v5373_v39 = vmul.f32 %v11135_v27, %v10787_v42 }
 0x7a1   :  { %v5432_v33 = vadd.f32 %v11143_v58, %v5365_v2  ;;  %v5375_v42 = vmul.f32 %v11135_v27, %v10818_v43 }
 0x7a2   :  { %v5490_v11 = vmax.f32 %v5426_v20, 0.0 }
 0x7a6   :  { %6769 = vmatmul.msk.f32.gmra.mxu3 %vm528_vm1, %v5477_v48  ;;  %v5420_v48 = vadd.f32 %v11143_v58, %v5353_v4  ;;  %v5427_v4 = vadd.f32 %v11143_v58, %v5360_v41 }
 0x7a8   :  { %v5484_v28 = vmax.f32 %v5420_v48, 0.0 }
 0x7ae   :  { %6770 = vmatmul.msk.f32.gmra.mxu3 %vm528_vm1, %v5478_v47  ;;  %v5421_v47 = vadd.f32 %v11143_v58, %v5354_v52 }
 0x7b0   :  { %v5485_v21 = vmax.f32 %v5421_v47, 0.0  ;;  %v5492_v47 = vmax.f32 %v5428_v13, 0.0 }
 0x7b6   :  { %6771 = vmatmul.msk.f32.gmra.mxu3 %vm528_vm1, %v5479_v45  ;;  %v5422_v45 = vadd.f32 %v11143_v58, %v5355_v5 }
 0x7b8   :  { %v5486_v12 = vmax.f32 %v5422_v45, 0.0  ;;  %v5430_v45 = vadd.f32 %v11143_v58, %v5363_v36 }
 0x7ba   :  { %v5494_v0 = vmax.f32 %v5430_v45, 0.0 }
 0x7be   :  { %6772 = vmatmul.msk.f32.gmra.mxu3 %vm528_vm1, %v5480_v49  ;;  %v5423_v49 = vadd.f32 %v11143_v58, %v5356_v18  ;;  %v5431_v18 = vadd.f32 %v11143_v58, %v5364_v55 }
 0x7c0   :  { %v5487_v24 = vmax.f32 %v5423_v49, 0.0 }
 0x7c6   :  { %6773 = vmatmul.msk.f32.gmra.mxu3 %vm528_vm1, %v5481_v23  ;;  %v5424_v23 = vadd.f32 %v11143_v58, %v5357_v14 }
 0x7c8   :  { %v5488_v44 = vmax.f32 %v5424_v23, 0.0  ;;  %v5496_v23 = vmax.f32 %v5432_v33, 0.0 }
 0x7ce   :  { %6774 = vmatmul.msk.f32.gmra.mxu3 %vm528_vm1, %v5482_v46 }
 0x7d6   :  { %6775 = vmatmul.msk.f32.gmra.mxu3 %vm528_vm1, %v5483_v56 }
 0x7de   :  { %6776 = vmatmul.msk.f32.gmra.mxu3 %vm528_vm1, %v5484_v28  ;;  %v5491_v28 = vmax.f32 %v5427_v4, 0.0 }
 0x7e6   :  { %6777 = vmatmul.msk.f32.gmra.mxu3 %vm528_vm1, %v5485_v21  ;;  %v5429_v21 = vadd.f32 %v11143_v58, %v5362_v30 }
 0x7e8   :  { %v5493_v5 = vmax.f32 %v5429_v21, 0.0 }
 0x7ee   :  { %6778 = vmatmul.msk.f32.gmra.mxu3 %vm528_vm1, %v5486_v12 }
 0x7f6   :  { %6779 = vmatmul.msk.f32.gmra.mxu3 %vm528_vm1, %v5487_v24  ;;  %v5495_v24 = vmax.f32 %v5431_v18, 0.0 }
 0x7fe   :  { %6780 = vmatmul.msk.f32.gmra.mxu3 %vm528_vm1, %v5488_v44  ;;  %v5433_v44 = vadd.f32 %v11143_v58, %v5366_v10 }
 0x800   :  { %v5497_v54 = vmax.f32 %v5433_v44, 0.0 }
 0x801   :  { %v11216_v46 = vpop.f32.mrf.mxu3 }
 0x802   :  { %12691 = vst [vmem:[#allocation38_spill] sm:$0xff] %v11216_v46 }
 0x806   :  { %6781 = vmatmul.msk.f32.gmra.mxu3 %vm528_vm1, %v5489_v32  ;;  %v5434_v32 = vadd.f32 %v11143_v58, %v5367_v8 }
 0x808   :  { %v5498_v20 = vmax.f32 %v5434_v32, 0.0 }
 0x809   :  { %v11222_v56 = vpop.f32.mrf.mxu3 }
 0x80a   :  { %12692 = vst [vmem:[#allocation52_spill] sm:$0xff] %v11222_v56 }
 0x80e   :  { %6782 = vmatmul.msk.f32.gmra.mxu3 %vm528_vm1, %v5490_v11  ;;  %v5435_v11 = vadd.f32 %v11143_v58, %v5368_v7 }
 0x810   :  { %v5499_v4 = vmax.f32 %v5435_v11, 0.0 }
 0x811   :  { %v11228_v48 = vpop.f32.mrf.mxu3 }
 0x812   :  { %12693 = vst [vmem:[#allocation39_spill] sm:$0xff] %v11228_v48 }
 0x816   :  { %6783 = vmatmul.msk.f32.gmra.mxu3 %vm528_vm1, %v5491_v28  ;;  %v5436_v28 = vadd.f32 %v11143_v58, %v5369_v40  ;;  %v12711_v40 = vld [vmem:[#allocation24_spill] sm:$0xff] }
 0x817   :  { %v5377_v43 = vmul.f32 %v11135_v27, %v12711_v40 }
 0x818   :  { %v5500_v13 = vmax.f32 %v5436_v28, 0.0 }
 0x819   :  { %v11234_v52 = vpop.f32.mrf.mxu3  ;;  %v5444_v28 = vadd.f32 %v11143_v58, %v5377_v43 }
 0x81a   :  { %12694 = vst [vmem:[#allocation53_spill] sm:$0xff] %v11234_v52 }
 0x81e   :  { %6784 = vmatmul.msk.f32.gmra.mxu3 %vm528_vm1, %v5492_v47  ;;  %v5437_v47 = vadd.f32 %v11143_v58, %v5370_v31  ;;  %v5508_v31 = vmax.f32 %v5444_v28, 0.0 }
 0x820   :  { %v5501_v21 = vmax.f32 %v5437_v47, 0.0  ;;  %v12713_v47 = vld [vmem:[#allocation47_spill] sm:$0xff] }
 0x821   :  { %v11240_v63 = vpop.f32.mrf.mxu3 }
 0x822   :  { %12695 = vst [vmem:[#allocation13_spill] sm:$0xff] %v11240_v63 }
 0x826   :  { %6785 = vmatmul.msk.f32.gmra.mxu3 %vm528_vm1, %v5493_v5  ;;  %v5438_v5 = vadd.f32 %v11143_v58, %v5371_v25 }
 0x828   :  { %v5502_v45 = vmax.f32 %v5438_v5, 0.0 }
 0x829   :  { %v11246_v12 = vpop.f32.mrf.mxu3 }
 0x82a   :  { %12696 = vst [vmem:[#allocation50_spill] sm:$0xff] %v11246_v12 }
 0x82e   :  { %6786 = vmatmul.msk.f32.gmra.mxu3 %vm528_vm1, %v5494_v0  ;;  %v5439_v0 = vadd.f32 %v11143_v58, %v5372_v15  ;;  %v12715_v15 = vld [vmem:[#allocation48_spill] sm:$0xff] }
 0x830   :  { %v5503_v18 = vmax.f32 %v5439_v0, 0.0  ;;  %v5379_v0 = vmul.f32 %v11135_v27, %v12715_v15 }
 0x831   :  { %v11252_v49 = vpop.f32.mrf.mxu3 }
 0x832   :  { %12697 = vst [vmem:[#allocation54_spill] sm:$0xff] %v11252_v49 }
 0x836   :  { %6787 = vmatmul.msk.f32.gmra.mxu3 %vm528_vm1, %v5495_v24  ;;  %v5440_v24 = vadd.f32 %v11143_v58, %v5373_v39 }
 0x838   :  { %v5504_v33 = vmax.f32 %v5440_v24, 0.0 }
 0x839   :  { %v11258_v14 = vpop.f32.mrf.mxu3 }
 0x83a   :  { %12698 = vst [vmem:[#allocation55_spill] sm:$0xff] %v11258_v14 }
 0x83e   :  { %6788 = vmatmul.msk.f32.gmra.mxu3 %vm528_vm1, %v5496_v23  ;;  %v5441_v23 = vadd.f32 %v11143_v58, %v5374_v19 }
 0x840   :  { %v5505_v44 = vmax.f32 %v5441_v23, 0.0 }
 0x841   :  { %v11264_v1 = vpop.f32.mrf.mxu3 }
 0x842   :  { %12699 = vst [vmem:[#allocation56_spill] sm:$0xff] %v11264_v1 }
 0x846   :  { %6789 = vmatmul.msk.f32.gmra.mxu3 %vm528_vm1, %v5497_v54  ;;  %v5442_v54 = vadd.f32 %v11143_v58, %v5375_v42 }
 0x848   :  { %v5506_v32 = vmax.f32 %v5442_v54, 0.0  ;;  %v12719_v54 = vld [vmem:[#allocation10_spill] sm:$0xff] }
 0x849   :  { %v11270_v50 = vpop.f32.mrf.mxu3 }
 0x84a   :  { %12700 = vst [vmem:[#allocation57_spill] sm:$0xff] %v11270_v50 }
 0x84e   :  { %6790 = vmatmul.msk.f32.gmra.mxu3 %vm528_vm1, %v5498_v20  ;;  %v12709_v20 = vld [vmem:[#allocation18_spill] sm:$0xff] }
 0x84f   :  { %v5376_v16 = vmul.f32 %v11135_v27, %v12709_v20 }
 0x851   :  { %v11276_v41 = vpop.f32.mrf.mxu3  ;;  %v5443_v7 = vadd.f32 %v11143_v58, %v5376_v16 }
 0x852   :  { %12701 = vst [vmem:[#allocation58_spill] sm:$0xff] %v11276_v41 }
 0x856   :  { %6791 = vmatmul.msk.f32.gmra.mxu3 %vm528_vm1, %v5499_v4  ;;  %v5507_v4 = vmax.f32 %v5443_v7, 0.0 }
 0x859   :  { %v11282_v6 = vpop.f32.mrf.mxu3 }
 0x85a   :  { %12702 = vst [vmem:[#allocation59_spill] sm:$0xff] %v11282_v6 }
 0x85e   :  { %6792 = vmatmul.msk.f32.gmra.mxu3 %vm528_vm1, %v5500_v13 }
 0x861   :  { %v11288_v30 = vpop.f32.mrf.mxu3 }
 0x862   :  { %12703 = vst [vmem:[#allocation60_spill] sm:$0xff] %v11288_v30 }
 0x866   :  { %6793 = vmatmul.msk.f32.gmra.mxu3 %vm528_vm1, %v5501_v21  ;;  %v5378_v21 = vmul.f32 %v11135_v27, %v12713_v47  ;;  %v12721_v47 = vld [vmem:[#allocation29_spill] sm:$0xff] }
 0x868   :  { %v5445_v25 = vadd.f32 %v11143_v58, %v5378_v21  ;;  %v5383_v21 = vmul.f32 %v11135_v27, %v12721_v47 }
 0x869   :  { %v11294_v36 = vpop.f32.mrf.mxu3 }
 0x86a   :  { %12704 = vst [vmem:[#allocation40_spill] sm:$0xff] %v11294_v36 }
 0x86e   :  { %6794 = vmatmul.msk.f32.gmra.mxu3 %vm528_vm1, %v5502_v45  ;;  %v5509_v45 = vmax.f32 %v5445_v25, 0.0  ;;  %v5450_v25 = vadd.f32 %v11143_v58, %v5383_v21 }
 0x870   :  { %v5514_v15 = vmax.f32 %v5450_v25, 0.0 }
 0x871   :  { %v11300_v55 = vpop.f32.mrf.mxu3 }
 0x872   :  { %12705 = vst [vmem:[#allocation86_spill] sm:$0xff] %v11300_v55 }
 0x876   :  { %6795 = vmatmul.msk.f32.gmra.mxu3 %vm528_vm1, %v5503_v18  ;;  %v5446_v18 = vadd.f32 %v11143_v58, %v5379_v0  ;;  %v12722_v0 = vld [vmem:[#allocation12_spill] sm:$0xff] }
 0x878   :  { %v5510_v24 = vmax.f32 %v5446_v18, 0.0  ;;  %v5384_v18 = vmul.f32 %v11135_v27, %v12722_v0  ;;  %v12725_v0 = vld [vmem:[#allocation51_spill] sm:$0xff] }
 0x879   :  { %v11306_v2 = vpop.f32.mrf.mxu3 }
 0x87a   :  { %12706 = vst [vmem:[#allocation68_spill] sm:$0xff] %v11306_v2 }
 0x87e   :  { %6796 = vmatmul.msk.f32.gmra.mxu3 %vm528_vm1, %v5504_v33  ;;  %v12717_v33 = vld [vmem:[#allocation26_spill] sm:$0xff] }
 0x87f   :  { %v5380_v19 = vmul.f32 %v11135_v27, %v12717_v33 }
 0x881   :  { %v11312_v10 = vpop.f32.mrf.mxu3  ;;  %v5447_v23 = vadd.f32 %v11143_v58, %v5380_v19 }
 0x882   :  { %12707 = vst [vmem:[#allocation61_spill] sm:$0xff] %v11312_v10 }
 0x883   :  { %v5511_v42 = vmax.f32 %v5447_v23, 0.0  ;;  %v12723_v23 = vld [vmem:[#allocation36_spill] sm:$0xff] }
 0x886   :  { %6797 = vmatmul.msk.f32.gmra.mxu3 %vm528_vm1, %v5505_v44 }
 0x889   :  { %v11318_v8 = vpop.f32.mrf.mxu3 }
 0x88a   :  { %12708 = vst [vmem:[#allocation70_spill] sm:$0xff] %v11318_v8 }
 0x88e   :  { %6798 = vmatmul.msk.f32.gmra.mxu3 %vm528_vm1, %v5506_v32  ;;  %v5381_v32 = vmul.f32 %v11135_v27, %v12719_v54 }
 0x890   :  { %v5448_v20 = vadd.f32 %v11143_v58, %v5381_v32 }
 0x891   :  { %v11324_v11 = vpop.f32.mrf.mxu3 }
 0x892   :  { %12710 = vst [vmem:[#allocation62_spill] sm:$0xff] %v11324_v11  ;;  %v5512_v7 = vmax.f32 %v5448_v20, 0.0 }
 0x896   :  { %6799 = vmatmul.msk.f32.gmra.mxu3 %vm528_vm1, %v5507_v4  ;;  %v12720_v4 = vld [vmem:[#allocation35_spill] sm:$0xff] }
 0x897   :  { %v5382_v40 = vmul.f32 %v11135_v27, %v12720_v4 }
 0x899   :  { %v11330_v13 = vpop.f32.mrf.mxu3  ;;  %v5449_v43 = vadd.f32 %v11143_v58, %v5382_v40 }
 0x89a   :  { %12712 = vst [vmem:[#allocation72_spill] sm:$0xff] %v11330_v13 }
 0x89e   :  { %6800 = vmatmul.msk.f32.gmra.mxu3 %vm528_vm1, %v5508_v31  ;;  %v5513_v31 = vmax.f32 %v5449_v43, 0.0 }
 0x8a1   :  { %v11336_v5 = vpop.f32.mrf.mxu3 }
 0x8a2   :  { %12714 = vst [vmem:[#allocation63_spill] sm:$0xff] %v11336_v5 }
 0x8a6   :  { %6801 = vmatmul.msk.f32.gmra.mxu3 %vm528_vm1, %v5509_v45 }
 0x8a9   :  { %v11342_v39 = vpop.f32.mrf.mxu3 }
 0x8aa   :  { %12716 = vst [vmem:[#allocation74_spill] sm:$0xff] %v11342_v39 }
 0x8ae   :  { %6802 = vmatmul.msk.f32.gmra.mxu3 %vm528_vm1, %v5510_v24  ;;  %v5451_v24 = vadd.f32 %v11143_v58, %v5384_v18 }
 0x8b0   :  { %v5515_v19 = vmax.f32 %v5451_v24, 0.0 }
 0x8b1   :  { %v11348_v44 = vpop.f32.mrf.mxu3 }
 0x8b2   :  { %12718 = vst [vmem:[#allocation64_spill] sm:$0xff] %v11348_v44 }
 0x8b6   :  { %6803 = vmatmul.msk.f32.gmra.mxu3 %vm528_vm1, %v5511_v42  ;;  %v5385_v42 = vmul.f32 %v11135_v27, %v12723_v23  ;;  %v5389_v23 = vmul.f32 %v11135_v27, %v10966_v62  ;;  %v5391_v62 = vmul.f32 %v11135_v27, %v10994_v60  ;;  %v5393_v60 = vmul.f32 %v11135_v27, %v11019_v35 }
 0x8b7   :  { %v5395_v35 = vmul.f32 %v11135_v27, %v11032_v34  ;;  %v5397_v34 = vmul.f32 %v11135_v27, %v11057_v61  ;;  %v5399_v61 = vmul.f32 %v11135_v27, %v11077_v37  ;;  %v5401_v37 = vmul.f32 %v11135_v27, %v11095_v38 }
 0x8b8   :  { %v5452_v54 = vadd.f32 %v11143_v58, %v5385_v42  ;;  %v5456_v42 = vadd.f32 %v11143_v58, %v5389_v23  ;;  %v5403_v38 = vmul.f32 %v11135_v27, %v11115_v29  ;;  %v6077_v29 = vmul.f32 %v11222_v56, %v11222_v56 }
 0x8b9   :  { %v11354_v16 = vpop.f32.mrf.mxu3 }
 0x8ba   :  { %v5516_v20 = vmax.f32 %v5452_v54, 0.0 }
 0x8be   :  { %6804 = vmatmul.msk.f32.gmra.mxu3 %vm528_vm1, %v5512_v7  ;;  %v5386_v7 = vmul.f32 %v11135_v27, %v10935_v22  ;;  %v5388_v22 = vmul.f32 %v11135_v27, %v12725_v0 }
 0x8c0   :  { %v5453_v4 = vadd.f32 %v11143_v58, %v5386_v7  ;;  %v5455_v18 = vadd.f32 %v11143_v58, %v5388_v22  ;;  %v5390_v7 = vmul.f32 %v11135_v27, %v10974_v9  ;;  %v5392_v9 = vmul.f32 %v11135_v27, %v11007_v17 }
 0x8c1   :  { %v11360_v28 = vpop.f32.mrf.mxu3  ;;  %v5394_v17 = vmul.f32 %v11135_v27, %v11027_v57  ;;  %v5396_v57 = vmul.f32 %v11135_v27, %v11049_v3  ;;  %v5398_v3 = vmul.f32 %v11135_v27, %v11062_v26  ;;  %v5400_v26 = vmul.f32 %v11135_v27, %v11086_v51 }
 0x8c2   :  { %v5517_v43 = vmax.f32 %v5453_v4, 0.0  ;;  %v5457_v4 = vadd.f32 %v11143_v58, %v5390_v7  ;;  %v5459_v0 = vadd.f32 %v11143_v58, %v5392_v9  ;;  %v5402_v51 = vmul.f32 %v11135_v27, %v11102_v53 }
 0x8c3   :  { %v5471_v53 = vadd.f32 %v11143_v58, %v11138_v59  ;;  %v5943_v59 = vsel %vm124_vm0, %v11216_v46, 0.0 }
 0x8c6   :  { %6805 = vmatmul.msk.f32.gmra.mxu3 %vm528_vm1, %v5513_v31  ;;  %v12724_v31 = vld [vmem:[#allocation49_spill] sm:$0xff] }
 0x8c7   :  { %v5387_v47 = vmul.f32 %v11135_v27, %v12724_v31  ;;  %v5521_v31 = vmax.f32 %v5457_v4, 0.0  ;;  %v6076_v27 = vmul.f32 %v11216_v46, %v11216_v46 }
 0x8c9   :  { %v11366_v45 = vpop.f32.mrf.mxu3  ;;  %v5454_v21 = vadd.f32 %v11143_v58, %v5387_v47  ;;  %v5458_v47 = vadd.f32 %v11143_v58, %v5391_v62 }
 0x8ce   :  { %6806 = vmatmul.msk.f32.gmra.mxu3 %vm528_vm1, %v5514_v15  ;;  %v5518_v15 = vmax.f32 %v5454_v21, 0.0 }
 0x8d1   :  { %v11372_v33 = vpop.f32.mrf.mxu3 }
 0x8d6   :  { %6807 = vmatmul.msk.f32.gmra.mxu3 %vm528_vm1, %v5515_v19  ;;  %v5519_v19 = vmax.f32 %v5455_v18, 0.0  ;;  %v5523_v18 = vmax.f32 %v5459_v0, 0.0 }
 0x8d9   :  { %v11378_v32 = vpop.f32.mrf.mxu3 }
 0x8de   :  { %6808 = vmatmul.msk.f32.gmra.mxu3 %vm528_vm1, %v5516_v20  ;;  %v5520_v20 = vmax.f32 %v5456_v42, 0.0 }
 0x8e1   :  { %v11384_v40 = vpop.f32.mrf.mxu3 }
 0x8e6   :  { %6809 = vmatmul.msk.f32.gmra.mxu3 %vm528_vm1, %v5517_v43 }
 0x8e9   :  { %v11390_v25 = vpop.f32.mrf.mxu3 }
 0x8ee   :  { %6810 = vmatmul.msk.f32.gmra.mxu3 %vm528_vm1, %v5518_v15  ;;  %v5522_v15 = vmax.f32 %v5458_v47, 0.0 }
 0x8f1   :  { %v11396_v24 = vpop.f32.mrf.mxu3 }
 0x8f6   :  { %6811 = vmatmul.msk.f32.gmra.mxu3 %vm528_vm1, %v5519_v19  ;;  %v5460_v19 = vadd.f32 %v11143_v58, %v5393_v60 }
 0x8f8   :  { %v5524_v42 = vmax.f32 %v5460_v19, 0.0 }
 0x8f9   :  { %v11402_v54 = vpop.f32.mrf.mxu3 }
 0x8fe   :  { %6812 = vmatmul.msk.f32.gmra.mxu3 %vm528_vm1, %v5520_v20  ;;  %v5461_v20 = vadd.f32 %v11143_v58, %v5394_v17 }
 0x900   :  { %v5525_v4 = vmax.f32 %v5461_v20, 0.0 }
 0x901   :  { %v11408_v43 = vpop.f32.mrf.mxu3 }
 0x906   :  { %6813 = vmatmul.msk.f32.gmra.mxu3 %vm528_vm1, %v5521_v31  ;;  %v5462_v31 = vadd.f32 %v11143_v58, %v5395_v35 }
 0x908   :  { %v5526_v47 = vmax.f32 %v5462_v31, 0.0 }
 0x909   :  { %v11414_v21 = vpop.f32.mrf.mxu3 }
 0x90e   :  { %6814 = vmatmul.msk.f32.gmra.mxu3 %vm528_vm1, %v5522_v15  ;;  %v5463_v15 = vadd.f32 %v11143_v58, %v5396_v57 }
 0x910   :  { %v5527_v0 = vmax.f32 %v5463_v15, 0.0 }
 0x911   :  { %v11420_v22 = vpop.f32.mrf.mxu3 }
 0x916   :  { %6815 = vmatmul.msk.f32.gmra.mxu3 %vm528_vm1, %v5523_v18  ;;  %v5464_v18 = vadd.f32 %v11143_v58, %v5397_v34 }
 0x918   :  { %v5528_v19 = vmax.f32 %v5464_v18, 0.0 }
 0x919   :  { %v11426_v23 = vpop.f32.mrf.mxu3 }
 0x91e   :  { %6816 = vmatmul.msk.f32.gmra.mxu3 %vm528_vm1, %v5524_v42  ;;  %v5465_v42 = vadd.f32 %v11143_v58, %v5398_v3 }
 0x920   :  { %v5529_v20 = vmax.f32 %v5465_v42, 0.0 }
 0x921   :  { %v11432_v7 = vpop.f32.mrf.mxu3 }
 0x926   :  { %6817 = vmatmul.msk.f32.gmra.mxu3 %vm528_vm1, %v5525_v4  ;;  %v5466_v4 = vadd.f32 %v11143_v58, %v5399_v61 }
 0x928   :  { %v5530_v31 = vmax.f32 %v5466_v4, 0.0 }
 0x929   :  { %v11438_v62 = vpop.f32.mrf.mxu3 }
 0x92e   :  { %6818 = vmatmul.msk.f32.gmra.mxu3 %vm528_vm1, %v5526_v47  ;;  %v5467_v47 = vadd.f32 %v11143_v58, %v5400_v26  ;;  %v5535_v26 = vmax.f32 %v5471_v53, 0.0 }
 0x930   :  { %v5531_v15 = vmax.f32 %v5467_v47, 0.0 }
 0x931   :  { %v11444_v9 = vpop.f32.mrf.mxu3 }
 0x936   :  { %6819 = vmatmul.msk.f32.gmra.mxu3 %vm528_vm1, %v5527_v0  ;;  %v5468_v0 = vadd.f32 %v11143_v58, %v5401_v37  ;;  %v6078_v37 = vmul.f32 %v11228_v48, %v11228_v48 }
 0x938   :  { %v5532_v18 = vmax.f32 %v5468_v0, 0.0  ;;  %v5946_v0 = vsel %vm124_vm0, %v11228_v48, 0.0  ;;  %v5950_v48 = vsel %vm124_vm0, %v11240_v63, 0.0 }
 0x939   :  { %v11450_v60 = vpop.f32.mrf.mxu3 }
 0x93e   :  { %6820 = vmatmul.msk.f32.gmra.mxu3 %vm528_vm1, %v5528_v19  ;;  %v5469_v19 = vadd.f32 %v11143_v58, %v5402_v51 }
 0x940   :  { %v5533_v42 = vmax.f32 %v5469_v19, 0.0  ;;  %v6140_v19 = vsel %vm124_vm0, %v6076_v27, 0.0  ;;  %v6081_v27 = vmul.f32 %v11246_v12, %v11246_v12 }
 0x941   :  { %v11456_v17 = vpop.f32.mrf.mxu3 }
 0x946   :  { %6821 = vmatmul.msk.f32.gmra.mxu3 %vm528_vm1, %v5529_v20  ;;  %v5470_v20 = vadd.f32 %v11143_v58, %v5403_v38  ;;  %v6141_v58 = vsel %vm124_vm0, %v6077_v29, 0.0  ;;  %v5948_v38 = vsel %vm124_vm0, %v11234_v52, 0.0 }
 0x948   :  { %v5534_v4 = vmax.f32 %v5470_v20, 0.0  ;;  %v6080_v20 = vmul.f32 %v11240_v63, %v11240_v63  ;;  %v6083_v63 = vmul.f32 %v11258_v14, %v11258_v14 }
 0x949   :  { %v11462_v35 = vpop.f32.mrf.mxu3 }
 0x94e   :  { %6822 = vmatmul.msk.f32.gmra.mxu3 %vm528_vm1, %v5530_v31 }
 0x951   :  { %v11468_v57 = vpop.f32.mrf.mxu3 }
 0x956   :  { %6823 = vmatmul.msk.f32.gmra.mxu3 %vm528_vm1, %v5531_v15  ;;  %v5944_v15 = vsel %vm124_vm0, %v11222_v56, 0.0 }
 0x957   :  { %v5945_v51 = vadd.f32 %v5944_v15, %v5943_v59  ;;  %v6147_v59 = vsel %vm124_vm0, %v6080_v20, 0.0 }
 0x959   :  { %v11474_v34 = vpop.f32.mrf.mxu3  ;;  %v5947_v53 = vadd.f32 %v5946_v0, %v5945_v51 }
 0x95e   :  { %6824 = vmatmul.msk.f32.gmra.mxu3 %vm528_vm1, %v5532_v18  ;;  %v6079_v18 = vmul.f32 %v11234_v52, %v11234_v52  ;;  %v5952_v52 = vsel %vm124_vm0, %v11246_v12, 0.0 }
 0x960   :  { %v6145_v29 = vsel %vm124_vm0, %v6079_v18, 0.0  ;;  %v6149_v18 = vsel %vm124_vm0, %v6081_v27, 0.0  ;;  %v6153_v27 = vsel %vm124_vm0, %v6083_v63, 0.0 }
 0x961   :  { %v11480_v3 = vpop.f32.mrf.mxu3 }
 0x966   :  { %6825 = vmatmul.msk.f32.gmra.mxu3 %vm528_vm1, %v5533_v42  ;;  %v6143_v42 = vsel %vm124_vm0, %v6078_v37, 0.0  ;;  %v5949_v37 = vadd.f32 %v5948_v38, %v5947_v53  ;;  %v6084_v53 = vmul.f32 %v11264_v1, %v11264_v1 }
 0x968   :  { %v5951_v51 = vadd.f32 %v5950_v48, %v5949_v37  ;;  %v5958_v37 = vsel %vm124_vm0, %v11264_v1, 0.0  ;;  %v6087_v1 = vmul.f32 %v11282_v6, %v11282_v6 }
 0x969   :  { %v11486_v61 = vpop.f32.mrf.mxu3 }
 0x96a   :  { %v5953_v38 = vadd.f32 %v5952_v52, %v5951_v51  ;;  %v6085_v52 = vmul.f32 %v11270_v50, %v11270_v50  ;;  %v5960_v51 = vsel %vm124_vm0, %v11270_v50, 0.0 }
 0x96c   :  { %v6157_v63 = vsel %vm124_vm0, %v6085_v52, 0.0  ;;  %v6161_v52 = vsel %vm124_vm0, %v6087_v1, 0.0 }
 0x96e   :  { %6826 = vmatmul.msk.f32.gmra.mxu3 %vm528_vm1, %v5534_v4  ;;  %v6142_v4 = vadd.f32 %v6141_v58, %v6140_v19  ;;  %v6082_v58 = vmul.f32 %v11252_v49, %v11252_v49  ;;  %v5954_v19 = vsel %vm124_vm0, %v11252_v49, 0.0 }
 0x96f   :  { %v5955_v48 = vadd.f32 %v5954_v19, %v5953_v38  ;;  %v5962_v38 = vsel %vm124_vm0, %v11276_v41, 0.0 }
 0x970   :  { %v6144_v15 = vadd.f32 %v6143_v42, %v6142_v4  ;;  %v6151_v20 = vsel %vm124_vm0, %v6082_v58, 0.0  ;;  %v5956_v4 = vsel %vm124_vm0, %v11258_v14, 0.0 }
 0x971   :  { %v11491_v31 = vpop.f32.mrf.mxu3  ;;  %v5957_v58 = vadd.f32 %v5956_v4, %v5955_v48  ;;  %v6088_v48 = vmul.f32 %v11288_v30, %v11288_v30 }
 0x972   :  { %v6146_v0 = vadd.f32 %v6145_v29, %v6144_v15 }
 0x974   :  { %v6148_v42 = vadd.f32 %v6147_v59, %v6146_v0  ;;  %v6155_v0 = vsel %vm124_vm0, %v6084_v53, 0.0 }
 0x976   :  { %6827 = vmatmul.msk.f32.gmra.mxu3 %vm528_vm1, %v5535_v26  ;;  %v6150_v29 = vadd.f32 %v6149_v18, %v6148_v42  ;;  %v6086_v18 = vmul.f32 %v11276_v41, %v11276_v41  ;;  %v5959_v42 = vadd.f32 %v5958_v37, %v5957_v58  ;;  %v5966_v58 = vsel %vm124_vm0, %v11288_v30, 0.0 }
 0x977   :  { %v6091_v30 = vmul.f32 %v11306_v2, %v11306_v2 }
 0x978   :  { %v6152_v59 = vadd.f32 %v6151_v20, %v6150_v29  ;;  %v5961_v4 = vadd.f32 %v5960_v51, %v5959_v42  ;;  %v6159_v53 = vsel %vm124_vm0, %v6086_v18, 0.0  ;;  %v5964_v29 = vsel %vm124_vm0, %v11282_v6, 0.0 }
 0x979   :  { %v11494_v47 = vpop.f32.mrf.mxu3  ;;  %v5968_v42 = vsel %vm124_vm0, %v11294_v36, 0.0 }
 0x97a   :  { %v6154_v19 = vadd.f32 %v6153_v27, %v6152_v59  ;;  %v5963_v37 = vadd.f32 %v5962_v38, %v5961_v4  ;;  %v5970_v4 = vsel %vm124_vm0, %v11300_v55, 0.0 }
 0x97c   :  { %v6156_v20 = vadd.f32 %v6155_v0, %v6154_v19  ;;  %v6089_v0 = vmul.f32 %v11294_v36, %v11294_v36  ;;  %v5965_v18 = vadd.f32 %v5964_v29, %v5963_v37  ;;  %v6163_v19 = vsel %vm124_vm0, %v6088_v48, 0.0 }
 0x97d   :  { %v6092_v37 = vmul.f32 %v11312_v10, %v11312_v10 }
 0x97e   :  { %v6158_v27 = vadd.f32 %v6157_v63, %v6156_v20  ;;  %v6090_v63 = vmul.f32 %v11300_v55, %v11300_v55  ;;  %v5967_v20 = vadd.f32 %v5966_v58, %v5965_v18  ;;  %v6165_v1 = vsel %vm124_vm0, %v6089_v0, 0.0 }
 0x97f   :  { %v6169_v0 = vsel %vm124_vm0, %v6091_v30, 0.0  ;;  %v5974_v18 = vsel %vm124_vm0, %v11312_v10, 0.0  ;;  %v6095_v10 = vmul.f32 %v11330_v13, %v11330_v13 }
 0x980   :  { %v6160_v51 = vadd.f32 %v6159_v53, %v6158_v27  ;;  %v5969_v29 = vadd.f32 %v5968_v42, %v5967_v20  ;;  %v6167_v48 = vsel %vm124_vm0, %v6090_v63, 0.0  ;;  %v5972_v27 = vsel %vm124_vm0, %v11306_v2, 0.0 }
 0x981   :  { %v11517_v26 = vpop.f32.mrf.mxu3  ;;  %v5976_v20 = vsel %vm124_vm0, %v11318_v8, 0.0  ;;  %v6123_v2 = vmul.f32 %v11494_v47, %v11494_v47 }
 0x982   :  { %v6162_v38 = vadd.f32 %v6161_v52, %v6160_v51  ;;  %v5971_v58 = vadd.f32 %v5970_v4, %v5969_v29  ;;  %v5978_v29 = vsel %vm124_vm0, %v11324_v11, 0.0 }
 0x984   :  { %v6164_v53 = vadd.f32 %v6163_v19, %v6162_v38  ;;  %v6093_v19 = vmul.f32 %v11318_v8, %v11318_v8  ;;  %v5973_v63 = vadd.f32 %v5972_v27, %v5971_v58  ;;  %v6171_v38 = vsel %vm124_vm0, %v6092_v37, 0.0 }
 0x985   :  { %v6096_v58 = vmul.f32 %v11336_v5, %v11336_v5  ;;  %v6119_v8 = vmul.f32 %v11474_v34, %v11474_v34 }
 0x986   :  { %v6166_v52 = vadd.f32 %v6165_v1, %v6164_v53  ;;  %v6094_v1 = vmul.f32 %v11324_v11, %v11324_v11  ;;  %v5975_v53 = vadd.f32 %v5974_v18, %v5973_v63  ;;  %v6173_v30 = vsel %vm124_vm0, %v6093_v19, 0.0 }
 0x987   :  { %v6177_v19 = vsel %vm124_vm0, %v6095_v10, 0.0  ;;  %v5982_v63 = vsel %vm124_vm0, %v11336_v5, 0.0  ;;  %v6099_v5 = vmul.f32 %v11354_v16, %v11354_v16  ;;  %v6115_v11 = vmul.f32 %v11450_v60, %v11450_v60 }
 0x988   :  { %v6168_v42 = vadd.f32 %v6167_v48, %v6166_v52  ;;  %v5977_v27 = vadd.f32 %v5976_v20, %v5975_v53  ;;  %v6175_v37 = vsel %vm124_vm0, %v6094_v1, 0.0  ;;  %v5980_v52 = vsel %vm124_vm0, %v11330_v13, 0.0 }
 0x989   :  { %v11539_v15 = vpop.f32.mrf.mxu3  ;;  %v5984_v53 = vsel %vm124_vm0, %v11342_v39, 0.0  ;;  %v6111_v13 = vmul.f32 %v11426_v23, %v11426_v23 }
 0x98a   :  { %v6170_v4 = vadd.f32 %v6169_v0, %v6168_v42  ;;  %v5979_v18 = vadd.f32 %v5978_v29, %v5977_v27  ;;  %v5986_v27 = vsel %vm124_vm0, %v11348_v44, 0.0 }
 0x98c   :  { %v6172_v48 = vadd.f32 %v6171_v38, %v6170_v4  ;;  %v6097_v38 = vmul.f32 %v11342_v39, %v11342_v39  ;;  %v5981_v1 = vadd.f32 %v5980_v52, %v5979_v18  ;;  %v6179_v4 = vsel %vm124_vm0, %v6096_v58, 0.0 }
 0x98d   :  { %v6100_v18 = vmul.f32 %v11360_v28, %v11360_v28  ;;  %v6107_v39 = vmul.f32 %v11402_v54, %v11402_v54 }
 0x98e   :  { %v6174_v0 = vadd.f32 %v6173_v30, %v6172_v48  ;;  %v6098_v30 = vmul.f32 %v11348_v44, %v11348_v44  ;;  %v5983_v48 = vadd.f32 %v5982_v63, %v5981_v1  ;;  %v6181_v10 = vsel %vm124_vm0, %v6097_v38, 0.0 }
 0x98f   :  { %v6185_v38 = vsel %vm124_vm0, %v6099_v5, 0.0  ;;  %v5990_v1 = vsel %vm124_vm0, %v11360_v28, 0.0  ;;  %v6103_v44 = vmul.f32 %v11378_v32, %v11378_v32 }
 0x990   :  { %v6176_v20 = vadd.f32 %v6175_v37, %v6174_v0  ;;  %v5985_v52 = vadd.f32 %v5984_v53, %v5983_v48  ;;  %v6183_v58 = vsel %vm124_vm0, %v6098_v30, 0.0  ;;  %v5988_v0 = vsel %vm124_vm0, %v11354_v16, 0.0 }
 0x991   :  { %v11561_v59 = vpop.f32.mrf.mxu3  ;;  %v5992_v48 = vsel %vm124_vm0, %v11366_v45, 0.0 }
 0x992   :  { %v6178_v29 = vadd.f32 %v6177_v19, %v6176_v20  ;;  %v5987_v63 = vadd.f32 %v5986_v27, %v5985_v52  ;;  %v5994_v52 = vsel %vm124_vm0, %v11372_v33, 0.0 }
 0x994   :  { %v6180_v37 = vadd.f32 %v6179_v4, %v6178_v29  ;;  %v6101_v4 = vmul.f32 %v11366_v45, %v11366_v45  ;;  %v5989_v30 = vadd.f32 %v5988_v0, %v5987_v63  ;;  %v6187_v29 = vsel %vm124_vm0, %v6100_v18, 0.0 }
 0x995   :  { %v6104_v63 = vmul.f32 %v11384_v40, %v11384_v40 }
 0x996   :  { %v6182_v19 = vadd.f32 %v6181_v10, %v6180_v37  ;;  %v6102_v10 = vmul.f32 %v11372_v33, %v11372_v33  ;;  %v5991_v37 = vadd.f32 %v5990_v1, %v5989_v30  ;;  %v6189_v5 = vsel %vm124_vm0, %v6101_v4, 0.0 }
 0x997   :  { %v6193_v4 = vsel %vm124_vm0, %v6103_v44, 0.0  ;;  %v5998_v30 = vsel %vm124_vm0, %v11384_v40, 0.0 }
 0x998   :  { %v6184_v53 = vadd.f32 %v6183_v58, %v6182_v19  ;;  %v5993_v0 = vadd.f32 %v5992_v48, %v5991_v37  ;;  %v6191_v18 = vsel %vm124_vm0, %v6102_v10, 0.0  ;;  %v5996_v19 = vsel %vm124_vm0, %v11378_v32, 0.0 }
 0x999   :  { %v11583_v51 = vpop.f32.mrf.mxu3  ;;  %v6000_v37 = vsel %vm124_vm0, %v11390_v25, 0.0 }
 0x99a   :  { %v6186_v27 = vadd.f32 %v6185_v38, %v6184_v53  ;;  %v5995_v1 = vadd.f32 %v5994_v52, %v5993_v0  ;;  %v6002_v0 = vsel %vm124_vm0, %v11396_v24, 0.0  ;;  %v6127_v55 = vmul.f32 %v11583_v51, %v11583_v51 }
 0x99c   :  { %v6188_v58 = vadd.f32 %v6187_v29, %v6186_v27  ;;  %v6105_v29 = vmul.f32 %v11390_v25, %v11390_v25  ;;  %v5997_v10 = vadd.f32 %v5996_v19, %v5995_v1  ;;  %v6195_v27 = vsel %vm124_vm0, %v6104_v63, 0.0 }
 0x99d   :  { %v6108_v1 = vmul.f32 %v11408_v43, %v11408_v43 }
 0x99e   :  { %v6190_v38 = vadd.f32 %v6189_v5, %v6188_v58  ;;  %v6106_v5 = vmul.f32 %v11396_v24, %v11396_v24  ;;  %v5999_v58 = vadd.f32 %v5998_v30, %v5997_v10  ;;  %v6197_v44 = vsel %vm124_vm0, %v6105_v29, 0.0 }
 0x99f   :  { %v6201_v29 = vsel %vm124_vm0, %v6107_v39, 0.0  ;;  %v6006_v10 = vsel %vm124_vm0, %v11408_v43, 0.0 }
 0x9a0   :  { %v6192_v48 = vadd.f32 %v6191_v18, %v6190_v38  ;;  %v6001_v19 = vadd.f32 %v6000_v37, %v5999_v58  ;;  %v6199_v63 = vsel %vm124_vm0, %v6106_v5, 0.0  ;;  %v6004_v38 = vsel %vm124_vm0, %v11402_v54, 0.0 }
 0x9a1   :  { %v11605_v42 = vpop.f32.mrf.mxu3  ;;  %v6008_v58 = vsel %vm124_vm0, %v11414_v21, 0.0 }
 0x9a2   :  { %v6194_v52 = vadd.f32 %v6193_v4, %v6192_v48  ;;  %v6003_v30 = vadd.f32 %v6002_v0, %v6001_v19  ;;  %v6010_v19 = vsel %vm124_vm0, %v11420_v22, 0.0 }
 0x9a4   :  { %v6196_v18 = vadd.f32 %v6195_v27, %v6194_v52  ;;  %v6109_v27 = vmul.f32 %v11414_v21, %v11414_v21  ;;  %v6005_v5 = vadd.f32 %v6004_v38, %v6003_v30  ;;  %v6203_v52 = vsel %vm124_vm0, %v6108_v1, 0.0 }
 0x9a5   :  { %v6112_v30 = vmul.f32 %v11432_v7, %v11432_v7 }
 0x9a6   :  { %v6198_v4 = vadd.f32 %v6197_v44, %v6196_v18  ;;  %v6110_v44 = vmul.f32 %v11420_v22, %v11420_v22  ;;  %v6007_v18 = vadd.f32 %v6006_v10, %v6005_v5  ;;  %v6205_v39 = vsel %vm124_vm0, %v6109_v27, 0.0 }
 0x9a7   :  { %v6209_v27 = vsel %vm124_vm0, %v6111_v13, 0.0  ;;  %v6014_v5 = vsel %vm124_vm0, %v11432_v7, 0.0 }
 0x9a8   :  { %v6200_v37 = vadd.f32 %v6199_v63, %v6198_v4  ;;  %v6009_v38 = vadd.f32 %v6008_v58, %v6007_v18  ;;  %v6207_v1 = vsel %vm124_vm0, %v6110_v44, 0.0  ;;  %v6012_v4 = vsel %vm124_vm0, %v11426_v23, 0.0 }
 0x9a9   :  { %v11627_v20 = vpop.f32.mrf.mxu3  ;;  %v6016_v18 = vsel %vm124_vm0, %v11438_v62, 0.0 }
 0x9aa   :  { %v6202_v0 = vadd.f32 %v6201_v29, %v6200_v37  ;;  %v6011_v10 = vadd.f32 %v6010_v19, %v6009_v38  ;;  %v6018_v38 = vsel %vm124_vm0, %v11444_v9, 0.0 }
 0x9ac   :  { %v6204_v63 = vadd.f32 %v6203_v52, %v6202_v0  ;;  %v6113_v52 = vmul.f32 %v11438_v62, %v11438_v62  ;;  %v6013_v44 = vadd.f32 %v6012_v4, %v6011_v10  ;;  %v6211_v0 = vsel %vm124_vm0, %v6112_v30, 0.0 }
 0x9ad   :  { %v6116_v10 = vmul.f32 %v11456_v17, %v11456_v17 }
 0x9ae   :  { %v6206_v29 = vadd.f32 %v6205_v39, %v6204_v63  ;;  %v6114_v39 = vmul.f32 %v11444_v9, %v11444_v9  ;;  %v6015_v63 = vadd.f32 %v6014_v5, %v6013_v44  ;;  %v6213_v13 = vsel %vm124_vm0, %v6113_v52, 0.0 }
 0x9af   :  { %v6217_v52 = vsel %vm124_vm0, %v6115_v11, 0.0  ;;  %v6022_v44 = vsel %vm124_vm0, %v11456_v17, 0.0 }
 0x9b0   :  { %v6208_v58 = vadd.f32 %v6207_v1, %v6206_v29  ;;  %v6017_v4 = vadd.f32 %v6016_v18, %v6015_v63  ;;  %v6215_v30 = vsel %vm124_vm0, %v6114_v39, 0.0  ;;  %v6020_v29 = vsel %vm124_vm0, %v11450_v60, 0.0 }
 0x9b1   :  { %v11649_v53 = vpop.f32.mrf.mxu3  ;;  %v6024_v63 = vsel %vm124_vm0, %v11462_v35, 0.0 }
 0x9b2   :  { %v6210_v19 = vadd.f32 %v6209_v27, %v6208_v58  ;;  %v6019_v5 = vadd.f32 %v6018_v38, %v6017_v4  ;;  %v6026_v4 = vsel %vm124_vm0, %v11468_v57, 0.0 }
 0x9b4   :  { %v6212_v1 = vadd.f32 %v6211_v0, %v6210_v19  ;;  %v6117_v0 = vmul.f32 %v11462_v35, %v11462_v35  ;;  %v6021_v39 = vadd.f32 %v6020_v29, %v6019_v5  ;;  %v6219_v19 = vsel %vm124_vm0, %v6116_v10, 0.0 }
 0x9b5   :  { %v6120_v5 = vmul.f32 %v11480_v3, %v11480_v3 }
 0x9b6   :  { %v6214_v27 = vadd.f32 %v6213_v13, %v6212_v1  ;;  %v6118_v13 = vmul.f32 %v11468_v57, %v11468_v57  ;;  %v6023_v38 = vadd.f32 %v6022_v44, %v6021_v39  ;;  %v6221_v11 = vsel %vm124_vm0, %v6117_v0, 0.0 }
 0x9b7   :  { %v6225_v0 = vsel %vm124_vm0, %v6119_v8, 0.0  ;;  %v6030_v39 = vsel %vm124_vm0, %v11480_v3, 0.0 }
 0x9b8   :  { %v6216_v18 = vadd.f32 %v6215_v30, %v6214_v27  ;;  %v6025_v29 = vadd.f32 %v6024_v63, %v6023_v38  ;;  %v6223_v10 = vsel %vm124_vm0, %v6118_v13, 0.0  ;;  %v6028_v27 = vsel %vm124_vm0, %v11474_v34, 0.0 }
 0x9b9   :  { %v11671_v48 = vpop.f32.mrf.mxu3  ;;  %v6227_v38 = vsel %vm124_vm0, %v6120_v5, 0.0 }
 0x9ba   :  { %v6218_v1 = vadd.f32 %v6217_v52, %v6216_v18  ;;  %v6027_v52 = vadd.f32 %v6026_v4, %v6025_v29  ;;  %v6034_v29 = vsel %vm124_vm0, %v11491_v31, 0.0  ;;  %v6131_v36 = vmul.f32 %v11671_v48, %v11671_v48 }
 0x9bc   :  { %v6220_v30 = vadd.f32 %v6219_v19, %v6218_v1  ;;  %v6121_v19 = vmul.f32 %v11486_v61, %v11486_v61  ;;  %v6029_v13 = vadd.f32 %v6028_v27, %v6027_v52  ;;  %v6032_v1 = vsel %vm124_vm0, %v11486_v61, 0.0 }
 0x9bd   :  { %v6124_v52 = vmul.f32 %v11517_v26, %v11517_v26 }
 0x9be   :  { %v6222_v44 = vadd.f32 %v6221_v11, %v6220_v30  ;;  %v6122_v11 = vmul.f32 %v11491_v31, %v11491_v31  ;;  %v6031_v30 = vadd.f32 %v6030_v39, %v6029_v13  ;;  %v6229_v8 = vsel %vm124_vm0, %v6121_v19, 0.0 }
 0x9bf   :  { %v6233_v19 = vsel %vm124_vm0, %v6123_v2, 0.0  ;;  %v6038_v13 = vsel %vm124_vm0, %v11517_v26, 0.0 }
 0x9c0   :  { %v6224_v63 = vadd.f32 %v6223_v10, %v6222_v44  ;;  %v6033_v27 = vadd.f32 %v6032_v1, %v6031_v30  ;;  %v6231_v5 = vsel %vm124_vm0, %v6122_v11, 0.0  ;;  %v6036_v44 = vsel %vm124_vm0, %v11494_v47, 0.0 }
 0x9c1   :  { %v11693_v37 = vpop.f32.mrf.mxu3  ;;  %v6040_v30 = vsel %vm124_vm0, %v11539_v15, 0.0 }
 0x9c2   :  { %v6226_v4 = vadd.f32 %v6225_v0, %v6224_v63  ;;  %v6035_v39 = vadd.f32 %v6034_v29, %v6033_v27  ;;  %v6042_v27 = vsel %vm124_vm0, %v11561_v59, 0.0 }
 0x9c4   :  { %v6228_v10 = vadd.f32 %v6227_v38, %v6226_v4  ;;  %v6125_v38 = vmul.f32 %v11539_v15, %v11539_v15  ;;  %v6037_v11 = vadd.f32 %v6036_v44, %v6035_v39  ;;  %v6235_v4 = vsel %vm124_vm0, %v6124_v52, 0.0 }
 0x9c5   :  { %v6128_v39 = vmul.f32 %v11605_v42, %v11605_v42 }
 0x9c6   :  { %v6230_v0 = vadd.f32 %v6229_v8, %v6228_v10  ;;  %v6126_v8 = vmul.f32 %v11561_v59, %v11561_v59  ;;  %v6039_v10 = vadd.f32 %v6038_v13, %v6037_v11  ;;  %v6237_v2 = vsel %vm124_vm0, %v6125_v38, 0.0 }
 0x9c7   :  { %v6241_v38 = vsel %vm124_vm0, %v6127_v55, 0.0  ;;  %v6046_v11 = vsel %vm124_vm0, %v11605_v42, 0.0 }
 0x9c8   :  { %v6232_v1 = vadd.f32 %v6231_v5, %v6230_v0  ;;  %v6041_v44 = vadd.f32 %v6040_v30, %v6039_v10  ;;  %v6239_v52 = vsel %vm124_vm0, %v6126_v8, 0.0  ;;  %v6044_v0 = vsel %vm124_vm0, %v11583_v51, 0.0 }
 0x9c9   :  { %v11715_v58 = vpop.f32.mrf.mxu3  ;;  %v6048_v10 = vsel %vm124_vm0, %v11627_v20, 0.0 }
 0x9ca   :  { %v6234_v29 = vadd.f32 %v6233_v19, %v6232_v1  ;;  %v6043_v13 = vadd.f32 %v6042_v27, %v6041_v44  ;;  %v6050_v44 = vsel %vm124_vm0, %v11649_v53, 0.0 }
 0x9cc   :  { %v6236_v5 = vadd.f32 %v6235_v4, %v6234_v29  ;;  %v6129_v4 = vmul.f32 %v11627_v20, %v11627_v20  ;;  %v6045_v8 = vadd.f32 %v6044_v0, %v6043_v13  ;;  %v6243_v29 = vsel %vm124_vm0, %v6128_v39, 0.0 }
 0x9cd   :  { %v6132_v13 = vmul.f32 %v11693_v37, %v11693_v37 }
 0x9ce   :  { %v6238_v19 = vadd.f32 %v6237_v2, %v6236_v5  ;;  %v6130_v2 = vmul.f32 %v11649_v53, %v11649_v53  ;;  %v6047_v5 = vadd.f32 %v6046_v11, %v6045_v8  ;;  %v6245_v55 = vsel %vm124_vm0, %v6129_v4, 0.0 }
 0x9cf   :  { %v6249_v4 = vsel %vm124_vm0, %v6131_v36, 0.0  ;;  %v6054_v8 = vsel %vm124_vm0, %v11693_v37, 0.0 }
 0x9d0   :  { %v6240_v30 = vadd.f32 %v6239_v52, %v6238_v19  ;;  %v6049_v0 = vadd.f32 %v6048_v10, %v6047_v5  ;;  %v6247_v39 = vsel %vm124_vm0, %v6130_v2, 0.0  ;;  %v6052_v19 = vsel %vm124_vm0, %v11671_v48, 0.0 }
 0x9d1   :  { %v11737_v18 = vpop.f32.mrf.mxu3  ;;  %v6056_v5 = vsel %vm124_vm0, %v11715_v58, 0.0 }
 0x9d2   :  { %v6242_v27 = vadd.f32 %v6241_v38, %v6240_v30  ;;  %v6051_v11 = vadd.f32 %v6050_v44, %v6049_v0  ;;  %v6058_v0 = vsel %vm124_vm0, %v11737_v18, 0.0 }
 0x9d4   :  { %v6244_v52 = vadd.f32 %v6243_v29, %v6242_v27  ;;  %v6133_v29 = vmul.f32 %v11715_v58, %v11715_v58  ;;  %v6053_v2 = vadd.f32 %v6052_v19, %v6051_v11  ;;  %v6251_v27 = vsel %vm124_vm0, %v6132_v13, 0.0 }
 0x9d6   :  { %v6246_v38 = vadd.f32 %v6245_v55, %v6244_v52  ;;  %v6134_v55 = vmul.f32 %v11737_v18, %v11737_v18  ;;  %v6055_v52 = vadd.f32 %v6054_v8, %v6053_v2  ;;  %v6253_v36 = vsel %vm124_vm0, %v6133_v29, 0.0 }
 0x9d8   :  { %v6248_v10 = vadd.f32 %v6247_v39, %v6246_v38  ;;  %v6057_v19 = vadd.f32 %v6056_v5, %v6055_v52  ;;  %v6255_v13 = vsel %vm124_vm0, %v6134_v55, 0.0 }
 0x9d9   :  { %v11759_v63 = vpop.f32.mrf.mxu3 }
 0x9da   :  { %v6250_v44 = vadd.f32 %v6249_v4, %v6248_v10  ;;  %v6135_v6 = vmul.f32 %v11759_v63, %v11759_v63  ;;  %v6060_v38 = vsel %vm124_vm0, %v11759_v63, 0.0  ;;  %v6059_v8 = vadd.f32 %v6058_v0, %v6057_v19 }
 0x9dc   :  { %v6252_v39 = vadd.f32 %v6251_v27, %v6250_v44  ;;  %v6257_v29 = vsel %vm124_vm0, %v6135_v6, 0.0  ;;  %v6061_v55 = vadd.f32 %v6060_v38, %v6059_v8 }
 0x9de   :  { %v6254_v4 = vadd.f32 %v6253_v36, %v6252_v39 }
 0x9e0   :  { %v6256_v5 = vadd.f32 %v6255_v13, %v6254_v4 }
 0x9e1   :  { %v11781_v1 = vpop.f32.mrf.mxu3 }
 0x9e2   :  { %v6136_v11 = vmul.f32 %v11781_v1, %v11781_v1  ;;  %v6062_v2 = vsel %vm124_vm0, %v11781_v1, 0.0  ;;  %v6258_v0 = vadd.f32 %v6257_v29, %v6256_v5 }
 0x9e3   :  { %v6063_v39 = vadd.f32 %v6062_v2, %v6061_v55 }
 0x9e4   :  { %v6259_v44 = vsel %vm124_vm0, %v6136_v11, 0.0 }
 0x9e5   :  { %v6260_v41 = vadd.f32 %v6259_v44, %v6258_v0 }
 0x9e9   :  { %v11803_v30 = vpop.f32.mrf.mxu3 }
 0x9ea   :  { %v6137_v27 = vmul.f32 %v11803_v30, %v11803_v30  ;;  %v6064_v52 = vsel %vm124_vm0, %v11803_v30, 0.0 }
 0x9eb   :  { %v6065_v50 = vadd.f32 %v6064_v52, %v6063_v39 }
 0x9ec   :  { %v6261_v6 = vsel %vm124_vm0, %v6137_v27, 0.0 }
 0x9ed   :  { %v6262_v38 = vadd.f32 %v6261_v6, %v6260_v41 }
 0x9f1   :  { %v11825_v10 = vpop.f32.mrf.mxu3 }
 0x9f2   :  { %12726 = vst [vmem:[#allocation76_spill] sm:$0xff] %v11825_v10  ;;  %v6138_v36 = vmul.f32 %v11825_v10, %v11825_v10  ;;  %v6066_v19 = vsel %vm124_vm0, %v11825_v10, 0.0 }
 0x9f3   :  { %v6067_v4 = vadd.f32 %v6066_v19, %v6065_v50 }
 0x9f4   :  { %v6263_v13 = vsel %vm124_vm0, %v6138_v36, 0.0 }
 0x9f5   :  { %v6264_v49 = vadd.f32 %v6263_v13, %v6262_v38 }
 0x9f9   :  { %v5938_v11 = vpop.f32.mrf.mxu3 }
 0x9fa   :  { %v6068_v8 = vsel %vm124_vm0, %v5938_v11, 0.0  ;;  %v6139_v14 = vmul.f32 %v5938_v11, %v5938_v11 }
 0x9fb   :  { %v6069_v12 = vadd.f32 %v6068_v8, %v6067_v4 }
 0x9fc   :  { %v6265_v29 = vsel %vm124_vm0, %v6139_v14, 0.0 }
 0x9fd   :  { %v6070_v2 = vrot.slane %v6069_v12, 4  ;;  %v6266_v5 = vadd.f32 %v6265_v29, %v6264_v49 }
 0x9ff   :  { %v6071_v27 = vadd.f32 %v6070_v2, %v6069_v12  ;;  %v6267_v55 = vrot.slane %v6266_v5, 4 }
 0xa01   :  { %v6072_v56 = vrot.slane %v6071_v27, 2  ;;  %v6268_v46 = vadd.f32 %v6267_v55, %v6266_v5 }
 0xa03   :  { %v6073_v44 = vadd.f32 %v6072_v56, %v6071_v27  ;;  %v6269_v52 = vrot.slane %v6268_v46, 2  ;;  %v5941_v56 = vld [vmem:[%s12242_s8] sm:$0x1]  ;;  %s6993_s8 = smov [#allocation7]  }
 0xa05   :  { %v6074_v0 = vrot.slane %v6073_v44, 1  ;;  %v6270_v36 = vadd.f32 %v6269_v52, %v6268_v46 }
 0xa07   :  { %v6075_v41 = vadd.f32 %v6074_v0, %v6073_v44  ;;  %v6271_v50 = vrot.slane %v6270_v36, 1 }
 0xa09   :  { %v6272_v39 = vadd.f32 %v6271_v50, %v6270_v36  ;;  %v6273_v6 = vmul.f32 0.001953125, %v6075_v41  ;;  %v6870_v36 = vld [vmem:[#allocation4 + $0x1f8] sm:$0xff] }
 0xa0b   :  { %v6274_v19 = vmul.f32 0.001953125, %v6272_v39  ;;  %v6275_v10 = vmul.f32 %v6273_v6, %v6273_v6 }
 0xa0d   :  { %v6276_v13 = vsub.f32 %v6274_v19, %v6275_v10  ;;  %v5942_v10 = vld [vmem:[%s12243_s9] sm:$0x1]  ;;  %s6621_s9 = sshll.u32 %s6993_s8, 4  ;;  %s6622_s9 = int_to_ptr.vmem [resolvable:$true] %s6621_s9 }
 0xa0f   :  { %v6277_v38 = vadd.f32 1e-05, %v6276_v13 }
 0xa11   :  { %6864 = vrsqrt.f32 %v6277_v38  ;;  %vm6284_vm13 = vweird.f32 %v6277_v38 }
 0xa17   :  { %v6865_v14 = vpop.eup %6864 }
 0xa18   :  { %v6279_v4 = vmul.f32 %v6865_v14, %v6277_v38  ;;  %vm6285_vm12 = vweird.f32 %v6865_v14 }
 0xa19   :  { %vm6286_vm14 = vmor %vm6284_vm13, %vm6285_vm12 }
 0xa1a   :  { %v6280_v49 = vmul.f32 %v6865_v14, %v6279_v4  ;;  %v12727_v4 = vld [vmem:[#allocation76_spill] sm:$0xff] }
 0xa1c   :  { %v6281_v12 = vmul.f32 0.5, %v6280_v49 }
 0xa1e   :  { %v6282_v8 = vsub.f32 1.5, %v6281_v12 }
 0xa20   :  { %v6283_v46 = vmul.f32 %v6865_v14, %v6282_v8 }
 0xa22   :  { %v6287_v29 = vsel %vm6286_vm14, %v6865_v14, %v6283_v46 }
 0xa23   :  { %v6288_v2 = vmul.f32 %v6287_v29, %v5941_v56 }
 0xa25   :  { %v6289_v5 = vmul.f32 %v6288_v2, %v6273_v6  ;;  %v11849_v27 = vperm.slane %v6288_v2, 0 }
 0xa27   :  { %v6290_v55 = vsub.f32 %v5942_v10, %v6289_v5  ;;  %v6357_v44 = vmul.f32 %v11849_v27, %v5938_v11  ;;  %v6317_v39 = vmul.f32 %v11849_v27, %v11354_v16  ;;  %v6318_v6 = vmul.f32 %v11849_v27, %v11360_v28 }
 0xa28   :  { %v6319_v19 = vmul.f32 %v11849_v27, %v11366_v45  ;;  %v6320_v11 = vmul.f32 %v11849_v27, %v11372_v33  ;;  %v6321_v13 = vmul.f32 %v11849_v27, %v11378_v32  ;;  %v6322_v38 = vmul.f32 %v11849_v27, %v11384_v40 }
 0xa29   :  { %v11852_v52 = vperm.slane %v6290_v55, 0  ;;  %v6323_v14 = vmul.f32 %v11849_v27, %v11390_v25  ;;  %v6324_v16 = vmul.f32 %v11849_v27, %v11396_v24  ;;  %v6325_v28 = vmul.f32 %v11849_v27, %v11402_v54 }
 0xa2a   :  { %v6326_v45 = vmul.f32 %v11849_v27, %v11408_v43  ;;  %v6327_v33 = vmul.f32 %v11849_v27, %v11414_v21  ;;  %v6328_v32 = vmul.f32 %v11849_v27, %v11420_v22  ;;  %v6329_v40 = vmul.f32 %v11849_v27, %v11426_v23 }
 0xa2b   :  { %v6424_v0 = vadd.f32 %v11852_v52, %v6357_v44  ;;  %v6330_v25 = vmul.f32 %v11849_v27, %v11432_v7  ;;  %v6331_v24 = vmul.f32 %v11849_v27, %v11438_v62  ;;  %v6332_v54 = vmul.f32 %v11849_v27, %v11444_v9 }
 0xa2c   :  { %v6333_v43 = vmul.f32 %v11849_v27, %v11450_v60  ;;  %v6334_v21 = vmul.f32 %v11849_v27, %v11456_v17  ;;  %v6335_v22 = vmul.f32 %v11849_v27, %v11462_v35  ;;  %v6336_v23 = vmul.f32 %v11849_v27, %v11468_v57 }
 0xa2d   :  { %v6488_v41 = vadd.f32 %v6870_v36, %v6424_v0  ;;  %v6337_v7 = vmul.f32 %v11849_v27, %v11474_v34  ;;  %v6338_v62 = vmul.f32 %v11849_v27, %v11480_v3  ;;  %v6339_v9 = vmul.f32 %v11849_v27, %v11486_v61 }
 0xa2e   :  { %v6340_v60 = vmul.f32 %v11849_v27, %v11491_v31  ;;  %v6341_v17 = vmul.f32 %v11849_v27, %v11494_v47  ;;  %v6342_v35 = vmul.f32 %v11849_v27, %v11517_v26  ;;  %v6343_v57 = vmul.f32 %v11849_v27, %v11539_v15 }
 0xa2f   :  { %v6552_v50 = vmax.f32 %v6488_v41, 0.0  ;;  %v6344_v34 = vmul.f32 %v11849_v27, %v11561_v59  ;;  %v6345_v3 = vmul.f32 %v11849_v27, %v11583_v51  ;;  %v6346_v61 = vmul.f32 %v11849_v27, %v11605_v42 }
 0xa30   :  { %v6347_v31 = vmul.f32 %v11849_v27, %v11627_v20  ;;  %v6348_v47 = vmul.f32 %v11849_v27, %v11649_v53  ;;  %v6349_v26 = vmul.f32 %v11849_v27, %v11671_v48  ;;  %v6350_v15 = vmul.f32 %v11849_v27, %v11693_v37 }
 0xa31   :  { %6616 = vst.msk [vmem:[#allocation7 + $0x1f8] sm:$0xff] %vm124_vm0, %v6552_v50  ;;  %v6351_v59 = vmul.f32 %v11849_v27, %v11715_v58  ;;  %v6352_v51 = vmul.f32 %v11849_v27, %v11737_v18  ;;  %v6353_v42 = vmul.f32 %v11849_v27, %v11759_v63  ;;  %v6354_v20 = vmul.f32 %v11849_v27, %v11781_v1 }
 0xa32   :  { %v6355_v53 = vmul.f32 %v11849_v27, %v11803_v30  ;;  %v6356_v48 = vmul.f32 %v11849_v27, %v12727_v4  ;;  %v11937_v37 = vadd.f32 %v11852_v52, %v6317_v39  ;;  %v11940_v58 = vadd.f32 %v11852_v52, %v6318_v6 }
 0xa33   :  { %v11943_v18 = vadd.f32 %v11852_v52, %v6319_v19  ;;  %v11946_v63 = vadd.f32 %v11852_v52, %v6320_v11  ;;  %v11949_v1 = vadd.f32 %v11852_v52, %v6321_v13  ;;  %v11952_v30 = vadd.f32 %v11852_v52, %v6322_v38 }
 0xa34   :  { %v11955_v49 = vadd.f32 %v11852_v52, %v6323_v14  ;;  %v11958_v12 = vadd.f32 %v11852_v52, %v6324_v16  ;;  %v11961_v8 = vadd.f32 %v11852_v52, %v6325_v28  ;;  %v11964_v56 = vadd.f32 %v11852_v52, %v6326_v45 }
 0xa35   :  { %v11967_v46 = vadd.f32 %v11852_v52, %v6327_v33  ;;  %v11970_v29 = vadd.f32 %v11852_v52, %v6328_v32  ;;  %v11973_v2 = vadd.f32 %v11852_v52, %v6329_v40  ;;  %v11976_v10 = vadd.f32 %v11852_v52, %v6330_v25 }
 0xa36   :  { %v11979_v5 = vadd.f32 %v11852_v52, %v6331_v24  ;;  %v11982_v55 = vadd.f32 %v11852_v52, %v6332_v54  ;;  %v11985_v44 = vadd.f32 %v11852_v52, %v6333_v43  ;;  %v11988_v0 = vadd.f32 %v11852_v52, %v6334_v21 }
 0xa37   :  { %v11991_v36 = vadd.f32 %v11852_v52, %v6335_v22  ;;  %v11994_v41 = vadd.f32 %v11852_v52, %v6336_v23  ;;  %v11997_v50 = vadd.f32 %v11852_v52, %v6337_v7  ;;  %v12000_v39 = vadd.f32 %v11852_v52, %v6338_v62  ;;  %v12737_v23 = vld [vmem:[#allocation38_spill] sm:$0xff]  ;;  %v12738_v62 = vld [vmem:[#allocation52_spill] sm:$0xff] }
 0xa38   :  { %v12003_v6 = vadd.f32 %v11852_v52, %v6339_v9  ;;  %v12006_v19 = vadd.f32 %v11852_v52, %v6340_v60  ;;  %v12009_v11 = vadd.f32 %v11852_v52, %v6341_v17  ;;  %v12012_v13 = vadd.f32 %v11852_v52, %v6342_v35  ;;  %v12739_v60 = vld [vmem:[#allocation39_spill] sm:$0xff]  ;;  %v12740_v35 = vld [vmem:[#allocation53_spill] sm:$0xff] }
 0xa39   :  { %v12015_v38 = vadd.f32 %v11852_v52, %v6343_v57  ;;  %v12018_v14 = vadd.f32 %v11852_v52, %v6344_v34  ;;  %v12021_v16 = vadd.f32 %v11852_v52, %v6345_v3  ;;  %v12024_v28 = vadd.f32 %v11852_v52, %v6346_v61  ;;  %v12741_v34 = vld [vmem:[#allocation13_spill] sm:$0xff] }
 0xa3a   :  { %v12027_v45 = vadd.f32 %v11852_v52, %v6347_v31  ;;  %v12030_v33 = vadd.f32 %v11852_v52, %v6348_v47  ;;  %v12033_v32 = vadd.f32 %v11852_v52, %v6349_v26  ;;  %v12036_v40 = vadd.f32 %v11852_v52, %v6350_v15  ;;  %v12742_v31 = vld [vmem:[#allocation50_spill] sm:$0xff] }
 0xa3b   :  { %v12039_v25 = vadd.f32 %v11852_v52, %v6351_v59  ;;  %v12042_v24 = vadd.f32 %v11852_v52, %v6352_v51  ;;  %v12045_v54 = vadd.f32 %v11852_v52, %v6353_v42  ;;  %v12048_v43 = vadd.f32 %v11852_v52, %v6354_v20  ;;  %v12743_v51 = vld [vmem:[#allocation54_spill] sm:$0xff] }
 0xa3c   :  { %12728 = vst [vmem:[#allocation65_spill] sm:$0xff] %v12030_v33  ;;  %v12051_v21 = vadd.f32 %v11852_v52, %v6355_v53  ;;  %v12054_v22 = vadd.f32 %v11852_v52, %v6356_v48  ;;  %v6294_v7 = vmul.f32 %v11849_v27, %v12737_v23  ;;  %v6295_v9 = vmul.f32 %v11849_v27, %v12738_v62  ;;  %v12744_v53 = vld [vmem:[#allocation55_spill] sm:$0xff]  ;;  %v12745_v23 = vld [vmem:[#allocation56_spill] sm:$0xff]  ;;  %v12746_v62 = vld [vmem:[#allocation57_spill] sm:$0xff] }
 0xa3d   :  { %12729 = vst [vmem:[#allocation78_spill] sm:$0xff] %v12033_v32  ;;  %v6296_v17 = vmul.f32 %v11849_v27, %v12739_v60  ;;  %v6297_v57 = vmul.f32 %v11849_v27, %v12740_v35  ;;  %v6298_v3 = vmul.f32 %v11849_v27, %v12741_v34  ;;  %v6299_v47 = vmul.f32 %v11849_v27, %v12742_v31  ;;  %v6872_v34 = vld [vmem:[#allocation4 + $0x8] sm:$0xff] }
 0xa3e   :  { %12730 = vst [vmem:[#allocation66_spill] sm:$0xff] %v12036_v40  ;;  %v6361_v61 = vadd.f32 %v11852_v52, %v6294_v7  ;;  %v6362_v26 = vadd.f32 %v11852_v52, %v6295_v9  ;;  %v6300_v42 = vmul.f32 %v11849_v27, %v12743_v51  ;;  %v6301_v4 = vmul.f32 %v11849_v27, %v12744_v53 }
 0xa3f   :  { %12731 = vst [vmem:[#allocation80_spill] sm:$0xff] %v12039_v25  ;;  %v6363_v15 = vadd.f32 %v11852_v52, %v6296_v17  ;;  %v6364_v59 = vadd.f32 %v11852_v52, %v6297_v57  ;;  %v6365_v20 = vadd.f32 %v11852_v52, %v6298_v3  ;;  %v6366_v48 = vadd.f32 %v11852_v52, %v6299_v47  ;;  %v6871_v17 = vld [vmem:[#allocation4] sm:$0xff]  ;;  %v6873_v3 = vld [vmem:[#allocation4 + $0x10] sm:$0xff] }
 0xa40   :  { %12732 = vst [vmem:[#allocation67_spill] sm:$0xff] %v12042_v24  ;;  %v6302_v7 = vmul.f32 %v11849_v27, %v12745_v23  ;;  %v6303_v9 = vmul.f32 %v11849_v27, %v12746_v62  ;;  %v6367_v60 = vadd.f32 %v11852_v52, %v6300_v42  ;;  %v6425_v35 = vadd.f32 %v6871_v17, %v6361_v61  ;;  %v12749_v24 = vld [vmem:[#allocation60_spill] sm:$0xff]  ;;  %v6876_v17 = vld [vmem:[#allocation4 + $0x28] sm:$0xff] }
 0xa41   :  { %12733 = vst [vmem:[#allocation82_spill] sm:$0xff] %v12045_v54  ;;  %v6368_v57 = vadd.f32 %v11852_v52, %v6301_v4  ;;  %v6426_v31 = vadd.f32 %v6872_v34, %v6362_v26  ;;  %v6427_v51 = vadd.f32 %v6873_v3, %v6363_v15  ;;  %v6875_v54 = vld [vmem:[#allocation4 + $0x20] sm:$0xff]  ;;  %v6306_v61 = vmul.f32 %v11849_v27, %v12749_v24  ;;  %v12750_v4 = vld [vmem:[#allocation40_spill] sm:$0xff] }
 0xa42   :  { %12734 = vst [vmem:[#allocation69_spill] sm:$0xff] %v12048_v43  ;;  %v12748_v43 = vld [vmem:[#allocation59_spill] sm:$0xff]  ;;  %v6369_v62 = vadd.f32 %v11852_v52, %v6302_v7  ;;  %v6429_v42 = vadd.f32 %v6875_v54, %v6365_v20  ;;  %v6307_v26 = vmul.f32 %v11849_v27, %v12750_v4  ;;  %v6370_v15 = vadd.f32 %v11852_v52, %v6303_v9  ;;  %v6877_v34 = vld [vmem:[#allocation4 + $0x30] sm:$0xff]  ;;  %v6878_v7 = vld [vmem:[#allocation4 + $0x38] sm:$0xff] }
 0xa43   :  { %12735 = vst [vmem:[#allocation84_spill] sm:$0xff] %v12051_v21  ;;  %v12747_v21 = vld [vmem:[#allocation58_spill] sm:$0xff]  ;;  %v6305_v23 = vmul.f32 %v11849_v27, %v12748_v43  ;;  %v6431_v43 = vadd.f32 %v6877_v34, %v6367_v60  ;;  %v6489_v3 = vmax.f32 %v6425_v35, 0.0  ;;  %v6432_v25 = vadd.f32 %v6878_v7, %v6368_v57  ;;  %v6880_v35 = vld [vmem:[#allocation4 + $0x48] sm:$0xff]  ;;  %v6882_v7 = vld [vmem:[#allocation4 + $0x58] sm:$0xff] }
 0xa44   :  { %12736 = vst [vmem:[#allocation71_spill] sm:$0xff] %v12054_v22  ;;  %v6874_v22 = vld [vmem:[#allocation4 + $0x18] sm:$0xff]  ;;  %v6304_v47 = vmul.f32 %v11849_v27, %v12747_v21  ;;  %v6490_v54 = vmax.f32 %v6426_v31, 0.0  ;;  %v6491_v20 = vmax.f32 %v6427_v51, 0.0  ;;  %v12751_v24 = vld [vmem:[#allocation86_spill] sm:$0xff]  ;;  %v6373_v4 = vadd.f32 %v11852_v52, %v6306_v61 }
 0xa45   :  { %v6428_v53 = vadd.f32 %v6874_v22, %v6364_v59  ;;  %v6430_v22 = vadd.f32 %v6876_v17, %v6366_v48  ;;  %v6372_v21 = vadd.f32 %v11852_v52, %v6305_v23  ;;  %v6308_v32 = vmul.f32 %v11849_v27, %v12751_v24  ;;  %v6879_v9 = vld [vmem:[#allocation4 + $0x40] sm:$0xff]  ;;  %6553 = vst.msk [vmem:[#allocation7] sm:$0xff] %vm124_vm0, %v6489_v3  ;;  %v12753_v51 = vld [vmem:[#allocation61_spill] sm:$0xff]  ;;  %v6881_v17 = vld [vmem:[#allocation4 + $0x50] sm:$0xff] }
 0xa46   :  { %v6371_v59 = vadd.f32 %v11852_v52, %v6304_v47  ;;  %v6433_v33 = vadd.f32 %v6879_v9, %v6369_v62  ;;  %v6493_v48 = vmax.f32 %v6429_v42, 0.0  ;;  %v12752_v47 = vld [vmem:[#allocation68_spill] sm:$0xff]  ;;  %v6374_v60 = vadd.f32 %v11852_v52, %v6307_v26  ;;  %6554 = vst.msk [vmem:[#allocation7 + $0x8] sm:$0xff] %vm124_vm0, %v6490_v54  ;;  %v12754_v34 = vld [vmem:[#allocation70_spill] sm:$0xff] }
 0xa47   :  { %v6492_v40 = vmax.f32 %v6428_v53, 0.0  ;;  %v6309_v23 = vmul.f32 %v11849_v27, %v12752_v47  ;;  %v6434_v57 = vadd.f32 %v6880_v35, %v6370_v15  ;;  %v6494_v31 = vmax.f32 %v6430_v22, 0.0  ;;  %6555 = vst.msk [vmem:[#allocation7 + $0x10] sm:$0xff] %vm124_vm0, %v6491_v20  ;;  %v12755_v54 = vld [vmem:[#allocation62_spill] sm:$0xff]  ;;  %v12756_v20 = vld [vmem:[#allocation72_spill] sm:$0xff]  ;;  %v6884_v35 = vld [vmem:[#allocation4 + $0x68] sm:$0xff] }
 0xa48   :  { %v6310_v53 = vmul.f32 %v11849_v27, %v12753_v51  ;;  %v6375_v61 = vadd.f32 %v11852_v52, %v6308_v32  ;;  %v6435_v62 = vadd.f32 %v6881_v17, %v6371_v59  ;;  %v6495_v42 = vmax.f32 %v6431_v43, 0.0  ;;  %v6883_v9 = vld [vmem:[#allocation4 + $0x60] sm:$0xff]  ;;  %6557 = vst.msk [vmem:[#allocation7 + $0x20] sm:$0xff] %vm124_vm0, %v6493_v48  ;;  %v6885_v17 = vld [vmem:[#allocation4 + $0x70] sm:$0xff] }
 0xa49   :  { %v6311_v3 = vmul.f32 %v11849_v27, %v12754_v34  ;;  %v6376_v26 = vadd.f32 %v11852_v52, %v6309_v23  ;;  %v6436_v15 = vadd.f32 %v6882_v7, %v6372_v21  ;;  %v6496_v22 = vmax.f32 %v6432_v25, 0.0  ;;  %6556 = vst.msk [vmem:[#allocation7 + $0x18] sm:$0xff] %vm124_vm0, %v6492_v40  ;;  %v12757_v40 = vld [vmem:[#allocation63_spill] sm:$0xff]  ;;  %v12758_v48 = vld [vmem:[#allocation74_spill] sm:$0xff]  ;;  %v6886_v7 = vld [vmem:[#allocation4 + $0x78] sm:$0xff] }
 0xa4a   :  { %v6312_v24 = vmul.f32 %v11849_v27, %v12755_v54  ;;  %v6377_v32 = vadd.f32 %v11852_v52, %v6310_v53  ;;  %v6437_v59 = vadd.f32 %v6883_v9, %v6373_v4  ;;  %v6497_v43 = vmax.f32 %v6433_v33, 0.0  ;;  %6558 = vst.msk [vmem:[#allocation7 + $0x28] sm:$0xff] %vm124_vm0, %v6494_v31  ;;  %v12759_v31 = vld [vmem:[#allocation64_spill] sm:$0xff]  ;;  %v6887_v9 = vld [vmem:[#allocation4 + $0x80] sm:$0xff] }
 0xa4b   :  { %v6313_v47 = vmul.f32 %v11849_v27, %v12756_v20  ;;  %v6378_v23 = vadd.f32 %v11852_v52, %v6311_v3  ;;  %v6438_v21 = vadd.f32 %v6884_v35, %v6374_v60  ;;  %v6498_v25 = vmax.f32 %v6434_v57, 0.0  ;;  %6559 = vst.msk [vmem:[#allocation7 + $0x30] sm:$0xff] %vm124_vm0, %v6495_v42  ;;  %v6888_v20 = vld [vmem:[#allocation4 + $0x88] sm:$0xff] }
 0xa4c   :  { %v6314_v51 = vmul.f32 %v11849_v27, %v12757_v40  ;;  %v6379_v53 = vadd.f32 %v11852_v52, %v6312_v24  ;;  %v6439_v4 = vadd.f32 %v6885_v17, %v6375_v61  ;;  %v6499_v33 = vmax.f32 %v6435_v62, 0.0  ;;  %6560 = vst.msk [vmem:[#allocation7 + $0x38] sm:$0xff] %vm124_vm0, %v6496_v22 }
 0xa4d   :  { %v6315_v34 = vmul.f32 %v11849_v27, %v12758_v48  ;;  %v6380_v3 = vadd.f32 %v11852_v52, %v6313_v47  ;;  %v6440_v60 = vadd.f32 %v6886_v7, %v6376_v26  ;;  %v6500_v57 = vmax.f32 %v6436_v15, 0.0  ;;  %6561 = vst.msk [vmem:[#allocation7 + $0x40] sm:$0xff] %vm124_vm0, %v6497_v43  ;;  %v6889_v15 = vld [vmem:[#allocation4 + $0x90] sm:$0xff] }
 0xa4e   :  { %v6316_v54 = vmul.f32 %v11849_v27, %v12759_v31  ;;  %v6381_v24 = vadd.f32 %v11852_v52, %v6314_v51  ;;  %v6441_v61 = vadd.f32 %v6887_v9, %v6377_v32  ;;  %v6501_v62 = vmax.f32 %v6437_v59, 0.0  ;;  %6562 = vst.msk [vmem:[#allocation7 + $0x48] sm:$0xff] %vm124_vm0, %v6498_v25  ;;  %v6890_v27 = vld [vmem:[#allocation4 + $0x98] sm:$0xff]  ;;  %v6891_v59 = vld [vmem:[#allocation4 + $0xa0] sm:$0xff] }
 0xa4f   :  { %v6382_v42 = vadd.f32 %v11852_v52, %v6315_v34  ;;  %v6442_v35 = vadd.f32 %v6888_v20, %v6378_v23  ;;  %v6502_v47 = vmax.f32 %v6438_v21, 0.0  ;;  %v6443_v22 = vadd.f32 %v6889_v15, %v6379_v53  ;;  %6563 = vst.msk [vmem:[#allocation7 + $0x50] sm:$0xff] %vm124_vm0, %v6499_v33  ;;  %v6892_v23 = vld [vmem:[#allocation4 + $0xa8] sm:$0xff]  ;;  %v6894_v33 = vld [vmem:[#allocation4 + $0xb8] sm:$0xff] }
 0xa50   :  { %v6383_v26 = vadd.f32 %v11852_v52, %v6316_v54  ;;  %v6503_v40 = vmax.f32 %v6439_v4, 0.0  ;;  %v6444_v51 = vadd.f32 %v6890_v27, %v6380_v3  ;;  %v6504_v32 = vmax.f32 %v6440_v60, 0.0  ;;  %6564 = vst.msk [vmem:[#allocation7 + $0x58] sm:$0xff] %vm124_vm0, %v6500_v57  ;;  %v6893_v52 = vld [vmem:[#allocation4 + $0xb0] sm:$0xff]  ;;  %v6895_v3 = vld [vmem:[#allocation4 + $0xc0] sm:$0xff]  ;;  %v6896_v57 = vld [vmem:[#allocation4 + $0xc8] sm:$0xff] }
 0xa51   :  { %v6445_v43 = vadd.f32 %v6891_v59, %v6381_v24  ;;  %v6505_v17 = vmax.f32 %v6441_v61, 0.0  ;;  %6565 = vst.msk [vmem:[#allocation7 + $0x60] sm:$0xff] %vm124_vm0, %v6501_v62  ;;  %v6446_v21 = vadd.f32 %v6892_v23, %v6382_v42  ;;  %v6506_v25 = vmax.f32 %v6442_v35, 0.0  ;;  %v6897_v24 = vld [vmem:[#allocation4 + $0xd0] sm:$0xff] }
 0xa52   :  { %6566 = vst.msk [vmem:[#allocation7 + $0x68] sm:$0xff] %vm124_vm0, %v6502_v47  ;;  %v6447_v53 = vadd.f32 %v6893_v52, %v6383_v26  ;;  %v6507_v4 = vmax.f32 %v6443_v22, 0.0  ;;  %v6448_v48 = vadd.f32 %v6894_v33, %v11937_v37  ;;  %v6508_v34 = vmax.f32 %v6444_v51, 0.0  ;;  %v6898_v37 = vld [vmem:[#allocation4 + $0xd8] sm:$0xff] }
 0xa53   :  { %6567 = vst.msk [vmem:[#allocation7 + $0x70] sm:$0xff] %vm124_vm0, %v6503_v40  ;;  %v6449_v7 = vadd.f32 %v6895_v3, %v11940_v58  ;;  %v6509_v60 = vmax.f32 %v6445_v43, 0.0  ;;  %v6450_v31 = vadd.f32 %v6896_v57, %v11943_v18  ;;  %v6510_v54 = vmax.f32 %v6446_v21, 0.0  ;;  %v6899_v58 = vld [vmem:[#allocation4 + $0xe0] sm:$0xff]  ;;  %v6900_v18 = vld [vmem:[#allocation4 + $0xe8] sm:$0xff] }
 0xa54   :  { %6568 = vst.msk [vmem:[#allocation7 + $0x78] sm:$0xff] %vm124_vm0, %v6504_v32  ;;  %v6451_v9 = vadd.f32 %v6897_v24, %v11946_v63  ;;  %v6511_v61 = vmax.f32 %v6447_v53, 0.0  ;;  %v6452_v62 = vadd.f32 %v6898_v37, %v11949_v1  ;;  %v6512_v42 = vmax.f32 %v6448_v48, 0.0  ;;  %v6901_v63 = vld [vmem:[#allocation4 + $0xf0] sm:$0xff]  ;;  %v6902_v1 = vld [vmem:[#allocation4 + $0xf8] sm:$0xff] }
 0xa55   :  { %6569 = vst.msk [vmem:[#allocation7 + $0x80] sm:$0xff] %vm124_vm0, %v6505_v17  ;;  %v6453_v20 = vadd.f32 %v6899_v58, %v11952_v30  ;;  %v6513_v35 = vmax.f32 %v6449_v7, 0.0  ;;  %v6454_v47 = vadd.f32 %v6900_v18, %v11955_v49  ;;  %v6514_v26 = vmax.f32 %v6450_v31, 0.0  ;;  %v6903_v30 = vld [vmem:[#allocation4 + $0x100] sm:$0xff]  ;;  %v6904_v49 = vld [vmem:[#allocation4 + $0x108] sm:$0xff] }
 0xa56   :  { %6570 = vst.msk [vmem:[#allocation7 + $0x88] sm:$0xff] %vm124_vm0, %v6506_v25  ;;  %v6455_v15 = vadd.f32 %v6901_v63, %v11958_v12  ;;  %v6515_v22 = vmax.f32 %v6451_v9, 0.0  ;;  %v6456_v40 = vadd.f32 %v6902_v1, %v11961_v8  ;;  %v6516_v27 = vmax.f32 %v6452_v62, 0.0  ;;  %v6905_v12 = vld [vmem:[#allocation4 + $0x110] sm:$0xff]  ;;  %v6906_v8 = vld [vmem:[#allocation4 + $0x118] sm:$0xff] }
 0xa57   :  { %6571 = vst.msk [vmem:[#allocation7 + $0x90] sm:$0xff] %vm124_vm0, %v6507_v4  ;;  %v6457_v51 = vadd.f32 %v6903_v30, %v11964_v56  ;;  %v6517_v32 = vmax.f32 %v6453_v20, 0.0  ;;  %v6458_v59 = vadd.f32 %v6904_v49, %v11967_v46  ;;  %v6518_v43 = vmax.f32 %v6454_v47, 0.0  ;;  %v6907_v56 = vld [vmem:[#allocation4 + $0x120] sm:$0xff]  ;;  %v6908_v46 = vld [vmem:[#allocation4 + $0x128] sm:$0xff] }
 0xa58   :  { %6572 = vst.msk [vmem:[#allocation7 + $0x98] sm:$0xff] %vm124_vm0, %v6508_v34  ;;  %v6459_v17 = vadd.f32 %v6905_v12, %v11970_v29  ;;  %v6519_v23 = vmax.f32 %v6455_v15, 0.0  ;;  %v6460_v21 = vadd.f32 %v6906_v8, %v11973_v2  ;;  %v6520_v25 = vmax.f32 %v6456_v40, 0.0  ;;  %v6909_v29 = vld [vmem:[#allocation4 + $0x130] sm:$0xff]  ;;  %v6910_v2 = vld [vmem:[#allocation4 + $0x138] sm:$0xff]  ;;  %v12761_v8 = vld [vmem:[#allocation78_spill] sm:$0xff] }
 0xa59   :  { %6573 = vst.msk [vmem:[#allocation7 + $0xa0] sm:$0xff] %vm124_vm0, %v6509_v60  ;;  %v6461_v52 = vadd.f32 %v6907_v56, %v11976_v10  ;;  %v6521_v53 = vmax.f32 %v6457_v51, 0.0  ;;  %v6462_v4 = vadd.f32 %v6908_v46, %v11979_v5  ;;  %v6522_v33 = vmax.f32 %v6458_v59, 0.0  ;;  %v6911_v10 = vld [vmem:[#allocation4 + $0x140] sm:$0xff]  ;;  %v6912_v5 = vld [vmem:[#allocation4 + $0x148] sm:$0xff]  ;;  %v12760_v12 = vld [vmem:[#allocation65_spill] sm:$0xff] }
 0xa5a   :  { %6574 = vst.msk [vmem:[#allocation7 + $0xa8] sm:$0xff] %vm124_vm0, %v6510_v54  ;;  %v6463_v48 = vadd.f32 %v6909_v29, %v11982_v55  ;;  %v6523_v34 = vmax.f32 %v6459_v17, 0.0  ;;  %v6464_v3 = vadd.f32 %v6910_v2, %v11985_v44  ;;  %v6524_v7 = vmax.f32 %v6460_v21, 0.0  ;;  %v6913_v55 = vld [vmem:[#allocation4 + $0x150] sm:$0xff]  ;;  %v6914_v44 = vld [vmem:[#allocation4 + $0x158] sm:$0xff]  ;;  %v12762_v56 = vld [vmem:[#allocation66_spill] sm:$0xff] }
 0xa5b   :  { %6575 = vst.msk [vmem:[#allocation7 + $0xb0] sm:$0xff] %vm124_vm0, %v6511_v61  ;;  %v6465_v60 = vadd.f32 %v6911_v10, %v11988_v0  ;;  %v6525_v57 = vmax.f32 %v6461_v52, 0.0  ;;  %v6466_v31 = vadd.f32 %v6912_v5, %v11991_v36  ;;  %v6526_v54 = vmax.f32 %v6462_v4, 0.0  ;;  %v6915_v0 = vld [vmem:[#allocation4 + $0x160] sm:$0xff]  ;;  %v6916_v36 = vld [vmem:[#allocation4 + $0x168] sm:$0xff]  ;;  %v12763_v46 = vld [vmem:[#allocation80_spill] sm:$0xff] }
 0xa5c   :  { %6576 = vst.msk [vmem:[#allocation7 + $0xb8] sm:$0xff] %vm124_vm0, %v6512_v42  ;;  %v6467_v24 = vadd.f32 %v6913_v55, %v11994_v41  ;;  %v6527_v9 = vmax.f32 %v6463_v48, 0.0  ;;  %v6468_v61 = vadd.f32 %v6914_v44, %v11997_v50  ;;  %v6528_v37 = vmax.f32 %v6464_v3, 0.0  ;;  %v6917_v41 = vld [vmem:[#allocation4 + $0x170] sm:$0xff]  ;;  %v6918_v50 = vld [vmem:[#allocation4 + $0x178] sm:$0xff]  ;;  %v12764_v48 = vld [vmem:[#allocation67_spill] sm:$0xff] }
 0xa5d   :  { %6577 = vst.msk [vmem:[#allocation7 + $0xc0] sm:$0xff] %vm124_vm0, %v6513_v35  ;;  %v6469_v62 = vadd.f32 %v6915_v0, %v12000_v39  ;;  %v6529_v42 = vmax.f32 %v6465_v60, 0.0  ;;  %v6470_v58 = vadd.f32 %v6916_v36, %v12003_v6  ;;  %v6530_v20 = vmax.f32 %v6466_v31, 0.0  ;;  %v6919_v39 = vld [vmem:[#allocation4 + $0x180] sm:$0xff]  ;;  %v6920_v6 = vld [vmem:[#allocation4 + $0x188] sm:$0xff]  ;;  %v6929_v29 = vld [vmem:[#allocation4 + $0x1d0] sm:$0xff] }
 0xa5e   :  { %6578 = vst.msk [vmem:[#allocation7 + $0xc8] sm:$0xff] %vm124_vm0, %v6514_v26  ;;  %v6471_v35 = vadd.f32 %v6917_v41, %v12006_v19  ;;  %v6531_v18 = vmax.f32 %v6467_v24, 0.0  ;;  %v6472_v47 = vadd.f32 %v6918_v50, %v12009_v11  ;;  %v6532_v26 = vmax.f32 %v6468_v61, 0.0  ;;  %v6921_v19 = vld [vmem:[#allocation4 + $0x190] sm:$0xff]  ;;  %v6922_v11 = vld [vmem:[#allocation4 + $0x198] sm:$0xff]  ;;  %v6932_v55 = vld [vmem:[#allocation4 + $0x1e8] sm:$0xff] }
 0xa5f   :  { %6579 = vst.msk [vmem:[#allocation7 + $0xd0] sm:$0xff] %vm124_vm0, %v6515_v22  ;;  %v6473_v63 = vadd.f32 %v6919_v39, %v12012_v13  ;;  %v6533_v15 = vmax.f32 %v6469_v62, 0.0  ;;  %v6474_v22 = vadd.f32 %v6920_v6, %v12015_v38  ;;  %v6534_v1 = vmax.f32 %v6470_v58, 0.0  ;;  %v6923_v13 = vld [vmem:[#allocation4 + $0x1a0] sm:$0xff]  ;;  %v6924_v38 = vld [vmem:[#allocation4 + $0x1a8] sm:$0xff]  ;;  %v6930_v3 = vld [vmem:[#allocation4 + $0x1d8] sm:$0xff] }
 0xa60   :  { %6580 = vst.msk [vmem:[#allocation7 + $0xd8] sm:$0xff] %vm124_vm0, %v6516_v27  ;;  %v6475_v40 = vadd.f32 %v6921_v19, %v12018_v14  ;;  %v6535_v27 = vmax.f32 %v6471_v35, 0.0  ;;  %v6476_v30 = vadd.f32 %v6922_v11, %v12021_v16  ;;  %v6536_v51 = vmax.f32 %v6472_v47, 0.0  ;;  %v6925_v14 = vld [vmem:[#allocation4 + $0x1b0] sm:$0xff]  ;;  %v6926_v16 = vld [vmem:[#allocation4 + $0x1b8] sm:$0xff] }
 0xa61   :  { %6581 = vst.msk [vmem:[#allocation7 + $0xe0] sm:$0xff] %vm124_vm0, %v6517_v32  ;;  %v6477_v32 = vadd.f32 %v6923_v13, %v12024_v28  ;;  %v6537_v49 = vmax.f32 %v6473_v63, 0.0  ;;  %v6478_v59 = vadd.f32 %v6924_v38, %v12027_v45  ;;  %v6479_v17 = vadd.f32 %v6925_v14, %v12760_v12  ;;  %v6927_v28 = vld [vmem:[#allocation4 + $0x1c0] sm:$0xff]  ;;  %v6928_v45 = vld [vmem:[#allocation4 + $0x1c8] sm:$0xff]  ;;  %v12766_v5 = vld [vmem:[#allocation69_spill] sm:$0xff] }
 0xa62   :  { %6582 = vst.msk [vmem:[#allocation7 + $0xe8] sm:$0xff] %vm124_vm0, %v6518_v43  ;;  %v6538_v43 = vmax.f32 %v6474_v22, 0.0  ;;  %v6480_v21 = vadd.f32 %v6926_v16, %v12761_v8  ;;  %v6481_v52 = vadd.f32 %v6927_v28, %v12762_v56  ;;  %v6482_v4 = vadd.f32 %v6928_v45, %v12763_v46  ;;  %v12767_v24 = vld [vmem:[#allocation84_spill] sm:$0xff] }
 0xa63   :  { %6583 = vst.msk [vmem:[#allocation7 + $0xf0] sm:$0xff] %vm124_vm0, %v6519_v23  ;;  %v6539_v23 = vmax.f32 %v6475_v40, 0.0  ;;  %v6543_v2 = vmax.f32 %v6479_v17, 0.0  ;;  %v6933_v61 = vld [vmem:[#allocation4 + $0x1f0] sm:$0xff] }
 0xa64   :  { %6584 = vst.msk [vmem:[#allocation7 + $0xf8] sm:$0xff] %vm124_vm0, %v6520_v25  ;;  %v6540_v25 = vmax.f32 %v6476_v30, 0.0  ;;  %v6544_v60 = vmax.f32 %v6480_v21, 0.0  ;;  %v6546_v44 = vmax.f32 %v6482_v4, 0.0 }
 0xa65   :  { %6585 = vst.msk [vmem:[#allocation7 + $0x100] sm:$0xff] %vm124_vm0, %v6521_v53  ;;  %v6541_v53 = vmax.f32 %v6477_v32, 0.0 }
 0xa66   :  { %6586 = vst.msk [vmem:[#allocation7 + $0x108] sm:$0xff] %vm124_vm0, %v6522_v33  ;;  %v6542_v33 = vmax.f32 %v6478_v59, 0.0 }
 0xa67   :  { %6587 = vst.msk [vmem:[#allocation7 + $0x110] sm:$0xff] %vm124_vm0, %v6523_v34  ;;  %v6483_v34 = vadd.f32 %v6929_v29, %v12764_v48 }
 0xa68   :  { %6588 = vst.msk [vmem:[#allocation7 + $0x118] sm:$0xff] %vm124_vm0, %v6524_v7  ;;  %v12765_v7 = vld [vmem:[#allocation82_spill] sm:$0xff] }
 0xa69   :  { %6589 = vst.msk [vmem:[#allocation7 + $0x120] sm:$0xff] %vm124_vm0, %v6525_v57  ;;  %v6484_v10 = vadd.f32 %v6930_v3, %v12765_v7  ;;  %v6931_v57 = vld [vmem:[#allocation4 + $0x1e0] sm:$0xff]  ;;  %v6547_v62 = vmax.f32 %v6483_v34, 0.0 }
 0xa6a   :  { %6590 = vst.msk [vmem:[#allocation7 + $0x128] sm:$0xff] %vm124_vm0, %v6526_v54  ;;  %v6485_v31 = vadd.f32 %v6931_v57, %v12766_v5  ;;  %v6545_v54 = vmax.f32 %v6481_v52, 0.0 }
 0xa6b   :  { %6591 = vst.msk [vmem:[#allocation7 + $0x130] sm:$0xff] %vm124_vm0, %v6527_v9  ;;  %v6486_v9 = vadd.f32 %v6932_v55, %v12767_v24 }
 0xa6c   :  { %6592 = vst.msk [vmem:[#allocation7 + $0x138] sm:$0xff] %vm124_vm0, %v6528_v37  ;;  %v12768_v37 = vld [vmem:[#allocation71_spill] sm:$0xff]  ;;  %v6549_v36 = vmax.f32 %v6485_v31, 0.0 }
 0xa6d   :  { %6593 = vst.msk [vmem:[#allocation7 + $0x140] sm:$0xff] %vm124_vm0, %v6529_v42  ;;  %v6487_v0 = vadd.f32 %v6933_v61, %v12768_v37  ;;  %v6548_v42 = vmax.f32 %v6484_v10, 0.0  ;;  %v6550_v58 = vmax.f32 %v6486_v9, 0.0 }
 0xa6e   :  { %6594 = vst.msk [vmem:[#allocation7 + $0x148] sm:$0xff] %vm124_vm0, %v6530_v20 }
 0xa6f   :  { %6595 = vst.msk [vmem:[#allocation7 + $0x150] sm:$0xff] %vm124_vm0, %v6531_v18  ;;  %v6551_v20 = vmax.f32 %v6487_v0, 0.0 }
 0xa70   :  { %6596 = vst.msk [vmem:[#allocation7 + $0x158] sm:$0xff] %vm124_vm0, %v6532_v26 }
 0xa71   :  { %6597 = vst.msk [vmem:[#allocation7 + $0x160] sm:$0xff] %vm124_vm0, %v6533_v15 }
 0xa72   :  { %6598 = vst.msk [vmem:[#allocation7 + $0x168] sm:$0xff] %vm124_vm0, %v6534_v1 }
 0xa73   :  { %6599 = vst.msk [vmem:[#allocation7 + $0x170] sm:$0xff] %vm124_vm0, %v6535_v27 }
 0xa74   :  { %6600 = vst.msk [vmem:[#allocation7 + $0x178] sm:$0xff] %vm124_vm0, %v6536_v51 }
 0xa75   :  { %6601 = vst.msk [vmem:[#allocation7 + $0x180] sm:$0xff] %vm124_vm0, %v6537_v49 }
 0xa76   :  { %6602 = vst.msk [vmem:[#allocation7 + $0x188] sm:$0xff] %vm124_vm0, %v6538_v43 }
 0xa77   :  { %6603 = vst.msk [vmem:[#allocation7 + $0x190] sm:$0xff] %vm124_vm0, %v6539_v23 }
 0xa78   :  { %6604 = vst.msk [vmem:[#allocation7 + $0x198] sm:$0xff] %vm124_vm0, %v6540_v25 }
 0xa79   :  { %6605 = vst.msk [vmem:[#allocation7 + $0x1a0] sm:$0xff] %vm124_vm0, %v6541_v53 }
 0xa7a   :  { %6606 = vst.msk [vmem:[#allocation7 + $0x1a8] sm:$0xff] %vm124_vm0, %v6542_v33 }
 0xa7b   :  { %6607 = vst.msk [vmem:[#allocation7 + $0x1b0] sm:$0xff] %vm124_vm0, %v6543_v2 }
 0xa7c   :  { %6608 = vst.msk [vmem:[#allocation7 + $0x1b8] sm:$0xff] %vm124_vm0, %v6544_v60 }
 0xa7d   :  { %6609 = vst.msk [vmem:[#allocation7 + $0x1c0] sm:$0xff] %vm124_vm0, %v6545_v54 }
 0xa7e   :  { %6610 = vst.msk [vmem:[#allocation7 + $0x1c8] sm:$0xff] %vm124_vm0, %v6546_v44 }
 0xa7f   :  { %6611 = vst.msk [vmem:[#allocation7 + $0x1d0] sm:$0xff] %vm124_vm0, %v6547_v62 }
 0xa80   :  { %6612 = vst.msk [vmem:[#allocation7 + $0x1d8] sm:$0xff] %vm124_vm0, %v6548_v42 }
 0xa81   :  { %6613 = vst.msk [vmem:[#allocation7 + $0x1e0] sm:$0xff] %vm124_vm0, %v6549_v36 }
 0xa82   :  { %6614 = vst.msk [vmem:[#allocation7 + $0x1e8] sm:$0xff] %vm124_vm0, %v6550_v58 }
 0xa83   :  { %6615 = vst.msk [vmem:[#allocation7 + $0x1f0] sm:$0xff] %vm124_vm0, %v6551_v20 }
 0xa84   :  { %6629 = dma.vmem_to_hbm [thread:$0]  %s6622_s9, 8192, %s6624_s27, [#allocation6], %s6987_s18, %s6987_s18, %s6988_s19  }
 0xa85   :  { %6984 = dma.done.wait [#allocation6], 8192  }
 0xa86   :  { %6985 = vsyncadd [#allocation6], 4294959104 }
 0xa87   :  { %6634 = vsyncpa [#allocation5], 1 }
 0xa88   :  { %6635 = vsyncpa [#allocation6], 1 }

</bundles_post_ra>
